<compile_context>
chip_gen: v5e
topology: v5e:2x2
jax: 0.10.0
libtpu: 0.0.40
codegen_flags: <defaults>
</compile_context>

<pallas_src>
import functools
import math

import jax
import jax.numpy as jnp
from jax import lax
from jax.experimental import pallas as pl
from jax.experimental.pallas import tpu as pltpu

NUM_NUCLEOTIDES = 16
PADDING_IDX = 15


def _embed_kernel(idx_ref, w_ref, out_ref, *, tokens_per_row, vocab_size, chunk_rows):
    """One grid step: embed `block_rows * tokens_per_row` tokens.

    idx_ref : (block_rows, R)    int32   -- R consecutive token ids per row
    w_ref   : (R*V, R*E)         float32 -- block-diagonal copy of the table
    out_ref : (block_rows, R*E)  f32/bf16 -- packed tokens-major output
    """
    r, v = tokens_per_row, vocab_size
    block_rows = out_ref.shape[0]
    n_chunks = block_rows // chunk_rows

    # Split the (tiny) table into bf16-exact high/low parts so the two MXU
    # one-hot matmuls reproduce the f32 table to ~2^-17 relative regardless of
    # the default f32 matmul precision (bf16-truncation parity concern).
    w = w_ref[...]
    w_hi = w.astype(jnp.bfloat16).astype(jnp.float32)
    w_lo = w - w_hi

    # One-hot column j corresponds to (token slot j // V, nucleotide id j % V).
    vocab = lax.broadcasted_iota(jnp.int32, (chunk_rows, r * v), 1)

    def body(c, carry):
        m0 = pl.multiple_of(c * chunk_rows, chunk_rows)
        idx = idx_ref[pl.ds(m0, chunk_rows), :]                 # (chunk_rows, R) int32
        # Packed one-hot: oh[m, ri*V + t] = (idx[m, ri] == t).  Padding tokens
        # (t == 15) select the zeroed padding row of W -> output row is zero,
        # which is exactly `embedding(x) * (x != padding_idx)`.
        oh = jnp.zeros((chunk_rows, r * v), jnp.float32)
        for ri in range(r):                                     # R is small & static
            col = idx[:, ri:ri + 1]                             # (chunk_rows, 1)
            oh = oh + (vocab == col + ri * v).astype(jnp.float32)
        # Gather == one-hot matmul on the MXU (two exact bf16 passes).
        emb = (jnp.dot(oh, w_hi, preferred_element_type=jnp.float32)
               + jnp.dot(oh, w_lo, preferred_element_type=jnp.float32))
        out_ref[pl.ds(m0, chunk_rows), :] = emb.astype(out_ref.dtype)
        return carry

    lax.fori_loop(0, n_chunks, body, 0, unroll=False)


def _choose_block_rows(m_rows, r, e):
    """Packed output rows per grid step.

    Sized so double-buffered output blocks (~6 MiB at E=32) amortise the
    ~0.35 us per-step pipeline overhead while the lane-padded index block
    ((rows, R) int32 pads to 128 lanes in VMEM) plus chunk intermediates stay
    well inside every generation's VMEM (v7x only has 64 MiB physical).
    """
    per_row_bytes = 2 * 4 * r * e + 2 * 4 * 128     # 2x out buffers + 2x padded idx buffers
    budget = 24 * 1024 * 1024
    rows = max(1024, min(16384, (budget // per_row_bytes) // 1024 * 1024))
    # Don't over-allocate for small inputs (keep 1024-row chunk granularity).
    return min(rows, pl.cdiv(m_rows, 1024) * 1024)


def make_embedding_table(embedding_dim, mlm_mode=False, key=None):
    """nn.Embedding(16 (+1 if mlm), embedding_dim, padding_idx=15)-style init:
    rows ~ N(0, 1) with the padding row zeroed."""
    num_embeddings = NUM_NUCLEOTIDES + (1 if mlm_mode else 0)
    key = jax.random.PRNGKey(42) if key is None else key
    table = jax.random.normal(key, (num_embeddings, embedding_dim), dtype=jnp.float32)
    return table.at[PADDING_IDX].set(0.0)


def nucleotide_embedding(inputs, table, *, out_dtype=None):
    """Forward pass of NucleotideEmbeddingLayer.

    inputs : integer nucleotide indices, any leading shape (e.g. (B, S))
    table  : (V, E) float32 embedding table (V = 16, or 17 in mlm_mode)
    returns: inputs.shape + (E,), embedding lookup zeroed where inputs == 15.
    """
    table = jnp.asarray(table)
    V, E = table.shape
    out_dtype = table.dtype if out_dtype is None else out_dtype  # bf16 halves writeback if wanted
    lead_shape = inputs.shape
    N = int(inputs.size)

    # Pack R tokens per output row so the row width R*E is a multiple of 128
    # lanes (unmasked vst + one contiguous HBM write per block).
    R = 128 // math.gcd(E, 128)
    if R > 32:
        # TODO(synk): embedding dims with gcd(E, 128) < 4 (e.g. odd E) would need a
        # huge block-diagonal table; fall back to a plain XLA gather for those.
        out = jnp.take(table, inputs.astype(jnp.int32), axis=0).astype(out_dtype)
        return out * (inputs != PADDING_IDX)[..., None].astype(out_dtype)

    M = pl.cdiv(N, R)                     # packed output rows
    n_pad = M * R

    idx = inputs.reshape(-1).astype(jnp.int32)
    if n_pad != N:
        # TODO(synk): a ragged tail costs one extra copy of the output ([:N] slice
        # below); keep B*S a multiple of R upstream to avoid it.
        idx = jnp.pad(idx, (0, n_pad - N), constant_values=PADDING_IDX)
    idx2d = idx.reshape(M, R)

    # Block-diagonal table with the padding row zeroed (== lookup * padding mask).
    # Note: out-of-range ids silently map to a zero embedding (PyTorch would error).
    table_masked = table.at[PADDING_IDX].set(0.0)
    w = jnp.zeros((R * V, R * E), table.dtype)
    for ri in range(R):
        w = w.at[ri * V:(ri + 1) * V, ri * E:(ri + 1) * E].set(table_masked)

    block_rows = _choose_block_rows(M, R, E)
    chunk_rows = min(block_rows, 1024)
    grid = (pl.cdiv(M, block_rows),)

    out_packed = pl.pallas_call(
        functools.partial(
            _embed_kernel, tokens_per_row=R, vocab_size=V, chunk_rows=chunk_rows
        ),
        out_shape=jax.ShapeDtypeStruct((M, R * E), out_dtype),
        grid_spec=pltpu.PrefetchScalarGridSpec(
            num_scalar_prefetch=0,
            grid=grid,
            in_specs=[
                pl.BlockSpec((block_rows, R), lambda i: (i, 0)),      # token ids
                pl.BlockSpec((R * V, R * E), lambda i: (0, 0)),       # block-diag table
            ],
            out_specs=pl.BlockSpec((block_rows, R * E), lambda i: (i, 0)),
        ),
        compiler_params=pltpu.CompilerParams(
            dimension_semantics=("parallel",),     # shard blocks across v7x's 2 TCs
            vmem_limit_bytes=48 * 1024 * 1024,
        ),
        cost_estimate=pl.CostEstimate(
            flops=2 * N * V * E,
            transcendentals=0,
            bytes_accessed=N * 4
            + N * E * jnp.dtype(out_dtype).itemsize
            + V * E * table.dtype.itemsize,
        ),
    )(idx2d, w)

    out = out_packed.reshape(n_pad, E)    # pure metadata reshape (row-major match)
    if n_pad != N:
        out = out[:N]
    return out.reshape(*lead_shape, E)


def _reference(inputs, table):
    emb = jnp.take(table, inputs.astype(jnp.int32), axis=0)
    mask = (inputs != PADDING_IDX)[..., None].astype(emb.dtype)
    return emb * mask


if __name__ == "__main__":
    embedding_dim = 32
    k_tab, k_in1, k_in2, k_in3 = jax.random.split(jax.random.PRNGKey(0), 4)
    table = make_embedding_table(embedding_dim, mlm_mode=False, key=k_tab)

    # 1) Small shape implied by the module: (batch=2, seq=8) nucleotide indices.
    B, S = 2, 8
    inputs = jax.random.randint(k_in1, (B, S), 0, NUM_NUCLEOTIDES, dtype=jnp.int32)
    inputs = inputs.at[0, 3].set(PADDING_IDX)          # exercise the padding mask
    out = jax.block_until_ready(nucleotide_embedding(inputs, table))
    assert out.shape == (B, S, embedding_dim)
    assert jnp.allclose(out, _reference(inputs, table), rtol=1e-4, atol=1e-6)

    # 2) Ragged token count (N % R != 0): exercises the pad + slice path.
    inputs_r = jax.random.randint(k_in2, (3, 333), 0, NUM_NUCLEOTIDES, dtype=jnp.int32)
    inputs_r = inputs_r.at[1, 7].set(PADDING_IDX)
    out_r = jax.block_until_ready(nucleotide_embedding(inputs_r, table))
    assert out_r.shape == (3, 333, embedding_dim)
    assert jnp.allclose(out_r, _reference(inputs_r, table), rtol=1e-4, atol=1e-6)

    # 3) Moderate shape: multi-block grid + in-kernel chunk loop (the perf path).
    inputs_b = jax.random.randint(k_in3, (16, 4096), 0, NUM_NUCLEOTIDES, dtype=jnp.int32)
    inputs_b = inputs_b.at[:, ::7].set(PADDING_IDX)
    out_b = jax.block_until_ready(nucleotide_embedding(inputs_b, table))
    assert out_b.shape == (16, 4096, embedding_dim)
    assert jnp.allclose(out_b, _reference(inputs_b, table), rtol=1e-4, atol=1e-6)

    print("KERNEL_OK")
</pallas_src>

<mosaic_0001>
module attributes {stable_mosaic.version = 11 : i64} {
  func.func @_embed_kernel(%arg0: i32, %arg1: memref<1024x4xi32, #tpu.memory_space<vmem>>, %arg2: memref<64x128xf32, #tpu.memory_space<vmem>>, %arg3: memref<1024x128xf32, #tpu.memory_space<vmem>>) attributes {dimension_semantics = [#tpu.dimension_semantics<parallel>], iteration_bounds = array<i64: 1>, scalar_prefetch = 0 : i64, scratch_operands = 0 : i64, tpu.core_type = #tpu.core_type<tc>, window_params = [{transform_indices = @transform_0, window_bounds = array<i64: 1024, 4>}, {pipeline_mode = #tpu.pipeline_mode<synchronous>, transform_indices = @transform_1, window_bounds = array<i64: 64, 128>}, {transform_indices = @transform_2, window_bounds = array<i64: 1024, 128>}]} {
    %c0 = arith.constant 0 : index
    %c0_0 = arith.constant 0 : index
    %0 = vector.load %arg2[%c0, %c0_0] : memref<64x128xf32, #tpu.memory_space<vmem>>, vector<64x128xf32>
    %1 = arith.truncf %0 : vector<64x128xf32> to vector<64x128xbf16>
    %2 = arith.extf %1 : vector<64x128xbf16> to vector<64x128xf32>
    %3 = arith.subf %0, %2 : vector<64x128xf32>
    %4 = tpu.iota {dimensions = array<i32: 1>} : vector<1024x64xi32>
    %c0_i32 = arith.constant 0 : i32
    %c1024_i32 = arith.constant 1024 : i32
    %5 = arith.muli %c0_i32, %c1024_i32 : i32
    %6 = tpu.assume_multiple %5, 1024 : i32
    %7 = arith.index_cast %6 : i32 to index
    %c0_1 = arith.constant 0 : index
    %8 = vector.load %arg1[%7, %c0_1] : memref<1024x4xi32, #tpu.memory_space<vmem>>, vector<1024x4xi32>
    %cst = arith.constant 0.000000e+00 : f32
    %9 = vector.broadcast %cst : f32 to vector<1024x64xf32>
    %10 = vector.extract_strided_slice %8 {offsets = [0, 0], sizes = [1024, 1], strides = [1, 1]} : vector<1024x4xi32> to vector<1024x1xi32>
    %c0_i32_2 = arith.constant 0 : i32
    %11 = vector.broadcast %c0_i32_2 : i32 to vector<1024x1xi32>
    %12 = arith.addi %10, %11 : vector<1024x1xi32>
    %13 = vector.broadcast %12 : vector<1024x1xi32> to vector<1024x64xi32>
    %14 = arith.cmpi eq, %4, %13 : vector<1024x64xi32>
    %15 = arith.extui %14 : vector<1024x64xi1> to vector<1024x64xi32>
    %16 = arith.sitofp %15 : vector<1024x64xi32> to vector<1024x64xf32>
    %17 = arith.addf %9, %16 : vector<1024x64xf32>
    %18 = vector.extract_strided_slice %8 {offsets = [0, 1], sizes = [1024, 1], strides = [1, 1]} : vector<1024x4xi32> to vector<1024x1xi32>
    %c16_i32 = arith.constant 16 : i32
    %19 = vector.broadcast %c16_i32 : i32 to vector<1024x1xi32>
    %20 = arith.addi %18, %19 : vector<1024x1xi32>
    %21 = vector.broadcast %20 : vector<1024x1xi32> to vector<1024x64xi32>
    %22 = arith.cmpi eq, %4, %21 : vector<1024x64xi32>
    %23 = arith.extui %22 : vector<1024x64xi1> to vector<1024x64xi32>
    %24 = arith.sitofp %23 : vector<1024x64xi32> to vector<1024x64xf32>
    %25 = arith.addf %17, %24 : vector<1024x64xf32>
    %26 = vector.extract_strided_slice %8 {offsets = [0, 2], sizes = [1024, 1], strides = [1, 1]} : vector<1024x4xi32> to vector<1024x1xi32>
    %c32_i32 = arith.constant 32 : i32
    %27 = vector.broadcast %c32_i32 : i32 to vector<1024x1xi32>
    %28 = arith.addi %26, %27 : vector<1024x1xi32>
    %29 = vector.broadcast %28 : vector<1024x1xi32> to vector<1024x64xi32>
    %30 = arith.cmpi eq, %4, %29 : vector<1024x64xi32>
    %31 = arith.extui %30 : vector<1024x64xi1> to vector<1024x64xi32>
    %32 = arith.sitofp %31 : vector<1024x64xi32> to vector<1024x64xf32>
    %33 = arith.addf %25, %32 : vector<1024x64xf32>
    %34 = vector.extract_strided_slice %8 {offsets = [0, 3], sizes = [1024, 1], strides = [1, 1]} : vector<1024x4xi32> to vector<1024x1xi32>
    %c48_i32 = arith.constant 48 : i32
    %35 = vector.broadcast %c48_i32 : i32 to vector<1024x1xi32>
    %36 = arith.addi %34, %35 : vector<1024x1xi32>
    %37 = vector.broadcast %36 : vector<1024x1xi32> to vector<1024x64xi32>
    %38 = arith.cmpi eq, %4, %37 : vector<1024x64xi32>
    %39 = arith.extui %38 : vector<1024x64xi1> to vector<1024x64xi32>
    %40 = arith.sitofp %39 : vector<1024x64xi32> to vector<1024x64xf32>
    %41 = arith.addf %33, %40 : vector<1024x64xf32>
    %cst_3 = arith.constant dense<0.000000e+00> : vector<1024x128xf32>
    %42 = tpu.matmul %41, %2, %cst_3 {dimension_numbers = #tpu.dot_dimension_numbers<[1], [0], [0], [1], [0, 0, 1, 1], [], []>} : vector<1024x64xf32>, vector<64x128xf32>, vector<1024x128xf32> -> vector<1024x128xf32>
    %cst_4 = arith.constant dense<0.000000e+00> : vector<1024x128xf32>
    %43 = tpu.matmul %41, %3, %cst_4 {dimension_numbers = #tpu.dot_dimension_numbers<[1], [0], [0], [1], [0, 0, 1, 1], [], []>} : vector<1024x64xf32>, vector<64x128xf32>, vector<1024x128xf32> -> vector<1024x128xf32>
    %44 = arith.addf %42, %43 : vector<1024x128xf32>
    %45 = arith.index_cast %6 : i32 to index
    %c0_5 = arith.constant 0 : index
    %46 = vector.load %arg3[%45, %c0_5] : memref<1024x128xf32, #tpu.memory_space<vmem>>, vector<1024x128xf32>
    tpu.vector_store %arg3[%45, %c0_5], %44 {strides = array<i32>} : memref<1024x128xf32, #tpu.memory_space<vmem>>, vector<1024x128xf32>,
    %c1_i32 = arith.constant 1 : i32
    return
  }
  func.func @transform_0(%arg0: i32) -> (i32, i32) {
    %c0_i32 = arith.constant 0 : i32
    %c0_i32_0 = arith.constant 0 : i32
    return %arg0, %c0_i32 : i32, i32
  }
  func.func @transform_1(%arg0: i32) -> (i32, i32) {
    %c0_i32 = arith.constant 0 : i32
    %c0_i32_0 = arith.constant 0 : i32
    %c0_i32_1 = arith.constant 0 : i32
    return %c0_i32, %c0_i32_0 : i32, i32
  }
  func.func @transform_2(%arg0: i32) -> (i32, i32) {
    %c0_i32 = arith.constant 0 : i32
    %c0_i32_0 = arith.constant 0 : i32
    return %arg0, %c0_i32 : i32, i32
  }
}

</mosaic_0001>

<bundles_post_ra>
// kernel: tpu_custom_call.1
= control target key start
LH: loop header
LB: loop body
LE: loop exit
PB: predicated region body
PF: predicated region fallthrough
CT: control target
= control target key end

     0   :  { %7 = vsyncpa [#allocation3], 0  ;;  %s10847_s0 = inlined_call_operand.hbm [shape: s32[4,4], index: 0, kind: input, shape index: {}]   ;;  %s10848_s1 = inlined_call_operand.hbm [shape: f32[64,128], index: 1, kind: input, shape index: {}]   ;;  %s10849_s2 = inlined_call_operand.hbm [shape: f32[4,128], index: 2, kind: output, shape index: {}]  }
   0x1   :  { %8 = vsyncpa [#allocation6], 0 }
   0x2   :  { %9 = vsyncpa [#allocation4], 0 }
   0x3   :  { %13 = vsyncadd [#allocation3], 16320  ;;  %s14_s11 = sshll.u32 %s10847_s0, 4  ;;  %s6597_s12 = smov [#allocation2]   ;;  %s15_s11 = int_to_ptr.hbm [resolvable:$true] %s14_s11 }
   0x4   :  { %s16_s13 = sshll.u32 %s6597_s12, 4  ;;  %s27_s16 = sshll.u32 %s10848_s1, 4  ;;  %s17_s13 = int_to_ptr.vmem [resolvable:$true] %s16_s13  ;;  %s28_s16 = int_to_ptr.hbm [resolvable:$true] %s27_s16 }
   0x5   :  { %s6598_s17 = smov 64   ;;  %s6599_s18 = smov 4  }
   0x6   :  { %22 = dma.hbm_to_vmem [thread:$0]  %s15_s11, 64, %s17_s13, [#allocation3], %s6598_s17, %s6598_s17, %s6599_s18  }
   0x7   :  { %s6600_s19 = smov [#allocation5]   ;;  %s6601_s21 = smov 128  }
   0x8   :  { %s29_s20 = sshll.u32 %s6600_s19, 4  ;;  %s6602_s0 = smov 8   ;;  %s30_s20 = int_to_ptr.vmem [resolvable:$true] %s29_s20 }
   0x9   :  { %35 = dma.hbm_to_vmem [thread:$0]  %s28_s16, 1024, %s30_s20, [#allocation6], %s6601_s21, %s6601_s21, %s6602_s0  }
   0xa   :  { %6591 = dma.done.wait [#allocation3], 16384  }
   0xb   :  { %6592 = vsyncadd [#allocation3], 4294950912 }
   0xc   :  { %6593 = dma.done.wait [#allocation6], 1024  }
   0xd   :  { %6594 = vsyncadd [#allocation6], 4294966272  ;;  %v6603_v0 = vmov 0   ;;  %v6633_v1 = vld [vmem:[#allocation2 + $0x20] sm:$0xff]  ;;  %v6635_v2 = vld [vmem:[#allocation2 + $0x10] sm:$0xff]  ;;  %vm4174_vm4 = vcmask 523264  }
   0xe   :  { %6307 = vset.pattern.permute.xlu2 %v6603_v0  ;;  %6306 = vset.pattern.permute.xlu1 %v6603_v0  ;;  %v6637_v3 = vld [vmem:[#allocation2] sm:$0xff]  ;;  %v6642_v4 = vld [vmem:[#allocation2 + $0x28] sm:$0xff]  ;;  %v6644_v5 = vld [vmem:[#allocation2 + $0x18] sm:$0xff] }
   0xf   :  { %6305 = vset.pattern.permute.xlu0 %v6603_v0  ;;  %219 = vperm.xlu2 %6307, %v6633_v1   ;;  %v6646_v6 = vld [vmem:[#allocation2 + $0x8] sm:$0xff]  ;;  %v6651_v7 = vld [vmem:[#allocation2 + $0x40] sm:$0xff]  ;;  %v6653_v8 = vld [vmem:[#allocation2 + $0x38] sm:$0xff] }
  0x10   :  { %213 = vperm.xlu1 %6306, %v6635_v2   ;;  %207 = vperm.xlu0 %6305, %v6637_v3   ;;  %v6655_v9 = vld [vmem:[#allocation2 + $0x30] sm:$0xff]  ;;  %v6660_v10 = vld [vmem:[#allocation2 + $0x58] sm:$0xff]  ;;  %v6664_v12 = vld [vmem:[#allocation2 + $0x48] sm:$0xff] }
  0x11   :  { %v6662_v11 = vld [vmem:[#allocation2 + $0x50] sm:$0xff]  ;;  %v6671_v14 = vld [vmem:[#allocation2 + $0x68] sm:$0xff]  ;;  %v6673_v15 = vld [vmem:[#allocation2 + $0x60] sm:$0xff] }
  0x12   :  { %v6669_v13 = vld [vmem:[#allocation2 + $0x70] sm:$0xff]  ;;  %v6678_v16 = vld [vmem:[#allocation2 + $0x88] sm:$0xff]  ;;  %v6680_v17 = vld [vmem:[#allocation2 + $0x80] sm:$0xff] }
  0x13   :  { %v6682_v18 = vld [vmem:[#allocation2 + $0x78] sm:$0xff]  ;;  %v6687_v19 = vld [vmem:[#allocation2 + $0xa0] sm:$0xff]  ;;  %v6691_v21 = vld [vmem:[#allocation2 + $0x90] sm:$0xff] }
  0x14   :  { %v6689_v20 = vld [vmem:[#allocation2 + $0x98] sm:$0xff]  ;;  %v6698_v23 = vld [vmem:[#allocation2 + $0xb0] sm:$0xff]  ;;  %v6700_v24 = vld [vmem:[#allocation2 + $0xa8] sm:$0xff] }
  0x15   :  { %v6696_v22 = vld [vmem:[#allocation2 + $0xb8] sm:$0xff]  ;;  %v6705_v25 = vld [vmem:[#allocation2 + $0xd0] sm:$0xff]  ;;  %v6707_v26 = vld [vmem:[#allocation2 + $0xc8] sm:$0xff] }
  0x16   :  { %v6709_v27 = vld [vmem:[#allocation2 + $0xc0] sm:$0xff]  ;;  %v6714_v28 = vld [vmem:[#allocation2 + $0xe8] sm:$0xff]  ;;  %v6718_v30 = vld [vmem:[#allocation2 + $0xd8] sm:$0xff] }
  0x17   :  { %222 = vperm.xlu2 %6307, %v6642_v4   ;;  %v6716_v29 = vld [vmem:[#allocation2 + $0xe0] sm:$0xff]  ;;  %v6725_v32 = vld [vmem:[#allocation2 + $0xf8] sm:$0xff]  ;;  %v6727_v33 = vld [vmem:[#allocation2 + $0xf0] sm:$0xff] }
  0x18   :  { %216 = vperm.xlu1 %6306, %v6644_v5   ;;  %210 = vperm.xlu0 %6305, %v6646_v6   ;;  %v6723_v31 = vld [vmem:[#allocation2 + $0x100] sm:$0xff]  ;;  %v6732_v34 = vld [vmem:[#allocation2 + $0x118] sm:$0xff]  ;;  %v6734_v35 = vld [vmem:[#allocation2 + $0x110] sm:$0xff] }
  0x19   :  { %v6736_v36 = vld [vmem:[#allocation2 + $0x108] sm:$0xff]  ;;  %v6743_v38 = vld [vmem:[#allocation2 + $0x130] sm:$0xff]  ;;  %v6747_v40 = vld [vmem:[#allocation2 + $0x120] sm:$0xff] }
  0x1a   :  { %v6745_v39 = vld [vmem:[#allocation2 + $0x128] sm:$0xff]  ;;  %v6756_v43 = vld [vmem:[#allocation2 + $0x140] sm:$0xff]  ;;  %v6758_v44 = vld [vmem:[#allocation2 + $0x138] sm:$0xff] }
  0x1b   :  { %v6754_v42 = vld [vmem:[#allocation2 + $0x148] sm:$0xff]  ;;  %v6765_v46 = vld [vmem:[#allocation2 + $0x160] sm:$0xff]  ;;  %v6767_v47 = vld [vmem:[#allocation2 + $0x158] sm:$0xff] }
  0x1c   :  { %v6769_v48 = vld [vmem:[#allocation2 + $0x150] sm:$0xff]  ;;  %v6780_v52 = vld [vmem:[#allocation2 + $0x178] sm:$0xff]  ;;  %v6784_v54 = vld [vmem:[#allocation2 + $0x168] sm:$0xff] }
  0x1d   :  { %v6782_v53 = vld [vmem:[#allocation2 + $0x170] sm:$0xff]  ;;  %v6797_v59 = vld [vmem:[#allocation2 + $0x188] sm:$0xff]  ;;  %v6799_v60 = vld [vmem:[#allocation2 + $0x180] sm:$0xff] }
  0x1e   :  { %v6795_v58 = vld [vmem:[#allocation2 + $0x190] sm:$0xff]  ;;  %v6810_v0 = vld [vmem:[#allocation2 + $0x1a8] sm:$0xff] }
  0x1f   :  { %231 = vperm.xlu2 %6307, %v6651_v7   ;;  %11168 = vst [vmem:[#allocation23_spill] sm:$0xff] %v6810_v0 }
  0x20   :  { %228 = vperm.xlu1 %6306, %v6653_v8   ;;  %225 = vperm.xlu0 %6305, %v6655_v9  }
  0x27   :  { %240 = vperm.xlu2 %6307, %v6660_v10  }
  0x28   :  { %237 = vperm.xlu1 %6306, %v6662_v11   ;;  %234 = vperm.xlu0 %6305, %v6664_v12  }
  0x2f   :  { %249 = vperm.xlu2 %6307, %v6669_v13  }
  0x30   :  { %246 = vperm.xlu1 %6306, %v6671_v14   ;;  %243 = vperm.xlu0 %6305, %v6673_v15  }
  0x37   :  { %258 = vperm.xlu2 %6307, %v6678_v16  }
  0x38   :  { %255 = vperm.xlu1 %6306, %v6680_v17   ;;  %252 = vperm.xlu0 %6305, %v6682_v18  }
  0x3f   :  { %267 = vperm.xlu2 %6307, %v6687_v19  }
  0x40   :  { %264 = vperm.xlu1 %6306, %v6689_v20   ;;  %261 = vperm.xlu0 %6305, %v6691_v21  }
  0x47   :  { %276 = vperm.xlu2 %6307, %v6696_v22  }
  0x48   :  { %273 = vperm.xlu1 %6306, %v6698_v23   ;;  %270 = vperm.xlu0 %6305, %v6700_v24  }
  0x4f   :  { %285 = vperm.xlu2 %6307, %v6705_v25  }
  0x50   :  { %282 = vperm.xlu1 %6306, %v6707_v26   ;;  %279 = vperm.xlu0 %6305, %v6709_v27  }
  0x57   :  { %294 = vperm.xlu2 %6307, %v6714_v28  }
  0x58   :  { %291 = vperm.xlu1 %6306, %v6716_v29   ;;  %288 = vperm.xlu0 %6305, %v6718_v30  }
  0x5f   :  { %303 = vperm.xlu2 %6307, %v6723_v31  }
  0x60   :  { %300 = vperm.xlu1 %6306, %v6725_v32   ;;  %297 = vperm.xlu0 %6305, %v6727_v33  }
  0x67   :  { %312 = vperm.xlu2 %6307, %v6732_v34  }
  0x68   :  { %309 = vperm.xlu1 %6306, %v6734_v35   ;;  %306 = vperm.xlu0 %6305, %v6736_v36  }
  0x69   :  { %v6741_v37 = vpop.permute.xlu2 %219 }
  0x6a   :  { %11156 = vst [vmem:[#allocation11_spill] sm:$0xff] %v6741_v37  ;;  %v6829_v37 = vld [vmem:[#allocation2 + $0x1b0] sm:$0xff] }
  0x6f   :  { %321 = vperm.xlu2 %6307, %v6743_v38  }
  0x70   :  { %318 = vperm.xlu1 %6306, %v6745_v39   ;;  %315 = vperm.xlu0 %6305, %v6747_v40  }
  0x71   :  { %v6752_v41 = vpop.permute.xlu2 %222 }
  0x72   :  { %11157 = vst [vmem:[#allocation12_spill] sm:$0xff] %v6752_v41 }
  0x77   :  { %330 = vperm.xlu2 %6307, %v6754_v42  }
  0x78   :  { %327 = vperm.xlu1 %6306, %v6756_v43   ;;  %324 = vperm.xlu0 %6305, %v6758_v44  }
  0x79   :  { %v6763_v45 = vpop.permute.xlu2 %231 }
  0x7a   :  { %11158 = vst [vmem:[#allocation13_spill] sm:$0xff] %v6763_v45 }
  0x7f   :  { %339 = vperm.xlu2 %6307, %v6765_v46  }
  0x80   :  { %336 = vperm.xlu1 %6306, %v6767_v47   ;;  %333 = vperm.xlu0 %6305, %v6769_v48  }
  0x81   :  { %v6774_v49 = vpop.permute.xlu2 %240 }
  0x82   :  { %11159 = vst [vmem:[#allocation14_spill] sm:$0xff] %v6774_v49  ;;  %v6776_v50 = vpop.permute.xlu1 %213  ;;  %v6778_v51 = vpop.permute.xlu0 %207  ;;  %v6814_v49 = vld [vmem:[#allocation2 + $0x198] sm:$0xff] }
  0x83   :  { %11160 = vst [vmem:[#allocation15_spill] sm:$0xff] %v6776_v50 }
  0x84   :  { %11161 = vst [vmem:[#allocation16_spill] sm:$0xff] %v6778_v51 }
  0x87   :  { %348 = vperm.xlu2 %6307, %v6780_v52  }
  0x88   :  { %345 = vperm.xlu1 %6306, %v6782_v53   ;;  %342 = vperm.xlu0 %6305, %v6784_v54  }
  0x89   :  { %v6789_v55 = vpop.permute.xlu2 %249 }
  0x8a   :  { %11162 = vst [vmem:[#allocation17_spill] sm:$0xff] %v6789_v55  ;;  %v6791_v56 = vpop.permute.xlu1 %216  ;;  %v6793_v57 = vpop.permute.xlu0 %210  ;;  %v6812_v55 = vld [vmem:[#allocation2 + $0x1a0] sm:$0xff] }
  0x8b   :  { %11163 = vst [vmem:[#allocation18_spill] sm:$0xff] %v6791_v56 }
  0x8c   :  { %11164 = vst [vmem:[#allocation19_spill] sm:$0xff] %v6793_v57  ;;  %v6844_v57 = vld [vmem:[#allocation2 + $0x1c8] sm:$0xff] }
  0x8d   :  { %11179 = vst [vmem:[#allocation34_spill] sm:$0xff] %v6844_v57 }
  0x8f   :  { %357 = vperm.xlu2 %6307, %v6795_v58  }
  0x90   :  { %354 = vperm.xlu1 %6306, %v6797_v59   ;;  %351 = vperm.xlu0 %6305, %v6799_v60  }
  0x91   :  { %v6804_v61 = vpop.permute.xlu2 %258 }
  0x92   :  { %11165 = vst [vmem:[#allocation20_spill] sm:$0xff] %v6804_v61  ;;  %v6806_v62 = vpop.permute.xlu1 %228  ;;  %v6808_v63 = vpop.permute.xlu0 %225 }
  0x93   :  { %11166 = vst [vmem:[#allocation21_spill] sm:$0xff] %v6806_v62  ;;  %v6825_v62 = vld [vmem:[#allocation2 + $0x1c0] sm:$0xff] }
  0x94   :  { %11167 = vst [vmem:[#allocation22_spill] sm:$0xff] %v6808_v63  ;;  %v6827_v63 = vld [vmem:[#allocation2 + $0x1b8] sm:$0xff] }
  0x95   :  { %11172 = vst [vmem:[#allocation27_spill] sm:$0xff] %v6825_v62 }
  0x96   :  { %11173 = vst [vmem:[#allocation28_spill] sm:$0xff] %v6827_v63 }
  0x97   :  { %366 = vperm.xlu2 %6307, %v6810_v0   ;;  %v6604_v0 = vmov 1  }
  0x98   :  { %363 = vperm.xlu1 %6306, %v6812_v55   ;;  %360 = vperm.xlu0 %6305, %v6814_v49  }
  0x99   :  { %v6819_v45 = vpop.permute.xlu2 %267 }
  0x9a   :  { %11169 = vst [vmem:[#allocation24_spill] sm:$0xff] %v6819_v45  ;;  %v6821_v41 = vpop.permute.xlu1 %237  ;;  %v6823_v61 = vpop.permute.xlu0 %234 }
  0x9b   :  { %11170 = vst [vmem:[#allocation25_spill] sm:$0xff] %v6821_v41  ;;  %v6840_v41 = vld [vmem:[#allocation2 + $0x1d8] sm:$0xff] }
  0x9c   :  { %11171 = vst [vmem:[#allocation26_spill] sm:$0xff] %v6823_v61  ;;  %v6842_v61 = vld [vmem:[#allocation2 + $0x1d0] sm:$0xff] }
  0x9d   :  { %11177 = vst [vmem:[#allocation32_spill] sm:$0xff] %v6840_v41 }
  0x9e   :  { %11178 = vst [vmem:[#allocation33_spill] sm:$0xff] %v6842_v61 }
  0x9f   :  { %375 = vperm.xlu2 %6307, %v6825_v62  }
  0xa0   :  { %372 = vperm.xlu1 %6306, %v6827_v63   ;;  %369 = vperm.xlu0 %6305, %v6829_v37   ;;  %v6859_v63 = vld [vmem:[#allocation2 + $0x1e0] sm:$0xff] }
  0xa1   :  { %v6834_v56 = vpop.permute.xlu2 %276  ;;  %11185 = vst [vmem:[#allocation40_spill] sm:$0xff] %v6859_v63 }
  0xa2   :  { %11174 = vst [vmem:[#allocation29_spill] sm:$0xff] %v6834_v56  ;;  %v6836_v50 = vpop.permute.xlu1 %246  ;;  %v6838_v45 = vpop.permute.xlu0 %243 }
  0xa3   :  { %11175 = vst [vmem:[#allocation30_spill] sm:$0xff] %v6836_v50  ;;  %v6855_v50 = vld [vmem:[#allocation2 + $0x1f0] sm:$0xff] }
  0xa4   :  { %11176 = vst [vmem:[#allocation31_spill] sm:$0xff] %v6838_v45  ;;  %v6857_v45 = vld [vmem:[#allocation2 + $0x1e8] sm:$0xff] }
  0xa5   :  { %11183 = vst [vmem:[#allocation38_spill] sm:$0xff] %v6855_v50 }
  0xa6   :  { %11184 = vst [vmem:[#allocation39_spill] sm:$0xff] %v6857_v45 }
  0xa7   :  { %384 = vperm.xlu2 %6307, %v6840_v41  }
  0xa8   :  { %381 = vperm.xlu1 %6306, %v6842_v61   ;;  %378 = vperm.xlu0 %6305, %v6844_v57   ;;  %v6874_v57 = vld [vmem:[#allocation2 + $0x1f8] sm:$0xff] }
  0xa9   :  { %v6849_v51 = vpop.permute.xlu2 %285  ;;  %11191 = vst [vmem:[#allocation46_spill] sm:$0xff] %v6874_v57 }
  0xaa   :  { %11180 = vst [vmem:[#allocation35_spill] sm:$0xff] %v6849_v51  ;;  %v6851_v62 = vpop.permute.xlu1 %255  ;;  %v6853_v56 = vpop.permute.xlu0 %252 }
  0xab   :  { %11181 = vst [vmem:[#allocation36_spill] sm:$0xff] %v6851_v62  ;;  %v6870_v62 = vld [vmem:[#allocation2 + $0x208] sm:$0xff] }
  0xac   :  { %11182 = vst [vmem:[#allocation37_spill] sm:$0xff] %v6853_v56  ;;  %v6872_v56 = vld [vmem:[#allocation2 + $0x200] sm:$0xff] }
  0xad   :  { %11189 = vst [vmem:[#allocation44_spill] sm:$0xff] %v6870_v62 }
  0xae   :  { %11190 = vst [vmem:[#allocation45_spill] sm:$0xff] %v6872_v56 }
  0xaf   :  { %393 = vperm.xlu2 %6307, %v6855_v50  }
  0xb0   :  { %390 = vperm.xlu1 %6306, %v6857_v45   ;;  %387 = vperm.xlu0 %6305, %v6859_v63   ;;  %v6889_v63 = vld [vmem:[#allocation2 + $0x210] sm:$0xff] }
  0xb1   :  { %v6864_v41 = vpop.permute.xlu2 %294  ;;  %11197 = vst [vmem:[#allocation52_spill] sm:$0xff] %v6889_v63 }
  0xb2   :  { %11186 = vst [vmem:[#allocation41_spill] sm:$0xff] %v6864_v41  ;;  %v6866_v61 = vpop.permute.xlu1 %264  ;;  %v6868_v51 = vpop.permute.xlu0 %261 }
  0xb3   :  { %11187 = vst [vmem:[#allocation42_spill] sm:$0xff] %v6866_v61  ;;  %v6885_v61 = vld [vmem:[#allocation2 + $0x220] sm:$0xff] }
  0xb4   :  { %11188 = vst [vmem:[#allocation43_spill] sm:$0xff] %v6868_v51  ;;  %v6887_v51 = vld [vmem:[#allocation2 + $0x218] sm:$0xff] }
  0xb5   :  { %11195 = vst [vmem:[#allocation50_spill] sm:$0xff] %v6885_v61 }
  0xb6   :  { %11196 = vst [vmem:[#allocation51_spill] sm:$0xff] %v6887_v51 }
  0xb7   :  { %402 = vperm.xlu2 %6307, %v6870_v62  }
  0xb8   :  { %399 = vperm.xlu1 %6306, %v6872_v56   ;;  %396 = vperm.xlu0 %6305, %v6874_v57   ;;  %v6904_v57 = vld [vmem:[#allocation2 + $0x228] sm:$0xff] }
  0xb9   :  { %v6879_v50 = vpop.permute.xlu2 %303  ;;  %11203 = vst [vmem:[#allocation58_spill] sm:$0xff] %v6904_v57 }
  0xba   :  { %11192 = vst [vmem:[#allocation47_spill] sm:$0xff] %v6879_v50  ;;  %v6881_v45 = vpop.permute.xlu1 %273  ;;  %v6883_v41 = vpop.permute.xlu0 %270 }
  0xbb   :  { %11193 = vst [vmem:[#allocation48_spill] sm:$0xff] %v6881_v45  ;;  %v6900_v45 = vld [vmem:[#allocation2 + $0x238] sm:$0xff] }
  0xbc   :  { %11194 = vst [vmem:[#allocation49_spill] sm:$0xff] %v6883_v41  ;;  %v6902_v41 = vld [vmem:[#allocation2 + $0x230] sm:$0xff] }
  0xbd   :  { %11201 = vst [vmem:[#allocation56_spill] sm:$0xff] %v6900_v45 }
  0xbe   :  { %11202 = vst [vmem:[#allocation57_spill] sm:$0xff] %v6902_v41 }
  0xbf   :  { %411 = vperm.xlu2 %6307, %v6885_v61  }
  0xc0   :  { %408 = vperm.xlu1 %6306, %v6887_v51   ;;  %405 = vperm.xlu0 %6305, %v6889_v63   ;;  %v6919_v63 = vld [vmem:[#allocation2 + $0x240] sm:$0xff] }
  0xc1   :  { %v6894_v62 = vpop.permute.xlu2 %312  ;;  %11209 = vst [vmem:[#allocation64_spill] sm:$0xff] %v6919_v63 }
  0xc2   :  { %11198 = vst [vmem:[#allocation53_spill] sm:$0xff] %v6894_v62  ;;  %v6896_v56 = vpop.permute.xlu1 %282  ;;  %v6898_v50 = vpop.permute.xlu0 %279 }
  0xc3   :  { %11199 = vst [vmem:[#allocation54_spill] sm:$0xff] %v6896_v56  ;;  %v6915_v56 = vld [vmem:[#allocation2 + $0x250] sm:$0xff] }
  0xc4   :  { %11200 = vst [vmem:[#allocation55_spill] sm:$0xff] %v6898_v50  ;;  %v6917_v50 = vld [vmem:[#allocation2 + $0x248] sm:$0xff] }
  0xc5   :  { %11207 = vst [vmem:[#allocation62_spill] sm:$0xff] %v6915_v56 }
  0xc6   :  { %11208 = vst [vmem:[#allocation63_spill] sm:$0xff] %v6917_v50 }
  0xc7   :  { %420 = vperm.xlu2 %6307, %v6900_v45  }
  0xc8   :  { %417 = vperm.xlu1 %6306, %v6902_v41   ;;  %414 = vperm.xlu0 %6305, %v6904_v57   ;;  %v6934_v57 = vld [vmem:[#allocation2 + $0x258] sm:$0xff] }
  0xc9   :  { %v6909_v61 = vpop.permute.xlu2 %321  ;;  %11215 = vst [vmem:[#allocation70_spill] sm:$0xff] %v6934_v57 }
  0xca   :  { %11204 = vst [vmem:[#allocation59_spill] sm:$0xff] %v6909_v61  ;;  %v6911_v51 = vpop.permute.xlu1 %291  ;;  %v6913_v62 = vpop.permute.xlu0 %288 }
  0xcb   :  { %11205 = vst [vmem:[#allocation60_spill] sm:$0xff] %v6911_v51  ;;  %v6930_v51 = vld [vmem:[#allocation2 + $0x268] sm:$0xff] }
  0xcc   :  { %11206 = vst [vmem:[#allocation61_spill] sm:$0xff] %v6913_v62  ;;  %v6932_v62 = vld [vmem:[#allocation2 + $0x260] sm:$0xff] }
  0xcd   :  { %11213 = vst [vmem:[#allocation68_spill] sm:$0xff] %v6930_v51 }
  0xce   :  { %11214 = vst [vmem:[#allocation69_spill] sm:$0xff] %v6932_v62 }
  0xcf   :  { %429 = vperm.xlu2 %6307, %v6915_v56  }
  0xd0   :  { %426 = vperm.xlu1 %6306, %v6917_v50   ;;  %423 = vperm.xlu0 %6305, %v6919_v63   ;;  %v6949_v63 = vld [vmem:[#allocation2 + $0x270] sm:$0xff] }
  0xd1   :  { %v6924_v45 = vpop.permute.xlu2 %330  ;;  %11221 = vst [vmem:[#allocation76_spill] sm:$0xff] %v6949_v63 }
  0xd2   :  { %11210 = vst [vmem:[#allocation65_spill] sm:$0xff] %v6924_v45  ;;  %v6926_v41 = vpop.permute.xlu1 %300  ;;  %v6928_v61 = vpop.permute.xlu0 %297 }
  0xd3   :  { %11211 = vst [vmem:[#allocation66_spill] sm:$0xff] %v6926_v41  ;;  %v6945_v41 = vld [vmem:[#allocation2 + $0x280] sm:$0xff] }
  0xd4   :  { %11212 = vst [vmem:[#allocation67_spill] sm:$0xff] %v6928_v61  ;;  %v6947_v61 = vld [vmem:[#allocation2 + $0x278] sm:$0xff] }
  0xd5   :  { %11219 = vst [vmem:[#allocation74_spill] sm:$0xff] %v6945_v41 }
  0xd6   :  { %11220 = vst [vmem:[#allocation75_spill] sm:$0xff] %v6947_v61 }
  0xd7   :  { %438 = vperm.xlu2 %6307, %v6930_v51  }
  0xd8   :  { %435 = vperm.xlu1 %6306, %v6932_v62   ;;  %432 = vperm.xlu0 %6305, %v6934_v57   ;;  %v6964_v57 = vld [vmem:[#allocation2 + $0x288] sm:$0xff] }
  0xd9   :  { %v6939_v56 = vpop.permute.xlu2 %339  ;;  %11227 = vst [vmem:[#allocation82_spill] sm:$0xff] %v6964_v57 }
  0xda   :  { %11216 = vst [vmem:[#allocation71_spill] sm:$0xff] %v6939_v56  ;;  %v6941_v50 = vpop.permute.xlu1 %309  ;;  %v6943_v45 = vpop.permute.xlu0 %306 }
  0xdb   :  { %11217 = vst [vmem:[#allocation72_spill] sm:$0xff] %v6941_v50  ;;  %v6960_v50 = vld [vmem:[#allocation2 + $0x298] sm:$0xff] }
  0xdc   :  { %11218 = vst [vmem:[#allocation73_spill] sm:$0xff] %v6943_v45  ;;  %v6962_v45 = vld [vmem:[#allocation2 + $0x290] sm:$0xff] }
  0xdd   :  { %11225 = vst [vmem:[#allocation80_spill] sm:$0xff] %v6960_v50 }
  0xde   :  { %11226 = vst [vmem:[#allocation81_spill] sm:$0xff] %v6962_v45 }
  0xdf   :  { %447 = vperm.xlu2 %6307, %v6945_v41  }
  0xe0   :  { %444 = vperm.xlu1 %6306, %v6947_v61   ;;  %441 = vperm.xlu0 %6305, %v6949_v63   ;;  %v6979_v63 = vld [vmem:[#allocation2 + $0x2a0] sm:$0xff] }
  0xe1   :  { %v6954_v51 = vpop.permute.xlu2 %348  ;;  %11233 = vst [vmem:[#allocation88_spill] sm:$0xff] %v6979_v63 }
  0xe2   :  { %11222 = vst [vmem:[#allocation77_spill] sm:$0xff] %v6954_v51  ;;  %v6956_v62 = vpop.permute.xlu1 %318  ;;  %v6958_v56 = vpop.permute.xlu0 %315 }
  0xe3   :  { %11223 = vst [vmem:[#allocation78_spill] sm:$0xff] %v6956_v62  ;;  %v6975_v62 = vld [vmem:[#allocation2 + $0x2b0] sm:$0xff] }
  0xe4   :  { %11224 = vst [vmem:[#allocation79_spill] sm:$0xff] %v6958_v56  ;;  %v6977_v56 = vld [vmem:[#allocation2 + $0x2a8] sm:$0xff] }
  0xe5   :  { %11231 = vst [vmem:[#allocation86_spill] sm:$0xff] %v6975_v62 }
  0xe6   :  { %11232 = vst [vmem:[#allocation87_spill] sm:$0xff] %v6977_v56 }
  0xe7   :  { %456 = vperm.xlu2 %6307, %v6960_v50  }
  0xe8   :  { %453 = vperm.xlu1 %6306, %v6962_v45   ;;  %450 = vperm.xlu0 %6305, %v6964_v57   ;;  %v6994_v57 = vld [vmem:[#allocation2 + $0x2b8] sm:$0xff] }
  0xe9   :  { %v6969_v41 = vpop.permute.xlu2 %357  ;;  %11239 = vst [vmem:[#allocation94_spill] sm:$0xff] %v6994_v57 }
  0xea   :  { %11228 = vst [vmem:[#allocation83_spill] sm:$0xff] %v6969_v41  ;;  %v6971_v61 = vpop.permute.xlu1 %327  ;;  %v6973_v51 = vpop.permute.xlu0 %324 }
  0xeb   :  { %11229 = vst [vmem:[#allocation84_spill] sm:$0xff] %v6971_v61  ;;  %v6990_v61 = vld [vmem:[#allocation2 + $0x2c8] sm:$0xff] }
  0xec   :  { %11230 = vst [vmem:[#allocation85_spill] sm:$0xff] %v6973_v51  ;;  %v6992_v51 = vld [vmem:[#allocation2 + $0x2c0] sm:$0xff] }
  0xed   :  { %11237 = vst [vmem:[#allocation92_spill] sm:$0xff] %v6990_v61 }
  0xee   :  { %11238 = vst [vmem:[#allocation93_spill] sm:$0xff] %v6992_v51 }
  0xef   :  { %465 = vperm.xlu2 %6307, %v6975_v62  }
  0xf0   :  { %462 = vperm.xlu1 %6306, %v6977_v56   ;;  %459 = vperm.xlu0 %6305, %v6979_v63   ;;  %v7009_v63 = vld [vmem:[#allocation2 + $0x2d0] sm:$0xff] }
  0xf1   :  { %v6984_v50 = vpop.permute.xlu2 %366  ;;  %11245 = vst [vmem:[#allocation100_spill] sm:$0xff] %v7009_v63 }
  0xf2   :  { %11234 = vst [vmem:[#allocation89_spill] sm:$0xff] %v6984_v50  ;;  %v6986_v45 = vpop.permute.xlu1 %336  ;;  %v6988_v41 = vpop.permute.xlu0 %333 }
  0xf3   :  { %11235 = vst [vmem:[#allocation90_spill] sm:$0xff] %v6986_v45  ;;  %v7005_v45 = vld [vmem:[#allocation2 + $0x2e0] sm:$0xff] }
  0xf4   :  { %11236 = vst [vmem:[#allocation91_spill] sm:$0xff] %v6988_v41  ;;  %v7007_v41 = vld [vmem:[#allocation2 + $0x2d8] sm:$0xff] }
  0xf5   :  { %11243 = vst [vmem:[#allocation98_spill] sm:$0xff] %v7005_v45 }
  0xf6   :  { %11244 = vst [vmem:[#allocation99_spill] sm:$0xff] %v7007_v41 }
  0xf7   :  { %474 = vperm.xlu2 %6307, %v6990_v61  }
  0xf8   :  { %471 = vperm.xlu1 %6306, %v6992_v51   ;;  %468 = vperm.xlu0 %6305, %v6994_v57   ;;  %v7024_v57 = vld [vmem:[#allocation2 + $0x2e8] sm:$0xff] }
  0xf9   :  { %v6999_v62 = vpop.permute.xlu2 %375  ;;  %11251 = vst [vmem:[#allocation106_spill] sm:$0xff] %v7024_v57 }
  0xfa   :  { %11240 = vst [vmem:[#allocation95_spill] sm:$0xff] %v6999_v62  ;;  %v7001_v56 = vpop.permute.xlu1 %345  ;;  %v7003_v50 = vpop.permute.xlu0 %342 }
  0xfb   :  { %11241 = vst [vmem:[#allocation96_spill] sm:$0xff] %v7001_v56  ;;  %v7020_v56 = vld [vmem:[#allocation2 + $0x2f8] sm:$0xff] }
  0xfc   :  { %11242 = vst [vmem:[#allocation97_spill] sm:$0xff] %v7003_v50  ;;  %v7022_v50 = vld [vmem:[#allocation2 + $0x2f0] sm:$0xff] }
  0xfd   :  { %11249 = vst [vmem:[#allocation104_spill] sm:$0xff] %v7020_v56 }
  0xfe   :  { %11250 = vst [vmem:[#allocation105_spill] sm:$0xff] %v7022_v50 }
  0xff   :  { %483 = vperm.xlu2 %6307, %v7005_v45  }
 0x100   :  { %480 = vperm.xlu1 %6306, %v7007_v41   ;;  %477 = vperm.xlu0 %6305, %v7009_v63   ;;  %v7039_v63 = vld [vmem:[#allocation2 + $0x300] sm:$0xff] }
 0x101   :  { %v7014_v61 = vpop.permute.xlu2 %384  ;;  %11257 = vst [vmem:[#allocation112_spill] sm:$0xff] %v7039_v63 }
 0x102   :  { %11246 = vst [vmem:[#allocation101_spill] sm:$0xff] %v7014_v61  ;;  %v7016_v51 = vpop.permute.xlu1 %354  ;;  %v7018_v62 = vpop.permute.xlu0 %351 }
 0x103   :  { %11247 = vst [vmem:[#allocation102_spill] sm:$0xff] %v7016_v51  ;;  %v7035_v51 = vld [vmem:[#allocation2 + $0x310] sm:$0xff] }
 0x104   :  { %11248 = vst [vmem:[#allocation103_spill] sm:$0xff] %v7018_v62  ;;  %v7037_v62 = vld [vmem:[#allocation2 + $0x308] sm:$0xff] }
 0x105   :  { %11255 = vst [vmem:[#allocation110_spill] sm:$0xff] %v7035_v51 }
 0x106   :  { %11256 = vst [vmem:[#allocation111_spill] sm:$0xff] %v7037_v62 }
 0x107   :  { %492 = vperm.xlu2 %6307, %v7020_v56  }
 0x108   :  { %489 = vperm.xlu1 %6306, %v7022_v50   ;;  %486 = vperm.xlu0 %6305, %v7024_v57   ;;  %v7054_v57 = vld [vmem:[#allocation2 + $0x318] sm:$0xff] }
 0x109   :  { %v7029_v45 = vpop.permute.xlu2 %393  ;;  %11263 = vst [vmem:[#allocation118_spill] sm:$0xff] %v7054_v57 }
 0x10a   :  { %11252 = vst [vmem:[#allocation107_spill] sm:$0xff] %v7029_v45  ;;  %v7031_v41 = vpop.permute.xlu1 %363  ;;  %v7033_v61 = vpop.permute.xlu0 %360 }
 0x10b   :  { %11253 = vst [vmem:[#allocation108_spill] sm:$0xff] %v7031_v41  ;;  %v7050_v41 = vld [vmem:[#allocation2 + $0x328] sm:$0xff] }
 0x10c   :  { %11254 = vst [vmem:[#allocation109_spill] sm:$0xff] %v7033_v61  ;;  %v7052_v61 = vld [vmem:[#allocation2 + $0x320] sm:$0xff] }
 0x10d   :  { %11261 = vst [vmem:[#allocation116_spill] sm:$0xff] %v7050_v41 }
 0x10e   :  { %11262 = vst [vmem:[#allocation117_spill] sm:$0xff] %v7052_v61 }
 0x10f   :  { %501 = vperm.xlu2 %6307, %v7035_v51  }
 0x110   :  { %498 = vperm.xlu1 %6306, %v7037_v62   ;;  %495 = vperm.xlu0 %6305, %v7039_v63   ;;  %v7069_v63 = vld [vmem:[#allocation2 + $0x330] sm:$0xff] }
 0x111   :  { %v7044_v56 = vpop.permute.xlu2 %402  ;;  %11269 = vst [vmem:[#allocation124_spill] sm:$0xff] %v7069_v63 }
 0x112   :  { %11258 = vst [vmem:[#allocation113_spill] sm:$0xff] %v7044_v56  ;;  %v7046_v50 = vpop.permute.xlu1 %372  ;;  %v7048_v45 = vpop.permute.xlu0 %369 }
 0x113   :  { %11259 = vst [vmem:[#allocation114_spill] sm:$0xff] %v7046_v50  ;;  %v7065_v50 = vld [vmem:[#allocation2 + $0x340] sm:$0xff] }
 0x114   :  { %11260 = vst [vmem:[#allocation115_spill] sm:$0xff] %v7048_v45  ;;  %v7067_v45 = vld [vmem:[#allocation2 + $0x338] sm:$0xff] }
 0x115   :  { %11267 = vst [vmem:[#allocation122_spill] sm:$0xff] %v7065_v50 }
 0x116   :  { %11268 = vst [vmem:[#allocation123_spill] sm:$0xff] %v7067_v45 }
 0x117   :  { %510 = vperm.xlu2 %6307, %v7050_v41  }
 0x118   :  { %507 = vperm.xlu1 %6306, %v7052_v61   ;;  %504 = vperm.xlu0 %6305, %v7054_v57   ;;  %v7084_v57 = vld [vmem:[#allocation2 + $0x348] sm:$0xff] }
 0x119   :  { %v7059_v51 = vpop.permute.xlu2 %411  ;;  %11275 = vst [vmem:[#allocation130_spill] sm:$0xff] %v7084_v57 }
 0x11a   :  { %11264 = vst [vmem:[#allocation119_spill] sm:$0xff] %v7059_v51  ;;  %v7061_v62 = vpop.permute.xlu1 %381  ;;  %v7063_v56 = vpop.permute.xlu0 %378 }
 0x11b   :  { %11265 = vst [vmem:[#allocation120_spill] sm:$0xff] %v7061_v62  ;;  %v7080_v62 = vld [vmem:[#allocation2 + $0x358] sm:$0xff] }
 0x11c   :  { %11266 = vst [vmem:[#allocation121_spill] sm:$0xff] %v7063_v56  ;;  %v7082_v56 = vld [vmem:[#allocation2 + $0x350] sm:$0xff] }
 0x11d   :  { %11273 = vst [vmem:[#allocation128_spill] sm:$0xff] %v7080_v62 }
 0x11e   :  { %11274 = vst [vmem:[#allocation129_spill] sm:$0xff] %v7082_v56 }
 0x11f   :  { %519 = vperm.xlu2 %6307, %v7065_v50  }
 0x120   :  { %516 = vperm.xlu1 %6306, %v7067_v45   ;;  %513 = vperm.xlu0 %6305, %v7069_v63   ;;  %v7099_v63 = vld [vmem:[#allocation2 + $0x360] sm:$0xff] }
 0x121   :  { %v7074_v41 = vpop.permute.xlu2 %420  ;;  %11281 = vst [vmem:[#allocation136_spill] sm:$0xff] %v7099_v63 }
 0x122   :  { %11270 = vst [vmem:[#allocation125_spill] sm:$0xff] %v7074_v41  ;;  %v7076_v61 = vpop.permute.xlu1 %390  ;;  %v7078_v51 = vpop.permute.xlu0 %387 }
 0x123   :  { %11271 = vst [vmem:[#allocation126_spill] sm:$0xff] %v7076_v61  ;;  %v7095_v61 = vld [vmem:[#allocation2 + $0x370] sm:$0xff] }
 0x124   :  { %11272 = vst [vmem:[#allocation127_spill] sm:$0xff] %v7078_v51  ;;  %v7097_v51 = vld [vmem:[#allocation2 + $0x368] sm:$0xff] }
 0x125   :  { %11279 = vst [vmem:[#allocation134_spill] sm:$0xff] %v7095_v61 }
 0x126   :  { %11280 = vst [vmem:[#allocation135_spill] sm:$0xff] %v7097_v51 }
 0x127   :  { %528 = vperm.xlu2 %6307, %v7080_v62  }
 0x128   :  { %525 = vperm.xlu1 %6306, %v7082_v56   ;;  %522 = vperm.xlu0 %6305, %v7084_v57   ;;  %v7114_v57 = vld [vmem:[#allocation2 + $0x378] sm:$0xff] }
 0x129   :  { %v7089_v50 = vpop.permute.xlu2 %429  ;;  %11287 = vst [vmem:[#allocation142_spill] sm:$0xff] %v7114_v57 }
 0x12a   :  { %11276 = vst [vmem:[#allocation131_spill] sm:$0xff] %v7089_v50  ;;  %v7091_v45 = vpop.permute.xlu1 %399  ;;  %v7093_v41 = vpop.permute.xlu0 %396 }
 0x12b   :  { %11277 = vst [vmem:[#allocation132_spill] sm:$0xff] %v7091_v45  ;;  %v7110_v45 = vld [vmem:[#allocation2 + $0x388] sm:$0xff] }
 0x12c   :  { %11278 = vst [vmem:[#allocation133_spill] sm:$0xff] %v7093_v41  ;;  %v7112_v41 = vld [vmem:[#allocation2 + $0x380] sm:$0xff] }
 0x12d   :  { %11285 = vst [vmem:[#allocation140_spill] sm:$0xff] %v7110_v45 }
 0x12e   :  { %11286 = vst [vmem:[#allocation141_spill] sm:$0xff] %v7112_v41 }
 0x12f   :  { %537 = vperm.xlu2 %6307, %v7095_v61  }
 0x130   :  { %534 = vperm.xlu1 %6306, %v7097_v51   ;;  %531 = vperm.xlu0 %6305, %v7099_v63   ;;  %v7129_v63 = vld [vmem:[#allocation2 + $0x390] sm:$0xff] }
 0x131   :  { %v7104_v62 = vpop.permute.xlu2 %438  ;;  %11293 = vst [vmem:[#allocation148_spill] sm:$0xff] %v7129_v63 }
 0x132   :  { %11282 = vst [vmem:[#allocation137_spill] sm:$0xff] %v7104_v62  ;;  %v7106_v56 = vpop.permute.xlu1 %408  ;;  %v7108_v50 = vpop.permute.xlu0 %405 }
 0x133   :  { %11283 = vst [vmem:[#allocation138_spill] sm:$0xff] %v7106_v56  ;;  %v7125_v56 = vld [vmem:[#allocation2 + $0x3a0] sm:$0xff] }
 0x134   :  { %11284 = vst [vmem:[#allocation139_spill] sm:$0xff] %v7108_v50  ;;  %v7127_v50 = vld [vmem:[#allocation2 + $0x398] sm:$0xff] }
 0x135   :  { %11291 = vst [vmem:[#allocation146_spill] sm:$0xff] %v7125_v56 }
 0x136   :  { %11292 = vst [vmem:[#allocation147_spill] sm:$0xff] %v7127_v50 }
 0x137   :  { %546 = vperm.xlu2 %6307, %v7110_v45  }
 0x138   :  { %543 = vperm.xlu1 %6306, %v7112_v41   ;;  %540 = vperm.xlu0 %6305, %v7114_v57   ;;  %v7144_v57 = vld [vmem:[#allocation2 + $0x3a8] sm:$0xff] }
 0x139   :  { %v7119_v61 = vpop.permute.xlu2 %447  ;;  %11299 = vst [vmem:[#allocation154_spill] sm:$0xff] %v7144_v57 }
 0x13a   :  { %11288 = vst [vmem:[#allocation143_spill] sm:$0xff] %v7119_v61  ;;  %v7121_v51 = vpop.permute.xlu1 %417  ;;  %v7123_v62 = vpop.permute.xlu0 %414 }
 0x13b   :  { %11289 = vst [vmem:[#allocation144_spill] sm:$0xff] %v7121_v51  ;;  %v7140_v51 = vld [vmem:[#allocation2 + $0x3b8] sm:$0xff] }
 0x13c   :  { %11290 = vst [vmem:[#allocation145_spill] sm:$0xff] %v7123_v62  ;;  %v7142_v62 = vld [vmem:[#allocation2 + $0x3b0] sm:$0xff] }
 0x13d   :  { %11297 = vst [vmem:[#allocation152_spill] sm:$0xff] %v7140_v51 }
 0x13e   :  { %11298 = vst [vmem:[#allocation153_spill] sm:$0xff] %v7142_v62 }
 0x13f   :  { %555 = vperm.xlu2 %6307, %v7125_v56  }
 0x140   :  { %552 = vperm.xlu1 %6306, %v7127_v50   ;;  %549 = vperm.xlu0 %6305, %v7129_v63   ;;  %v7159_v63 = vld [vmem:[#allocation2 + $0x3c0] sm:$0xff] }
 0x141   :  { %v7134_v45 = vpop.permute.xlu2 %456  ;;  %11305 = vst [vmem:[#allocation160_spill] sm:$0xff] %v7159_v63 }
 0x142   :  { %11294 = vst [vmem:[#allocation149_spill] sm:$0xff] %v7134_v45  ;;  %v7136_v41 = vpop.permute.xlu1 %426  ;;  %v7138_v61 = vpop.permute.xlu0 %423 }
 0x143   :  { %11295 = vst [vmem:[#allocation150_spill] sm:$0xff] %v7136_v41  ;;  %v7155_v41 = vld [vmem:[#allocation2 + $0x3d0] sm:$0xff] }
 0x144   :  { %11296 = vst [vmem:[#allocation151_spill] sm:$0xff] %v7138_v61  ;;  %v7157_v61 = vld [vmem:[#allocation2 + $0x3c8] sm:$0xff] }
 0x145   :  { %11303 = vst [vmem:[#allocation158_spill] sm:$0xff] %v7155_v41 }
 0x146   :  { %11304 = vst [vmem:[#allocation159_spill] sm:$0xff] %v7157_v61 }
 0x147   :  { %564 = vperm.xlu2 %6307, %v7140_v51  }
 0x148   :  { %561 = vperm.xlu1 %6306, %v7142_v62   ;;  %558 = vperm.xlu0 %6305, %v7144_v57   ;;  %v7174_v57 = vld [vmem:[#allocation2 + $0x3d8] sm:$0xff] }
 0x149   :  { %v7149_v56 = vpop.permute.xlu2 %465 }
 0x14a   :  { %11300 = vst [vmem:[#allocation155_spill] sm:$0xff] %v7149_v56  ;;  %v7151_v50 = vpop.permute.xlu1 %435  ;;  %v7153_v45 = vpop.permute.xlu0 %432 }
 0x14b   :  { %11301 = vst [vmem:[#allocation156_spill] sm:$0xff] %v7151_v50  ;;  %v7170_v50 = vld [vmem:[#allocation2 + $0x3e8] sm:$0xff] }
 0x14c   :  { %11302 = vst [vmem:[#allocation157_spill] sm:$0xff] %v7153_v45  ;;  %v7172_v45 = vld [vmem:[#allocation2 + $0x3e0] sm:$0xff] }
 0x14d   :  { %11309 = vst [vmem:[#allocation164_spill] sm:$0xff] %v7170_v50 }
 0x14e   :  { %11310 = vst [vmem:[#allocation165_spill] sm:$0xff] %v7172_v45 }
 0x14f   :  { %573 = vperm.xlu2 %6307, %v7155_v41  }
 0x150   :  { %570 = vperm.xlu1 %6306, %v7157_v61   ;;  %567 = vperm.xlu0 %6305, %v7159_v63   ;;  %v7188_v63 = vld [vmem:[#allocation2 + $0x3f0] sm:$0xff] }
 0x151   :  { %v7164_v51 = vpop.permute.xlu2 %474 }
 0x152   :  { %11306 = vst [vmem:[#allocation161_spill] sm:$0xff] %v7164_v51  ;;  %v7166_v62 = vpop.permute.xlu1 %444  ;;  %v7168_v56 = vpop.permute.xlu0 %441 }
 0x153   :  { %11307 = vst [vmem:[#allocation162_spill] sm:$0xff] %v7166_v62  ;;  %v7185_v62 = vld [vmem:[#allocation2 + $0x3f8] sm:$0xff] }
 0x154   :  { %11308 = vst [vmem:[#allocation163_spill] sm:$0xff] %v7168_v56  ;;  %v1102_v56 = vadd.s32 16, %v6637_v3  ;;  %v1105_v3 = vadd.s32 16, %v6644_v5 }
 0x155   :  { %11314 = vst [vmem:[#allocation169_spill] sm:$0xff] %v7185_v62 }
 0x157   :  { %582 = vperm.xlu2 %6307, %v7170_v50  }
 0x158   :  { %579 = vperm.xlu1 %6306, %v7172_v45   ;;  %576 = vperm.xlu0 %6305, %v7174_v57   ;;  %v1103_v45 = vadd.s32 16, %v6646_v6 }
 0x159   :  { %v7179_v41 = vpop.permute.xlu2 %483 }
 0x15a   :  { %11311 = vst [vmem:[#allocation166_spill] sm:$0xff] %v7179_v41  ;;  %v7181_v61 = vpop.permute.xlu1 %453  ;;  %v7183_v51 = vpop.permute.xlu0 %450 }
 0x15b   :  { %11312 = vst [vmem:[#allocation167_spill] sm:$0xff] %v7181_v61 }
 0x15c   :  { %11313 = vst [vmem:[#allocation168_spill] sm:$0xff] %v7183_v51  ;;  %v1104_v51 = vadd.s32 16, %v6635_v2  ;;  %v1107_v2 = vadd.s32 16, %v6642_v4 }
 0x15f   :  { %6308 = vset.pattern.permute.xlu2 %v6604_v0 }
 0x160   :  { %588 = vperm.xlu1 %6306, %v7185_v62   ;;  %585 = vperm.xlu0 %6305, %v7188_v63  }
 0x161   :  { %1231 = vperm.xlu2 %6308, %v1102_v56   ;;  %v7192_v50 = vpop.permute.xlu2 %492 }
 0x162   :  { %11315 = vst [vmem:[#allocation170_spill] sm:$0xff] %v7192_v50  ;;  %v7194_v41 = vpop.permute.xlu1 %462  ;;  %v7196_v61 = vpop.permute.xlu0 %459 }
 0x163   :  { %11316 = vst [vmem:[#allocation171_spill] sm:$0xff] %v7194_v41  ;;  %v1106_v41 = vadd.s32 16, %v6633_v1 }
 0x164   :  { %11317 = vst [vmem:[#allocation172_spill] sm:$0xff] %v7196_v61  ;;  %v1108_v61 = vadd.s32 16, %v6655_v9 }
 0x168   :  { %6310 = vset.pattern.permute.xlu1 %v6604_v0  ;;  %6309 = vset.pattern.permute.xlu0 %v6604_v0  ;;  %v1111_v0 = vadd.s32 16, %v6664_v12 }
 0x169   :  { %1237 = vperm.xlu1 %6310, %v1104_v51   ;;  %1234 = vperm.xlu0 %6309, %v1103_v45   ;;  %v7201_v62 = vpop.permute.xlu2 %501  ;;  %v1109_v51 = vadd.s32 16, %v6653_v8 }
 0x16a   :  { %1240 = vperm.xlu2 %6308, %v1105_v3   ;;  %11318 = vst [vmem:[#allocation173_spill] sm:$0xff] %v7201_v62  ;;  %v7203_v56 = vpop.permute.xlu1 %471  ;;  %v7205_v50 = vpop.permute.xlu0 %468  ;;  %v1110_v3 = vadd.s32 16, %v6651_v7 }
 0x16b   :  { %11319 = vst [vmem:[#allocation174_spill] sm:$0xff] %v7203_v56  ;;  %v11508_v56 = vld [vmem:[#allocation164_spill] sm:$0xff] }
 0x16c   :  { %11320 = vst [vmem:[#allocation175_spill] sm:$0xff] %v7205_v50  ;;  %v7592_v50 = vld [vmem:[#allocation2 + $0x30] sm:$0xff] }
 0x171   :  { %1243 = vperm.xlu1 %6310, %v1106_v41   ;;  %1249 = vperm.xlu0 %6309, %v1108_v61   ;;  %v7210_v5 = vpop.permute.xlu2 %510  ;;  %v1112_v41 = vadd.s32 16, %v6662_v11  ;;  %v1114_v61 = vadd.s32 16, %v6673_v15 }
 0x172   :  { %1246 = vperm.xlu2 %6308, %v1107_v2   ;;  %11321 = vst [vmem:[#allocation176_spill] sm:$0xff] %v7210_v5  ;;  %v7212_v6 = vpop.permute.xlu1 %480  ;;  %v7214_v45 = vpop.permute.xlu0 %477  ;;  %v1113_v2 = vadd.s32 16, %v6660_v10  ;;  %v11420_v5 = vld [vmem:[#allocation74_spill] sm:$0xff] }
 0x173   :  { %11322 = vst [vmem:[#allocation177_spill] sm:$0xff] %v7212_v6 }
 0x174   :  { %11323 = vst [vmem:[#allocation178_spill] sm:$0xff] %v7214_v45 }
 0x179   :  { %1252 = vperm.xlu1 %6310, %v1109_v51   ;;  %1258 = vperm.xlu0 %6309, %v1111_v0   ;;  %v7219_v1 = vpop.permute.xlu2 %519  ;;  %v1115_v51 = vadd.s32 16, %v6671_v14  ;;  %v1117_v0 = vadd.s32 16, %v6682_v18 }
 0x17a   :  { %1255 = vperm.xlu2 %6308, %v1110_v3   ;;  %11324 = vst [vmem:[#allocation179_spill] sm:$0xff] %v7219_v1  ;;  %v7221_v4 = vpop.permute.xlu1 %489  ;;  %v7223_v9 = vpop.permute.xlu0 %486  ;;  %v1116_v3 = vadd.s32 16, %v6669_v13  ;;  %v11414_v1 = vld [vmem:[#allocation68_spill] sm:$0xff] }
 0x17b   :  { %11325 = vst [vmem:[#allocation180_spill] sm:$0xff] %v7221_v4  ;;  %v11486_v4 = vld [vmem:[#allocation140_spill] sm:$0xff] }
 0x17c   :  { %11326 = vst [vmem:[#allocation181_spill] sm:$0xff] %v7223_v9 }
 0x181   :  { %1261 = vperm.xlu1 %6310, %v1112_v41   ;;  %1267 = vperm.xlu0 %6309, %v1114_v61   ;;  %v7228_v8 = vpop.permute.xlu2 %528  ;;  %v1118_v41 = vadd.s32 16, %v6680_v17  ;;  %v1120_v61 = vadd.s32 16, %v6691_v21 }
 0x182   :  { %1264 = vperm.xlu2 %6308, %v1113_v2   ;;  %11327 = vst [vmem:[#allocation182_spill] sm:$0xff] %v7228_v8  ;;  %v7230_v7 = vpop.permute.xlu1 %498  ;;  %v7232_v12 = vpop.permute.xlu0 %495  ;;  %v1119_v2 = vadd.s32 16, %v6678_v16  ;;  %v11408_v8 = vld [vmem:[#allocation62_spill] sm:$0xff] }
 0x183   :  { %11328 = vst [vmem:[#allocation183_spill] sm:$0xff] %v7230_v7 }
 0x184   :  { %11329 = vst [vmem:[#allocation184_spill] sm:$0xff] %v7232_v12 }
 0x189   :  { %1270 = vperm.xlu1 %6310, %v1115_v51   ;;  %1276 = vperm.xlu0 %6309, %v1117_v0   ;;  %v7237_v11 = vpop.permute.xlu2 %537  ;;  %v1121_v51 = vadd.s32 16, %v6689_v20  ;;  %v1123_v0 = vadd.s32 16, %v6700_v24 }
 0x18a   :  { %1273 = vperm.xlu2 %6308, %v1116_v3   ;;  %11330 = vst [vmem:[#allocation185_spill] sm:$0xff] %v7237_v11  ;;  %v7239_v10 = vpop.permute.xlu1 %507  ;;  %v7241_v15 = vpop.permute.xlu0 %504  ;;  %v1122_v3 = vadd.s32 16, %v6687_v19  ;;  %v11402_v11 = vld [vmem:[#allocation56_spill] sm:$0xff] }
 0x18b   :  { %11331 = vst [vmem:[#allocation186_spill] sm:$0xff] %v7239_v10  ;;  %v1182_v10 = vadd.s32 16, %v11420_v5 }
 0x18c   :  { %11332 = vst [vmem:[#allocation187_spill] sm:$0xff] %v7241_v15 }
 0x191   :  { %1279 = vperm.xlu1 %6310, %v1118_v41   ;;  %1285 = vperm.xlu0 %6309, %v1120_v61   ;;  %v7246_v14 = vpop.permute.xlu2 %546  ;;  %v1124_v41 = vadd.s32 16, %v6698_v23  ;;  %v1126_v61 = vadd.s32 16, %v6709_v27 }
 0x192   :  { %1282 = vperm.xlu2 %6308, %v1119_v2   ;;  %11333 = vst [vmem:[#allocation188_spill] sm:$0xff] %v7246_v14  ;;  %v7248_v13 = vpop.permute.xlu1 %516  ;;  %v7250_v18 = vpop.permute.xlu0 %513  ;;  %v1125_v2 = vadd.s32 16, %v6696_v22  ;;  %v11396_v14 = vld [vmem:[#allocation50_spill] sm:$0xff] }
 0x193   :  { %11334 = vst [vmem:[#allocation189_spill] sm:$0xff] %v7248_v13  ;;  %v1179_v13 = vadd.s32 16, %v11414_v1 }
 0x194   :  { %11335 = vst [vmem:[#allocation190_spill] sm:$0xff] %v7250_v18 }
 0x199   :  { %1288 = vperm.xlu1 %6310, %v1121_v51   ;;  %1294 = vperm.xlu0 %6309, %v1123_v0   ;;  %v7255_v17 = vpop.permute.xlu2 %555  ;;  %v1127_v51 = vadd.s32 16, %v6707_v26  ;;  %v1129_v0 = vadd.s32 16, %v6718_v30 }
 0x19a   :  { %1291 = vperm.xlu2 %6308, %v1122_v3   ;;  %11336 = vst [vmem:[#allocation191_spill] sm:$0xff] %v7255_v17  ;;  %v7257_v16 = vpop.permute.xlu1 %525  ;;  %v7259_v21 = vpop.permute.xlu0 %522  ;;  %v1128_v3 = vadd.s32 16, %v6705_v25  ;;  %v11390_v17 = vld [vmem:[#allocation44_spill] sm:$0xff] }
 0x19b   :  { %11337 = vst [vmem:[#allocation192_spill] sm:$0xff] %v7257_v16  ;;  %v1176_v16 = vadd.s32 16, %v11408_v8 }
 0x19c   :  { %11338 = vst [vmem:[#allocation193_spill] sm:$0xff] %v7259_v21 }
 0x1a1   :  { %1297 = vperm.xlu1 %6310, %v1124_v41   ;;  %1303 = vperm.xlu0 %6309, %v1126_v61   ;;  %v7264_v20 = vpop.permute.xlu2 %564  ;;  %v1130_v41 = vadd.s32 16, %v6716_v29  ;;  %v1132_v61 = vadd.s32 16, %v6727_v33 }
 0x1a2   :  { %1300 = vperm.xlu2 %6308, %v1125_v2   ;;  %11339 = vst [vmem:[#allocation194_spill] sm:$0xff] %v7264_v20  ;;  %v7266_v19 = vpop.permute.xlu1 %534  ;;  %v7268_v24 = vpop.permute.xlu0 %531  ;;  %v1131_v2 = vadd.s32 16, %v6714_v28  ;;  %v11384_v20 = vld [vmem:[#allocation38_spill] sm:$0xff] }
 0x1a3   :  { %11340 = vst [vmem:[#allocation195_spill] sm:$0xff] %v7266_v19  ;;  %v1173_v19 = vadd.s32 16, %v11402_v11 }
 0x1a4   :  { %11341 = vst [vmem:[#allocation196_spill] sm:$0xff] %v7268_v24 }
 0x1a9   :  { %1306 = vperm.xlu1 %6310, %v1127_v51   ;;  %1312 = vperm.xlu0 %6309, %v1129_v0   ;;  %v7273_v23 = vpop.permute.xlu2 %573  ;;  %v1133_v51 = vadd.s32 16, %v6725_v32  ;;  %v1135_v0 = vadd.s32 16, %v6736_v36 }
 0x1aa   :  { %1309 = vperm.xlu2 %6308, %v1128_v3   ;;  %11342 = vst [vmem:[#allocation197_spill] sm:$0xff] %v7273_v23  ;;  %v7275_v22 = vpop.permute.xlu1 %543  ;;  %v7277_v27 = vpop.permute.xlu0 %540  ;;  %v1134_v3 = vadd.s32 16, %v6723_v31  ;;  %v11378_v23 = vld [vmem:[#allocation32_spill] sm:$0xff] }
 0x1ab   :  { %11343 = vst [vmem:[#allocation198_spill] sm:$0xff] %v7275_v22  ;;  %v1170_v22 = vadd.s32 16, %v11396_v14 }
 0x1ac   :  { %11344 = vst [vmem:[#allocation199_spill] sm:$0xff] %v7277_v27 }
 0x1b1   :  { %1315 = vperm.xlu1 %6310, %v1130_v41   ;;  %1321 = vperm.xlu0 %6309, %v1132_v61   ;;  %v7282_v26 = vpop.permute.xlu2 %582  ;;  %v1136_v41 = vadd.s32 16, %v6734_v35  ;;  %v1138_v61 = vadd.s32 16, %v6747_v40 }
 0x1b2   :  { %1318 = vperm.xlu2 %6308, %v1131_v2   ;;  %11345 = vst [vmem:[#allocation200_spill] sm:$0xff] %v7282_v26  ;;  %v7284_v25 = vpop.permute.xlu1 %552  ;;  %v7286_v30 = vpop.permute.xlu0 %549  ;;  %v1137_v2 = vadd.s32 16, %v6732_v34  ;;  %v11372_v26 = vld [vmem:[#allocation27_spill] sm:$0xff] }
 0x1b3   :  { %11346 = vst [vmem:[#allocation201_spill] sm:$0xff] %v7284_v25  ;;  %v1167_v25 = vadd.s32 16, %v11390_v17 }
 0x1b4   :  { %11347 = vst [vmem:[#allocation202_spill] sm:$0xff] %v7286_v30 }
 0x1b9   :  { %1324 = vperm.xlu1 %6310, %v1133_v51   ;;  %1330 = vperm.xlu0 %6309, %v1135_v0   ;;  %v1139_v51 = vadd.s32 16, %v6745_v39  ;;  %v1141_v0 = vadd.s32 16, %v6758_v44 }
 0x1ba   :  { %1327 = vperm.xlu2 %6308, %v1134_v3   ;;  %v7291_v29 = vpop.permute.xlu1 %561  ;;  %v7293_v28 = vpop.permute.xlu0 %558  ;;  %v1140_v3 = vadd.s32 16, %v6743_v38 }
 0x1bb   :  { %11348 = vst [vmem:[#allocation203_spill] sm:$0xff] %v7291_v29  ;;  %v7295_v33 = vpop.permute.xlu2 %1231  ;;  %v1164_v29 = vadd.s32 16, %v11384_v20 }
 0x1bc   :  { %11349 = vst [vmem:[#allocation204_spill] sm:$0xff] %v7293_v28 }
 0x1c1   :  { %1333 = vperm.xlu1 %6310, %v1136_v41   ;;  %1339 = vperm.xlu0 %6309, %v1138_v61   ;;  %v1142_v41 = vadd.s32 16, %v6756_v43  ;;  %v1144_v61 = vadd.s32 16, %v6769_v48 }
 0x1c2   :  { %1336 = vperm.xlu2 %6308, %v1137_v2   ;;  %v7300_v32 = vpop.permute.xlu1 %570  ;;  %v7302_v31 = vpop.permute.xlu0 %567  ;;  %v1143_v2 = vadd.s32 16, %v6754_v42 }
 0x1c3   :  { %11350 = vst [vmem:[#allocation205_spill] sm:$0xff] %v7300_v32  ;;  %v1161_v32 = vadd.s32 16, %v11378_v23 }
 0x1c4   :  { %11351 = vst [vmem:[#allocation206_spill] sm:$0xff] %v7302_v31  ;;  %v7304_v36 = vpop.permute.xlu2 %1240 }
 0x1c5   :  { %11352 = vst [vmem:[#allocation207_spill] sm:$0xff] %v7304_v36 }
 0x1c9   :  { %1342 = vperm.xlu1 %6310, %v1139_v51   ;;  %1348 = vperm.xlu0 %6309, %v1141_v0   ;;  %v1145_v51 = vadd.s32 16, %v6767_v47  ;;  %v1147_v0 = vadd.s32 16, %v6784_v54 }
 0x1ca   :  { %1345 = vperm.xlu2 %6308, %v1140_v3   ;;  %v7309_v35 = vpop.permute.xlu1 %579  ;;  %v7311_v34 = vpop.permute.xlu0 %576  ;;  %v1146_v3 = vadd.s32 16, %v6765_v46 }
 0x1cb   :  { %11353 = vst [vmem:[#allocation208_spill] sm:$0xff] %v7309_v35  ;;  %v1158_v35 = vadd.s32 16, %v11372_v26 }
 0x1cc   :  { %11354 = vst [vmem:[#allocation209_spill] sm:$0xff] %v7311_v34  ;;  %v7313_v40 = vpop.permute.xlu2 %1246 }
 0x1cd   :  { %11355 = vst [vmem:[#allocation210_spill] sm:$0xff] %v7313_v40  ;;  %v7883_v40 = vld [vmem:[#allocation2 + $0x2b0] sm:$0xff] }
 0x1ce   :  { %11599 = vst [vmem:[#allocation310_spill] sm:$0xff] %v7883_v40 }
 0x1d1   :  { %1351 = vperm.xlu1 %6310, %v1142_v41   ;;  %1357 = vperm.xlu0 %6309, %v1144_v61   ;;  %v1148_v41 = vadd.s32 16, %v6782_v53  ;;  %v1150_v61 = vadd.s32 16, %v6799_v60 }
 0x1d2   :  { %1354 = vperm.xlu2 %6308, %v1143_v2   ;;  %v7318_v39 = vpop.permute.xlu1 %588  ;;  %v7320_v38 = vpop.permute.xlu0 %585  ;;  %v1149_v2 = vadd.s32 16, %v6780_v52 }
 0x1d3   :  { %11356 = vst [vmem:[#allocation211_spill] sm:$0xff] %v7318_v39 }
 0x1d4   :  { %11357 = vst [vmem:[#allocation212_spill] sm:$0xff] %v7320_v38  ;;  %v7322_v44 = vpop.permute.xlu2 %1255 }
 0x1d5   :  { %11358 = vst [vmem:[#allocation213_spill] sm:$0xff] %v7322_v44 }
 0x1d9   :  { %1360 = vperm.xlu1 %6310, %v1145_v51   ;;  %1366 = vperm.xlu0 %6309, %v1147_v0   ;;  %v1151_v51 = vadd.s32 16, %v6797_v59  ;;  %v1153_v0 = vadd.s32 16, %v6814_v49 }
 0x1da   :  { %1363 = vperm.xlu2 %6308, %v1146_v3   ;;  %v1152_v3 = vadd.s32 16, %v6795_v58 }
 0x1db   :  { %v7327_v43 = vpop.permute.xlu1 %1237  ;;  %v7329_v42 = vpop.permute.xlu0 %1234 }
 0x1dc   :  { %v7331_v48 = vpop.permute.xlu2 %1264 }
 0x1dd   :  { %11359 = vst [vmem:[#allocation214_spill] sm:$0xff] %v7331_v48 }
 0x1e1   :  { %1369 = vperm.xlu1 %6310, %v1148_v41   ;;  %1375 = vperm.xlu0 %6309, %v1150_v61   ;;  %v1154_v41 = vadd.s32 16, %v6812_v55  ;;  %v1156_v61 = vadd.s32 16, %v6829_v37 }
 0x1e2   :  { %1372 = vperm.xlu2 %6308, %v1149_v2   ;;  %v11366_v2 = vld [vmem:[#allocation23_spill] sm:$0xff] }
 0x1e3   :  { %v7336_v47 = vpop.permute.xlu1 %1243  ;;  %v7338_v46 = vpop.permute.xlu0 %1249  ;;  %v1155_v39 = vadd.s32 16, %v11366_v2  ;;  %v11377_v2 = vld [vmem:[#allocation40_spill] sm:$0xff] }
 0x1e4   :  { %11360 = vst [vmem:[#allocation215_spill] sm:$0xff] %v7336_v47  ;;  %v7340_v54 = vpop.permute.xlu2 %1273  ;;  %v1162_v34 = vadd.s32 16, %v11377_v2  ;;  %v11389_v2 = vld [vmem:[#allocation52_spill] sm:$0xff]  ;;  %v6410_v47 = vld [vmem:[#allocation2 + $0x300] sm:$0xff] }
 0x1e5   :  { %11361 = vst [vmem:[#allocation216_spill] sm:$0xff] %v7338_v46  ;;  %v1168_v28 = vadd.s32 16, %v11389_v2  ;;  %v11401_v2 = vld [vmem:[#allocation64_spill] sm:$0xff]  ;;  %v7880_v46 = vld [vmem:[#allocation2 + $0x2d0] sm:$0xff] }
 0x1e6   :  { %11362 = vst [vmem:[#allocation217_spill] sm:$0xff] %v7340_v54  ;;  %v1174_v27 = vadd.s32 16, %v11401_v2  ;;  %v11413_v2 = vld [vmem:[#allocation76_spill] sm:$0xff]  ;;  %v6369_v54 = vld [vmem:[#allocation2 + $0x190] sm:$0xff] }
 0x1e7   :  { %v1180_v21 = vadd.s32 16, %v11413_v2  ;;  %v11425_v2 = vld [vmem:[#allocation88_spill] sm:$0xff]  ;;  %11598 = vst [vmem:[#allocation309_spill] sm:$0xff] %v7880_v46 }
 0x1e8   :  { %v1186_v15 = vadd.s32 16, %v11425_v2  ;;  %v11437_v2 = vld [vmem:[#allocation100_spill] sm:$0xff] }
 0x1e9   :  { %1378 = vperm.xlu1 %6310, %v1151_v51   ;;  %1384 = vperm.xlu0 %6309, %v1153_v0   ;;  %v11370_v51 = vld [vmem:[#allocation28_spill] sm:$0xff] }
 0x1ea   :  { %1381 = vperm.xlu2 %6308, %v1152_v3   ;;  %v1157_v0 = vadd.s32 16, %v11370_v51  ;;  %v11371_v3 = vld [vmem:[#allocation34_spill] sm:$0xff] }
 0x1eb   :  { %v7345_v53 = vpop.permute.xlu1 %1252  ;;  %v7347_v52 = vpop.permute.xlu0 %1258  ;;  %v1159_v38 = vadd.s32 16, %v11371_v3  ;;  %v11383_v3 = vld [vmem:[#allocation46_spill] sm:$0xff] }
 0x1ec   :  { %11363 = vst [vmem:[#allocation218_spill] sm:$0xff] %v7345_v53  ;;  %v7349_v60 = vpop.permute.xlu2 %1282  ;;  %v1165_v31 = vadd.s32 16, %v11383_v3  ;;  %v11395_v3 = vld [vmem:[#allocation58_spill] sm:$0xff] }
 0x1ed   :  { %11364 = vst [vmem:[#allocation219_spill] sm:$0xff] %v7347_v52  ;;  %v1171_v30 = vadd.s32 16, %v11395_v3  ;;  %v11407_v3 = vld [vmem:[#allocation70_spill] sm:$0xff] }
 0x1ee   :  { %11365 = vst [vmem:[#allocation220_spill] sm:$0xff] %v7349_v60  ;;  %v1177_v24 = vadd.s32 16, %v11407_v3  ;;  %v11419_v3 = vld [vmem:[#allocation82_spill] sm:$0xff] }
 0x1ef   :  { %v1183_v18 = vadd.s32 16, %v11419_v3  ;;  %v11431_v3 = vld [vmem:[#allocation94_spill] sm:$0xff] }
 0x1f0   :  { %v1189_v62 = vadd.s32 16, %v11431_v3  ;;  %v11443_v3 = vld [vmem:[#allocation106_spill] sm:$0xff] }
 0x1f1   :  { %1387 = vperm.xlu1 %6310, %v1154_v41   ;;  %1393 = vperm.xlu0 %6309, %v1156_v61   ;;  %v11376_v41 = vld [vmem:[#allocation33_spill] sm:$0xff] }
 0x1f2   :  { %1390 = vperm.xlu2 %6308, %v1155_v39   ;;  %v1160_v61 = vadd.s32 16, %v11376_v41 }
 0x1f3   :  { %v7354_v49 = vpop.permute.xlu1 %1261  ;;  %v7356_v58 = vpop.permute.xlu0 %1267 }
 0x1f4   :  { %11367 = vst [vmem:[#allocation23_spill] sm:$0xff] %v7354_v49  ;;  %v7358_v59 = vpop.permute.xlu2 %1291 }
 0x1f5   :  { %11368 = vst [vmem:[#allocation221_spill] sm:$0xff] %v7356_v58 }
 0x1f6   :  { %11369 = vst [vmem:[#allocation222_spill] sm:$0xff] %v7358_v59 }
 0x1f9   :  { %1396 = vperm.xlu1 %6310, %v1157_v0   ;;  %1402 = vperm.xlu0 %6309, %v1159_v38   ;;  %v11382_v38 = vld [vmem:[#allocation39_spill] sm:$0xff] }
 0x1fa   :  { %1399 = vperm.xlu2 %6308, %v1158_v35   ;;  %v1163_v0 = vadd.s32 16, %v11382_v38 }
 0x1fb   :  { %v7363_v37 = vpop.permute.xlu1 %1270  ;;  %v7365_v55 = vpop.permute.xlu0 %1276 }
 0x1fc   :  { %11373 = vst [vmem:[#allocation28_spill] sm:$0xff] %v7363_v37  ;;  %v7367_v39 = vpop.permute.xlu2 %1300 }
 0x1fd   :  { %11374 = vst [vmem:[#allocation34_spill] sm:$0xff] %v7365_v55 }
 0x1fe   :  { %11375 = vst [vmem:[#allocation27_spill] sm:$0xff] %v7367_v39 }
 0x201   :  { %1405 = vperm.xlu1 %6310, %v1160_v61   ;;  %1411 = vperm.xlu0 %6309, %v1162_v34   ;;  %v11388_v34 = vld [vmem:[#allocation45_spill] sm:$0xff] }
 0x202   :  { %1408 = vperm.xlu2 %6308, %v1161_v32   ;;  %v1166_v61 = vadd.s32 16, %v11388_v34 }
 0x203   :  { %v7372_v51 = vpop.permute.xlu1 %1279  ;;  %v7374_v26 = vpop.permute.xlu0 %1285 }
 0x204   :  { %11379 = vst [vmem:[#allocation33_spill] sm:$0xff] %v7372_v51  ;;  %v7376_v35 = vpop.permute.xlu2 %1309 }
 0x205   :  { %11380 = vst [vmem:[#allocation40_spill] sm:$0xff] %v7374_v26 }
 0x206   :  { %11381 = vst [vmem:[#allocation32_spill] sm:$0xff] %v7376_v35  ;;  %v7610_v35 = vld [vmem:[#allocation2 + $0x28] sm:$0xff] }
 0x209   :  { %1414 = vperm.xlu1 %6310, %v1163_v0   ;;  %1420 = vperm.xlu0 %6309, %v1165_v31   ;;  %v11394_v31 = vld [vmem:[#allocation51_spill] sm:$0xff] }
 0x20a   :  { %1417 = vperm.xlu2 %6308, %v1164_v29   ;;  %v1169_v0 = vadd.s32 16, %v11394_v31 }
 0x20b   :  { %v7381_v41 = vpop.permute.xlu1 %1288  ;;  %v7383_v23 = vpop.permute.xlu0 %1294 }
 0x20c   :  { %11385 = vst [vmem:[#allocation39_spill] sm:$0xff] %v7381_v41  ;;  %v7385_v32 = vpop.permute.xlu2 %1318 }
 0x20d   :  { %11386 = vst [vmem:[#allocation46_spill] sm:$0xff] %v7383_v23  ;;  %v7667_v23 = vld [vmem:[#allocation2 + $0x88] sm:$0xff] }
 0x20e   :  { %11387 = vst [vmem:[#allocation38_spill] sm:$0xff] %v7385_v32  ;;  %v2132_v32 = vadd.s32 32, %v7592_v50 }
 0x211   :  { %1423 = vperm.xlu1 %6310, %v1166_v61   ;;  %1429 = vperm.xlu0 %6309, %v1168_v28   ;;  %v11400_v28 = vld [vmem:[#allocation57_spill] sm:$0xff] }
 0x212   :  { %1426 = vperm.xlu2 %6308, %v1167_v25   ;;  %v1172_v61 = vadd.s32 16, %v11400_v28 }
 0x213   :  { %v7390_v38 = vpop.permute.xlu1 %1297  ;;  %v7392_v20 = vpop.permute.xlu0 %1303 }
 0x214   :  { %11391 = vst [vmem:[#allocation45_spill] sm:$0xff] %v7390_v38  ;;  %v7394_v29 = vpop.permute.xlu2 %1327  ;;  %v6335_v38 = vld [vmem:[#allocation2 + $0xa8] sm:$0xff] }
 0x215   :  { %11392 = vst [vmem:[#allocation52_spill] sm:$0xff] %v7392_v20 }
 0x216   :  { %11393 = vst [vmem:[#allocation44_spill] sm:$0xff] %v7394_v29  ;;  %v11503_v29 = vld [vmem:[#allocation158_spill] sm:$0xff] }
 0x219   :  { %1432 = vperm.xlu1 %6310, %v1169_v0   ;;  %1438 = vperm.xlu0 %6309, %v1171_v30   ;;  %v11406_v30 = vld [vmem:[#allocation63_spill] sm:$0xff] }
 0x21a   :  { %1435 = vperm.xlu2 %6308, %v1170_v22   ;;  %v1175_v0 = vadd.s32 16, %v11406_v30 }
 0x21b   :  { %v7399_v34 = vpop.permute.xlu1 %1306  ;;  %v7401_v17 = vpop.permute.xlu0 %1312 }
 0x21c   :  { %11397 = vst [vmem:[#allocation51_spill] sm:$0xff] %v7399_v34  ;;  %v7403_v25 = vpop.permute.xlu2 %1336  ;;  %v7625_v34 = vld [vmem:[#allocation2 + $0x40] sm:$0xff] }
 0x21d   :  { %11398 = vst [vmem:[#allocation58_spill] sm:$0xff] %v7401_v17 }
 0x21e   :  { %11399 = vst [vmem:[#allocation50_spill] sm:$0xff] %v7403_v25  ;;  %v11492_v25 = vld [vmem:[#allocation146_spill] sm:$0xff] }
 0x221   :  { %1441 = vperm.xlu1 %6310, %v1172_v61   ;;  %1447 = vperm.xlu0 %6309, %v1174_v27   ;;  %v11412_v27 = vld [vmem:[#allocation69_spill] sm:$0xff] }
 0x222   :  { %1444 = vperm.xlu2 %6308, %v1173_v19   ;;  %v1178_v61 = vadd.s32 16, %v11412_v27 }
 0x223   :  { %v7408_v31 = vpop.permute.xlu1 %1315  ;;  %v7410_v14 = vpop.permute.xlu0 %1321 }
 0x224   :  { %11403 = vst [vmem:[#allocation57_spill] sm:$0xff] %v7408_v31  ;;  %v7412_v22 = vpop.permute.xlu2 %1345 }
 0x225   :  { %11404 = vst [vmem:[#allocation64_spill] sm:$0xff] %v7410_v14  ;;  %v1227_v14 = vadd.s32 16, %v11508_v56  ;;  %v6605_v56 = vmov 2  }
 0x226   :  { %11405 = vst [vmem:[#allocation56_spill] sm:$0xff] %v7412_v22 }
 0x229   :  { %1450 = vperm.xlu1 %6310, %v1175_v0   ;;  %1456 = vperm.xlu0 %6309, %v1177_v24   ;;  %v11418_v24 = vld [vmem:[#allocation75_spill] sm:$0xff] }
 0x22a   :  { %1453 = vperm.xlu2 %6308, %v1176_v16   ;;  %v1181_v0 = vadd.s32 16, %v11418_v24 }
 0x22b   :  { %v7417_v28 = vpop.permute.xlu1 %1324  ;;  %v7419_v11 = vpop.permute.xlu0 %1330 }
 0x22c   :  { %11409 = vst [vmem:[#allocation63_spill] sm:$0xff] %v7417_v28  ;;  %v7421_v19 = vpop.permute.xlu2 %1354  ;;  %v1224_v28 = vadd.s32 16, %v11503_v29 }
 0x22d   :  { %11410 = vst [vmem:[#allocation70_spill] sm:$0xff] %v7419_v11  ;;  %v11498_v11 = vld [vmem:[#allocation152_spill] sm:$0xff] }
 0x22e   :  { %11411 = vst [vmem:[#allocation62_spill] sm:$0xff] %v7421_v19  ;;  %v1221_v45 = vadd.s32 16, %v11498_v11 }
 0x231   :  { %1459 = vperm.xlu1 %6310, %v1178_v61   ;;  %1465 = vperm.xlu0 %6309, %v1180_v21   ;;  %v11424_v21 = vld [vmem:[#allocation81_spill] sm:$0xff] }
 0x232   :  { %1462 = vperm.xlu2 %6308, %v1179_v13   ;;  %v1184_v61 = vadd.s32 16, %v11424_v21 }
 0x233   :  { %v7426_v30 = vpop.permute.xlu1 %1333  ;;  %v7428_v8 = vpop.permute.xlu0 %1339 }
 0x234   :  { %11415 = vst [vmem:[#allocation69_spill] sm:$0xff] %v7426_v30  ;;  %v7430_v16 = vpop.permute.xlu2 %1363  ;;  %v1218_v30 = vadd.s32 16, %v11492_v25 }
 0x235   :  { %11416 = vst [vmem:[#allocation76_spill] sm:$0xff] %v7428_v8  ;;  %v1215_v8 = vadd.s32 16, %v11486_v4 }
 0x236   :  { %11417 = vst [vmem:[#allocation68_spill] sm:$0xff] %v7430_v16  ;;  %v11426_v16 = vld [vmem:[#allocation80_spill] sm:$0xff] }
 0x237   :  { %v1185_v19 = vadd.s32 16, %v11426_v16 }
 0x239   :  { %1468 = vperm.xlu1 %6310, %v1181_v0   ;;  %1474 = vperm.xlu0 %6309, %v1183_v18   ;;  %v11430_v18 = vld [vmem:[#allocation87_spill] sm:$0xff] }
 0x23a   :  { %1471 = vperm.xlu2 %6308, %v1182_v10   ;;  %v1187_v0 = vadd.s32 16, %v11430_v18 }
 0x23b   :  { %v7435_v27 = vpop.permute.xlu1 %1342  ;;  %v7437_v1 = vpop.permute.xlu0 %1348 }
 0x23c   :  { %11421 = vst [vmem:[#allocation75_spill] sm:$0xff] %v7435_v27  ;;  %v7439_v13 = vpop.permute.xlu2 %1372 }
 0x23d   :  { %11422 = vst [vmem:[#allocation82_spill] sm:$0xff] %v7437_v1 }
 0x23e   :  { %11423 = vst [vmem:[#allocation74_spill] sm:$0xff] %v7439_v13  ;;  %v11432_v13 = vld [vmem:[#allocation86_spill] sm:$0xff] }
 0x23f   :  { %v1188_v7 = vadd.s32 16, %v11432_v13 }
 0x241   :  { %1477 = vperm.xlu1 %6310, %v1184_v61   ;;  %1483 = vperm.xlu0 %6309, %v1186_v15  }
 0x242   :  { %1480 = vperm.xlu2 %6308, %v1185_v19   ;;  %v11436_v19 = vld [vmem:[#allocation93_spill] sm:$0xff] }
 0x243   :  { %v7444_v24 = vpop.permute.xlu1 %1351  ;;  %v7446_v5 = vpop.permute.xlu0 %1357  ;;  %v1190_v61 = vadd.s32 16, %v11436_v19 }
 0x244   :  { %11427 = vst [vmem:[#allocation81_spill] sm:$0xff] %v7444_v24  ;;  %v7448_v10 = vpop.permute.xlu2 %1381 }
 0x245   :  { %11428 = vst [vmem:[#allocation88_spill] sm:$0xff] %v7446_v5  ;;  %v1192_v5 = vadd.s32 16, %v11437_v2  ;;  %v11449_v2 = vld [vmem:[#allocation112_spill] sm:$0xff] }
 0x246   :  { %11429 = vst [vmem:[#allocation80_spill] sm:$0xff] %v7448_v10  ;;  %v11438_v10 = vld [vmem:[#allocation92_spill] sm:$0xff] }
 0x247   :  { %v1191_v24 = vadd.s32 16, %v11438_v10 }
 0x249   :  { %1486 = vperm.xlu1 %6310, %v1187_v0   ;;  %1492 = vperm.xlu0 %6309, %v1189_v62  }
 0x24a   :  { %1489 = vperm.xlu2 %6308, %v1188_v7   ;;  %v11442_v7 = vld [vmem:[#allocation99_spill] sm:$0xff] }
 0x24b   :  { %v7453_v21 = vpop.permute.xlu1 %1360  ;;  %v7455_v16 = vpop.permute.xlu0 %1366  ;;  %v1193_v0 = vadd.s32 16, %v11442_v7 }
 0x24c   :  { %11433 = vst [vmem:[#allocation87_spill] sm:$0xff] %v7453_v21  ;;  %v7457_v15 = vpop.permute.xlu2 %1390 }
 0x24d   :  { %11434 = vst [vmem:[#allocation94_spill] sm:$0xff] %v7455_v16  ;;  %v1195_v16 = vadd.s32 16, %v11443_v3  ;;  %v11455_v3 = vld [vmem:[#allocation118_spill] sm:$0xff] }
 0x24e   :  { %11435 = vst [vmem:[#allocation86_spill] sm:$0xff] %v7457_v15  ;;  %v11444_v15 = vld [vmem:[#allocation98_spill] sm:$0xff] }
 0x24f   :  { %v1194_v21 = vadd.s32 16, %v11444_v15 }
 0x251   :  { %1495 = vperm.xlu1 %6310, %v1190_v61   ;;  %1501 = vperm.xlu0 %6309, %v1192_v5   ;;  %v11448_v5 = vld [vmem:[#allocation105_spill] sm:$0xff] }
 0x252   :  { %1498 = vperm.xlu2 %6308, %v1191_v24   ;;  %v1196_v61 = vadd.s32 16, %v11448_v5 }
 0x253   :  { %v7462_v18 = vpop.permute.xlu1 %1369  ;;  %v7464_v13 = vpop.permute.xlu0 %1375 }
 0x254   :  { %11439 = vst [vmem:[#allocation93_spill] sm:$0xff] %v7462_v18  ;;  %v7466_v62 = vpop.permute.xlu2 %1399 }
 0x255   :  { %11440 = vst [vmem:[#allocation100_spill] sm:$0xff] %v7464_v13  ;;  %v1198_v13 = vadd.s32 16, %v11449_v2  ;;  %v11461_v2 = vld [vmem:[#allocation124_spill] sm:$0xff] }
 0x256   :  { %11441 = vst [vmem:[#allocation92_spill] sm:$0xff] %v7466_v62  ;;  %v11450_v62 = vld [vmem:[#allocation104_spill] sm:$0xff] }
 0x257   :  { %v1197_v18 = vadd.s32 16, %v11450_v62 }
 0x259   :  { %1504 = vperm.xlu1 %6310, %v1193_v0   ;;  %1510 = vperm.xlu0 %6309, %v1195_v16   ;;  %v11454_v16 = vld [vmem:[#allocation111_spill] sm:$0xff] }
 0x25a   :  { %1507 = vperm.xlu2 %6308, %v1194_v21   ;;  %v1199_v0 = vadd.s32 16, %v11454_v16 }
 0x25b   :  { %v7471_v19 = vpop.permute.xlu1 %1378  ;;  %v7473_v10 = vpop.permute.xlu0 %1384 }
 0x25c   :  { %11445 = vst [vmem:[#allocation99_spill] sm:$0xff] %v7471_v19  ;;  %v7475_v24 = vpop.permute.xlu2 %1408 }
 0x25d   :  { %11446 = vst [vmem:[#allocation106_spill] sm:$0xff] %v7473_v10  ;;  %v1201_v10 = vadd.s32 16, %v11455_v3  ;;  %v11467_v3 = vld [vmem:[#allocation130_spill] sm:$0xff] }
 0x25e   :  { %11447 = vst [vmem:[#allocation98_spill] sm:$0xff] %v7475_v24  ;;  %v11456_v24 = vld [vmem:[#allocation110_spill] sm:$0xff] }
 0x25f   :  { %v1200_v19 = vadd.s32 16, %v11456_v24 }
 0x261   :  { %1513 = vperm.xlu1 %6310, %v1196_v61   ;;  %1519 = vperm.xlu0 %6309, %v1198_v13   ;;  %v11460_v13 = vld [vmem:[#allocation117_spill] sm:$0xff] }
 0x262   :  { %1516 = vperm.xlu2 %6308, %v1197_v18   ;;  %v1202_v61 = vadd.s32 16, %v11460_v13 }
 0x263   :  { %v7480_v7 = vpop.permute.xlu1 %1387  ;;  %v7482_v15 = vpop.permute.xlu0 %1393 }
 0x264   :  { %11451 = vst [vmem:[#allocation105_spill] sm:$0xff] %v7480_v7  ;;  %v7484_v21 = vpop.permute.xlu2 %1417 }
 0x265   :  { %11452 = vst [vmem:[#allocation112_spill] sm:$0xff] %v7482_v15  ;;  %v1204_v15 = vadd.s32 16, %v11461_v2  ;;  %v11473_v2 = vld [vmem:[#allocation136_spill] sm:$0xff] }
 0x266   :  { %11453 = vst [vmem:[#allocation104_spill] sm:$0xff] %v7484_v21  ;;  %v11462_v21 = vld [vmem:[#allocation116_spill] sm:$0xff] }
 0x267   :  { %v1203_v7 = vadd.s32 16, %v11462_v21 }
 0x269   :  { %1522 = vperm.xlu1 %6310, %v1199_v0   ;;  %1528 = vperm.xlu0 %6309, %v1201_v10   ;;  %v11466_v10 = vld [vmem:[#allocation123_spill] sm:$0xff] }
 0x26a   :  { %1525 = vperm.xlu2 %6308, %v1200_v19   ;;  %v1205_v0 = vadd.s32 16, %v11466_v10 }
 0x26b   :  { %v7489_v5 = vpop.permute.xlu1 %1396  ;;  %v7491_v62 = vpop.permute.xlu0 %1402 }
 0x26c   :  { %11457 = vst [vmem:[#allocation111_spill] sm:$0xff] %v7489_v5  ;;  %v7493_v18 = vpop.permute.xlu2 %1426  ;;  %v11468_v5 = vld [vmem:[#allocation122_spill] sm:$0xff] }
 0x26d   :  { %11458 = vst [vmem:[#allocation118_spill] sm:$0xff] %v7491_v62  ;;  %v1207_v62 = vadd.s32 16, %v11467_v3  ;;  %v1206_v1 = vadd.s32 16, %v11468_v5  ;;  %v11479_v3 = vld [vmem:[#allocation142_spill] sm:$0xff] }
 0x26e   :  { %11459 = vst [vmem:[#allocation110_spill] sm:$0xff] %v7493_v18  ;;  %v7865_v18 = vld [vmem:[#allocation2 + $0x2b8] sm:$0xff] }
 0x26f   :  { %11594 = vst [vmem:[#allocation305_spill] sm:$0xff] %v7865_v18  ;;  %v2213_v53 = vadd.s32 32, %v7865_v18  ;;  %v2222_v18 = vadd.s32 32, %v6410_v47  ;;  %v7922_v47 = vld [vmem:[#allocation2 + $0x2f8] sm:$0xff] }
 0x270   :  { %11614 = vst [vmem:[#allocation325_spill] sm:$0xff] %v7922_v47 }
 0x271   :  { %1531 = vperm.xlu1 %6310, %v1202_v61   ;;  %1537 = vperm.xlu0 %6309, %v1204_v15   ;;  %v11472_v15 = vld [vmem:[#allocation129_spill] sm:$0xff] }
 0x272   :  { %1534 = vperm.xlu2 %6308, %v1203_v7   ;;  %v1208_v61 = vadd.s32 16, %v11472_v15 }
 0x273   :  { %v7498_v16 = vpop.permute.xlu1 %1405  ;;  %v7500_v24 = vpop.permute.xlu0 %1411 }
 0x274   :  { %11463 = vst [vmem:[#allocation117_spill] sm:$0xff] %v7498_v16  ;;  %v7502_v19 = vpop.permute.xlu2 %1435  ;;  %v11474_v16 = vld [vmem:[#allocation128_spill] sm:$0xff] }
 0x275   :  { %11464 = vst [vmem:[#allocation124_spill] sm:$0xff] %v7500_v24  ;;  %v1210_v24 = vadd.s32 16, %v11473_v2  ;;  %v1209_v12 = vadd.s32 16, %v11474_v16  ;;  %v11485_v2 = vld [vmem:[#allocation148_spill] sm:$0xff] }
 0x276   :  { %11465 = vst [vmem:[#allocation116_spill] sm:$0xff] %v7502_v19  ;;  %v1216_v27 = vadd.s32 16, %v11485_v2  ;;  %v11497_v2 = vld [vmem:[#allocation160_spill] sm:$0xff]  ;;  %v7820_v19 = vld [vmem:[#allocation2 + $0x270] sm:$0xff] }
 0x277   :  { %v1222_v6 = vadd.s32 16, %v11497_v2  ;;  %v1228_v2 = vadd.s32 16, %v7188_v63  ;;  %v2204_v49 = vadd.s32 32, %v7820_v19 }
 0x279   :  { %1540 = vperm.xlu1 %6310, %v1205_v0   ;;  %1546 = vperm.xlu0 %6309, %v1207_v62   ;;  %v11478_v62 = vld [vmem:[#allocation135_spill] sm:$0xff] }
 0x27a   :  { %1543 = vperm.xlu2 %6308, %v1206_v1   ;;  %v1211_v0 = vadd.s32 16, %v11478_v62 }
 0x27b   :  { %v7507_v13 = vpop.permute.xlu1 %1414  ;;  %v7509_v21 = vpop.permute.xlu0 %1420 }
 0x27c   :  { %11469 = vst [vmem:[#allocation123_spill] sm:$0xff] %v7507_v13  ;;  %v7511_v7 = vpop.permute.xlu2 %1444  ;;  %v11480_v13 = vld [vmem:[#allocation134_spill] sm:$0xff] }
 0x27d   :  { %11470 = vst [vmem:[#allocation130_spill] sm:$0xff] %v7509_v21  ;;  %v1213_v21 = vadd.s32 16, %v11479_v3  ;;  %v1212_v22 = vadd.s32 16, %v11480_v13  ;;  %v11491_v3 = vld [vmem:[#allocation154_spill] sm:$0xff] }
 0x27e   :  { %11471 = vst [vmem:[#allocation122_spill] sm:$0xff] %v7511_v7  ;;  %v1219_v9 = vadd.s32 16, %v11491_v3  ;;  %v1225_v3 = vadd.s32 16, %v7174_v57  ;;  %v2176_v7 = vadd.s32 32, %v6369_v54 }
 0x281   :  { %1549 = vperm.xlu1 %6310, %v1208_v61   ;;  %1555 = vperm.xlu0 %6309, %v1210_v24   ;;  %v11484_v24 = vld [vmem:[#allocation141_spill] sm:$0xff] }
 0x282   :  { %1552 = vperm.xlu2 %6308, %v1209_v12   ;;  %v1214_v61 = vadd.s32 16, %v11484_v24 }
 0x283   :  { %v7516_v10 = vpop.permute.xlu1 %1423  ;;  %v7518_v5 = vpop.permute.xlu0 %1429 }
 0x284   :  { %11475 = vst [vmem:[#allocation129_spill] sm:$0xff] %v7516_v10  ;;  %v7520_v1 = vpop.permute.xlu2 %1453  ;;  %v7898_v10 = vld [vmem:[#allocation2 + $0x2c8] sm:$0xff] }
 0x285   :  { %11476 = vst [vmem:[#allocation136_spill] sm:$0xff] %v7518_v5  ;;  %v7850_v5 = vld [vmem:[#allocation2 + $0x2a0] sm:$0xff] }
 0x286   :  { %11477 = vst [vmem:[#allocation128_spill] sm:$0xff] %v7520_v1  ;;  %v2210_v44 = vadd.s32 32, %v7850_v5 }
 0x287   :  { %11604 = vst [vmem:[#allocation315_spill] sm:$0xff] %v7898_v10 }
 0x289   :  { %1558 = vperm.xlu1 %6310, %v1211_v0   ;;  %1564 = vperm.xlu0 %6309, %v1213_v21   ;;  %v11490_v21 = vld [vmem:[#allocation147_spill] sm:$0xff] }
 0x28a   :  { %1561 = vperm.xlu2 %6308, %v1212_v22   ;;  %v1217_v0 = vadd.s32 16, %v11490_v21 }
 0x28b   :  { %v7525_v15 = vpop.permute.xlu1 %1432  ;;  %v7527_v16 = vpop.permute.xlu0 %1438 }
 0x28c   :  { %11481 = vst [vmem:[#allocation135_spill] sm:$0xff] %v7525_v15  ;;  %v7529_v12 = vpop.permute.xlu2 %1462  ;;  %v7835_v15 = vld [vmem:[#allocation2 + $0x288] sm:$0xff] }
 0x28d   :  { %11482 = vst [vmem:[#allocation142_spill] sm:$0xff] %v7527_v16  ;;  %v7805_v16 = vld [vmem:[#allocation2 + $0x258] sm:$0xff]  ;;  %v2207_v52 = vadd.s32 32, %v7835_v15 }
 0x28e   :  { %11483 = vst [vmem:[#allocation134_spill] sm:$0xff] %v7529_v12  ;;  %v2201_v48 = vadd.s32 32, %v7805_v16 }
 0x291   :  { %1567 = vperm.xlu1 %6310, %v1214_v61   ;;  %1573 = vperm.xlu0 %6309, %v1216_v27   ;;  %v11496_v27 = vld [vmem:[#allocation153_spill] sm:$0xff] }
 0x292   :  { %1570 = vperm.xlu2 %6308, %v1215_v8   ;;  %v1220_v61 = vadd.s32 16, %v11496_v27 }
 0x293   :  { %v7534_v62 = vpop.permute.xlu1 %1441  ;;  %v7536_v13 = vpop.permute.xlu0 %1447 }
 0x294   :  { %11487 = vst [vmem:[#allocation141_spill] sm:$0xff] %v7534_v62  ;;  %v7538_v22 = vpop.permute.xlu2 %1471 }
 0x295   :  { %11488 = vst [vmem:[#allocation148_spill] sm:$0xff] %v7536_v13 }
 0x296   :  { %11489 = vst [vmem:[#allocation140_spill] sm:$0xff] %v7538_v22  ;;  %v7655_v22 = vld [vmem:[#allocation2 + $0x70] sm:$0xff] }
 0x299   :  { %1576 = vperm.xlu1 %6310, %v1217_v0   ;;  %1582 = vperm.xlu0 %6309, %v1219_v9  }
 0x29a   :  { %1579 = vperm.xlu2 %6308, %v1218_v30   ;;  %v11502_v30 = vld [vmem:[#allocation159_spill] sm:$0xff] }
 0x29b   :  { %v7543_v24 = vpop.permute.xlu1 %1450  ;;  %v7545_v4 = vpop.permute.xlu0 %1456  ;;  %v1223_v0 = vadd.s32 16, %v11502_v30  ;;  %v11512_v30 = vld [vmem:[#allocation169_spill] sm:$0xff] }
 0x29c   :  { %11493 = vst [vmem:[#allocation147_spill] sm:$0xff] %v7543_v24  ;;  %v7547_v8 = vpop.permute.xlu2 %1480  ;;  %v6366_v24 = vld [vmem:[#allocation2 + $0x178] sm:$0xff] }
 0x29d   :  { %11494 = vst [vmem:[#allocation154_spill] sm:$0xff] %v7545_v4  ;;  %v2173_v55 = vadd.s32 32, %v6366_v24 }
 0x29e   :  { %11495 = vst [vmem:[#allocation146_spill] sm:$0xff] %v7547_v8  ;;  %v7637_v8 = vld [vmem:[#allocation2 + $0x78] sm:$0xff] }
 0x29f   :  { %v2141_v20 = vadd.s32 32, %v7637_v8 }
 0x2a1   :  { %1585 = vperm.xlu1 %6310, %v1220_v61   ;;  %1591 = vperm.xlu0 %6309, %v1222_v6  }
 0x2a2   :  { %1588 = vperm.xlu2 %6308, %v1221_v45   ;;  %v11507_v45 = vld [vmem:[#allocation165_spill] sm:$0xff] }
 0x2a3   :  { %v7552_v21 = vpop.permute.xlu1 %1459  ;;  %v7554_v25 = vpop.permute.xlu0 %1465  ;;  %v1226_v61 = vadd.s32 16, %v11507_v45  ;;  %v7580_v45 = vld [vmem:[#allocation2] sm:$0xff] }
 0x2a4   :  { %11499 = vst [vmem:[#allocation153_spill] sm:$0xff] %v7552_v21  ;;  %v7556_v9 = vpop.permute.xlu2 %1489  ;;  %v2126_v63 = vadd.s32 32, %v7580_v45  ;;  %v6342_v21 = vld [vmem:[#allocation2 + $0xb8] sm:$0xff] }
 0x2a5   :  { %11500 = vst [vmem:[#allocation160_spill] sm:$0xff] %v7554_v25  ;;  %v2143_v25 = vadd.s32 32, %v7667_v23  ;;  %v2149_v26 = vadd.s32 32, %v6342_v21 }
 0x2a6   :  { %11501 = vst [vmem:[#allocation152_spill] sm:$0xff] %v7556_v9 }
 0x2a9   :  { %1594 = vperm.xlu1 %6310, %v1223_v0   ;;  %1600 = vperm.xlu0 %6309, %v1225_v3   ;;  %v1229_v0 = vadd.s32 16, %v11512_v30  ;;  %v7577_v3 = vld [vmem:[#allocation2 + $0x8] sm:$0xff]  ;;  %v7589_v30 = vld [vmem:[#allocation2 + $0x10] sm:$0xff] }
 0x2aa   :  { %1597 = vperm.xlu2 %6308, %v1224_v28  }
 0x2ab   :  { %v7561_v27 = vpop.permute.xlu1 %1468  ;;  %v7563_v11 = vpop.permute.xlu0 %1474 }
 0x2ac   :  { %11504 = vst [vmem:[#allocation159_spill] sm:$0xff] %v7561_v27  ;;  %v7565_v6 = vpop.permute.xlu2 %1498  ;;  %v2147_v27 = vadd.s32 32, %v6335_v38  ;;  %v6339_v38 = vld [vmem:[#allocation2 + $0xa0] sm:$0xff] }
 0x2ad   :  { %11505 = vst [vmem:[#allocation158_spill] sm:$0xff] %v7563_v11  ;;  %v7652_v11 = vld [vmem:[#allocation2 + $0x90] sm:$0xff]  ;;  %v2146_v12 = vadd.s32 32, %v6339_v38 }
 0x2ae   :  { %11506 = vst [vmem:[#allocation223_spill] sm:$0xff] %v7565_v6  ;;  %v2127_v6 = vadd.s32 32, %v7577_v3  ;;  %v2144_v39 = vadd.s32 32, %v7652_v11 }
 0x2b1   :  { %1603 = vperm.xlu1 %6310, %v1226_v61   ;;  %1609 = vperm.xlu0 %6309, %v1228_v2  }
 0x2b2   :  { %1606 = vperm.xlu2 %6308, %v1227_v14  }
 0x2b3   :  { %v7570_v57 = vpop.permute.xlu1 %1477  ;;  %v7572_v29 = vpop.permute.xlu0 %1483 }
 0x2b4   :  { %11509 = vst [vmem:[#allocation165_spill] sm:$0xff] %v7570_v57  ;;  %v7574_v28 = vpop.permute.xlu2 %1507  ;;  %v7640_v57 = vld [vmem:[#allocation2 + $0x58] sm:$0xff] }
 0x2b5   :  { %11510 = vst [vmem:[#allocation164_spill] sm:$0xff] %v7572_v29 }
 0x2b6   :  { %11511 = vst [vmem:[#allocation224_spill] sm:$0xff] %v7574_v28  ;;  %v2128_v28 = vadd.s32 32, %v7589_v30 }
 0x2b9   :  { %1612 = vperm.xlu1 %6310, %v1229_v0   ;;  %6312 = vset.pattern.permute.xlu0 %v6605_v56  ;;  %v7595_v0 = vld [vmem:[#allocation2 + $0x18] sm:$0xff] }
 0x2ba   :  { %6311 = vset.pattern.permute.xlu2 %v6605_v56  ;;  %2258 = vperm.xlu0 %6312, %v2127_v6   ;;  %v2129_v9 = vadd.s32 32, %v7595_v0 }
 0x2bb   :  { %2255 = vperm.xlu2 %6311, %v2126_v63   ;;  %v7583_v14 = vpop.permute.xlu1 %1486  ;;  %v7585_v61 = vpop.permute.xlu0 %1492 }
 0x2bc   :  { %11513 = vst [vmem:[#allocation169_spill] sm:$0xff] %v7583_v14  ;;  %v7587_v2 = vpop.permute.xlu2 %1516  ;;  %v7607_v14 = vld [vmem:[#allocation2 + $0x48] sm:$0xff] }
 0x2bd   :  { %11514 = vst [vmem:[#allocation225_spill] sm:$0xff] %v7585_v61  ;;  %v7604_v61 = vld [vmem:[#allocation2 + $0x20] sm:$0xff]  ;;  %v2135_v17 = vadd.s32 32, %v7607_v14 }
 0x2be   :  { %11515 = vst [vmem:[#allocation226_spill] sm:$0xff] %v7587_v2  ;;  %v2130_v31 = vadd.s32 32, %v7604_v61 }
 0x2c1   :  { %6313 = vset.pattern.permute.xlu1 %v6605_v56 }
 0x2c2   :  { %2261 = vperm.xlu1 %6313, %v2128_v28   ;;  %2273 = vperm.xlu0 %6312, %v2132_v32   ;;  %v2131_v28 = vadd.s32 32, %v7610_v35 }
 0x2c3   :  { %2264 = vperm.xlu2 %6311, %v2129_v9   ;;  %v7598_v6 = vpop.permute.xlu1 %1495  ;;  %v7600_v63 = vpop.permute.xlu0 %1501 }
 0x2c4   :  { %11516 = vst [vmem:[#allocation227_spill] sm:$0xff] %v7598_v6  ;;  %v7602_v2 = vpop.permute.xlu2 %1525  ;;  %v7622_v6 = vld [vmem:[#allocation2 + $0x60] sm:$0xff] }
 0x2c5   :  { %11517 = vst [vmem:[#allocation228_spill] sm:$0xff] %v7600_v63  ;;  %v2138_v29 = vadd.s32 32, %v7622_v6 }
 0x2c6   :  { %11518 = vst [vmem:[#allocation229_spill] sm:$0xff] %v7602_v2  ;;  %v7619_v2 = vld [vmem:[#allocation2 + $0x38] sm:$0xff] }
 0x2c7   :  { %v2133_v63 = vadd.s32 32, %v7619_v2 }
 0x2ca   :  { %2267 = vperm.xlu1 %6313, %v2130_v31   ;;  %2282 = vperm.xlu0 %6312, %v2135_v17   ;;  %v2134_v31 = vadd.s32 32, %v7625_v34 }
 0x2cb   :  { %2270 = vperm.xlu2 %6311, %v2131_v28   ;;  %v7613_v32 = vpop.permute.xlu1 %1504  ;;  %v7615_v9 = vpop.permute.xlu0 %1510 }
 0x2cc   :  { %11519 = vst [vmem:[#allocation230_spill] sm:$0xff] %v7613_v32  ;;  %v7617_v56 = vpop.permute.xlu2 %1534 }
 0x2cd   :  { %11520 = vst [vmem:[#allocation231_spill] sm:$0xff] %v7615_v9  ;;  %v7634_v9 = vld [vmem:[#allocation2 + $0x50] sm:$0xff] }
 0x2ce   :  { %11521 = vst [vmem:[#allocation232_spill] sm:$0xff] %v7617_v56  ;;  %v2136_v32 = vadd.s32 32, %v7634_v9 }
 0x2d2   :  { %2276 = vperm.xlu1 %6313, %v2133_v63   ;;  %2291 = vperm.xlu0 %6312, %v2138_v29   ;;  %v2137_v63 = vadd.s32 32, %v7640_v57 }
 0x2d3   :  { %2279 = vperm.xlu2 %6311, %v2134_v31   ;;  %v7628_v17 = vpop.permute.xlu1 %1513  ;;  %v7630_v28 = vpop.permute.xlu0 %1519 }
 0x2d4   :  { %11522 = vst [vmem:[#allocation233_spill] sm:$0xff] %v7628_v17  ;;  %v7632_v56 = vpop.permute.xlu2 %1543 }
 0x2d5   :  { %11523 = vst [vmem:[#allocation234_spill] sm:$0xff] %v7630_v28  ;;  %v7649_v28 = vld [vmem:[#allocation2 + $0x68] sm:$0xff] }
 0x2d6   :  { %11524 = vst [vmem:[#allocation235_spill] sm:$0xff] %v7632_v56  ;;  %v2139_v17 = vadd.s32 32, %v7649_v28 }
 0x2da   :  { %2285 = vperm.xlu1 %6313, %v2136_v32   ;;  %2300 = vperm.xlu0 %6312, %v2141_v20   ;;  %v2140_v32 = vadd.s32 32, %v7655_v22 }
 0x2db   :  { %2288 = vperm.xlu2 %6311, %v2137_v63   ;;  %v7643_v29 = vpop.permute.xlu1 %1522  ;;  %v7645_v31 = vpop.permute.xlu0 %1528 }
 0x2dc   :  { %11525 = vst [vmem:[#allocation236_spill] sm:$0xff] %v7643_v29  ;;  %v7647_v56 = vpop.permute.xlu2 %1552 }
 0x2dd   :  { %11526 = vst [vmem:[#allocation237_spill] sm:$0xff] %v7645_v31  ;;  %v7664_v31 = vld [vmem:[#allocation2 + $0x80] sm:$0xff] }
 0x2de   :  { %11527 = vst [vmem:[#allocation238_spill] sm:$0xff] %v7647_v56  ;;  %v2142_v29 = vadd.s32 32, %v7664_v31 }
 0x2e2   :  { %2294 = vperm.xlu1 %6313, %v2139_v17   ;;  %2309 = vperm.xlu0 %6312, %v2144_v39  }
 0x2e3   :  { %2297 = vperm.xlu2 %6311, %v2140_v32   ;;  %v7658_v20 = vpop.permute.xlu1 %1531  ;;  %v7660_v63 = vpop.permute.xlu0 %1537 }
 0x2e4   :  { %11528 = vst [vmem:[#allocation239_spill] sm:$0xff] %v7658_v20  ;;  %v7662_v56 = vpop.permute.xlu2 %1561  ;;  %v6338_v20 = vld [vmem:[#allocation2 + $0xc0] sm:$0xff] }
 0x2e5   :  { %11529 = vst [vmem:[#allocation240_spill] sm:$0xff] %v7660_v63  ;;  %v2150_v59 = vadd.s32 32, %v6338_v20 }
 0x2e6   :  { %11530 = vst [vmem:[#allocation241_spill] sm:$0xff] %v7662_v56  ;;  %v7676_v56 = vld [vmem:[#allocation2 + $0x98] sm:$0xff] }
 0x2e7   :  { %v2145_v63 = vadd.s32 32, %v7676_v56 }
 0x2ea   :  { %2303 = vperm.xlu1 %6313, %v2142_v29   ;;  %2318 = vperm.xlu0 %6312, %v2147_v27  }
 0x2eb   :  { %2306 = vperm.xlu2 %6311, %v2143_v25   ;;  %v7670_v39 = vpop.permute.xlu1 %1540  ;;  %v7672_v17 = vpop.permute.xlu0 %1546 }
 0x2ec   :  { %11531 = vst [vmem:[#allocation242_spill] sm:$0xff] %v7670_v39  ;;  %v7674_v32 = vpop.permute.xlu2 %1570 }
 0x2ed   :  { %11532 = vst [vmem:[#allocation243_spill] sm:$0xff] %v7672_v17  ;;  %v6340_v17 = vld [vmem:[#allocation2 + $0xb0] sm:$0xff] }
 0x2ee   :  { %11533 = vst [vmem:[#allocation244_spill] sm:$0xff] %v7674_v32  ;;  %v2148_v39 = vadd.s32 32, %v6340_v17  ;;  %v6341_v32 = vld [vmem:[#allocation2 + $0xd8] sm:$0xff] }
 0x2ef   :  { %v2153_v41 = vadd.s32 32, %v6341_v32  ;;  %v6347_v32 = vld [vmem:[#allocation2 + $0x108] sm:$0xff] }
 0x2f2   :  { %2312 = vperm.xlu1 %6313, %v2145_v63   ;;  %2327 = vperm.xlu0 %6312, %v2150_v59  }
 0x2f3   :  { %2315 = vperm.xlu2 %6311, %v2146_v12   ;;  %v7679_v29 = vpop.permute.xlu1 %1549  ;;  %v7681_v25 = vpop.permute.xlu0 %1555  ;;  %v6343_v12 = vld [vmem:[#allocation2 + $0xc8] sm:$0xff] }
 0x2f4   :  { %11534 = vst [vmem:[#allocation245_spill] sm:$0xff] %v7679_v29  ;;  %v7683_v27 = vpop.permute.xlu2 %1579  ;;  %v2151_v38 = vadd.s32 32, %v6343_v12 }
 0x2f5   :  { %11535 = vst [vmem:[#allocation246_spill] sm:$0xff] %v7681_v25  ;;  %v6344_v25 = vld [vmem:[#allocation2 + $0xf0] sm:$0xff] }
 0x2f6   :  { %11536 = vst [vmem:[#allocation247_spill] sm:$0xff] %v7683_v27  ;;  %v2156_v29 = vadd.s32 32, %v6344_v25  ;;  %v6345_v27 = vld [vmem:[#allocation2 + $0xd0] sm:$0xff] }
 0x2f7   :  { %v2152_v4 = vadd.s32 32, %v6345_v27 }
 0x2fa   :  { %2321 = vperm.xlu1 %6313, %v2148_v39   ;;  %2336 = vperm.xlu0 %6312, %v2153_v41   ;;  %v6346_v41 = vld [vmem:[#allocation2 + $0xe0] sm:$0xff] }
 0x2fb   :  { %2324 = vperm.xlu2 %6311, %v2149_v26   ;;  %v7685_v20 = vpop.permute.xlu1 %1558  ;;  %v7687_v63 = vpop.permute.xlu0 %1564  ;;  %v2154_v39 = vadd.s32 32, %v6346_v41 }
 0x2fc   :  { %11537 = vst [vmem:[#allocation248_spill] sm:$0xff] %v7685_v20  ;;  %v7689_v59 = vpop.permute.xlu2 %1588 }
 0x2fd   :  { %11538 = vst [vmem:[#allocation249_spill] sm:$0xff] %v7687_v63  ;;  %v2159_v63 = vadd.s32 32, %v6347_v32  ;;  %v6353_v32 = vld [vmem:[#allocation2 + $0x138] sm:$0xff] }
 0x2fe   :  { %11539 = vst [vmem:[#allocation250_spill] sm:$0xff] %v7689_v59  ;;  %v6348_v59 = vld [vmem:[#allocation2 + $0xe8] sm:$0xff] }
 0x2ff   :  { %v2155_v20 = vadd.s32 32, %v6348_v59 }
 0x302   :  { %2330 = vperm.xlu1 %6313, %v2151_v38   ;;  %2345 = vperm.xlu0 %6312, %v2156_v29   ;;  %v6349_v29 = vld [vmem:[#allocation2 + $0xf8] sm:$0xff]  ;;  %v6350_v38 = vld [vmem:[#allocation2 + $0x120] sm:$0xff] }
 0x303   :  { %2333 = vperm.xlu2 %6311, %v2152_v4   ;;  %v7691_v17 = vpop.permute.xlu1 %1567  ;;  %v7693_v21 = vpop.permute.xlu0 %1573  ;;  %v2157_v12 = vadd.s32 32, %v6349_v29 }
 0x304   :  { %11540 = vst [vmem:[#allocation251_spill] sm:$0xff] %v7691_v17  ;;  %v7695_v26 = vpop.permute.xlu2 %1597 }
 0x305   :  { %11541 = vst [vmem:[#allocation252_spill] sm:$0xff] %v7693_v21  ;;  %v2162_v21 = vadd.s32 32, %v6350_v38  ;;  %v6356_v38 = vld [vmem:[#allocation2 + $0x150] sm:$0xff] }
 0x306   :  { %11542 = vst [vmem:[#allocation253_spill] sm:$0xff] %v7695_v26  ;;  %v6351_v26 = vld [vmem:[#allocation2 + $0x100] sm:$0xff] }
 0x307   :  { %v2158_v17 = vadd.s32 32, %v6351_v26 }
 0x30a   :  { %2339 = vperm.xlu1 %6313, %v2154_v39   ;;  %2354 = vperm.xlu0 %6312, %v2159_v63   ;;  %v6352_v63 = vld [vmem:[#allocation2 + $0x110] sm:$0xff] }
 0x30b   :  { %2342 = vperm.xlu2 %6311, %v2155_v20   ;;  %v7697_v25 = vpop.permute.xlu1 %1576  ;;  %v7699_v27 = vpop.permute.xlu0 %1582  ;;  %v2160_v39 = vadd.s32 32, %v6352_v63 }
 0x30c   :  { %11543 = vst [vmem:[#allocation254_spill] sm:$0xff] %v7697_v25  ;;  %v7701_v4 = vpop.permute.xlu2 %1606 }
 0x30d   :  { %11544 = vst [vmem:[#allocation255_spill] sm:$0xff] %v7699_v27  ;;  %v2165_v27 = vadd.s32 32, %v6353_v32  ;;  %v6359_v32 = vld [vmem:[#allocation2 + $0x168] sm:$0xff] }
 0x30e   :  { %11545 = vst [vmem:[#allocation256_spill] sm:$0xff] %v7701_v4  ;;  %v6354_v4 = vld [vmem:[#allocation2 + $0x118] sm:$0xff] }
 0x30f   :  { %v2161_v25 = vadd.s32 32, %v6354_v4 }
 0x312   :  { %2348 = vperm.xlu1 %6313, %v2157_v12   ;;  %2363 = vperm.xlu0 %6312, %v2162_v21   ;;  %v6355_v21 = vld [vmem:[#allocation2 + $0x128] sm:$0xff] }
 0x313   :  { %2351 = vperm.xlu2 %6311, %v2158_v17   ;;  %v7703_v41 = vpop.permute.xlu1 %1585  ;;  %v7705_v59 = vpop.permute.xlu0 %1591  ;;  %v2163_v12 = vadd.s32 32, %v6355_v21 }
 0x314   :  { %11546 = vst [vmem:[#allocation257_spill] sm:$0xff] %v7703_v41  ;;  %v6357_v41 = vld [vmem:[#allocation2 + $0x130] sm:$0xff] }
 0x315   :  { %11547 = vst [vmem:[#allocation258_spill] sm:$0xff] %v7705_v59  ;;  %v7707_v20 = vpop.permute.xlu2 %2255  ;;  %v2168_v59 = vadd.s32 32, %v6356_v38  ;;  %v2164_v60 = vadd.s32 32, %v6357_v41  ;;  %v6362_v38 = vld [vmem:[#allocation2 + $0x180] sm:$0xff] }
 0x31a   :  { %2357 = vperm.xlu1 %6313, %v2160_v39   ;;  %2372 = vperm.xlu0 %6312, %v2165_v27   ;;  %v6358_v27 = vld [vmem:[#allocation2 + $0x140] sm:$0xff] }
 0x31b   :  { %2360 = vperm.xlu2 %6311, %v2161_v25   ;;  %v7709_v29 = vpop.permute.xlu1 %1594  ;;  %v7711_v26 = vpop.permute.xlu0 %1600  ;;  %v2166_v39 = vadd.s32 32, %v6358_v27 }
 0x31c   :  { %11548 = vst [vmem:[#allocation259_spill] sm:$0xff] %v7709_v29  ;;  %v6360_v29 = vld [vmem:[#allocation2 + $0x148] sm:$0xff] }
 0x31d   :  { %11549 = vst [vmem:[#allocation260_spill] sm:$0xff] %v7711_v26  ;;  %v7713_v17 = vpop.permute.xlu2 %2264  ;;  %v2171_v26 = vadd.s32 32, %v6359_v32  ;;  %v2167_v1 = vadd.s32 32, %v6360_v29  ;;  %v6365_v32 = vld [vmem:[#allocation2 + $0x198] sm:$0xff] }
 0x31e   :  { %11550 = vst [vmem:[#allocation261_spill] sm:$0xff] %v7713_v17 }
 0x322   :  { %2366 = vperm.xlu1 %6313, %v2163_v12   ;;  %2381 = vperm.xlu0 %6312, %v2168_v59   ;;  %v6361_v59 = vld [vmem:[#allocation2 + $0x158] sm:$0xff] }
 0x323   :  { %2369 = vperm.xlu2 %6311, %v2164_v60   ;;  %v7715_v63 = vpop.permute.xlu1 %1603  ;;  %v7717_v4 = vpop.permute.xlu0 %1609  ;;  %v2169_v12 = vadd.s32 32, %v6361_v59 }
 0x324   :  { %11551 = vst [vmem:[#allocation262_spill] sm:$0xff] %v7715_v63  ;;  %v6363_v63 = vld [vmem:[#allocation2 + $0x160] sm:$0xff] }
 0x325   :  { %11552 = vst [vmem:[#allocation263_spill] sm:$0xff] %v7717_v4  ;;  %v7719_v25 = vpop.permute.xlu2 %2270  ;;  %v2174_v4 = vadd.s32 32, %v6362_v38  ;;  %v2170_v51 = vadd.s32 32, %v6363_v63  ;;  %v6368_v38 = vld [vmem:[#allocation2 + $0x1b0] sm:$0xff] }
 0x326   :  { %11553 = vst [vmem:[#allocation264_spill] sm:$0xff] %v7719_v25  ;;  %v2180_v13 = vadd.s32 32, %v6368_v38  ;;  %v6374_v38 = vld [vmem:[#allocation2 + $0x1e0] sm:$0xff]  ;;  %v2216_v25 = vadd.s32 32, %v7880_v46 }
 0x32a   :  { %2375 = vperm.xlu1 %6313, %v2166_v39   ;;  %2390 = vperm.xlu0 %6312, %v2171_v26   ;;  %v6364_v26 = vld [vmem:[#allocation2 + $0x170] sm:$0xff] }
 0x32b   :  { %2378 = vperm.xlu2 %6311, %v2167_v1   ;;  %v7721_v21 = vpop.permute.xlu1 %1612  ;;  %v2172_v39 = vadd.s32 32, %v6364_v26 }
 0x32c   :  { %11554 = vst [vmem:[#allocation265_spill] sm:$0xff] %v7721_v21  ;;  %v7723_v41 = vpop.permute.xlu0 %2258  ;;  %v2177_v21 = vadd.s32 32, %v6365_v32  ;;  %v6371_v32 = vld [vmem:[#allocation2 + $0x1c8] sm:$0xff] }
 0x32d   :  { %v7725_v60 = vpop.permute.xlu2 %2279  ;;  %v2183_v37 = vadd.s32 32, %v6371_v32  ;;  %v6377_v32 = vld [vmem:[#allocation2 + $0x1f8] sm:$0xff] }
 0x32e   :  { %11555 = vst [vmem:[#allocation266_spill] sm:$0xff] %v7725_v60  ;;  %v7838_v60 = vld [vmem:[#allocation2 + $0x268] sm:$0xff] }
 0x332   :  { %2384 = vperm.xlu1 %6313, %v2169_v12   ;;  %2399 = vperm.xlu0 %6312, %v2174_v4   ;;  %v6367_v4 = vld [vmem:[#allocation2 + $0x188] sm:$0xff] }
 0x333   :  { %2387 = vperm.xlu2 %6311, %v2170_v51   ;;  %v2175_v12 = vadd.s32 32, %v6367_v4 }
 0x334   :  { %v7727_v27 = vpop.permute.xlu1 %2261  ;;  %v7729_v29 = vpop.permute.xlu0 %2273 }
 0x335   :  { %11556 = vst [vmem:[#allocation267_spill] sm:$0xff] %v7729_v29  ;;  %v7731_v1 = vpop.permute.xlu2 %2288  ;;  %v7868_v29 = vld [vmem:[#allocation2 + $0x298] sm:$0xff] }
 0x336   :  { %11557 = vst [vmem:[#allocation268_spill] sm:$0xff] %v7731_v1 }
 0x33a   :  { %2393 = vperm.xlu1 %6313, %v2172_v39   ;;  %2408 = vperm.xlu0 %6312, %v2177_v21   ;;  %v6370_v21 = vld [vmem:[#allocation2 + $0x1a0] sm:$0xff] }
 0x33b   :  { %2396 = vperm.xlu2 %6311, %v2173_v55   ;;  %v2178_v39 = vadd.s32 32, %v6370_v21 }
 0x33c   :  { %v7733_v59 = vpop.permute.xlu1 %2267  ;;  %v7735_v63 = vpop.permute.xlu0 %2282 }
 0x33d   :  { %11558 = vst [vmem:[#allocation269_spill] sm:$0xff] %v7733_v59  ;;  %v7737_v51 = vpop.permute.xlu2 %2297  ;;  %v7895_v59 = vld [vmem:[#allocation2 + $0x2e8] sm:$0xff] }
 0x33e   :  { %11559 = vst [vmem:[#allocation270_spill] sm:$0xff] %v7735_v63  ;;  %v7823_v63 = vld [vmem:[#allocation2 + $0x250] sm:$0xff]  ;;  %v2219_v46 = vadd.s32 32, %v7895_v59 }
 0x33f   :  { %11560 = vst [vmem:[#allocation271_spill] sm:$0xff] %v7737_v51  ;;  %v6372_v51 = vld [vmem:[#allocation2 + $0x1a8] sm:$0xff] }
 0x340   :  { %v2179_v62 = vadd.s32 32, %v6372_v51  ;;  %11603 = vst [vmem:[#allocation314_spill] sm:$0xff] %v7895_v59  ;;  %v7910_v59 = vld [vmem:[#allocation2 + $0x2e0] sm:$0xff] }
 0x341   :  { %11609 = vst [vmem:[#allocation320_spill] sm:$0xff] %v7910_v59  ;;  %v2218_v17 = vadd.s32 32, %v7910_v59 }
 0x342   :  { %2402 = vperm.xlu1 %6313, %v2175_v12   ;;  %2417 = vperm.xlu0 %6312, %v2180_v13   ;;  %v6373_v13 = vld [vmem:[#allocation2 + $0x1b8] sm:$0xff] }
 0x343   :  { %2405 = vperm.xlu2 %6311, %v2176_v7   ;;  %v2181_v12 = vadd.s32 32, %v6373_v13 }
 0x344   :  { %v7739_v26 = vpop.permute.xlu1 %2276  ;;  %v7741_v24 = vpop.permute.xlu0 %2291 }
 0x345   :  { %11561 = vst [vmem:[#allocation272_spill] sm:$0xff] %v7739_v26  ;;  %v7743_v55 = vpop.permute.xlu2 %2306  ;;  %v7853_v26 = vld [vmem:[#allocation2 + $0x280] sm:$0xff] }
 0x346   :  { %11562 = vst [vmem:[#allocation273_spill] sm:$0xff] %v7741_v24  ;;  %v2186_v24 = vadd.s32 32, %v6374_v38  ;;  %v7763_v38 = vld [vmem:[#allocation2 + $0x210] sm:$0xff] }
 0x347   :  { %11563 = vst [vmem:[#allocation274_spill] sm:$0xff] %v7743_v55  ;;  %v6375_v55 = vld [vmem:[#allocation2 + $0x1c0] sm:$0xff] }
 0x348   :  { %v2182_v58 = vadd.s32 32, %v6375_v55 }
 0x34a   :  { %2411 = vperm.xlu1 %6313, %v2178_v39   ;;  %2426 = vperm.xlu0 %6312, %v2183_v37  }
 0x34b   :  { %2414 = vperm.xlu2 %6311, %v2179_v62   ;;  %v6376_v62 = vld [vmem:[#allocation2 + $0x1d0] sm:$0xff] }
 0x34c   :  { %v7745_v4 = vpop.permute.xlu1 %2285  ;;  %v7747_v54 = vpop.permute.xlu0 %2300  ;;  %v2184_v39 = vadd.s32 32, %v6376_v62  ;;  %v6381_v62 = vld [vmem:[#allocation2 + $0x1f0] sm:$0xff] }
 0x34d   :  { %11564 = vst [vmem:[#allocation275_spill] sm:$0xff] %v7745_v4  ;;  %v7749_v7 = vpop.permute.xlu2 %2315  ;;  %v7808_v4 = vld [vmem:[#allocation2 + $0x238] sm:$0xff] }
 0x34e   :  { %11565 = vst [vmem:[#allocation276_spill] sm:$0xff] %v7747_v54  ;;  %v2189_v54 = vadd.s32 32, %v6377_v32 }
 0x34f   :  { %11566 = vst [vmem:[#allocation277_spill] sm:$0xff] %v7749_v7  ;;  %v6378_v7 = vld [vmem:[#allocation2 + $0x1d8] sm:$0xff] }
 0x350   :  { %v2185_v1 = vadd.s32 32, %v6378_v7 }
 0x352   :  { %2420 = vperm.xlu1 %6313, %v2181_v12   ;;  %2435 = vperm.xlu0 %6312, %v2186_v24   ;;  %v6379_v24 = vld [vmem:[#allocation2 + $0x1e8] sm:$0xff] }
 0x353   :  { %2423 = vperm.xlu2 %6311, %v2182_v58   ;;  %v2187_v12 = vadd.s32 32, %v6379_v24  ;;  %v7775_v24 = vld [vmem:[#allocation2 + $0x228] sm:$0xff] }
 0x354   :  { %v7751_v21 = vpop.permute.xlu1 %2294  ;;  %v7753_v51 = vpop.permute.xlu0 %2309 }
 0x355   :  { %11567 = vst [vmem:[#allocation278_spill] sm:$0xff] %v7751_v21  ;;  %v7755_v37 = vpop.permute.xlu2 %2324  ;;  %v7793_v21 = vld [vmem:[#allocation2 + $0x220] sm:$0xff] }
 0x356   :  { %11568 = vst [vmem:[#allocation279_spill] sm:$0xff] %v7753_v51  ;;  %v2188_v51 = vadd.s32 32, %v6381_v62 }
 0x357   :  { %11569 = vst [vmem:[#allocation280_spill] sm:$0xff] %v7755_v37  ;;  %v2192_v37 = vadd.s32 32, %v7763_v38 }
 0x35a   :  { %2429 = vperm.xlu1 %6313, %v2184_v39   ;;  %2444 = vperm.xlu0 %6312, %v2189_v54   ;;  %v7772_v39 = vld [vmem:[#allocation2 + $0x200] sm:$0xff] }
 0x35b   :  { %2432 = vperm.xlu2 %6311, %v2185_v1   ;;  %v2190_v32 = vadd.s32 32, %v7772_v39 }
 0x35c   :  { %v7757_v13 = vpop.permute.xlu1 %2303  ;;  %v7759_v55 = vpop.permute.xlu0 %2318 }
 0x35d   :  { %11570 = vst [vmem:[#allocation281_spill] sm:$0xff] %v7757_v13  ;;  %v7761_v58 = vpop.permute.xlu2 %2333 }
 0x35e   :  { %11571 = vst [vmem:[#allocation282_spill] sm:$0xff] %v7759_v55  ;;  %v7778_v55 = vld [vmem:[#allocation2 + $0x208] sm:$0xff] }
 0x35f   :  { %11572 = vst [vmem:[#allocation283_spill] sm:$0xff] %v7761_v58  ;;  %v2195_v58 = vadd.s32 32, %v7775_v24 }
 0x362   :  { %2438 = vperm.xlu1 %6313, %v2187_v12   ;;  %2453 = vperm.xlu0 %6312, %v2192_v37   ;;  %v2191_v12 = vadd.s32 32, %v7778_v55 }
 0x363   :  { %2441 = vperm.xlu2 %6311, %v2188_v51  }
 0x364   :  { %v7766_v7 = vpop.permute.xlu1 %2312  ;;  %v7768_v1 = vpop.permute.xlu0 %2327 }
 0x365   :  { %11573 = vst [vmem:[#allocation284_spill] sm:$0xff] %v7766_v7  ;;  %v7770_v54 = vpop.permute.xlu2 %2342  ;;  %v7790_v7 = vld [vmem:[#allocation2 + $0x240] sm:$0xff] }
 0x366   :  { %11574 = vst [vmem:[#allocation285_spill] sm:$0xff] %v7768_v1  ;;  %v2198_v13 = vadd.s32 32, %v7790_v7 }
 0x367   :  { %11575 = vst [vmem:[#allocation286_spill] sm:$0xff] %v7770_v54  ;;  %v7787_v54 = vld [vmem:[#allocation2 + $0x218] sm:$0xff] }
 0x368   :  { %v2193_v1 = vadd.s32 32, %v7787_v54 }
 0x36a   :  { %2447 = vperm.xlu1 %6313, %v2190_v32   ;;  %2462 = vperm.xlu0 %6312, %v2195_v58   ;;  %v2194_v32 = vadd.s32 32, %v7793_v21 }
 0x36b   :  { %2450 = vperm.xlu2 %6311, %v2191_v12  }
 0x36c   :  { %v7781_v51 = vpop.permute.xlu1 %2321  ;;  %v7783_v37 = vpop.permute.xlu0 %2336 }
 0x36d   :  { %11576 = vst [vmem:[#allocation287_spill] sm:$0xff] %v7781_v51  ;;  %v7785_v62 = vpop.permute.xlu2 %2351 }
 0x36e   :  { %11577 = vst [vmem:[#allocation288_spill] sm:$0xff] %v7783_v37  ;;  %v7802_v37 = vld [vmem:[#allocation2 + $0x230] sm:$0xff] }
 0x36f   :  { %11578 = vst [vmem:[#allocation289_spill] sm:$0xff] %v7785_v62  ;;  %v2196_v51 = vadd.s32 32, %v7802_v37 }
 0x372   :  { %2456 = vperm.xlu1 %6313, %v2193_v1   ;;  %2471 = vperm.xlu0 %6312, %v2198_v13   ;;  %v2197_v1 = vadd.s32 32, %v7808_v4 }
 0x373   :  { %2459 = vperm.xlu2 %6311, %v2194_v32  }
 0x374   :  { %v7796_v58 = vpop.permute.xlu1 %2330  ;;  %v7798_v12 = vpop.permute.xlu0 %2345 }
 0x375   :  { %11579 = vst [vmem:[#allocation290_spill] sm:$0xff] %v7796_v58  ;;  %v7800_v62 = vpop.permute.xlu2 %2360 }
 0x376   :  { %11580 = vst [vmem:[#allocation291_spill] sm:$0xff] %v7798_v12  ;;  %v7817_v12 = vld [vmem:[#allocation2 + $0x248] sm:$0xff] }
 0x377   :  { %11581 = vst [vmem:[#allocation292_spill] sm:$0xff] %v7800_v62  ;;  %v2199_v58 = vadd.s32 32, %v7817_v12 }
 0x37a   :  { %2465 = vperm.xlu1 %6313, %v2196_v51   ;;  %2480 = vperm.xlu0 %6312, %v2201_v48   ;;  %v2200_v51 = vadd.s32 32, %v7823_v63 }
 0x37b   :  { %2468 = vperm.xlu2 %6311, %v2197_v1  }
 0x37c   :  { %v7811_v13 = vpop.permute.xlu1 %2339  ;;  %v7813_v32 = vpop.permute.xlu0 %2354 }
 0x37d   :  { %11582 = vst [vmem:[#allocation293_spill] sm:$0xff] %v7811_v13  ;;  %v7815_v62 = vpop.permute.xlu2 %2369 }
 0x37e   :  { %11583 = vst [vmem:[#allocation294_spill] sm:$0xff] %v7813_v32  ;;  %v7832_v32 = vld [vmem:[#allocation2 + $0x260] sm:$0xff] }
 0x37f   :  { %11584 = vst [vmem:[#allocation295_spill] sm:$0xff] %v7815_v62  ;;  %v2202_v13 = vadd.s32 32, %v7832_v32 }
 0x382   :  { %2474 = vperm.xlu1 %6313, %v2199_v58   ;;  %2489 = vperm.xlu0 %6312, %v2204_v49   ;;  %v2203_v58 = vadd.s32 32, %v7838_v60 }
 0x383   :  { %2477 = vperm.xlu2 %6311, %v2200_v51  }
 0x384   :  { %v7826_v48 = vpop.permute.xlu1 %2348  ;;  %v7828_v1 = vpop.permute.xlu0 %2363 }
 0x385   :  { %11585 = vst [vmem:[#allocation296_spill] sm:$0xff] %v7826_v48  ;;  %v7830_v62 = vpop.permute.xlu2 %2378 }
 0x386   :  { %11586 = vst [vmem:[#allocation297_spill] sm:$0xff] %v7828_v1  ;;  %v7847_v1 = vld [vmem:[#allocation2 + $0x278] sm:$0xff] }
 0x387   :  { %11587 = vst [vmem:[#allocation298_spill] sm:$0xff] %v7830_v62  ;;  %v2205_v48 = vadd.s32 32, %v7847_v1 }
 0x38a   :  { %2483 = vperm.xlu1 %6313, %v2202_v13   ;;  %2498 = vperm.xlu0 %6312, %v2207_v52   ;;  %v2206_v13 = vadd.s32 32, %v7853_v26 }
 0x38b   :  { %2486 = vperm.xlu2 %6311, %v2203_v58  }
 0x38c   :  { %v7841_v49 = vpop.permute.xlu1 %2357  ;;  %v7843_v51 = vpop.permute.xlu0 %2372 }
 0x38d   :  { %11588 = vst [vmem:[#allocation299_spill] sm:$0xff] %v7841_v49  ;;  %v7845_v62 = vpop.permute.xlu2 %2387 }
 0x38e   :  { %11589 = vst [vmem:[#allocation300_spill] sm:$0xff] %v7843_v51  ;;  %v7862_v51 = vld [vmem:[#allocation2 + $0x290] sm:$0xff] }
 0x38f   :  { %11590 = vst [vmem:[#allocation301_spill] sm:$0xff] %v7845_v62  ;;  %v2208_v49 = vadd.s32 32, %v7862_v51 }
 0x392   :  { %2492 = vperm.xlu1 %6313, %v2205_v48   ;;  %2507 = vperm.xlu0 %6312, %v2210_v44   ;;  %v2209_v48 = vadd.s32 32, %v7868_v29 }
 0x393   :  { %2495 = vperm.xlu2 %6311, %v2206_v13  }
 0x394   :  { %v7856_v52 = vpop.permute.xlu1 %2366  ;;  %v7858_v58 = vpop.permute.xlu0 %2381 }
 0x395   :  { %11591 = vst [vmem:[#allocation302_spill] sm:$0xff] %v7856_v52  ;;  %v7860_v62 = vpop.permute.xlu2 %2396 }
 0x396   :  { %11592 = vst [vmem:[#allocation303_spill] sm:$0xff] %v7858_v58  ;;  %v7877_v58 = vld [vmem:[#allocation2 + $0x2a8] sm:$0xff] }
 0x397   :  { %11593 = vst [vmem:[#allocation304_spill] sm:$0xff] %v7860_v62  ;;  %v2211_v52 = vadd.s32 32, %v7877_v58 }
 0x39a   :  { %2501 = vperm.xlu1 %6313, %v2208_v49   ;;  %2516 = vperm.xlu0 %6312, %v2213_v53   ;;  %v2212_v49 = vadd.s32 32, %v7883_v40 }
 0x39b   :  { %2504 = vperm.xlu2 %6311, %v2209_v48  }
 0x39c   :  { %v7871_v44 = vpop.permute.xlu1 %2375  ;;  %v7873_v13 = vpop.permute.xlu0 %2390 }
 0x39d   :  { %11595 = vst [vmem:[#allocation306_spill] sm:$0xff] %v7871_v44  ;;  %v7875_v62 = vpop.permute.xlu2 %2405 }
 0x39e   :  { %11596 = vst [vmem:[#allocation307_spill] sm:$0xff] %v7873_v13  ;;  %v7892_v13 = vld [vmem:[#allocation2 + $0x2c0] sm:$0xff] }
 0x39f   :  { %11597 = vst [vmem:[#allocation308_spill] sm:$0xff] %v7875_v62  ;;  %v2214_v44 = vadd.s32 32, %v7892_v13 }
 0x3a2   :  { %2510 = vperm.xlu1 %6313, %v2211_v52   ;;  %2525 = vperm.xlu0 %6312, %v2216_v25   ;;  %v2215_v52 = vadd.s32 32, %v7898_v10 }
 0x3a3   :  { %2513 = vperm.xlu2 %6311, %v2212_v49  }
 0x3a4   :  { %v7886_v53 = vpop.permute.xlu1 %2384  ;;  %v7888_v48 = vpop.permute.xlu0 %2399 }
 0x3a5   :  { %11600 = vst [vmem:[#allocation311_spill] sm:$0xff] %v7886_v53  ;;  %v7890_v62 = vpop.permute.xlu2 %2414 }
 0x3a6   :  { %11601 = vst [vmem:[#allocation312_spill] sm:$0xff] %v7888_v48  ;;  %v7907_v48 = vld [vmem:[#allocation2 + $0x2d8] sm:$0xff] }
 0x3a7   :  { %11602 = vst [vmem:[#allocation313_spill] sm:$0xff] %v7890_v62  ;;  %v2217_v53 = vadd.s32 32, %v7907_v48 }
 0x3a8   :  { %11608 = vst [vmem:[#allocation319_spill] sm:$0xff] %v7907_v48  ;;  %v2221_v48 = vadd.s32 32, %v7922_v47 }
 0x3aa   :  { %2519 = vperm.xlu1 %6313, %v2214_v44   ;;  %2534 = vperm.xlu0 %6312, %v2219_v46  }
 0x3ab   :  { %2522 = vperm.xlu2 %6311, %v2215_v52  }
 0x3ac   :  { %v7901_v25 = vpop.permute.xlu1 %2393  ;;  %v7903_v49 = vpop.permute.xlu0 %2408 }
 0x3ad   :  { %11605 = vst [vmem:[#allocation316_spill] sm:$0xff] %v7901_v25  ;;  %v7905_v62 = vpop.permute.xlu2 %2423  ;;  %v6413_v25 = vld [vmem:[#allocation2 + $0x318] sm:$0xff] }
 0x3ae   :  { %11606 = vst [vmem:[#allocation317_spill] sm:$0xff] %v7903_v49  ;;  %v2225_v10 = vadd.s32 32, %v6413_v25  ;;  %v6417_v25 = vld [vmem:[#allocation2 + $0x310] sm:$0xff] }
 0x3af   :  { %11607 = vst [vmem:[#allocation318_spill] sm:$0xff] %v7905_v62  ;;  %v7919_v62 = vld [vmem:[#allocation2 + $0x2f0] sm:$0xff] }
 0x3b0   :  { %11613 = vst [vmem:[#allocation324_spill] sm:$0xff] %v7919_v62  ;;  %v2220_v49 = vadd.s32 32, %v7919_v62  ;;  %v2224_v62 = vadd.s32 32, %v6417_v25 }
 0x3b2   :  { %2528 = vperm.xlu1 %6313, %v2217_v53   ;;  %2543 = vperm.xlu0 %6312, %v2222_v18  }
 0x3b3   :  { %2531 = vperm.xlu2 %6311, %v2218_v17  }
 0x3b4   :  { %v7913_v46 = vpop.permute.xlu1 %2402  ;;  %v7915_v44 = vpop.permute.xlu0 %2417 }
 0x3b5   :  { %11610 = vst [vmem:[#allocation321_spill] sm:$0xff] %v7913_v46  ;;  %v7917_v52 = vpop.permute.xlu2 %2432  ;;  %v6416_v46 = vld [vmem:[#allocation2 + $0x330] sm:$0xff] }
 0x3b6   :  { %11611 = vst [vmem:[#allocation322_spill] sm:$0xff] %v7915_v44  ;;  %v2228_v59 = vadd.s32 32, %v6416_v46 }
 0x3b7   :  { %11612 = vst [vmem:[#allocation323_spill] sm:$0xff] %v7917_v52  ;;  %v7931_v52 = vld [vmem:[#allocation2 + $0x308] sm:$0xff] }
 0x3b8   :  { %11618 = vst [vmem:[#allocation329_spill] sm:$0xff] %v7931_v52  ;;  %v2223_v44 = vadd.s32 32, %v7931_v52  ;;  %v6420_v52 = vld [vmem:[#allocation2 + $0x328] sm:$0xff] }
 0x3b9   :  { %v2227_v36 = vadd.s32 32, %v6420_v52 }
 0x3ba   :  { %2537 = vperm.xlu1 %6313, %v2220_v49   ;;  %2552 = vperm.xlu0 %6312, %v2225_v10  }
 0x3bb   :  { %2540 = vperm.xlu2 %6311, %v2221_v48  }
 0x3bc   :  { %v7925_v18 = vpop.permute.xlu1 %2411  ;;  %v7927_v17 = vpop.permute.xlu0 %2426 }
 0x3bd   :  { %11615 = vst [vmem:[#allocation326_spill] sm:$0xff] %v7925_v18  ;;  %v7929_v53 = vpop.permute.xlu2 %2441  ;;  %v6419_v18 = vld [vmem:[#allocation2 + $0x348] sm:$0xff] }
 0x3be   :  { %11616 = vst [vmem:[#allocation327_spill] sm:$0xff] %v7927_v17  ;;  %v7940_v17 = vld [vmem:[#allocation2 + $0x320] sm:$0xff]  ;;  %v2231_v47 = vadd.s32 32, %v6419_v18 }
 0x3bf   :  { %11617 = vst [vmem:[#allocation328_spill] sm:$0xff] %v7929_v53  ;;  %v2226_v53 = vadd.s32 32, %v7940_v17 }
 0x3c0   :  { %11622 = vst [vmem:[#allocation333_spill] sm:$0xff] %v7940_v17 }
 0x3c2   :  { %2546 = vperm.xlu1 %6313, %v2223_v44   ;;  %2561 = vperm.xlu0 %6312, %v2228_v59   ;;  %v6421_v44 = vld [vmem:[#allocation2 + $0x338] sm:$0xff] }
 0x3c3   :  { %2549 = vperm.xlu2 %6311, %v2224_v62   ;;  %v2229_v25 = vadd.s32 32, %v6421_v44 }
 0x3c4   :  { %v7934_v49 = vpop.permute.xlu1 %2420  ;;  %v7936_v10 = vpop.permute.xlu0 %2435 }
 0x3c5   :  { %11619 = vst [vmem:[#allocation330_spill] sm:$0xff] %v7934_v49  ;;  %v7938_v48 = vpop.permute.xlu2 %2450 }
 0x3c6   :  { %11620 = vst [vmem:[#allocation331_spill] sm:$0xff] %v7936_v10  ;;  %v6422_v10 = vld [vmem:[#allocation2 + $0x360] sm:$0xff] }
 0x3c7   :  { %11621 = vst [vmem:[#allocation332_spill] sm:$0xff] %v7938_v48  ;;  %v2234_v49 = vadd.s32 32, %v6422_v10  ;;  %v6423_v48 = vld [vmem:[#allocation2 + $0x340] sm:$0xff] }
 0x3c8   :  { %v2230_v40 = vadd.s32 32, %v6423_v48 }
 0x3ca   :  { %2555 = vperm.xlu1 %6313, %v2226_v53   ;;  %2570 = vperm.xlu0 %6312, %v2231_v47   ;;  %v6424_v47 = vld [vmem:[#allocation2 + $0x350] sm:$0xff] }
 0x3cb   :  { %2558 = vperm.xlu2 %6311, %v2227_v36   ;;  %v2232_v53 = vadd.s32 32, %v6424_v47 }
 0x3cc   :  { %v7943_v46 = vpop.permute.xlu1 %2429  ;;  %v7945_v59 = vpop.permute.xlu0 %2444 }
 0x3cd   :  { %11623 = vst [vmem:[#allocation334_spill] sm:$0xff] %v7943_v46  ;;  %v7947_v62 = vpop.permute.xlu2 %2459 }
 0x3ce   :  { %11624 = vst [vmem:[#allocation335_spill] sm:$0xff] %v7945_v59  ;;  %v6425_v59 = vld [vmem:[#allocation2 + $0x378] sm:$0xff] }
 0x3cf   :  { %11625 = vst [vmem:[#allocation336_spill] sm:$0xff] %v7947_v62  ;;  %v2237_v46 = vadd.s32 32, %v6425_v59  ;;  %v6426_v62 = vld [vmem:[#allocation2 + $0x358] sm:$0xff] }
 0x3d0   :  { %v2233_v17 = vadd.s32 32, %v6426_v62 }
 0x3d2   :  { %2564 = vperm.xlu1 %6313, %v2229_v25   ;;  %2579 = vperm.xlu0 %6312, %v2234_v49   ;;  %v6427_v49 = vld [vmem:[#allocation2 + $0x368] sm:$0xff]  ;;  %v6428_v25 = vld [vmem:[#allocation2 + $0x390] sm:$0xff] }
 0x3d3   :  { %2567 = vperm.xlu2 %6311, %v2230_v40   ;;  %v2235_v44 = vadd.s32 32, %v6427_v49 }
 0x3d4   :  { %v7949_v18 = vpop.permute.xlu1 %2438  ;;  %v7951_v52 = vpop.permute.xlu0 %2453 }
 0x3d5   :  { %11626 = vst [vmem:[#allocation337_spill] sm:$0xff] %v7949_v18  ;;  %v7953_v36 = vpop.permute.xlu2 %2468  ;;  %v2240_v18 = vadd.s32 32, %v6428_v25  ;;  %v6434_v25 = vld [vmem:[#allocation2 + $0x3c0] sm:$0xff] }
 0x3d6   :  { %11627 = vst [vmem:[#allocation338_spill] sm:$0xff] %v7951_v52 }
 0x3d7   :  { %11628 = vst [vmem:[#allocation339_spill] sm:$0xff] %v7953_v36  ;;  %v6429_v36 = vld [vmem:[#allocation2 + $0x370] sm:$0xff] }
 0x3d8   :  { %v2236_v52 = vadd.s32 32, %v6429_v36 }
 0x3da   :  { %2573 = vperm.xlu1 %6313, %v2232_v53   ;;  %2588 = vperm.xlu0 %6312, %v2237_v46   ;;  %v6430_v46 = vld [vmem:[#allocation2 + $0x380] sm:$0xff]  ;;  %v6431_v53 = vld [vmem:[#allocation2 + $0x3a8] sm:$0xff] }
 0x3db   :  { %2576 = vperm.xlu2 %6311, %v2233_v17   ;;  %v2238_v47 = vadd.s32 32, %v6430_v46 }
 0x3dc   :  { %v7955_v10 = vpop.permute.xlu1 %2447  ;;  %v7957_v48 = vpop.permute.xlu0 %2462 }
 0x3dd   :  { %11629 = vst [vmem:[#allocation340_spill] sm:$0xff] %v7955_v10  ;;  %v7959_v40 = vpop.permute.xlu2 %2477 }
 0x3de   :  { %11630 = vst [vmem:[#allocation341_spill] sm:$0xff] %v7957_v48  ;;  %v2243_v48 = vadd.s32 32, %v6431_v53  ;;  %v6437_v53 = vld [vmem:[#allocation2 + $0x3d8] sm:$0xff] }
 0x3df   :  { %11631 = vst [vmem:[#allocation342_spill] sm:$0xff] %v7959_v40  ;;  %v6432_v40 = vld [vmem:[#allocation2 + $0x388] sm:$0xff] }
 0x3e0   :  { %v2239_v10 = vadd.s32 32, %v6432_v40 }
 0x3e2   :  { %2582 = vperm.xlu1 %6313, %v2235_v44   ;;  %2597 = vperm.xlu0 %6312, %v2240_v18  }
 0x3e3   :  { %2585 = vperm.xlu2 %6311, %v2236_v52   ;;  %v6433_v52 = vld [vmem:[#allocation2 + $0x398] sm:$0xff] }
 0x3e4   :  { %v7961_v59 = vpop.permute.xlu1 %2456  ;;  %v7963_v62 = vpop.permute.xlu0 %2471  ;;  %v2241_v44 = vadd.s32 32, %v6433_v52 }
 0x3e5   :  { %11632 = vst [vmem:[#allocation343_spill] sm:$0xff] %v7961_v59  ;;  %v7965_v17 = vpop.permute.xlu2 %2486 }
 0x3e6   :  { %11633 = vst [vmem:[#allocation344_spill] sm:$0xff] %v7963_v62  ;;  %v2246_v62 = vadd.s32 32, %v6434_v25  ;;  %v6440_v25 = vld [vmem:[#allocation2 + $0x3f0] sm:$0xff] }
 0x3e7   :  { %11634 = vst [vmem:[#allocation345_spill] sm:$0xff] %v7965_v17  ;;  %v6435_v17 = vld [vmem:[#allocation2 + $0x3a0] sm:$0xff] }
 0x3e8   :  { %v2242_v59 = vadd.s32 32, %v6435_v17 }
 0x3ea   :  { %2591 = vperm.xlu1 %6313, %v2238_v47   ;;  %2606 = vperm.xlu0 %6312, %v2243_v48   ;;  %v6436_v48 = vld [vmem:[#allocation2 + $0x3b0] sm:$0xff] }
 0x3eb   :  { %2594 = vperm.xlu2 %6311, %v2239_v10   ;;  %v2244_v47 = vadd.s32 32, %v6436_v48 }
 0x3ec   :  { %v7967_v49 = vpop.permute.xlu1 %2465  ;;  %v7969_v36 = vpop.permute.xlu0 %2480 }
 0x3ed   :  { %11635 = vst [vmem:[#allocation346_spill] sm:$0xff] %v7967_v49  ;;  %v7971_v18 = vpop.permute.xlu2 %2495 }
 0x3ee   :  { %11636 = vst [vmem:[#allocation347_spill] sm:$0xff] %v7969_v36  ;;  %v2249_v36 = vadd.s32 32, %v6437_v53  ;;  %v6443_v53 = vld [vmem:[#allocation2 + $0x3e8] sm:$0xff] }
 0x3ef   :  { %11637 = vst [vmem:[#allocation348_spill] sm:$0xff] %v7971_v18  ;;  %v6438_v18 = vld [vmem:[#allocation2 + $0x3b8] sm:$0xff] }
 0x3f0   :  { %v2245_v49 = vadd.s32 32, %v6438_v18 }
 0x3f2   :  { %2600 = vperm.xlu1 %6313, %v2241_v44   ;;  %2615 = vperm.xlu0 %6312, %v2246_v62   ;;  %v6439_v62 = vld [vmem:[#allocation2 + $0x3c8] sm:$0xff] }
 0x3f3   :  { %2603 = vperm.xlu2 %6311, %v2242_v59   ;;  %v2247_v44 = vadd.s32 32, %v6439_v62  ;;  %v6606_v62 = vmov 3  }
 0x3f4   :  { %v7973_v46 = vpop.permute.xlu1 %2474  ;;  %v7975_v40 = vpop.permute.xlu0 %2489 }
 0x3f5   :  { %11638 = vst [vmem:[#allocation349_spill] sm:$0xff] %v7973_v46  ;;  %v7977_v10 = vpop.permute.xlu2 %2504 }
 0x3f6   :  { %11639 = vst [vmem:[#allocation350_spill] sm:$0xff] %v7975_v40  ;;  %v2252_v40 = vadd.s32 32, %v6440_v25 }
 0x3f7   :  { %11640 = vst [vmem:[#allocation351_spill] sm:$0xff] %v7977_v10  ;;  %v6441_v10 = vld [vmem:[#allocation2 + $0x3d0] sm:$0xff] }
 0x3f8   :  { %v2248_v46 = vadd.s32 32, %v6441_v10 }
 0x3fa   :  { %2609 = vperm.xlu1 %6313, %v2244_v47   ;;  %2624 = vperm.xlu0 %6312, %v2249_v36   ;;  %v6442_v36 = vld [vmem:[#allocation2 + $0x3e0] sm:$0xff] }
 0x3fb   :  { %2612 = vperm.xlu2 %6311, %v2245_v49   ;;  %v2250_v47 = vadd.s32 32, %v6442_v36  ;;  %v3150_v36 = vadd.s32 48, %v7580_v45 }
 0x3fc   :  { %v7979_v52 = vpop.permute.xlu1 %2483  ;;  %v7981_v17 = vpop.permute.xlu0 %2498 }
 0x3fd   :  { %11641 = vst [vmem:[#allocation352_spill] sm:$0xff] %v7981_v17  ;;  %v7983_v59 = vpop.permute.xlu2 %2513  ;;  %v2251_v17 = vadd.s32 32, %v6443_v53  ;;  %v3159_v53 = vadd.s32 48, %v7607_v14 }
 0x3fe   :  { %11642 = vst [vmem:[#allocation353_spill] sm:$0xff] %v7983_v59  ;;  %v3151_v59 = vadd.s32 48, %v7577_v3 }
 0x402   :  { %2618 = vperm.xlu1 %6313, %v2247_v44   ;;  %2633 = vperm.xlu0 %6312, %v2252_v40   ;;  %v6444_v44 = vld [vmem:[#allocation2 + $0x3f8] sm:$0xff] }
 0x403   :  { %2621 = vperm.xlu2 %6311, %v2248_v46   ;;  %v2253_v25 = vadd.s32 32, %v6444_v44  ;;  %v3153_v44 = vadd.s32 48, %v7595_v0 }
 0x404   :  { %v7985_v48 = vpop.permute.xlu1 %2492  ;;  %v7987_v18 = vpop.permute.xlu0 %2507 }
 0x405   :  { %v7989_v49 = vpop.permute.xlu2 %2522 }
 0x406   :  { %11643 = vst [vmem:[#allocation354_spill] sm:$0xff] %v7989_v49  ;;  %v3156_v49 = vadd.s32 48, %v7592_v50 }
 0x40a   :  { %2627 = vperm.xlu1 %6313, %v2250_v47   ;;  %6315 = vset.pattern.permute.xlu0 %v6606_v62  ;;  %v3152_v47 = vadd.s32 48, %v7589_v30  ;;  %v3155_v30 = vadd.s32 48, %v7610_v35 }
 0x40b   :  { %2630 = vperm.xlu2 %6311, %v2251_v17   ;;  %3282 = vperm.xlu0 %6315, %v3151_v59  }
 0x40c   :  { %v7992_v10 = vpop.permute.xlu1 %2501  ;;  %v7994_v46 = vpop.permute.xlu0 %2516 }
 0x40d   :  { %v7996_v40 = vpop.permute.xlu2 %2531 }
 0x412   :  { %2636 = vperm.xlu1 %6313, %v2253_v25   ;;  %v3154_v25 = vadd.s32 48, %v7604_v61 }
 0x413   :  { %6314 = vset.pattern.permute.xlu2 %v6606_v62  ;;  %3297 = vperm.xlu0 %6315, %v3156_v49  }
 0x414   :  { %3279 = vperm.xlu2 %6314, %v3150_v36   ;;  %v8000_v3 = vpop.permute.xlu1 %2510  ;;  %v8002_v17 = vpop.permute.xlu0 %2525  ;;  %v3162_v36 = vadd.s32 48, %v7622_v6 }
 0x415   :  { %v8004_v59 = vpop.permute.xlu2 %2540 }
 0x41a   :  { %6316 = vset.pattern.permute.xlu1 %v6606_v62 }
 0x41b   :  { %3285 = vperm.xlu1 %6316, %v3152_v47   ;;  %3306 = vperm.xlu0 %6315, %v3159_v53   ;;  %v3157_v47 = vadd.s32 48, %v7619_v2  ;;  %v3214_v53 = vadd.s32 48, %v7772_v39 }
 0x41c   :  { %3288 = vperm.xlu2 %6314, %v3153_v44   ;;  %v8009_v50 = vpop.permute.xlu1 %2519  ;;  %v8011_v45 = vpop.permute.xlu0 %2534  ;;  %v3158_v44 = vadd.s32 48, %v7625_v34 }
 0x41d   :  { %v8013_v49 = vpop.permute.xlu2 %2549 }
 0x423   :  { %3291 = vperm.xlu1 %6316, %v3154_v25   ;;  %3315 = vperm.xlu0 %6315, %v3162_v36   ;;  %v3160_v25 = vadd.s32 48, %v7634_v9  ;;  %v3216_v36 = vadd.s32 48, %v7763_v38 }
 0x424   :  { %3294 = vperm.xlu2 %6314, %v3155_v30   ;;  %v8018_v14 = vpop.permute.xlu1 %2528  ;;  %v8020_v0 = vpop.permute.xlu0 %2543  ;;  %v3161_v30 = vadd.s32 48, %v7640_v57 }
 0x425   :  { %v8022_v62 = vpop.permute.xlu2 %2558 }
 0x426   :  { %11644 = vst [vmem:[#allocation355_spill] sm:$0xff] %v8022_v62 }
 0x42b   :  { %3300 = vperm.xlu1 %6316, %v3157_v47   ;;  %3471 = vperm.xlu0 %6315, %v3214_v53   ;;  %v3163_v47 = vadd.s32 48, %v7649_v28  ;;  %v3166_v53 = vadd.s32 48, %v7664_v31  ;;  %v3221_v28 = vadd.s32 48, %v7808_v4  ;;  %v3165_v31 = vadd.s32 48, %v7637_v8 }
 0x42c   :  { %3303 = vperm.xlu2 %6314, %v3158_v44   ;;  %v8027_v61 = vpop.permute.xlu1 %2537  ;;  %v8029_v35 = vpop.permute.xlu0 %2552  ;;  %v3164_v44 = vadd.s32 48, %v7655_v22 }
 0x42d   :  { %v8031_v6 = vpop.permute.xlu2 %2567 }
 0x42e   :  { %11645 = vst [vmem:[#allocation356_spill] sm:$0xff] %v8031_v6 }
 0x433   :  { %3309 = vperm.xlu1 %6316, %v3160_v25   ;;  %3477 = vperm.xlu0 %6315, %v3216_v36   ;;  %v51_v25 = vld [vmem:[#allocation5 + $0x38] sm:$0xff] }
 0x434   :  { %3312 = vperm.xlu2 %6314, %v3161_v30   ;;  %v8036_v2 = vpop.permute.xlu1 %2546  ;;  %v8038_v34 = vpop.permute.xlu0 %2561  ;;  %v59_v36 = vpack.c.bf16 %v51_v25, %v51_v25  ;;  %v3215_v30 = vadd.s32 48, %v7778_v55 }
 0x435   :  { %11646 = vst [vmem:[#allocation357_spill] sm:$0xff] %v8038_v34  ;;  %v8040_v39 = vpop.permute.xlu2 %2576  ;;  %v48_v34 = vld [vmem:[#allocation5 + $0x20] sm:$0xff] }
 0x436   :  { %11647 = vst [vmem:[#allocation358_spill] sm:$0xff] %v8040_v39  ;;  %v50_v39 = vld [vmem:[#allocation5 + $0x30] sm:$0xff]  ;;  %v67_v6 = vunpack.c.l.bf16 %v59_v36  ;;  %v56_v62 = vpack.c.bf16 %v48_v34, %v48_v34 }
 0x437   :  { %v58_v22 = vpack.c.bf16 %v50_v39, %v50_v39 }
 0x438   :  { %4968 = vmatpush.msra.mxu1 %v67_v6  ;;  %6285 = vmatpush.msra.mxu3 %v67_v6 }
 0x43b   :  { %3318 = vperm.xlu1 %6316, %v3163_v47   ;;  %3327 = vperm.xlu0 %6315, %v3166_v53   ;;  %v49_v47 = vld [vmem:[#allocation5 + $0x28] sm:$0xff]  ;;  %v75_v53 = vsub.f32 %v51_v25, %v67_v6  ;;  %v47_v25 = vld [vmem:[#allocation5 + $0x18] sm:$0xff]  ;;  %v3217_v6 = vadd.s32 48, %v7787_v54 }
 0x43c   :  { %3321 = vperm.xlu2 %6314, %v3164_v44   ;;  %v8045_v9 = vpop.permute.xlu1 %2555  ;;  %v8047_v57 = vpop.permute.xlu0 %2570  ;;  %v57_v44 = vpack.c.bf16 %v49_v47, %v49_v47 }
 0x43d   :  { %11648 = vst [vmem:[#allocation359_spill] sm:$0xff] %v8045_v9  ;;  %v8049_v38 = vpop.permute.xlu2 %2585  ;;  %4567 = vmatpush.msra.mxu0 %v75_v53  ;;  %6277 = vmatpush.msra.mxu2 %v75_v53 }
 0x43e   :  { %11649 = vst [vmem:[#allocation360_spill] sm:$0xff] %v8047_v57  ;;  %v66_v57 = vunpack.c.l.bf16 %v58_v22  ;;  %v65_v55 = vunpack.c.l.bf16 %v57_v44  ;;  %v3218_v22 = vadd.s32 48, %v7793_v21  ;;  %v55_v44 = vpack.c.bf16 %v47_v25, %v47_v25 }
 0x43f   :  { %11650 = vst [vmem:[#allocation361_spill] sm:$0xff] %v8049_v38 }
 0x440   :  { %v74_v8 = vsub.f32 %v50_v39, %v66_v57  ;;  %4969 = vmatpush.msra.mxu1 %v66_v57  ;;  %v73_v36 = vsub.f32 %v49_v47, %v65_v55  ;;  %6286 = vmatpush.msra.mxu3 %v66_v57  ;;  %v45_v47 = vld [vmem:[#allocation5 + $0x8] sm:$0xff]  ;;  %v63_v53 = vunpack.c.l.bf16 %v55_v44 }
 0x441   :  { %v53_v57 = vpack.c.bf16 %v45_v47, %v45_v47 }
 0x442   :  { %4568 = vmatpush.msra.mxu0 %v74_v8  ;;  %4970 = vmatpush.msra.mxu1 %v65_v55  ;;  %v71_v21 = vsub.f32 %v47_v25, %v63_v53  ;;  %v3220_v25 = vadd.s32 48, %v7802_v37  ;;  %v3169_v37 = vadd.s32 48, %v7676_v56 }
 0x443   :  { %3474 = vperm.xlu1 %6316, %v3215_v30   ;;  %3492 = vperm.xlu0 %6315, %v3221_v28   ;;  %v64_v30 = vunpack.c.l.bf16 %v56_v62  ;;  %v46_v28 = vld [vmem:[#allocation5 + $0x10] sm:$0xff]  ;;  %v44_v62 = vld [vmem:[#allocation5] sm:$0xff] }
 0x444   :  { %3324 = vperm.xlu2 %6314, %v3165_v31   ;;  %v8054_v38 = vpop.permute.xlu1 %2564  ;;  %v8056_v9 = vpop.permute.xlu0 %2579  ;;  %v3223_v31 = vadd.s32 48, %v7817_v12  ;;  %6278 = vmatpush.msra.mxu2 %v74_v8  ;;  %v61_v8 = vunpack.c.l.bf16 %v53_v57 }
 0x445   :  { %11651 = vst [vmem:[#allocation362_spill] sm:$0xff] %v8056_v9  ;;  %v8058_v4 = vpop.permute.xlu2 %2594  ;;  %6287 = vmatpush.msra.mxu3 %v65_v55  ;;  %4569 = vmatpush.msra.mxu0 %v73_v36  ;;  %v72_v39 = vsub.f32 %v48_v34, %v64_v30  ;;  %v52_v55 = vpack.c.bf16 %v44_v62, %v44_v62 }
 0x446   :  { %11652 = vst [vmem:[#allocation363_spill] sm:$0xff] %v8058_v4  ;;  %4971 = vmatpush.msra.mxu1 %v64_v30  ;;  %v54_v4 = vpack.c.bf16 %v46_v28, %v46_v28  ;;  %6279 = vmatpush.msra.mxu2 %v73_v36  ;;  %v69_v36 = vsub.f32 %v45_v47, %v61_v8 }
 0x447   :  { %6288 = vmatpush.msra.mxu3 %v64_v30  ;;  %4570 = vmatpush.msra.mxu0 %v72_v39  ;;  %v3225_v30 = vadd.s32 48, %v7805_v16  ;;  %v3167_v16 = vadd.s32 48, %v7667_v23  ;;  %v3168_v23 = vadd.s32 48, %v7652_v11  ;;  %v3227_v11 = vadd.s32 48, %v7838_v60 }
 0x448   :  { %v62_v54 = vunpack.c.l.bf16 %v54_v4  ;;  %4972 = vmatpush.msra.mxu1 %v63_v53  ;;  %6280 = vmatpush.msra.mxu2 %v72_v39  ;;  %v3219_v4 = vadd.s32 48, %v7775_v24  ;;  %v3222_v39 = vadd.s32 48, %v7790_v7 }
 0x449   :  { %4571 = vmatpush.msra.mxu0 %v71_v21  ;;  %6289 = vmatpush.msra.mxu3 %v63_v53 }
 0x44a   :  { %v70_v44 = vsub.f32 %v46_v28, %v62_v54  ;;  %4973 = vmatpush.msra.mxu1 %v62_v54  ;;  %6281 = vmatpush.msra.mxu2 %v71_v21  ;;  %v76_v21 = vlaneseq }
 0x44b   :  { %3480 = vperm.xlu1 %6316, %v3217_v6   ;;  %3498 = vperm.xlu0 %6315, %v3223_v31   ;;  %v60_v6 = vunpack.c.l.bf16 %v52_v55 }
 0x44c   :  { %3483 = vperm.xlu2 %6314, %v3218_v22   ;;  %v8063_v12 = vpop.permute.xlu1 %2573  ;;  %v8065_v9 = vpop.permute.xlu0 %2588  ;;  %4572 = vmatpush.msra.mxu0 %v70_v44  ;;  %v8092_v7 = vand.u32 127, %v76_v21 }
 0x44d   :  { %v8067_v34 = vpop.permute.xlu2 %2603  ;;  %6290 = vmatpush.msra.mxu3 %v62_v54  ;;  %4974 = vmatpush.msra.mxu1 %v61_v8  ;;  %v68_v31 = vsub.f32 %v44_v62, %v60_v6  ;;  %v3224_v54 = vadd.s32 48, %v7823_v63  ;;  %v3230_v62 = vadd.s32 48, %v7853_v26  ;;  %v3226_v63 = vadd.s32 48, %v7832_v32 }
 0x44e   :  { %6282 = vmatpush.msra.mxu2 %v70_v44  ;;  %4573 = vmatpush.msra.mxu0 %v69_v36  ;;  %vm1614_vm0 = vcmp.eq.s32.totalorder %v8092_v7, %v7295_v33  ;;  %v3232_v26 = vadd.s32 48, %v7862_v51  ;;  %v11654_v44 = vld [vmem:[#allocation16_spill] sm:$0xff]  ;;  %vm2638_vm2 = vcmp.eq.s32.totalorder %v8092_v7, %v7707_v20  ;;  %vm1615_vm5 = vcmp.eq.s32.totalorder %v8092_v7, %v7329_v42 }
 0x44f   :  { %6291 = vmatpush.msra.mxu3 %v61_v8  ;;  %4975 = vmatpush.msra.mxu1 %v60_v6  ;;  %vm590_vm1 = vcmp.eq.s32.totalorder %v8092_v7, %v11654_v44  ;;  %vm2639_vm7 = vcmp.eq.s32.totalorder %v8092_v7, %v7723_v41  ;;  %vm1616_vm9 = vcmp.eq.s32.totalorder %v8092_v7, %v7327_v43 }
 0x450   :  { %4574 = vmatpush.msra.mxu0 %v68_v31  ;;  %6283 = vmatpush.msra.mxu2 %v69_v36  ;;  %v6607_v36 = vmov 0.0   ;;  %vm2640_vm11 = vcmp.eq.s32.totalorder %v8092_v7, %v7727_v27 }
 0x451   :  { %6292 = vmatpush.msra.mxu3 %v60_v6  ;;  %v5509_v6 = vsel %vm590_vm1, 1.0, %v6607_v36  ;;  %v5765_v33 = vsel %vm2638_vm2, 1.0, %v6607_v36  ;;  %v5766_v44 = vsel %vm2639_vm7, 1.0, %v6607_v36  ;;  %v5767_v43 = vsel %vm2640_vm11, 1.0, %v6607_v36 }
 0x452   :  { %6284 = vmatpush.msra.mxu2 %v68_v31  ;;  %v3228_v31 = vadd.s32 48, %v7820_v19  ;;  %v6445_v19 = vld [vmem:[#allocation2 + $0xa0] sm:$0xff] }
 0x453   :  { %3486 = vperm.xlu1 %6316, %v3219_v4   ;;  %3504 = vperm.xlu0 %6315, %v3225_v30   ;;  %v5637_v4 = vsel %vm1614_vm0, 1.0, %v6607_v36 }
 0x454   :  { %3489 = vperm.xlu2 %6314, %v3220_v25   ;;  %v8072_v28 = vpop.permute.xlu1 %2582  ;;  %v8074_v24 = vpop.permute.xlu0 %2597  ;;  %v1998_v51 = vadd.f32 %v5637_v4, %v5509_v6 }
 0x455   :  { %v8076_v22 = vpop.permute.xlu2 %2612 }
 0x456   :  { %v3022_v25 = vadd.f32 %v5765_v33, %v1998_v51  ;;  %v3238_v51 = vadd.s32 48, %v7892_v13  ;;  %v3235_v13 = vadd.s32 48, %v7877_v58 }
 0x45b   :  { %3330 = vperm.xlu1 %6316, %v3167_v16   ;;  %3336 = vperm.xlu0 %6315, %v3169_v37   ;;  %v3234_v16 = vadd.s32 48, %v7850_v5  ;;  %v6446_v5 = vld [vmem:[#allocation2 + $0xb0] sm:$0xff] }
 0x45c   :  { %3495 = vperm.xlu2 %6314, %v3222_v39   ;;  %v8081_v47 = vpop.permute.xlu1 %2591  ;;  %v8083_v53 = vpop.permute.xlu0 %2606  ;;  %v3229_v39 = vadd.s32 48, %v7847_v1  ;;  %v3172_v21 = vadd.s32 48, %v6446_v5  ;;  %v3231_v1 = vadd.s32 48, %v7835_v15  ;;  %v3233_v15 = vadd.s32 48, %v7868_v29  ;;  %v11658_v29 = vld [vmem:[#allocation15_spill] sm:$0xff] }
 0x45d   :  { %v8085_v57 = vpop.permute.xlu2 %2621  ;;  %vm592_vm10 = vcmp.eq.s32.totalorder %v8092_v7, %v11658_v29 }
 0x463   :  { %3501 = vperm.xlu1 %6316, %v3224_v54   ;;  %3519 = vperm.xlu0 %6315, %v3230_v62  }
 0x464   :  { %3333 = vperm.xlu2 %6314, %v3168_v23   ;;  %v8090_v56 = vpop.permute.xlu1 %2600  ;;  %v8094_v8 = vpop.permute.xlu0 %2615  ;;  %v3170_v23 = vadd.s32 48, %v6445_v19  ;;  %v5639_v19 = vsel %vm1616_vm9, 1.0, %v6607_v36 }
 0x465   :  { %v8096_v55 = vpop.permute.xlu2 %2630 }
 0x466   :  { %11653 = vst [vmem:[#allocation364_spill] sm:$0xff] %v8096_v55 }
 0x46b   :  { %3507 = vperm.xlu1 %6316, %v3226_v63   ;;  %3525 = vperm.xlu0 %6315, %v3232_v26   ;;  %v11656_v63 = vld [vmem:[#allocation19_spill] sm:$0xff]  ;;  %v5638_v26 = vsel %vm1615_vm5, 1.0, %v6607_v36 }
 0x46c   :  { %3510 = vperm.xlu2 %6314, %v3227_v11   ;;  %v8110_v32 = vpop.permute.xlu1 %2609  ;;  %v8112_v60 = vpop.permute.xlu0 %2624  ;;  %vm591_vm6 = vcmp.eq.s32.totalorder %v8092_v7, %v11656_v63 }
 0x46d   :  { %v5510_v11 = vsel %vm591_vm6, 1.0, %v6607_v36 }
 0x46e   :  { %v3280_v30 = vpop.permute.xlu2 %3279  ;;  %v1999_v4 = vadd.f32 %v5638_v26, %v5510_v11  ;;  %v11660_v11 = vld [vmem:[#allocation207_spill] sm:$0xff] }
 0x46f   :  { %vm3662_vm3 = vcmp.eq.s32.totalorder %v8092_v7, %v3280_v30  ;;  %vm1617_vm12 = vcmp.eq.s32.totalorder %v8092_v7, %v11660_v11  ;;  %v11668_v11 = vld [vmem:[#allocation269_spill] sm:$0xff] }
 0x470   :  { %v5893_v20 = vsel %vm3662_vm3, 1.0, %v6607_v36  ;;  %v3023_v33 = vadd.f32 %v5766_v44, %v1999_v4  ;;  %v11661_v44 = vld [vmem:[#allocation18_spill] sm:$0xff]  ;;  %vm2642_vm5 = vcmp.eq.s32.totalorder %v8092_v7, %v11668_v11 }
 0x471   :  { %v4046_v37 = vadd.f32 %v5893_v20, %v3022_v25  ;;  %v6447_v25 = vld [vmem:[#allocation2 + $0xa8] sm:$0xff]  ;;  %vm593_vm14 = vcmp.eq.s32.totalorder %v8092_v7, %v11661_v44  ;;  %v6450_v44 = vld [vmem:[#allocation2 + $0xc0] sm:$0xff] }
 0x472   :  { %v3171_v20 = vadd.s32 48, %v6447_v25  ;;  %v5640_v25 = vsel %vm1617_vm12, 1.0, %v6607_v36 }
 0x473   :  { %6021 = vmatmul.msk.f32.vlgmr.msra.gmra.mxu0 %vm4174_vm4, %v4046_v37  ;;  %6149 = vmatmul.msk.f32.vlgmr.msra.gmra.mxu1 %vm4174_vm4, %v4046_v37  ;;  %v6448_v37 = vld [vmem:[#allocation2 + $0xc8] sm:$0xff] }
 0x474   :  { %3513 = vperm.xlu1 %6316, %v3228_v31   ;;  %3531 = vperm.xlu0 %6315, %v3234_v16   ;;  %v8121_v54 = vpop.permute.xlu1 %2618  ;;  %v8123_v62 = vpop.permute.xlu0 %2633 }
 0x475   :  { %3516 = vperm.xlu2 %6314, %v3229_v39   ;;  %11655 = vst [vmem:[#allocation16_spill] sm:$0xff] %v8123_v62  ;;  %v3175_v39 = vadd.s32 48, %v6448_v37 }
 0x476   :  { %v3289_v63 = vpop.permute.xlu2 %3288 }
 0x477   :  { %vm3665_vm0 = vcmp.eq.s32.totalorder %v8092_v7, %v3289_v63 }
 0x47c   :  { %3339 = vperm.xlu1 %6316, %v3170_v23   ;;  %3345 = vperm.xlu0 %6315, %v3172_v21   ;;  %v8135_v42 = vpop.permute.xlu1 %2627  ;;  %v11659_v23 = vld [vmem:[#allocation310_spill] sm:$0xff]  ;;  %v5511_v21 = vsel %vm592_vm10, 1.0, %v6607_v36 }
 0x47d   :  { %3522 = vperm.xlu2 %6314, %v3231_v1   ;;  %v3283_v6 = vpop.permute.xlu0 %3282  ;;  %v3236_v5 = vadd.s32 48, %v11659_v23  ;;  %v2000_v1 = vadd.f32 %v5639_v19, %v5511_v21  ;;  %v5896_v19 = vsel %vm3665_vm0, 1.0, %v6607_v36  ;;  %v11665_v21 = vld [vmem:[#allocation215_spill] sm:$0xff] }
 0x47e   :  { %vm3663_vm8 = vcmp.eq.s32.totalorder %v8092_v7, %v3283_v6  ;;  %v11662_v6 = vld [vmem:[#allocation261_spill] sm:$0xff]  ;;  %v3295_v23 = vpop.permute.xlu2 %3294  ;;  %vm1618_vm1 = vcmp.eq.s32.totalorder %v8092_v7, %v11665_v21 }
 0x47f   :  { %v5894_v41 = vsel %vm3663_vm8, 1.0, %v6607_v36  ;;  %v3024_v27 = vadd.f32 %v5767_v43, %v2000_v1  ;;  %vm2641_vm15 = vcmp.eq.s32.totalorder %v8092_v7, %v11662_v6  ;;  %v11666_v1 = vld [vmem:[#allocation11_spill] sm:$0xff] }
 0x480   :  { %v4047_v30 = vadd.f32 %v5894_v41, %v3023_v33  ;;  %v11663_v41 = vld [vmem:[#allocation305_spill] sm:$0xff]  ;;  %v5768_v37 = vsel %vm2641_vm15, 1.0, %v6607_v36  ;;  %vm594_vm2 = vcmp.eq.s32.totalorder %v8092_v7, %v11666_v1  ;;  %v6451_v6 = vld [vmem:[#allocation2 + $0xe0] sm:$0xff] }
 0x482   :  { %6022 = vmatmul.msk.f32.gmra.mxu0 %vm4174_vm4, %v4047_v30  ;;  %6150 = vmatmul.msk.f32.gmra.mxu1 %vm4174_vm4, %v4047_v30 }
 0x484   :  { %3528 = vperm.xlu1 %6316, %v3233_v15   ;;  %3543 = vperm.xlu0 %6315, %v3238_v51   ;;  %v8143_v31 = vpop.permute.xlu1 %2636  ;;  %v3237_v15 = vadd.s32 48, %v11663_v41  ;;  %v11664_v51 = vld [vmem:[#allocation319_spill] sm:$0xff]  ;;  %v11669_v41 = vld [vmem:[#allocation132_spill] sm:$0xff] }
 0x485   :  { %11657 = vst [vmem:[#allocation19_spill] sm:$0xff] %v8143_v31  ;;  %3342 = vperm.xlu2 %6314, %v3171_v20   ;;  %v8147_v16 = vpop.permute.xlu0 %3297  ;;  %v3241_v30 = vadd.s32 48, %v11664_v51  ;;  %v6449_v20 = vld [vmem:[#allocation2 + $0xb8] sm:$0xff]  ;;  %vm654_vm6 = vcmp.eq.s32.totalorder %v8092_v7, %v11669_v41  ;;  %v11670_v51 = vld [vmem:[#allocation340_spill] sm:$0xff] }
 0x486   :  { %v3173_v29 = vadd.s32 48, %v6449_v20  ;;  %vm2702_vm7 = vcmp.eq.s32.totalorder %v8092_v7, %v11670_v51 }
 0x48c   :  { %3534 = vperm.xlu1 %6316, %v3235_v13   ;;  %3354 = vperm.xlu0 %6315, %v3175_v39   ;;  %v5512_v13 = vsel %vm593_vm14, 1.0, %v6607_v36 }
 0x48d   :  { %3537 = vperm.xlu2 %6314, %v3236_v5   ;;  %v3286_v26 = vpop.permute.xlu1 %3285  ;;  %v8161_v58 = vpop.permute.xlu0 %3306  ;;  %v2001_v39 = vadd.f32 %v5640_v25, %v5512_v13  ;;  %v5769_v13 = vsel %vm2642_vm5, 1.0, %v6607_v36 }
 0x48e   :  { %vm3664_vm13 = vcmp.eq.s32.totalorder %v8092_v7, %v3286_v26  ;;  %v11667_v26 = vld [vmem:[#allocation129_spill] sm:$0xff] }
 0x48f   :  { %v5895_v4 = vsel %vm3664_vm13, 1.0, %v6607_v36  ;;  %v3025_v43 = vadd.f32 %v5768_v37, %v2001_v39  ;;  %vm1678_vm3 = vcmp.eq.s32.totalorder %v8092_v7, %v11667_v26  ;;  %v5573_v37 = vsel %vm654_vm6, 1.0, %v6607_v36  ;;  %v11672_v26 = vld [vmem:[#allocation210_spill] sm:$0xff] }
 0x490   :  { %v4048_v33 = vadd.f32 %v5895_v4, %v3024_v27  ;;  %v3174_v4 = vadd.s32 48, %v6450_v44  ;;  %v5701_v20 = vsel %vm1678_vm3, 1.0, %v6607_v36  ;;  %vm1619_vm9 = vcmp.eq.s32.totalorder %v8092_v7, %v11672_v26  ;;  %v11674_v44 = vld [vmem:[#allocation264_spill] sm:$0xff] }
 0x491   :  { %v4049_v27 = vadd.f32 %v5896_v19, %v3025_v43  ;;  %v5829_v19 = vsel %vm2702_vm7, 1.0, %v6607_v36  ;;  %v2062_v21 = vadd.f32 %v5701_v20, %v5573_v37  ;;  %vm2643_vm11 = vcmp.eq.s32.totalorder %v8092_v7, %v11674_v44  ;;  %v11677_v26 = vld [vmem:[#allocation216_spill] sm:$0xff] }
 0x492   :  { %6023 = vmatmul.msk.f32.gmra.mxu0 %vm4174_vm4, %v4048_v33  ;;  %6151 = vmatmul.msk.f32.gmra.mxu1 %vm4174_vm4, %v4048_v33  ;;  %v3178_v33 = vadd.s32 48, %v6451_v6  ;;  %v5642_v20 = vsel %vm1619_vm9, 1.0, %v6607_v36  ;;  %vm3667_vm13 = vcmp.eq.s32.totalorder %v8092_v7, %v3295_v23  ;;  %vm1620_vm14 = vcmp.eq.s32.totalorder %v8092_v7, %v11677_v26  ;;  %v11683_v26 = vld [vmem:[#allocation21_spill] sm:$0xff] }
 0x493   :  { %v3086_v6 = vadd.f32 %v5829_v19, %v2062_v21  ;;  %v5770_v19 = vsel %vm2643_vm11, 1.0, %v6607_v36  ;;  %v5898_v23 = vsel %vm3667_vm13, 1.0, %v6607_v36  ;;  %vm597_vm5 = vcmp.eq.s32.totalorder %v8092_v7, %v11683_v26 }
 0x494   :  { %3540 = vperm.xlu1 %6316, %v3237_v15   ;;  %3552 = vperm.xlu0 %6315, %v3241_v30   ;;  %v5641_v15 = vsel %vm1618_vm1, 1.0, %v6607_v36  ;;  %v11671_v30 = vld [vmem:[#allocation315_spill] sm:$0xff]  ;;  %vm3668_vm1 = vcmp.eq.s32.totalorder %v8092_v7, %v8147_v16  ;;  %v11682_v16 = vld [vmem:[#allocation110_spill] sm:$0xff] }
 0x495   :  { %3348 = vperm.xlu2 %6314, %v3173_v29   ;;  %v3292_v5 = vpop.permute.xlu1 %3291  ;;  %v8179_v63 = vpop.permute.xlu0 %3315  ;;  %v3239_v25 = vadd.s32 48, %v11671_v30  ;;  %v5513_v29 = vsel %vm594_vm2, 1.0, %v6607_v36  ;;  %v11676_v30 = vld [vmem:[#allocation324_spill] sm:$0xff]  ;;  %vm1679_vm3 = vcmp.eq.s32.totalorder %v8092_v7, %v11682_v16 }
 0x496   :  { %vm3666_vm8 = vcmp.eq.s32.totalorder %v8092_v7, %v3292_v5  ;;  %v2002_v39 = vadd.f32 %v5641_v15, %v5513_v29  ;;  %v11675_v15 = vld [vmem:[#allocation309_spill] sm:$0xff] }
 0x497   :  { %v5897_v5 = vsel %vm3666_vm8, 1.0, %v6607_v36  ;;  %v3240_v51 = vadd.s32 48, %v11675_v15 }
 0x498   :  { %v3026_v1 = vadd.f32 %v5769_v13, %v2002_v39  ;;  %v6452_v13 = vld [vmem:[#allocation2 + $0xd0] sm:$0xff] }
 0x499   :  { %v3176_v37 = vadd.s32 48, %v6452_v13 }
 0x49a   :  { %6024 = vmatmul.msk.f32.gmra.mxu0 %vm4174_vm4, %v4049_v27  ;;  %6152 = vmatmul.msk.f32.gmra.mxu1 %vm4174_vm4, %v4049_v27  ;;  %v11673_v27 = vld [vmem:[#allocation12_spill] sm:$0xff] }
 0x49b   :  { %vm595_vm10 = vcmp.eq.s32.totalorder %v8092_v7, %v11673_v27  ;;  %v11679_v27 = vld [vmem:[#allocation267_spill] sm:$0xff] }
 0x49c   :  { %3351 = vperm.xlu1 %6316, %v3174_v4   ;;  %3363 = vperm.xlu0 %6315, %v3178_v33   ;;  %v8213_v4 = vpop.permute.xlu2 %3303  ;;  %v4050_v33 = vadd.f32 %v5897_v5, %v3026_v1  ;;  %v5514_v39 = vsel %vm595_vm10, 1.0, %v6607_v36  ;;  %vm2644_vm0 = vcmp.eq.s32.totalorder %v8092_v7, %v11679_v27  ;;  %v11686_v27 = vld [vmem:[#allocation332_spill] sm:$0xff] }
 0x49d   :  { %3546 = vperm.xlu2 %6314, %v3239_v25   ;;  %v8205_v43 = vpop.permute.xlu1 %3300  ;;  %v3472_v11 = vpop.permute.xlu0 %3471  ;;  %v3244_v25 = vadd.s32 48, %v11676_v30  ;;  %v2003_v21 = vadd.f32 %v5642_v20, %v5514_v39  ;;  %v5771_v13 = vsel %vm2644_vm0, 1.0, %v6607_v36  ;;  %v5899_v39 = vsel %vm3668_vm1, 1.0, %v6607_v36 }
 0x49e   :  { %vm3726_vm12 = vcmp.eq.s32.totalorder %v8092_v7, %v3472_v11  ;;  %v11678_v11 = vld [vmem:[#allocation22_spill] sm:$0xff]  ;;  %vm2703_vm8 = vcmp.eq.s32.totalorder %v8092_v7, %v11686_v27  ;;  %vm3669_vm9 = vcmp.eq.s32.totalorder %v8092_v7, %v8205_v43  ;;  %v11690_v43 = vld [vmem:[#allocation213_spill] sm:$0xff]  ;;  %vm3670_vm1 = vcmp.eq.s32.totalorder %v8092_v7, %v8213_v4 }
 0x49f   :  { %v5957_v41 = vsel %vm3726_vm12, 1.0, %v6607_v36  ;;  %v3027_v1 = vadd.f32 %v5770_v19, %v2003_v21  ;;  %vm596_vm15 = vcmp.eq.s32.totalorder %v8092_v7, %v11678_v11  ;;  %v11681_v21 = vld [vmem:[#allocation218_spill] sm:$0xff]  ;;  %v11685_v11 = vld [vmem:[#allocation272_spill] sm:$0xff]  ;;  %vm1622_vm11 = vcmp.eq.s32.totalorder %v8092_v7, %v11690_v43 }
 0x4a0   :  { %v4110_v29 = vadd.f32 %v5957_v41, %v3086_v6  ;;  %v6453_v6 = vld [vmem:[#allocation2 + $0xd8] sm:$0xff]  ;;  %vm1621_vm2 = vcmp.eq.s32.totalorder %v8092_v7, %v11681_v21  ;;  %vm2645_vm7 = vcmp.eq.s32.totalorder %v8092_v7, %v11685_v11  ;;  %v5830_v21 = vsel %vm2703_vm8, 1.0, %v6607_v36 }
 0x4a1   :  { %v4051_v44 = vadd.f32 %v5898_v23, %v3027_v1  ;;  %v6454_v41 = vld [vmem:[#allocation2 + $0xf8] sm:$0xff]  ;;  %v11684_v1 = vld [vmem:[#allocation113_spill] sm:$0xff]  ;;  %v5900_v11 = vsel %vm3669_vm9, 1.0, %v6607_v36 }
 0x4a2   :  { %6025 = vmatmul.msk.f32.gmra.mxu0 %vm4174_vm4, %v4050_v33  ;;  %6153 = vmatmul.msk.f32.gmra.mxu1 %vm4174_vm4, %v4050_v33  ;;  %v3177_v33 = vadd.s32 48, %v6453_v6  ;;  %v3181_v15 = vadd.s32 48, %v6454_v41  ;;  %vm655_vm6 = vcmp.eq.s32.totalorder %v8092_v7, %v11684_v1  ;;  %v11687_v6 = vld [vmem:[#allocation314_spill] sm:$0xff]  ;;  %v11688_v41 = vld [vmem:[#allocation329_spill] sm:$0xff] }
 0x4a3   :  { %6085 = vmatmul.msk.f32.vlgmr.msra.gmra.mxu2 %vm4174_vm4, %v4110_v29  ;;  %6213 = vmatmul.msk.f32.vlgmr.msra.gmra.mxu3 %vm4174_vm4, %v4110_v29  ;;  %v5515_v29 = vsel %vm596_vm15, 1.0, %v6607_v36  ;;  %v11689_v1 = vld [vmem:[#allocation13_spill] sm:$0xff] }
 0x4a4   :  { %3549 = vperm.xlu1 %6316, %v3240_v51   ;;  %3561 = vperm.xlu0 %6315, %v3244_v25   ;;  %v5643_v51 = vsel %vm1620_vm14, 1.0, %v6607_v36  ;;  %v8243_v30 = vpop.permute.xlu2 %3312  ;;  %v11680_v25 = vld [vmem:[#allocation320_spill] sm:$0xff]  ;;  %vm598_vm10 = vcmp.eq.s32.totalorder %v8092_v7, %v11689_v1 }
 0x4a5   :  { %3357 = vperm.xlu2 %6314, %v3176_v37   ;;  %v8234_v5 = vpop.permute.xlu1 %3309  ;;  %v3242_v20 = vadd.s32 48, %v11680_v25  ;;  %v2004_v37 = vadd.f32 %v5643_v51, %v5515_v29  ;;  %v5644_v51 = vsel %vm1621_vm2, 1.0, %v6607_v36  ;;  %v5702_v25 = vsel %vm1679_vm3, 1.0, %v6607_v36 }
 0x4a6   :  { %v5517_v43 = vsel %vm598_vm10, 1.0, %v6607_v36  ;;  %vm3671_vm10 = vcmp.eq.s32.totalorder %v8092_v7, %v8161_v58 }
 0x4a7   :  { %v3028_v23 = vadd.f32 %v5771_v13, %v2004_v37  ;;  %v5516_v13 = vsel %vm597_vm5, 1.0, %v6607_v36  ;;  %v5574_v37 = vsel %vm655_vm6, 1.0, %v6607_v36 }
 0x4a8   :  { %v2063_v26 = vadd.f32 %v5702_v25, %v5574_v37  ;;  %v3478_v25 = vpop.permute.xlu0 %3477  ;;  %v6456_v37 = vld [vmem:[#allocation2 + $0xf0] sm:$0xff] }
 0x4a9   :  { %v3180_v31 = vadd.s32 48, %v6456_v37  ;;  %vm3728_vm2 = vcmp.eq.s32.totalorder %v8092_v7, %v3478_v25  ;;  %v11696_v25 = vld [vmem:[#allocation219_spill] sm:$0xff]  ;;  %v11700_v37 = vld [vmem:[#allocation270_spill] sm:$0xff] }
 0x4aa   :  { %6026 = vmatmul.msk.f32.gmra.mxu0 %vm4174_vm4, %v4051_v44  ;;  %6154 = vmatmul.msk.f32.gmra.mxu1 %vm4174_vm4, %v4051_v44  ;;  %v4052_v44 = vadd.f32 %v5899_v39, %v3028_v23  ;;  %v5772_v39 = vsel %vm2645_vm7, 1.0, %v6607_v36  ;;  %v2005_v23 = vadd.f32 %v5644_v51, %v5516_v13  ;;  %v11692_v51 = vld [vmem:[#allocation139_spill] sm:$0xff]  ;;  %vm1623_vm3 = vcmp.eq.s32.totalorder %v8092_v7, %v11696_v25 }
 0x4ab   :  { %vm656_vm14 = vcmp.eq.s32.totalorder %v8092_v7, %v11692_v51  ;;  %vm2647_vm8 = vcmp.eq.s32.totalorder %v8092_v7, %v11700_v37  ;;  %v11704_v37 = vld [vmem:[#allocation116_spill] sm:$0xff] }
 0x4ac   :  { %3360 = vperm.xlu1 %6316, %v3177_v33   ;;  %3372 = vperm.xlu0 %6315, %v3181_v15   ;;  %v3243_v33 = vadd.s32 48, %v11687_v6  ;;  %v3247_v15 = vadd.s32 48, %v11688_v41  ;;  %v8279_v16 = vpop.permute.xlu2 %3321  ;;  %v3029_v6 = vadd.f32 %v5772_v39, %v2005_v23  ;;  %v3087_v41 = vadd.f32 %v5830_v21, %v2063_v26  ;;  %v6457_v39 = vld [vmem:[#allocation2 + $0x110] sm:$0xff] }
 0x4ad   :  { %3555 = vperm.xlu2 %6314, %v3242_v20   ;;  %v8253_v19 = vpop.permute.xlu1 %3318  ;;  %v6455_v20 = vld [vmem:[#allocation2 + $0xe8] sm:$0xff]  ;;  %v3184_v21 = vadd.s32 48, %v6457_v39  ;;  %v5645_v23 = vsel %vm1622_vm11, 1.0, %v6607_v36  ;;  %v11701_v39 = vld [vmem:[#allocation343_spill] sm:$0xff]  ;;  %v5774_v58 = vsel %vm2647_vm8, 1.0, %v6607_v36 }
 0x4ae   :  { %v3179_v29 = vadd.s32 48, %v6455_v20  ;;  %v2006_v1 = vadd.f32 %v5645_v23, %v5517_v43  ;;  %vm2705_vm9 = vcmp.eq.s32.totalorder %v8092_v7, %v11701_v39  ;;  %v11702_v43 = vld [vmem:[#allocation333_spill] sm:$0xff] }
 0x4af   :  { %v5832_v25 = vsel %vm2705_vm9, 1.0, %v6607_v36 }
 0x4b2   :  { %6027 = vmatmul.msk.f32.gmra.mxu0 %vm4174_vm4, %v4052_v44  ;;  %6155 = vmatmul.msk.f32.gmra.mxu1 %vm4174_vm4, %v4052_v44  ;;  %v11691_v44 = vld [vmem:[#allocation136_spill] sm:$0xff] }
 0x4b3   :  { %vm1680_vm12 = vcmp.eq.s32.totalorder %v8092_v7, %v11691_v44 }
 0x4b4   :  { %3558 = vperm.xlu1 %6316, %v3243_v33   ;;  %3570 = vperm.xlu0 %6315, %v3247_v15   ;;  %v11693_v33 = vld [vmem:[#allocation266_spill] sm:$0xff]  ;;  %v5703_v26 = vsel %vm1680_vm12, 1.0, %v6607_v36  ;;  %v8329_v51 = vpop.permute.xlu2 %3324 }
 0x4b5   :  { %3366 = vperm.xlu2 %6314, %v3179_v29   ;;  %v3475_v27 = vpop.permute.xlu1 %3474  ;;  %vm2646_vm15 = vcmp.eq.s32.totalorder %v8092_v7, %v11693_v33  ;;  %v11694_v15 = vld [vmem:[#allocation338_spill] sm:$0xff]  ;;  %v4053_v29 = vadd.f32 %v5900_v11, %v3029_v6  ;;  %v5575_v11 = vsel %vm656_vm14, 1.0, %v6607_v36  ;;  %v5959_v33 = vsel %vm3728_vm2, 1.0, %v6607_v36 }
 0x4b6   :  { %vm3727_vm13 = vcmp.eq.s32.totalorder %v8092_v7, %v3475_v27  ;;  %vm2704_vm0 = vcmp.eq.s32.totalorder %v8092_v7, %v11694_v15  ;;  %v11695_v27 = vld [vmem:[#allocation325_spill] sm:$0xff]  ;;  %v5773_v4 = vsel %vm2646_vm15, 1.0, %v6607_v36  ;;  %v2064_v6 = vadd.f32 %v5703_v26, %v5575_v11  ;;  %v11697_v15 = vld [vmem:[#allocation135_spill] sm:$0xff] }
 0x4b7   :  { %v5958_v20 = vsel %vm3727_vm13, 1.0, %v6607_v36  ;;  %v3245_v62 = vadd.s32 48, %v11695_v27  ;;  %v5831_v44 = vsel %vm2704_vm0, 1.0, %v6607_v36  ;;  %vm1681_vm5 = vcmp.eq.s32.totalorder %v8092_v7, %v11697_v15  ;;  %v6458_v26 = vld [vmem:[#allocation2 + $0x300] sm:$0xff] }
 0x4b8   :  { %v4111_v13 = vadd.f32 %v5958_v20, %v3087_v41  ;;  %v5901_v41 = vsel %vm3670_vm1, 1.0, %v6607_v36  ;;  %v3030_v20 = vadd.f32 %v5773_v4, %v2006_v1  ;;  %v3246_v27 = vadd.s32 48, %v6458_v26  ;;  %v6459_v1 = vld [vmem:[#allocation2 + $0x100] sm:$0xff] }
 0x4b9   :  { %v3250_v11 = vadd.s32 48, %v11702_v43  ;;  %v5646_v4 = vsel %vm1623_vm3, 1.0, %v6607_v36  ;;  %vm1682_vm13 = vcmp.eq.s32.totalorder %v8092_v7, %v11704_v37  ;;  %v11707_v26 = vld [vmem:[#allocation275_spill] sm:$0xff]  ;;  %vm3672_vm2 = vcmp.eq.s32.totalorder %v8092_v7, %v8234_v5 }
 0x4ba   :  { %6028 = vmatmul.msk.f32.gmra.mxu0 %vm4174_vm4, %v4053_v29  ;;  %6086 = vmatmul.msk.f32.gmra.mxu2 %vm4174_vm4, %v4111_v13  ;;  %vm2648_vm0 = vcmp.eq.s32.totalorder %v8092_v7, %v11707_v26 }
 0x4bb   :  { %6156 = vmatmul.msk.f32.gmra.mxu1 %vm4174_vm4, %v4053_v29  ;;  %6214 = vmatmul.msk.f32.gmra.mxu3 %vm4174_vm4, %v4111_v13  ;;  %v3088_v29 = vadd.f32 %v5831_v44, %v2064_v6  ;;  %v11698_v13 = vld [vmem:[#allocation26_spill] sm:$0xff]  ;;  %v5704_v44 = vsel %vm1681_vm5, 1.0, %v6607_v36  ;;  %v3182_v6 = vadd.s32 48, %v6459_v1  ;;  %v5775_v5 = vsel %vm2648_vm0, 1.0, %v6607_v36 }
 0x4bc   :  { %3369 = vperm.xlu1 %6316, %v3180_v31   ;;  %3381 = vperm.xlu0 %6315, %v3184_v21   ;;  %vm599_vm6 = vcmp.eq.s32.totalorder %v8092_v7, %v11698_v13  ;;  %v11699_v31 = vld [vmem:[#allocation138_spill] sm:$0xff]  ;;  %v4054_v21 = vadd.f32 %v5901_v41, %v3030_v20  ;;  %v3484_v43 = vpop.permute.xlu2 %3483 }
 0x4bd   :  { %3564 = vperm.xlu2 %6314, %v3245_v62   ;;  %vm657_vm7 = vcmp.eq.s32.totalorder %v8092_v7, %v11699_v31  ;;  %v3481_v62 = vpop.permute.xlu1 %3480  ;;  %v4112_v23 = vadd.f32 %v5959_v33, %v3088_v29  ;;  %v5518_v41 = vsel %vm599_vm6, 1.0, %v6607_v36  ;;  %v5902_v29 = vsel %vm3671_vm10, 1.0, %v6607_v36  ;;  %v11703_v31 = vld [vmem:[#allocation23_spill] sm:$0xff] }
 0x4be   :  { %vm3729_vm11 = vcmp.eq.s32.totalorder %v8092_v7, %v3481_v62  ;;  %v5576_v33 = vsel %vm657_vm7, 1.0, %v6607_v36  ;;  %v2007_v15 = vadd.f32 %v5646_v4, %v5518_v41  ;;  %vm1624_vm12 = vcmp.eq.s32.totalorder %v8092_v7, %v11703_v31 }
 0x4bf   :  { %v2065_v20 = vadd.f32 %v5704_v44, %v5576_v33  ;;  %v5960_v13 = vsel %vm3729_vm11, 1.0, %v6607_v36  ;;  %v6460_v44 = vld [vmem:[#allocation2 + $0x108] sm:$0xff]  ;;  %v5647_v33 = vsel %vm1624_vm12, 1.0, %v6607_v36  ;;  %vm3730_vm3 = vcmp.eq.s32.totalorder %v8092_v7, %v3484_v43  ;;  %v11711_v43 = vld [vmem:[#allocation14_spill] sm:$0xff] }
 0x4c0   :  { %v3031_v39 = vadd.f32 %v5774_v58, %v2007_v15  ;;  %v3183_v1 = vadd.s32 48, %v6460_v44  ;;  %v5705_v58 = vsel %vm1682_vm13, 1.0, %v6607_v36  ;;  %vm601_vm7 = vcmp.eq.s32.totalorder %v8092_v7, %v11711_v43  ;;  %v11714_v44 = vld [vmem:[#allocation341_spill] sm:$0xff] }
 0x4c1   :  { %v3089_v62 = vadd.f32 %v5832_v25, %v2065_v20  ;;  %v6462_v25 = vld [vmem:[#allocation2 + $0x310] sm:$0xff]  ;;  %vm2707_vm10 = vcmp.eq.s32.totalorder %v8092_v7, %v11714_v44  ;;  %vm3673_vm11 = vcmp.eq.s32.totalorder %v8092_v7, %v8243_v30 }
 0x4c2   :  { %6029 = vmatmul.msk.f32.gmra.mxu0 %vm4174_vm4, %v4054_v21  ;;  %6087 = vmatmul.msk.f32.gmra.mxu2 %vm4174_vm4, %v4112_v23  ;;  %v3248_v15 = vadd.s32 48, %v6462_v25  ;;  %v6464_v25 = vld [vmem:[#allocation2 + $0x338] sm:$0xff]  ;;  %v11715_v43 = vld [vmem:[#allocation221_spill] sm:$0xff] }
 0x4c3   :  { %6157 = vmatmul.msk.f32.gmra.mxu1 %vm4174_vm4, %v4054_v21  ;;  %6215 = vmatmul.msk.f32.gmra.mxu3 %vm4174_vm4, %v4112_v23  ;;  %v11705_v21 = vld [vmem:[#allocation25_spill] sm:$0xff]  ;;  %v11706_v23 = vld [vmem:[#allocation119_spill] sm:$0xff]  ;;  %v4113_v4 = vadd.f32 %v5960_v13, %v3089_v62  ;;  %v5961_v62 = vsel %vm3730_vm3, 1.0, %v6607_v36  ;;  %vm1626_vm13 = vcmp.eq.s32.totalorder %v8092_v7, %v11715_v43  ;;  %vm3674_vm3 = vcmp.eq.s32.totalorder %v8092_v7, %v8179_v63 }
 0x4c4   :  { %3567 = vperm.xlu1 %6316, %v3246_v27   ;;  %3579 = vperm.xlu0 %6315, %v3250_v11   ;;  %vm600_vm14 = vcmp.eq.s32.totalorder %v8092_v7, %v11705_v21  ;;  %vm658_vm15 = vcmp.eq.s32.totalorder %v8092_v7, %v11706_v23  ;;  %v11708_v27 = vld [vmem:[#allocation336_spill] sm:$0xff]  ;;  %v4055_v11 = vadd.f32 %v5902_v29, %v3031_v39  ;;  %v5903_v39 = vsel %vm3672_vm2, 1.0, %v6607_v36  ;;  %v11709_v21 = vld [vmem:[#allocation214_spill] sm:$0xff] }
 0x4c5   :  { %3375 = vperm.xlu2 %6314, %v3182_v6   ;;  %vm2706_vm1 = vcmp.eq.s32.totalorder %v8092_v7, %v11708_v27  ;;  %v6461_v6 = vld [vmem:[#allocation2 + $0x128] sm:$0xff]  ;;  %v5519_v20 = vsel %vm600_vm14, 1.0, %v6607_v36  ;;  %v5577_v29 = vsel %vm658_vm15, 1.0, %v6607_v36  ;;  %vm1625_vm5 = vcmp.eq.s32.totalorder %v8092_v7, %v11709_v21  ;;  %v11710_v23 = vld [vmem:[#allocation142_spill] sm:$0xff] }
 0x4c6   :  { %v3187_v41 = vadd.s32 48, %v6461_v6  ;;  %v5833_v13 = vsel %vm2706_vm1, 1.0, %v6607_v36  ;;  %v2008_v31 = vadd.f32 %v5647_v33, %v5519_v20  ;;  %v2066_v37 = vadd.f32 %v5705_v58, %v5577_v29  ;;  %v6463_v33 = vld [vmem:[#allocation2 + $0x318] sm:$0xff] }
 0x4c7   :  { %vm1683_vm6 = vcmp.eq.s32.totalorder %v8092_v7, %v11710_v23  ;;  %v3249_v58 = vadd.s32 48, %v6463_v33  ;;  %v5648_v20 = vsel %vm1625_vm5, 1.0, %v6607_v36  ;;  %v5904_v23 = vsel %vm3673_vm11, 1.0, %v6607_v36  ;;  %v11720_v33 = vld [vmem:[#allocation346_spill] sm:$0xff] }
 0x4c8   :  { %v3032_v26 = vadd.f32 %v5775_v5, %v2008_v31  ;;  %v3090_v27 = vadd.f32 %v5833_v13, %v2066_v37  ;;  %v5706_v29 = vsel %vm1683_vm6, 1.0, %v6607_v36  ;;  %v6465_v5 = vld [vmem:[#allocation2 + $0x118] sm:$0xff]  ;;  %v5520_v31 = vsel %vm601_vm7, 1.0, %v6607_v36 }
 0x4c9   :  { %v3185_v13 = vadd.s32 48, %v6465_v5  ;;  %vm2708_vm2 = vcmp.eq.s32.totalorder %v8092_v7, %v11720_v33  ;;  %v6467_v5 = vld [vmem:[#allocation2 + $0x140] sm:$0xff]  ;;  %v11723_v33 = vld [vmem:[#allocation30_spill] sm:$0xff] }
 0x4ca   :  { %6030 = vmatmul.msk.f32.gmra.mxu0 %vm4174_vm4, %v4055_v11  ;;  %6088 = vmatmul.msk.f32.gmra.mxu2 %vm4174_vm4, %v4113_v4  ;;  %v4056_v6 = vadd.f32 %v5903_v39, %v3032_v26  ;;  %v5834_v39 = vsel %vm2707_vm10, 1.0, %v6607_v36  ;;  %v8449_v26 = vpop.permute.xlu0 %3327 }
 0x4cb   :  { %6158 = vmatmul.msk.f32.gmra.mxu1 %vm4174_vm4, %v4055_v11  ;;  %6216 = vmatmul.msk.f32.gmra.mxu3 %vm4174_vm4, %v4113_v4  ;;  %v11712_v11 = vld [vmem:[#allocation145_spill] sm:$0xff]  ;;  %v11713_v4 = vld [vmem:[#allocation268_spill] sm:$0xff] }
 0x4cc   :  { %3378 = vperm.xlu1 %6316, %v3183_v1   ;;  %3390 = vperm.xlu0 %6315, %v3187_v41   ;;  %vm659_vm8 = vcmp.eq.s32.totalorder %v8092_v7, %v11712_v11  ;;  %vm2649_vm9 = vcmp.eq.s32.totalorder %v8092_v7, %v11713_v4  ;;  %v3487_v1 = vpop.permute.xlu1 %3486  ;;  %v4114_v41 = vadd.f32 %v5961_v62, %v3090_v27  ;;  %v11716_v11 = vld [vmem:[#allocation141_spill] sm:$0xff] }
 0x4cd   :  { %3573 = vperm.xlu2 %6314, %v3248_v15   ;;  %v3253_v15 = vadd.s32 48, %v6464_v25  ;;  %vm3731_vm12 = vcmp.eq.s32.totalorder %v8092_v7, %v3487_v1  ;;  %v5578_v37 = vsel %vm659_vm8, 1.0, %v6607_v36  ;;  %v5776_v30 = vsel %vm2649_vm9, 1.0, %v6607_v36  ;;  %v11717_v1 = vld [vmem:[#allocation31_spill] sm:$0xff] }
 0x4ce   :  { %v2009_v62 = vadd.f32 %v5648_v20, %v5520_v31  ;;  %v2067_v21 = vadd.f32 %v5706_v29, %v5578_v37  ;;  %v5962_v27 = vsel %vm3731_vm12, 1.0, %v6607_v36  ;;  %vm1684_vm14 = vcmp.eq.s32.totalorder %v8092_v7, %v11716_v11  ;;  %v6466_v20 = vld [vmem:[#allocation2 + $0x120] sm:$0xff] }
 0x4cf   :  { %vm602_vm15 = vcmp.eq.s32.totalorder %v8092_v7, %v11717_v1  ;;  %v3186_v29 = vadd.s32 48, %v6466_v20  ;;  %v5649_v31 = vsel %vm1626_vm13, 1.0, %v6607_v36  ;;  %v5707_v37 = vsel %vm1684_vm14, 1.0, %v6607_v36  ;;  %v11722_v1 = vld [vmem:[#allocation122_spill] sm:$0xff] }
 0x4d0   :  { %v3033_v4 = vadd.f32 %v5776_v30, %v2009_v62  ;;  %v3091_v44 = vadd.f32 %v5834_v39, %v2067_v21  ;;  %v6468_v30 = vld [vmem:[#allocation2 + $0x328] sm:$0xff]  ;;  %v5521_v62 = vsel %vm602_vm15, 1.0, %v6607_v36  ;;  %v5905_v11 = vsel %vm3674_vm3, 1.0, %v6607_v36 }
 0x4d1   :  { %v3251_v39 = vadd.s32 48, %v6468_v30  ;;  %vm1685_vm7 = vcmp.eq.s32.totalorder %v8092_v7, %v11722_v1  ;;  %vm603_vm8 = vcmp.eq.s32.totalorder %v8092_v7, %v11723_v33  ;;  %vm3675_vm12 = vcmp.eq.s32.totalorder %v8092_v7, %v8253_v19 }
 0x4d2   :  { %6031 = vmatmul.msk.f32.gmra.mxu0 %vm4174_vm4, %v4056_v6  ;;  %6089 = vmatmul.msk.f32.gmra.mxu2 %vm4174_vm4, %v4114_v41  ;;  %v4057_v25 = vadd.f32 %v5904_v23, %v3033_v4  ;;  %v5835_v23 = vsel %vm2708_vm2, 1.0, %v6607_v36  ;;  %v3493_v20 = vpop.permute.xlu0 %3492 }
 0x4d3   :  { %6159 = vmatmul.msk.f32.gmra.mxu1 %vm4174_vm4, %v4056_v6  ;;  %6217 = vmatmul.msk.f32.gmra.mxu3 %vm4174_vm4, %v4114_v41  ;;  %v11718_v6 = vld [vmem:[#allocation144_spill] sm:$0xff]  ;;  %v11719_v41 = vld [vmem:[#allocation273_spill] sm:$0xff]  ;;  %vm3733_vm13 = vcmp.eq.s32.totalorder %v8092_v7, %v3493_v20  ;;  %v11731_v20 = vld [vmem:[#allocation271_spill] sm:$0xff] }
 0x4d4   :  { %3576 = vperm.xlu1 %6316, %v3249_v58   ;;  %3588 = vperm.xlu0 %6315, %v3253_v15   ;;  %vm660_vm0 = vcmp.eq.s32.totalorder %v8092_v7, %v11718_v6  ;;  %vm2650_vm1 = vcmp.eq.s32.totalorder %v8092_v7, %v11719_v41  ;;  %v3490_v58 = vpop.permute.xlu2 %3489  ;;  %v4115_v15 = vadd.f32 %v5962_v27, %v3091_v44  ;;  %v11721_v44 = vld [vmem:[#allocation28_spill] sm:$0xff]  ;;  %v5964_v1 = vsel %vm3733_vm13, 1.0, %v6607_v36 }
 0x4d5   :  { %3384 = vperm.xlu2 %6314, %v3185_v13   ;;  %v3190_v13 = vadd.s32 48, %v6467_v5  ;;  %vm3732_vm5 = vcmp.eq.s32.totalorder %v8092_v7, %v3490_v58  ;;  %v5579_v21 = vsel %vm660_vm0, 1.0, %v6607_v36  ;;  %v5777_v63 = vsel %vm2650_vm1, 1.0, %v6607_v36  ;;  %v11724_v58 = vld [vmem:[#allocation125_spill] sm:$0xff] }
 0x4d6   :  { %v2010_v27 = vadd.f32 %v5649_v31, %v5521_v62  ;;  %v2068_v43 = vadd.f32 %v5707_v37, %v5579_v21  ;;  %v5963_v4 = vsel %vm3732_vm5, 1.0, %v6607_v36  ;;  %vm1627_vm6 = vcmp.eq.s32.totalorder %v8092_v7, %v11721_v44  ;;  %v6470_v37 = vld [vmem:[#allocation2 + $0x350] sm:$0xff] }
 0x4d7   :  { %vm661_vm9 = vcmp.eq.s32.totalorder %v8092_v7, %v11724_v58  ;;  %v3256_v30 = vadd.s32 48, %v6470_v37  ;;  %v5708_v62 = vsel %vm1685_vm7, 1.0, %v6607_v36  ;;  %v6471_v21 = vld [vmem:[#allocation2 + $0x130] sm:$0xff]  ;;  %v5906_v44 = vsel %vm3675_vm12, 1.0, %v6607_v36 }
 0x4d8   :  { %v3034_v6 = vadd.f32 %v5777_v63, %v2010_v27  ;;  %v3092_v41 = vadd.f32 %v5835_v23, %v2068_v43  ;;  %v3188_v63 = vadd.s32 48, %v6471_v21  ;;  %v5522_v23 = vsel %vm603_vm8, 1.0, %v6607_v36 }
 0x4d9   :  { %v5580_v27 = vsel %vm661_vm9, 1.0, %v6607_v36  ;;  %vm2652_vm2 = vcmp.eq.s32.totalorder %v8092_v7, %v11731_v20  ;;  %vm3676_vm5 = vcmp.eq.s32.totalorder %v8092_v7, %v8279_v16  ;;  %vm3677_vm13 = vcmp.eq.s32.totalorder %v8092_v7, %v8329_v51  ;;  %v11742_v51 = vld [vmem:[#allocation131_spill] sm:$0xff] }
 0x4da   :  { %6032 = vmatmul.msk.f32.gmra.mxu0 %vm4174_vm4, %v4057_v25  ;;  %6090 = vmatmul.msk.f32.gmra.mxu2 %vm4174_vm4, %v4115_v15  ;;  %v4116_v5 = vadd.f32 %v5963_v4, %v3092_v41  ;;  %v2069_v4 = vadd.f32 %v5708_v62, %v5580_v27  ;;  %v11728_v41 = vld [vmem:[#allocation148_spill] sm:$0xff]  ;;  %v6473_v62 = vld [vmem:[#allocation2 + $0x158] sm:$0xff]  ;;  %v6474_v27 = vld [vmem:[#allocation2 + $0x340] sm:$0xff]  ;;  %v5779_v16 = vsel %vm2652_vm2, 1.0, %v6607_v36  ;;  %vm664_vm2 = vcmp.eq.s32.totalorder %v8092_v7, %v11742_v51 }
 0x4db   :  { %6160 = vmatmul.msk.f32.gmra.mxu1 %vm4174_vm4, %v4057_v25  ;;  %6218 = vmatmul.msk.f32.gmra.mxu3 %vm4174_vm4, %v4115_v15  ;;  %v11725_v25 = vld [vmem:[#allocation278_spill] sm:$0xff]  ;;  %v11726_v15 = vld [vmem:[#allocation339_spill] sm:$0xff]  ;;  %vm1686_vm15 = vcmp.eq.s32.totalorder %v8092_v7, %v11728_v41  ;;  %v3193_v21 = vadd.s32 48, %v6473_v62  ;;  %v5907_v41 = vsel %vm3676_vm5, 1.0, %v6607_v36 }
 0x4dc   :  { %3387 = vperm.xlu1 %6316, %v3186_v29   ;;  %3399 = vperm.xlu0 %6315, %v3190_v13   ;;  %vm2651_vm10 = vcmp.eq.s32.totalorder %v8092_v7, %v11725_v25  ;;  %vm2709_vm11 = vcmp.eq.s32.totalorder %v8092_v7, %v11726_v15  ;;  %v4058_v29 = vadd.f32 %v5905_v11, %v3034_v6  ;;  %v6469_v13 = vld [vmem:[#allocation2 + $0x330] sm:$0xff]  ;;  %v11730_v15 = vld [vmem:[#allocation151_spill] sm:$0xff]  ;;  %v11746_v51 = vld [vmem:[#allocation154_spill] sm:$0xff] }
 0x4dd   :  { %3582 = vperm.xlu2 %6314, %v3251_v39   ;;  %v3252_v31 = vadd.s32 48, %v6469_v13  ;;  %v5650_v39 = vsel %vm1627_vm6, 1.0, %v6607_v36  ;;  %v5778_v19 = vsel %vm2651_vm10, 1.0, %v6607_v36  ;;  %v5836_v43 = vsel %vm2709_vm11, 1.0, %v6607_v36  ;;  %v11727_v6 = vld [vmem:[#allocation217_spill] sm:$0xff]  ;;  %v8542_v13 = vpop.permute.xlu1 %3330 }
 0x4de   :  { %v2011_v11 = vadd.f32 %v5650_v39, %v5522_v23  ;;  %vm1628_vm14 = vcmp.eq.s32.totalorder %v8092_v7, %v11727_v6  ;;  %v3093_v58 = vadd.f32 %v5836_v43, %v2069_v4  ;;  %v11729_v25 = vld [vmem:[#allocation17_spill] sm:$0xff]  ;;  %vm662_vm1 = vcmp.eq.s32.totalorder %v8092_v7, %v11730_v15 }
 0x4df   :  { %vm604_vm0 = vcmp.eq.s32.totalorder %v8092_v7, %v11729_v25  ;;  %v5709_v23 = vsel %vm1686_vm15, 1.0, %v6607_v36  ;;  %v11734_v25 = vld [vmem:[#allocation147_spill] sm:$0xff] }
 0x4e0   :  { %v3035_v33 = vadd.f32 %v5778_v19, %v2011_v11  ;;  %v4117_v37 = vadd.f32 %v5964_v1, %v3093_v58  ;;  %v3254_v19 = vadd.s32 48, %v6474_v27  ;;  %v5523_v43 = vsel %vm604_vm0, 1.0, %v6607_v36  ;;  %v11733_v58 = vld [vmem:[#allocation34_spill] sm:$0xff]  ;;  %v6476_v27 = vld [vmem:[#allocation2 + $0x368] sm:$0xff] }
 0x4e1   :  { %v5581_v11 = vsel %vm662_vm1, 1.0, %v6607_v36  ;;  %vm1629_vm7 = vcmp.eq.s32.totalorder %v8092_v7, %v11733_v58  ;;  %vm1687_vm8 = vcmp.eq.s32.totalorder %v8092_v7, %v11734_v25 }
 0x4e2   :  { %6033 = vmatmul.msk.f32.gmra.mxu0 %vm4174_vm4, %v4058_v29  ;;  %6091 = vmatmul.msk.f32.gmra.mxu2 %vm4174_vm4, %v4116_v5  ;;  %v2070_v6 = vadd.f32 %v5709_v23, %v5581_v11  ;;  %v5710_v11 = vsel %vm1687_vm8, 1.0, %v6607_v36 }
 0x4e3   :  { %6161 = vmatmul.msk.f32.gmra.mxu1 %vm4174_vm4, %v4058_v29  ;;  %6219 = vmatmul.msk.f32.gmra.mxu3 %vm4174_vm4, %v4116_v5  ;;  %v11732_v29 = vld [vmem:[#allocation344_spill] sm:$0xff]  ;;  %v3496_v5 = vpop.permute.xlu2 %3495 }
 0x4e4   :  { %3585 = vperm.xlu1 %6316, %v3252_v31   ;;  %3597 = vperm.xlu0 %6315, %v3256_v30   ;;  %vm2710_vm3 = vcmp.eq.s32.totalorder %v8092_v7, %v11732_v29  ;;  %v4059_v31 = vadd.f32 %v5906_v44, %v3035_v33  ;;  %v6472_v30 = vld [vmem:[#allocation2 + $0x138] sm:$0xff]  ;;  %vm3734_vm6 = vcmp.eq.s32.totalorder %v8092_v7, %v3496_v5  ;;  %v3499_v44 = vpop.permute.xlu0 %3498  ;;  %v11735_v29 = vld [vmem:[#allocation37_spill] sm:$0xff] }
 0x4e5   :  { %3393 = vperm.xlu2 %6314, %v3188_v63   ;;  %v3189_v39 = vadd.s32 48, %v6472_v30  ;;  %v5651_v63 = vsel %vm1628_vm14, 1.0, %v6607_v36  ;;  %v5837_v4 = vsel %vm2710_vm3, 1.0, %v6607_v36  ;;  %v5965_v33 = vsel %vm3734_vm6, 1.0, %v6607_v36  ;;  %v11736_v5 = vld [vmem:[#allocation150_spill] sm:$0xff] }
 0x4e6   :  { %v2012_v1 = vadd.f32 %v5651_v63, %v5523_v43  ;;  %v3094_v20 = vadd.f32 %v5837_v4, %v2070_v6  ;;  %vm605_vm9 = vcmp.eq.s32.totalorder %v8092_v7, %v11735_v29  ;;  %vm663_vm10 = vcmp.eq.s32.totalorder %v8092_v7, %v11736_v5  ;;  %v6475_v63 = vld [vmem:[#allocation2 + $0x348] sm:$0xff] }
 0x4e7   :  { %v3255_v23 = vadd.s32 48, %v6475_v63  ;;  %v5652_v43 = vsel %vm1629_vm7, 1.0, %v6607_v36  ;;  %vm3735_vm14 = vcmp.eq.s32.totalorder %v8092_v7, %v3499_v44  ;;  %v5908_v5 = vsel %vm3677_vm13, 1.0, %v6607_v36  ;;  %v11741_v63 = vld [vmem:[#allocation36_spill] sm:$0xff]  ;;  %v11744_v44 = vld [vmem:[#allocation342_spill] sm:$0xff] }
 0x4e8   :  { %v3036_v15 = vadd.f32 %v5779_v16, %v2012_v1  ;;  %v3502_v16 = vpop.permute.xlu1 %3501  ;;  %v6477_v1 = vld [vmem:[#allocation2 + $0x148] sm:$0xff]  ;;  %vm606_vm1 = vcmp.eq.s32.totalorder %v8092_v7, %v11741_v63  ;;  %vm2712_vm5 = vcmp.eq.s32.totalorder %v8092_v7, %v11744_v44  ;;  %vm3678_vm6 = vcmp.eq.s32.totalorder %v8092_v7, %v8449_v26 }
 0x4e9   :  { %v3191_v6 = vadd.s32 48, %v6477_v1  ;;  %vm3736_vm7 = vcmp.eq.s32.totalorder %v8092_v7, %v3502_v16  ;;  %v11745_v63 = vld [vmem:[#allocation220_spill] sm:$0xff]  ;;  %v11750_v16 = vld [vmem:[#allocation347_spill] sm:$0xff] }
 0x4ea   :  { %6034 = vmatmul.msk.f32.gmra.mxu0 %vm4174_vm4, %v4059_v31  ;;  %6092 = vmatmul.msk.f32.gmra.mxu2 %vm4174_vm4, %v4117_v37  ;;  %v4060_v30 = vadd.f32 %v5907_v41, %v3036_v15  ;;  %v5524_v41 = vsel %vm605_vm9, 1.0, %v6607_v36  ;;  %vm1631_vm8 = vcmp.eq.s32.totalorder %v8092_v7, %v11745_v63  ;;  %vm1689_vm9 = vcmp.eq.s32.totalorder %v8092_v7, %v11746_v51 }
 0x4eb   :  { %6162 = vmatmul.msk.f32.gmra.mxu1 %vm4174_vm4, %v4059_v31  ;;  %6220 = vmatmul.msk.f32.gmra.mxu3 %vm4174_vm4, %v4117_v37  ;;  %v11737_v31 = vld [vmem:[#allocation276_spill] sm:$0xff]  ;;  %v11738_v37 = vld [vmem:[#allocation349_spill] sm:$0xff]  ;;  %v8618_v15 = vpop.permute.xlu2 %3333  ;;  %vm2713_vm13 = vcmp.eq.s32.totalorder %v8092_v7, %v11750_v16 }
 0x4ec   :  { %3396 = vperm.xlu1 %6316, %v3189_v39   ;;  %3408 = vperm.xlu0 %6315, %v3193_v21   ;;  %vm2653_vm11 = vcmp.eq.s32.totalorder %v8092_v7, %v11737_v31  ;;  %vm2711_vm12 = vcmp.eq.s32.totalorder %v8092_v7, %v11738_v37  ;;  %v4118_v39 = vadd.f32 %v5965_v33, %v3094_v20  ;;  %v5582_v33 = vsel %vm663_vm10, 1.0, %v6607_v36  ;;  %v8629_v37 = vpop.permute.xlu0 %3504  ;;  %v11752_v16 = vld [vmem:[#allocation153_spill] sm:$0xff] }
 0x4ed   :  { %3591 = vperm.xlu2 %6314, %v3254_v19   ;;  %v3259_v19 = vadd.s32 48, %v6476_v27  ;;  %v5780_v58 = vsel %vm2653_vm11, 1.0, %v6607_v36  ;;  %v5838_v25 = vsel %vm2711_vm12, 1.0, %v6607_v36  ;;  %v2013_v20 = vadd.f32 %v5652_v43, %v5524_v41  ;;  %v6478_v43 = vld [vmem:[#allocation2 + $0x150] sm:$0xff] }
 0x4ee   :  { %v2071_v29 = vadd.f32 %v5710_v11, %v5582_v33  ;;  %v5966_v31 = vsel %vm3735_vm14, 1.0, %v6607_v36  ;;  %v3192_v11 = vadd.s32 48, %v6478_v43  ;;  %v6480_v33 = vld [vmem:[#allocation2 + $0x358] sm:$0xff]  ;;  %vm3737_vm14 = vcmp.eq.s32.totalorder %v8092_v7, %v8629_v37 }
 0x4ef   :  { %v11749_v43 = vld [vmem:[#allocation274_spill] sm:$0xff] }
 0x4f0   :  { %v4576_v62 = vpop.f32.mrf.mxu0  ;;  %v4977_v21 = vpop.f32.mrf.mxu1  ;;  %vm2655_vm12 = vcmp.eq.s32.totalorder %v8092_v7, %v11749_v43  ;;  %v11751_v43 = vld [vmem:[#allocation40_spill] sm:$0xff] }
 0x4f1   :  { %v4978_v4 = vadd.f32 %v4977_v21, %v4576_v62  ;;  %v11739_v62 = vld [vmem:[#allocation33_spill] sm:$0xff]  ;;  %v3095_v21 = vadd.f32 %v5838_v25, %v2071_v29  ;;  %v5525_v25 = vsel %vm606_vm1, 1.0, %v6607_v36  ;;  %v5839_v29 = vsel %vm2712_vm5, 1.0, %v6607_v36 }
 0x4f2   :  { %6035 = vmatmul.msk.f32.gmra.mxu0 %vm4174_vm4, %v4060_v30  ;;  %6093 = vmatmul.msk.f32.gmra.mxu2 %vm4174_vm4, %v4118_v39  ;;  %vm1630_vm15 = vcmp.eq.s32.totalorder %v8092_v7, %v11739_v62  ;;  %v5782_v37 = vsel %vm2655_vm12, 1.0, %v6607_v36  ;;  %vm1690_vm1 = vcmp.eq.s32.totalorder %v8092_v7, %v11752_v16 }
 0x4f3   :  { %5361 = vst [vmem:[#allocation7] sm:$0xff] %v4978_v4  ;;  %6163 = vmatmul.msk.f32.gmra.mxu1 %vm4174_vm4, %v4060_v30  ;;  %6221 = vmatmul.msk.f32.gmra.mxu3 %vm4174_vm4, %v4118_v39  ;;  %v11740_v30 = vld [vmem:[#allocation128_spill] sm:$0xff]  ;;  %v3037_v39 = vadd.f32 %v5780_v58, %v2013_v20  ;;  %v6479_v4 = vld [vmem:[#allocation2 + $0x170] sm:$0xff]  ;;  %v3257_v58 = vadd.s32 48, %v6480_v33  ;;  %v5583_v20 = vsel %vm664_vm2, 1.0, %v6607_v36  ;;  %v6481_v33 = vld [vmem:[#allocation2 + $0x360] sm:$0xff] }
 0x4f4   :  { %3594 = vperm.xlu1 %6316, %v3255_v23   ;;  %3606 = vperm.xlu0 %6315, %v3259_v19   ;;  %vm1688_vm0 = vcmp.eq.s32.totalorder %v8092_v7, %v11740_v30  ;;  %v11743_v23 = vld [vmem:[#allocation281_spill] sm:$0xff]  ;;  %v4119_v19 = vadd.f32 %v5966_v31, %v3095_v21  ;;  %v3196_v1 = vadd.s32 48, %v6479_v4  ;;  %v5909_v30 = vsel %vm3678_vm6, 1.0, %v6607_v36 }
 0x4f5   :  { %3402 = vperm.xlu2 %6314, %v3191_v6   ;;  %vm2654_vm3 = vcmp.eq.s32.totalorder %v8092_v7, %v11743_v23  ;;  %v4061_v27 = vadd.f32 %v5908_v5, %v3037_v39  ;;  %v5653_v6 = vsel %vm1630_vm15, 1.0, %v6607_v36  ;;  %v5711_v41 = vsel %vm1688_vm0, 1.0, %v6607_v36  ;;  %v8666_v5 = vpop.permute.xlu1 %3507  ;;  %v8671_v39 = vpop.permute.xlu2 %3510 }
 0x4f6   :  { %v5781_v26 = vsel %vm2654_vm3, 1.0, %v6607_v36  ;;  %v2014_v31 = vadd.f32 %v5653_v6, %v5525_v25  ;;  %v2072_v62 = vadd.f32 %v5711_v41, %v5583_v20  ;;  %v5967_v21 = vsel %vm3736_vm7, 1.0, %v6607_v36  ;;  %v6482_v25 = vld [vmem:[#allocation2 + $0x380] sm:$0xff] }
 0x4f7   :  { %v3262_v20 = vadd.s32 48, %v6482_v25  ;;  %vm3679_vm15 = vcmp.eq.s32.totalorder %v8092_v7, %v8542_v13  ;;  %v5840_v13 = vsel %vm2713_vm13, 1.0, %v6607_v36  ;;  %vm1632_vm0 = vcmp.eq.s32.totalorder %v8092_v7, %v11751_v43 }
 0x4f8   :  { %v3038_v23 = vadd.f32 %v5781_v26, %v2014_v31  ;;  %v3096_v44 = vadd.f32 %v5839_v29, %v2072_v62  ;;  %v5654_v26 = vsel %vm1631_vm8, 1.0, %v6607_v36  ;;  %v5712_v29 = vsel %vm1689_vm9, 1.0, %v6607_v36  ;;  %v6483_v62 = vld [vmem:[#allocation2 + $0x160] sm:$0xff] }
 0x4f9   :  { %vm2714_vm6 = vcmp.eq.s32.totalorder %v8092_v7, %v7979_v52  ;;  %vm3680_vm7 = vcmp.eq.s32.totalorder %v8092_v7, %v8618_v15  ;;  %vm3738_vm8 = vcmp.eq.s32.totalorder %v8092_v7, %v8666_v5 }
 0x4fa   :  { %6036 = vmatmul.msk.f32.gmra.mxu0 %vm4174_vm4, %v4061_v27  ;;  %6094 = vmatmul.msk.f32.gmra.mxu2 %vm4174_vm4, %v4119_v19  ;;  %v4062_v4 = vadd.f32 %v5909_v30, %v3038_v23  ;;  %v3194_v30 = vadd.s32 48, %v6483_v62  ;;  %v5841_v5 = vsel %vm2714_vm6, 1.0, %v6607_v36  ;;  %v5911_v43 = vsel %vm3680_vm7, 1.0, %v6607_v36 }
 0x4fb   :  { %6164 = vmatmul.msk.f32.gmra.mxu1 %vm4174_vm4, %v4061_v27  ;;  %6222 = vmatmul.msk.f32.gmra.mxu3 %vm4174_vm4, %v4119_v19  ;;  %v11747_v27 = vld [vmem:[#allocation20_spill] sm:$0xff]  ;;  %v11748_v19 = vld [vmem:[#allocation157_spill] sm:$0xff]  ;;  %v5969_v16 = vsel %vm3738_vm8, 1.0, %v6607_v36 }
 0x4fc   :  { %3405 = vperm.xlu1 %6316, %v3192_v11   ;;  %3417 = vperm.xlu0 %6315, %v3196_v1   ;;  %vm607_vm10 = vcmp.eq.s32.totalorder %v8092_v7, %v11747_v27  ;;  %vm665_vm11 = vcmp.eq.s32.totalorder %v8092_v7, %v11748_v19  ;;  %v8688_v11 = vpop.permute.xlu0 %3336  ;;  %v4120_v1 = vadd.f32 %v5967_v21, %v3096_v44  ;;  %v5968_v44 = vsel %vm3737_vm14, 1.0, %v6607_v36 }
 0x4fd   :  { %3600 = vperm.xlu2 %6314, %v3257_v58   ;;  %v3258_v58 = vadd.s32 48, %v6481_v33  ;;  %v5526_v21 = vsel %vm607_vm10, 1.0, %v6607_v36  ;;  %v5584_v63 = vsel %vm665_vm11, 1.0, %v6607_v36  ;;  %v5910_v27 = vsel %vm3679_vm15, 1.0, %v6607_v36  ;;  %v8724_v19 = vpop.permute.xlu1 %3513  ;;  %v11755_v33 = vld [vmem:[#allocation279_spill] sm:$0xff] }
 0x4fe   :  { %v2015_v51 = vadd.f32 %v5654_v26, %v5526_v21  ;;  %v2073_v23 = vadd.f32 %v5712_v29, %v5584_v63  ;;  %vm2656_vm5 = vcmp.eq.s32.totalorder %v8092_v7, %v11755_v33  ;;  %v6484_v26 = vld [vmem:[#allocation2 + $0x168] sm:$0xff]  ;;  %v5713_v21 = vsel %vm1690_vm1, 1.0, %v6607_v36  ;;  %v11759_v33 = vld [vmem:[#allocation137_spill] sm:$0xff] }
 0x4ff   :  { %v4579_v6 = vpop.f32.mrf.mxu0  ;;  %v4980_v41 = vpop.f32.mrf.mxu1  ;;  %v3195_v29 = vadd.s32 48, %v6484_v26  ;;  %v5783_v15 = vsel %vm2656_vm5, 1.0, %v6607_v36  ;;  %vm667_vm12 = vcmp.eq.s32.totalorder %v8092_v7, %v11759_v33  ;;  %vm3739_vm15 = vcmp.eq.s32.totalorder %v8092_v7, %v8671_v39  ;;  %v11766_v39 = vld [vmem:[#allocation277_spill] sm:$0xff] }
 0x500   :  { %v4981_v31 = vadd.f32 %v4980_v41, %v4579_v6  ;;  %v3097_v6 = vadd.f32 %v5840_v13, %v2073_v23  ;;  %v11754_v41 = vld [vmem:[#allocation156_spill] sm:$0xff]  ;;  %vm2658_vm6 = vcmp.eq.s32.totalorder %v8092_v7, %v11766_v39  ;;  %vm3740_vm8 = vcmp.eq.s32.totalorder %v8092_v7, %v8724_v19  ;;  %v11771_v19 = vld [vmem:[#allocation162_spill] sm:$0xff] }
 0x501   :  { %vm666_vm3 = vcmp.eq.s32.totalorder %v8092_v7, %v11754_v41  ;;  %v11758_v41 = vld [vmem:[#allocation42_spill] sm:$0xff] }
 0x502   :  { %6037 = vmatmul.msk.f32.gmra.mxu0 %vm4174_vm4, %v4062_v4  ;;  %6095 = vmatmul.msk.f32.gmra.mxu2 %vm4174_vm4, %v4120_v1  ;;  %5362 = vst [vmem:[#allocation7 + $0x8] sm:$0xff] %v4981_v31  ;;  %v4121_v25 = vadd.f32 %v5968_v44, %v3097_v6  ;;  %v6485_v31 = vld [vmem:[#allocation2 + $0x188] sm:$0xff]  ;;  %v5585_v23 = vsel %vm666_vm3, 1.0, %v6607_v36  ;;  %v11757_v6 = vld [vmem:[#allocation134_spill] sm:$0xff]  ;;  %vm609_vm11 = vcmp.eq.s32.totalorder %v8092_v7, %v11758_v41 }
 0x503   :  { %6165 = vmatmul.msk.f32.gmra.mxu1 %vm4174_vm4, %v4062_v4  ;;  %6223 = vmatmul.msk.f32.gmra.mxu3 %vm4174_vm4, %v4120_v1  ;;  %v3039_v4 = vadd.f32 %v5782_v37, %v2015_v51  ;;  %v11753_v1 = vld [vmem:[#allocation43_spill] sm:$0xff]  ;;  %v3199_v62 = vadd.s32 48, %v6485_v31  ;;  %v6486_v37 = vld [vmem:[#allocation2 + $0x370] sm:$0xff]  ;;  %vm1691_vm10 = vcmp.eq.s32.totalorder %v8092_v7, %v11757_v6 }
 0x504   :  { %3603 = vperm.xlu1 %6316, %v3258_v58   ;;  %3615 = vperm.xlu0 %6315, %v3262_v20   ;;  %vm608_vm2 = vcmp.eq.s32.totalorder %v8092_v7, %v11753_v1  ;;  %v8738_v58 = vpop.permute.xlu2 %3516  ;;  %v8742_v63 = vpop.permute.xlu0 %3519  ;;  %v3260_v13 = vadd.s32 48, %v6486_v37 }
 0x505   :  { %3411 = vperm.xlu2 %6314, %v3194_v30   ;;  %v4063_v20 = vadd.f32 %v5910_v27, %v3039_v4  ;;  %v5655_v30 = vsel %vm1632_vm0, 1.0, %v6607_v36  ;;  %v5527_v51 = vsel %vm608_vm2, 1.0, %v6607_v36  ;;  %v2074_v27 = vadd.f32 %v5713_v21, %v5585_v23  ;;  %v11756_v4 = vld [vmem:[#allocation39_spill] sm:$0xff]  ;;  %v8782_v26 = vpop.permute.xlu1 %3339  ;;  %v6487_v21 = vld [vmem:[#allocation2 + $0x378] sm:$0xff] }
 0x506   :  { %v2016_v44 = vadd.f32 %v5655_v30, %v5527_v51  ;;  %vm1633_vm9 = vcmp.eq.s32.totalorder %v8092_v7, %v11756_v4  ;;  %v3261_v37 = vadd.s32 48, %v6487_v21  ;;  %vm3681_vm0 = vcmp.eq.s32.totalorder %v8092_v7, %v8688_v11  ;;  %v11764_v21 = vld [vmem:[#allocation24_spill] sm:$0xff]  ;;  %v11767_v11 = vld [vmem:[#allocation350_spill] sm:$0xff] }
 0x507   :  { %v3098_v1 = vadd.f32 %v5841_v5, %v2074_v27  ;;  %v5656_v23 = vsel %vm1633_vm9, 1.0, %v6607_v36  ;;  %v6489_v27 = vld [vmem:[#allocation2 + $0x178] sm:$0xff]  ;;  %v5586_v4 = vsel %vm667_vm12, 1.0, %v6607_v36  ;;  %vm610_vm3 = vcmp.eq.s32.totalorder %v8092_v7, %v11764_v21 }
 0x508   :  { %v3040_v52 = vadd.f32 %v5783_v15, %v2016_v44  ;;  %v5714_v15 = vsel %vm1691_vm10, 1.0, %v6607_v36  ;;  %vm2716_vm7 = vcmp.eq.s32.totalorder %v8092_v7, %v11767_v11  ;;  %vm3682_vm9 = vcmp.eq.s32.totalorder %v8092_v7, %v8782_v26 }
 0x509   :  { %v2075_v33 = vadd.f32 %v5714_v15, %v5586_v4  ;;  %v5913_v11 = vsel %vm3682_vm9, 1.0, %v6607_v36  ;;  %vm3742_vm9 = vcmp.eq.s32.totalorder %v8092_v7, %v8742_v63  ;;  %v11782_v63 = vld [vmem:[#allocation168_spill] sm:$0xff] }
 0x50a   :  { %6038 = vmatmul.msk.f32.gmra.mxu0 %vm4174_vm4, %v4063_v20  ;;  %6096 = vmatmul.msk.f32.gmra.mxu2 %vm4174_vm4, %v4121_v25  ;;  %v4064_v31 = vadd.f32 %v5911_v43, %v3040_v52  ;;  %v3197_v43 = vadd.s32 48, %v6489_v27 }
 0x50b   :  { %6166 = vmatmul.msk.f32.gmra.mxu1 %vm4174_vm4, %v4063_v20  ;;  %6224 = vmatmul.msk.f32.gmra.mxu3 %vm4174_vm4, %v4121_v25  ;;  %v11760_v25 = vld [vmem:[#allocation284_spill] sm:$0xff]  ;;  %v11761_v20 = vld [vmem:[#allocation345_spill] sm:$0xff] }
 0x50c   :  { %3414 = vperm.xlu1 %6316, %v3195_v29   ;;  %3426 = vperm.xlu0 %6315, %v3199_v62   ;;  %vm2657_vm13 = vcmp.eq.s32.totalorder %v8092_v7, %v11760_v25  ;;  %vm2715_vm14 = vcmp.eq.s32.totalorder %v8092_v7, %v11761_v20  ;;  %v4122_v62 = vadd.f32 %v5969_v16, %v3098_v1  ;;  %v8792_v5 = vpop.permute.xlu2 %3522  ;;  %v5528_v16 = vsel %vm609_vm11, 1.0, %v6607_v36  ;;  %v8816_v1 = vpop.permute.xlu0 %3525 }
 0x50d   :  { %3609 = vperm.xlu2 %6314, %v3260_v13   ;;  %v6488_v13 = vld [vmem:[#allocation2 + $0x398] sm:$0xff]  ;;  %v5784_v6 = vsel %vm2657_vm13, 1.0, %v6607_v36  ;;  %v5842_v52 = vsel %vm2715_vm14, 1.0, %v6607_v36  ;;  %v2017_v41 = vadd.f32 %v5656_v23, %v5528_v16  ;;  %v5970_v25 = vsel %vm3739_vm15, 1.0, %v6607_v36 }
 0x50e   :  { %v3265_v51 = vadd.s32 48, %v6488_v13  ;;  %v5912_v20 = vsel %vm3681_vm0, 1.0, %v6607_v36  ;;  %vm669_vm13 = vcmp.eq.s32.totalorder %v8092_v7, %v11771_v19  ;;  %vm2717_vm15 = vcmp.eq.s32.totalorder %v8092_v7, %v7985_v48 }
 0x50f   :  { %v4582_v29 = vpop.f32.mrf.mxu0  ;;  %v4983_v30 = vpop.f32.mrf.mxu1  ;;  %vm3741_vm0 = vcmp.eq.s32.totalorder %v8092_v7, %v8738_v58  ;;  %v11776_v58 = vld [vmem:[#allocation143_spill] sm:$0xff] }
 0x510   :  { %v4984_v44 = vadd.f32 %v4983_v30, %v4582_v29  ;;  %v11762_v29 = vld [vmem:[#allocation222_spill] sm:$0xff]  ;;  %v3099_v30 = vadd.f32 %v5842_v52, %v2075_v33  ;;  %v8848_v52 = vpop.permute.xlu1 %3528  ;;  %v6492_v33 = vld [vmem:[#allocation2 + $0x388] sm:$0xff]  ;;  %v5972_v19 = vsel %vm3741_vm0, 1.0, %v6607_v36 }
 0x511   :  { %vm1634_vm1 = vcmp.eq.s32.totalorder %v8092_v7, %v11762_v29 }
 0x512   :  { %6039 = vmatmul.msk.f32.gmra.mxu0 %vm4174_vm4, %v4064_v31  ;;  %6097 = vmatmul.msk.f32.gmra.mxu2 %vm4174_vm4, %v4122_v62  ;;  %5363 = vst [vmem:[#allocation7 + $0x10] sm:$0xff] %v4984_v44  ;;  %v6490_v44 = vld [vmem:[#allocation2 + $0x180] sm:$0xff]  ;;  %v5657_v4 = vsel %vm1634_vm1, 1.0, %v6607_v36 }
 0x513   :  { %6167 = vmatmul.msk.f32.gmra.mxu1 %vm4174_vm4, %v4064_v31  ;;  %6225 = vmatmul.msk.f32.gmra.mxu3 %vm4174_vm4, %v4122_v62  ;;  %v11763_v31 = vld [vmem:[#allocation160_spill] sm:$0xff]  ;;  %v3041_v62 = vadd.f32 %v5784_v6, %v2017_v41  ;;  %v3198_v27 = vadd.s32 48, %v6490_v44 }
 0x514   :  { %3612 = vperm.xlu1 %6316, %v3261_v37   ;;  %3624 = vperm.xlu0 %6315, %v3265_v51   ;;  %vm1692_vm2 = vcmp.eq.s32.totalorder %v8092_v7, %v11763_v31  ;;  %v11765_v37 = vld [vmem:[#allocation163_spill] sm:$0xff]  ;;  %v4123_v51 = vadd.f32 %v5970_v25, %v3099_v30  ;;  %v3263_v25 = vadd.s32 48, %v6492_v33  ;;  %v5785_v31 = vsel %vm2658_vm6, 1.0, %v6607_v36  ;;  %v3343_v30 = vpop.permute.xlu2 %3342  ;;  %v8878_v39 = vpop.permute.xlu0 %3531 }
 0x515   :  { %3420 = vperm.xlu2 %6314, %v3197_v43   ;;  %vm668_vm5 = vcmp.eq.s32.totalorder %v8092_v7, %v11765_v37  ;;  %v4065_v23 = vadd.f32 %v5912_v20, %v3041_v62  ;;  %v6491_v43 = vld [vmem:[#allocation2 + $0x1a0] sm:$0xff]  ;;  %v5715_v6 = vsel %vm1692_vm2, 1.0, %v6607_v36  ;;  %v5529_v20 = vsel %vm610_vm3, 1.0, %v6607_v36 }
 0x516   :  { %v3202_v16 = vadd.s32 48, %v6491_v43  ;;  %v5587_v29 = vsel %vm668_vm5, 1.0, %v6607_v36  ;;  %v5843_v62 = vsel %vm2716_vm7, 1.0, %v6607_v36  ;;  %v2018_v21 = vadd.f32 %v5657_v4, %v5529_v20  ;;  %v11772_v43 = vld [vmem:[#allocation282_spill] sm:$0xff] }
 0x517   :  { %v4585_v13 = vpop.f32.mrf.mxu0  ;;  %v4986_v15 = vpop.f32.mrf.mxu1  ;;  %v5971_v37 = vsel %vm3740_vm8, 1.0, %v6607_v36  ;;  %vm2659_vm14 = vcmp.eq.s32.totalorder %v8092_v7, %v11772_v43  ;;  %vm3683_vm1 = vcmp.eq.s32.totalorder %v8092_v7, %v3343_v30  ;;  %vm670_vm6 = vcmp.eq.s32.totalorder %v8092_v7, %v11776_v58  ;;  %v11778_v30 = vld [vmem:[#allocation348_spill] sm:$0xff] }
 0x518   :  { %v4987_v41 = vadd.f32 %v4986_v15, %v4585_v13  ;;  %v2076_v13 = vadd.f32 %v5715_v6, %v5587_v29  ;;  %v3042_v15 = vadd.f32 %v5785_v31, %v2018_v21  ;;  %v6495_v21 = vld [vmem:[#allocation2 + $0x190] sm:$0xff]  ;;  %v5914_v48 = vsel %vm3683_vm1, 1.0, %v6607_v36 }
 0x519   :  { %vm2718_vm8 = vcmp.eq.s32.totalorder %v8092_v7, %v11778_v30  ;;  %v5973_v58 = vsel %vm3742_vm9, 1.0, %v6607_v36  ;;  %vm3743_vm1 = vcmp.eq.s32.totalorder %v8092_v7, %v8792_v5  ;;  %vm2720_vm9 = vcmp.eq.s32.totalorder %v8092_v7, %v7992_v10 }
 0x51a   :  { %6040 = vmatmul.msk.f32.gmra.mxu0 %vm4174_vm4, %v4065_v23  ;;  %6098 = vmatmul.msk.f32.gmra.mxu2 %vm4174_vm4, %v4123_v51  ;;  %5364 = vst [vmem:[#allocation7 + $0x18] sm:$0xff] %v4987_v41  ;;  %v3100_v44 = vadd.f32 %v5843_v62, %v2076_v13  ;;  %v4066_v4 = vadd.f32 %v5913_v11, %v3042_v15  ;;  %v6493_v41 = vld [vmem:[#allocation2 + $0x390] sm:$0xff]  ;;  %v3200_v13 = vadd.s32 48, %v6495_v21  ;;  %v5588_v11 = vsel %vm669_vm13, 1.0, %v6607_v36  ;;  %v8925_v15 = vpop.permute.xlu1 %3534 }
 0x51b   :  { %6168 = vmatmul.msk.f32.gmra.mxu1 %vm4174_vm4, %v4065_v23  ;;  %6226 = vmatmul.msk.f32.gmra.mxu3 %vm4174_vm4, %v4123_v51  ;;  %v11768_v23 = vld [vmem:[#allocation46_spill] sm:$0xff]  ;;  %v11769_v51 = vld [vmem:[#allocation159_spill] sm:$0xff]  ;;  %v3264_v33 = vadd.s32 48, %v6493_v41  ;;  %v11775_v41 = vld [vmem:[#allocation48_spill] sm:$0xff] }
 0x51c   :  { %3423 = vperm.xlu1 %6316, %v3198_v27   ;;  %3435 = vperm.xlu0 %6315, %v3202_v16   ;;  %vm1635_vm10 = vcmp.eq.s32.totalorder %v8092_v7, %v11768_v23  ;;  %vm1693_vm11 = vcmp.eq.s32.totalorder %v8092_v7, %v11769_v51  ;;  %v11770_v27 = vld [vmem:[#allocation49_spill] sm:$0xff]  ;;  %v4124_v16 = vadd.f32 %v5971_v37, %v3100_v44  ;;  %v5786_v23 = vsel %vm2659_vm14, 1.0, %v6607_v36  ;;  %v8936_v43 = vpop.permute.xlu2 %3537 }
 0x51d   :  { %3618 = vperm.xlu2 %6314, %v3263_v25   ;;  %vm611_vm12 = vcmp.eq.s32.totalorder %v8092_v7, %v11770_v27  ;;  %v6494_v25 = vld [vmem:[#allocation2 + $0x3b0] sm:$0xff]  ;;  %v5658_v29 = vsel %vm1635_vm10, 1.0, %v6607_v36  ;;  %v5716_v31 = vsel %vm1693_vm11, 1.0, %v6607_v36  ;;  %v5844_v51 = vsel %vm2717_vm15, 1.0, %v6607_v36 }
 0x51e   :  { %v3268_v20 = vadd.s32 48, %v6494_v25  ;;  %v5530_v37 = vsel %vm611_vm12, 1.0, %v6607_v36  ;;  %v2077_v27 = vadd.f32 %v5716_v31, %v5588_v11  ;;  %vm612_vm5 = vcmp.eq.s32.totalorder %v8092_v7, %v11775_v41  ;;  %v3346_v25 = vpop.permute.xlu0 %3345  ;;  %v6497_v11 = vld [vmem:[#allocation2 + $0x1b8] sm:$0xff] }
 0x51f   :  { %v4588_v26 = vpop.f32.mrf.mxu0  ;;  %v4989_v6 = vpop.f32.mrf.mxu1  ;;  %v2019_v44 = vadd.f32 %v5658_v29, %v5530_v37  ;;  %vm3684_vm10 = vcmp.eq.s32.totalorder %v8092_v7, %v3346_v25  ;;  %vm671_vm14 = vcmp.eq.s32.totalorder %v8092_v7, %v11782_v63  ;;  %v11784_v25 = vld [vmem:[#allocation352_spill] sm:$0xff]  ;;  %v5974_v63 = vsel %vm3743_vm1, 1.0, %v6607_v36 }
 0x520   :  { %v4990_v62 = vadd.f32 %v4989_v6, %v4588_v26  ;;  %v11773_v26 = vld [vmem:[#allocation45_spill] sm:$0xff]  ;;  %v3101_v6 = vadd.f32 %v5844_v51, %v2077_v27  ;;  %vm2719_vm0 = vcmp.eq.s32.totalorder %v8092_v7, %v11784_v25 }
 0x521   :  { %vm1636_vm2 = vcmp.eq.s32.totalorder %v8092_v7, %v11773_v26  ;;  %v5531_v26 = vsel %vm612_vm5, 1.0, %v6607_v36 }
 0x522   :  { %6041 = vmatmul.msk.f32.gmra.mxu0 %vm4174_vm4, %v4066_v4  ;;  %6099 = vmatmul.msk.f32.gmra.mxu2 %vm4174_vm4, %v4124_v16  ;;  %5365 = vst [vmem:[#allocation7 + $0x20] sm:$0xff] %v4990_v62  ;;  %v4125_v29 = vadd.f32 %v5972_v19, %v3101_v6  ;;  %v5659_v51 = vsel %vm1636_vm2, 1.0, %v6607_v36  ;;  %v6498_v19 = vld [vmem:[#allocation2 + $0x3a0] sm:$0xff]  ;;  %v8988_v30 = vpop.permute.xlu1 %3540 }
 0x523   :  { %6169 = vmatmul.msk.f32.gmra.mxu1 %vm4174_vm4, %v4066_v4  ;;  %6227 = vmatmul.msk.f32.gmra.mxu3 %vm4174_vm4, %v4124_v16  ;;  %v11774_v16 = vld [vmem:[#allocation140_spill] sm:$0xff]  ;;  %v3043_v4 = vadd.f32 %v5786_v23, %v2019_v44  ;;  %v3205_v23 = vadd.s32 48, %v6497_v11  ;;  %v2020_v41 = vadd.f32 %v5659_v51, %v5531_v26 }
 0x524   :  { %3621 = vperm.xlu1 %6316, %v3264_v33   ;;  %3633 = vperm.xlu0 %6315, %v3268_v20   ;;  %vm1694_vm3 = vcmp.eq.s32.totalorder %v8092_v7, %v11774_v16  ;;  %v11777_v33 = vld [vmem:[#allocation287_spill] sm:$0xff]  ;;  %v5589_v16 = vsel %vm670_vm6, 1.0, %v6607_v36  ;;  %v3349_v11 = vpop.permute.xlu2 %3348 }
 0x525   :  { %3429 = vperm.xlu2 %6314, %v3200_v13   ;;  %vm2660_vm7 = vcmp.eq.s32.totalorder %v8092_v7, %v11777_v33  ;;  %v4067_v31 = vadd.f32 %v5914_v48, %v3043_v4  ;;  %v6496_v13 = vld [vmem:[#allocation2 + $0x198] sm:$0xff]  ;;  %v5717_v44 = vsel %vm1694_vm3, 1.0, %v6607_v36  ;;  %v3266_v48 = vadd.s32 48, %v6498_v19 }
 0x526   :  { %v4768_v20 = vpop.f32.mrf.mxu2  ;;  %v5169_v62 = vpop.f32.mrf.mxu3  ;;  %v3201_v37 = vadd.s32 48, %v6496_v13  ;;  %v5787_v6 = vsel %vm2660_vm7, 1.0, %v6607_v36  ;;  %v5915_v33 = vsel %vm3684_vm10, 1.0, %v6607_v36  ;;  %v11781_v13 = vld [vmem:[#allocation29_spill] sm:$0xff]  ;;  %vm3685_vm2 = vcmp.eq.s32.totalorder %v8092_v7, %v3349_v11 }
 0x527   :  { %v4591_v21 = vpop.f32.mrf.mxu0  ;;  %v5170_v27 = vadd.f32 %v5169_v62, %v4768_v20  ;;  %v4992_v55 = vpop.f32.mrf.mxu1  ;;  %v2078_v20 = vadd.f32 %v5717_v44, %v5589_v16  ;;  %v3044_v62 = vadd.f32 %v5787_v6, %v2020_v41  ;;  %vm613_vm13 = vcmp.eq.s32.totalorder %v8092_v7, %v11781_v13  ;;  %v11785_v13 = vld [vmem:[#allocation165_spill] sm:$0xff] }
 0x528   :  { %v4993_v4 = vadd.f32 %v4992_v55, %v4591_v21  ;;  %v5845_v55 = vsel %vm2718_vm8, 1.0, %v6607_v36  ;;  %vm1696_vm3 = vcmp.eq.s32.totalorder %v8092_v7, %v11785_v13  ;;  %v9042_v25 = vpop.permute.xlu0 %3543  ;;  %vm3744_vm10 = vcmp.eq.s32.totalorder %v8092_v7, %v8816_v1  ;;  %v11793_v1 = vld [vmem:[#allocation51_spill] sm:$0xff] }
 0x529   :  { %5425 = vst [vmem:[#allocation7 + $0x200] sm:$0xff] %v5170_v27  ;;  %v3102_v21 = vadd.f32 %v5845_v55, %v2078_v20  ;;  %v4068_v51 = vadd.f32 %v5915_v33, %v3044_v62  ;;  %v6499_v27 = vld [vmem:[#allocation2 + $0x3a8] sm:$0xff]  ;;  %v5590_v33 = vsel %vm671_vm14, 1.0, %v6607_v36  ;;  %v5719_v5 = vsel %vm1696_vm3, 1.0, %v6607_v36 }
 0x52a   :  { %6042 = vmatmul.msk.f32.gmra.mxu0 %vm4174_vm4, %v4067_v31  ;;  %6100 = vmatmul.msk.f32.gmra.mxu2 %vm4174_vm4, %v4125_v29  ;;  %5366 = vst [vmem:[#allocation7 + $0x28] sm:$0xff] %v4993_v4  ;;  %v3267_v19 = vadd.s32 48, %v6499_v27  ;;  %v6501_v55 = vld [vmem:[#allocation2 + $0x1a8] sm:$0xff]  ;;  %v3352_v11 = vpop.permute.xlu1 %3351 }
 0x52b   :  { %6170 = vmatmul.msk.f32.gmra.mxu1 %vm4174_vm4, %v4067_v31  ;;  %6228 = vmatmul.msk.f32.gmra.mxu3 %vm4174_vm4, %v4125_v29  ;;  %v11779_v31 = vld [vmem:[#allocation27_spill] sm:$0xff]  ;;  %v11780_v29 = vld [vmem:[#allocation158_spill] sm:$0xff]  ;;  %v3203_v41 = vadd.s32 48, %v6501_v55 }
 0x52c   :  { %3432 = vperm.xlu1 %6316, %v3201_v37   ;;  %3444 = vperm.xlu0 %6315, %v3205_v23   ;;  %vm1637_vm11 = vcmp.eq.s32.totalorder %v8092_v7, %v11779_v31  ;;  %vm1695_vm12 = vcmp.eq.s32.totalorder %v8092_v7, %v11780_v29  ;;  %v11783_v37 = vld [vmem:[#allocation280_spill] sm:$0xff]  ;;  %v4126_v23 = vadd.f32 %v5973_v58, %v3102_v21  ;;  %v5532_v58 = vsel %vm613_vm13, 1.0, %v6607_v36 }
 0x52d   :  { %3627 = vperm.xlu2 %6314, %v3266_v48   ;;  %vm2661_vm15 = vcmp.eq.s32.totalorder %v8092_v7, %v11783_v37  ;;  %v6500_v48 = vld [vmem:[#allocation2 + $0x3c8] sm:$0xff]  ;;  %v5660_v26 = vsel %vm1637_vm11, 1.0, %v6607_v36  ;;  %v5718_v16 = vsel %vm1695_vm12, 1.0, %v6607_v36  ;;  %v5846_v29 = vsel %vm2719_vm0, 1.0, %v6607_v36 }
 0x52e   :  { %v3271_v4 = vadd.s32 48, %v6500_v48  ;;  %v5788_v31 = vsel %vm2661_vm15, 1.0, %v6607_v36  ;;  %v2021_v62 = vadd.f32 %v5660_v26, %v5532_v58  ;;  %v2079_v21 = vadd.f32 %v5718_v16, %v5590_v33  ;;  %v11789_v48 = vld [vmem:[#allocation285_spill] sm:$0xff] }
 0x52f   :  { %v4594_v44 = vpop.f32.mrf.mxu0  ;;  %v4995_v6 = vpop.f32.mrf.mxu1  ;;  %v5916_v37 = vsel %vm3685_vm2, 1.0, %v6607_v36  ;;  %vm2662_vm8 = vcmp.eq.s32.totalorder %v8092_v7, %v11789_v48  ;;  %vm3686_vm11 = vcmp.eq.s32.totalorder %v8092_v7, %v3352_v11  ;;  %vm1639_vm15 = vcmp.eq.s32.totalorder %v8092_v7, %v11793_v1 }
 0x530   :  { %v4996_v20 = vadd.f32 %v4995_v6, %v4594_v44  ;;  %v3045_v44 = vadd.f32 %v5788_v31, %v2021_v62  ;;  %v3103_v27 = vadd.f32 %v5846_v29, %v2079_v21  ;;  %v6502_v6 = vld [vmem:[#allocation2 + $0x1b0] sm:$0xff]  ;;  %v6504_v31 = vld [vmem:[#allocation2 + $0x3b8] sm:$0xff]  ;;  %v5847_v62 = vsel %vm2720_vm9, 1.0, %v6607_v36 }
 0x531   :  { %v3204_v55 = vadd.s32 48, %v6502_v6  ;;  %v3269_v29 = vadd.s32 48, %v6504_v31  ;;  %vm3745_vm2 = vcmp.eq.s32.totalorder %v8092_v7, %v8848_v52  ;;  %v11799_v52 = vld [vmem:[#allocation32_spill] sm:$0xff] }
 0x532   :  { %6043 = vmatmul.msk.f32.gmra.mxu0 %vm4174_vm4, %v4068_v51  ;;  %6101 = vmatmul.msk.f32.gmra.mxu2 %vm4174_vm4, %v4126_v23  ;;  %5367 = vst [vmem:[#allocation7 + $0x30] sm:$0xff] %v4996_v20  ;;  %v4069_v26 = vadd.f32 %v5916_v37, %v3045_v44  ;;  %v5789_v37 = vsel %vm2662_vm8, 1.0, %v6607_v36  ;;  %v11790_v44 = vld [vmem:[#allocation146_spill] sm:$0xff]  ;;  %vm1640_vm8 = vcmp.eq.s32.totalorder %v8092_v7, %v11799_v52 }
 0x533   :  { %6171 = vmatmul.msk.f32.gmra.mxu1 %vm4174_vm4, %v4068_v51  ;;  %6229 = vmatmul.msk.f32.gmra.mxu3 %vm4174_vm4, %v4126_v23  ;;  %v11786_v23 = vld [vmem:[#allocation55_spill] sm:$0xff]  ;;  %v11787_v51 = vld [vmem:[#allocation52_spill] sm:$0xff]  ;;  %vm1697_vm12 = vcmp.eq.s32.totalorder %v8092_v7, %v11790_v44 }
 0x534   :  { %3630 = vperm.xlu1 %6316, %v3267_v19   ;;  %3642 = vperm.xlu0 %6315, %v3271_v4   ;;  %vm614_vm5 = vcmp.eq.s32.totalorder %v8092_v7, %v11786_v23  ;;  %vm1638_vm6 = vcmp.eq.s32.totalorder %v8092_v7, %v11787_v51  ;;  %v11788_v19 = vld [vmem:[#allocation167_spill] sm:$0xff]  ;;  %v4127_v4 = vadd.f32 %v5974_v63, %v3103_v27  ;;  %v5975_v23 = vsel %vm3744_vm10, 1.0, %v6607_v36 }
 0x535   :  { %3438 = vperm.xlu2 %6314, %v3203_v41   ;;  %vm672_vm7 = vcmp.eq.s32.totalorder %v8092_v7, %v11788_v19  ;;  %v6503_v41 = vld [vmem:[#allocation2 + $0x1d0] sm:$0xff]  ;;  %v5661_v58 = vsel %vm1638_vm6, 1.0, %v6607_v36  ;;  %v5533_v13 = vsel %vm614_vm5, 1.0, %v6607_v36  ;;  %v9082_v19 = vpop.permute.xlu2 %3546  ;;  %v5720_v6 = vsel %vm1697_vm12, 1.0, %v6607_v36 }
 0x536   :  { %v3208_v20 = vadd.s32 48, %v6503_v41  ;;  %v5591_v10 = vsel %vm672_vm7, 1.0, %v6607_v36  ;;  %v2022_v51 = vadd.f32 %v5661_v58, %v5533_v13  ;;  %v11795_v41 = vld [vmem:[#allocation351_spill] sm:$0xff]  ;;  %vm2722_vm10 = vcmp.eq.s32.totalorder %v8092_v7, %v7987_v18 }
 0x537   :  { %v4597_v16 = vpop.f32.mrf.mxu0  ;;  %v2080_v63 = vadd.f32 %v5719_v5, %v5591_v10  ;;  %v5917_v5 = vsel %vm3686_vm11, 1.0, %v6607_v36  ;;  %vm2721_vm1 = vcmp.eq.s32.totalorder %v8092_v7, %v11795_v41  ;;  %v6505_v10 = vld [vmem:[#allocation2 + $0x3c0] sm:$0xff]  ;;  %v11796_v41 = vld [vmem:[#allocation164_spill] sm:$0xff]  ;;  %vm3746_vm11 = vcmp.eq.s32.totalorder %v8092_v7, %v8878_v39  ;;  %v11803_v39 = vld [vmem:[#allocation169_spill] sm:$0xff] }
 0x538   :  { %v4998_v33 = vpop.f32.mrf.mxu1  ;;  %vm1698_vm5 = vcmp.eq.s32.totalorder %v8092_v7, %v11796_v41  ;;  %v5977_v52 = vsel %vm3746_vm11, 1.0, %v6607_v36 }
 0x539   :  { %v4999_v21 = vadd.f32 %v4998_v33, %v4597_v16  ;;  %v3104_v27 = vadd.f32 %v5847_v62, %v2080_v63  ;;  %v3046_v16 = vadd.f32 %v5789_v37, %v2022_v51  ;;  %v3270_v62 = vadd.s32 48, %v6505_v10  ;;  %v6507_v51 = vld [vmem:[#allocation2 + $0x1c0] sm:$0xff] }
 0x53a   :  { %6044 = vmatmul.msk.f32.gmra.mxu0 %vm4174_vm4, %v4069_v26  ;;  %6102 = vmatmul.msk.f32.gmra.mxu2 %vm4174_vm4, %v4127_v4  ;;  %v5662_v63 = vsel %vm1639_vm15, 1.0, %v6607_v36  ;;  %v3206_v44 = vadd.s32 48, %v6507_v51  ;;  %v5721_v10 = vsel %vm1698_vm5, 1.0, %v6607_v36  ;;  %vm1699_vm15 = vcmp.eq.s32.totalorder %v8092_v7, %v11803_v39 }
 0x53b   :  { %6172 = vmatmul.msk.f32.gmra.mxu1 %vm4174_vm4, %v4069_v26  ;;  %6230 = vmatmul.msk.f32.gmra.mxu3 %vm4174_vm4, %v4127_v4  ;;  %5368 = vst [vmem:[#allocation7 + $0x38] sm:$0xff] %v4999_v21  ;;  %v11791_v4 = vld [vmem:[#allocation54_spill] sm:$0xff]  ;;  %v11792_v26 = vld [vmem:[#allocation149_spill] sm:$0xff]  ;;  %v4128_v11 = vadd.f32 %v5975_v23, %v3104_v27  ;;  %v4070_v33 = vadd.f32 %v5917_v5, %v3046_v16  ;;  %v6506_v21 = vld [vmem:[#allocation2 + $0x3e0] sm:$0xff]  ;;  %v5848_v27 = vsel %vm2721_vm1, 1.0, %v6607_v36 }
 0x53c   :  { %3441 = vperm.xlu1 %6316, %v3204_v55   ;;  %3453 = vperm.xlu0 %6315, %v3208_v20   ;;  %vm615_vm13 = vcmp.eq.s32.totalorder %v8092_v7, %v11791_v4  ;;  %vm673_vm14 = vcmp.eq.s32.totalorder %v8092_v7, %v11792_v26  ;;  %v11794_v55 = vld [vmem:[#allocation290_spill] sm:$0xff]  ;;  %v3355_v20 = vpop.permute.xlu0 %3354  ;;  %v3274_v13 = vadd.s32 48, %v6506_v21  ;;  %v5976_v4 = vsel %vm3745_vm2, 1.0, %v6607_v36 }
 0x53d   :  { %3636 = vperm.xlu2 %6314, %v3269_v29   ;;  %v4771_v48 = vpop.f32.mrf.mxu2  ;;  %vm2663_vm0 = vcmp.eq.s32.totalorder %v8092_v7, %v11794_v55  ;;  %v5592_v23 = vsel %vm673_vm14, 1.0, %v6607_v36  ;;  %vm3687_vm3 = vcmp.eq.s32.totalorder %v8092_v7, %v3355_v20  ;;  %v3358_v21 = vpop.permute.xlu2 %3357  ;;  %vm2723_vm2 = vcmp.eq.s32.totalorder %v8092_v7, %v8000_v3 }
 0x53e   :  { %v5172_v58 = vpop.f32.mrf.mxu3  ;;  %v2081_v26 = vadd.f32 %v5720_v6, %v5592_v23  ;;  %v5790_v1 = vsel %vm2663_vm0, 1.0, %v6607_v36  ;;  %v5918_v55 = vsel %vm3687_vm3, 1.0, %v6607_v36  ;;  %vm3688_vm12 = vcmp.eq.s32.totalorder %v8092_v7, %v3358_v21 }
 0x53f   :  { %v5173_v31 = vadd.f32 %v5172_v58, %v4771_v48  ;;  %v4600_v29 = vpop.f32.mrf.mxu0  ;;  %v5534_v48 = vsel %vm615_vm13, 1.0, %v6607_v36  ;;  %v9131_v58 = vpop.permute.xlu1 %3549  ;;  %vm3747_vm3 = vcmp.eq.s32.totalorder %v8092_v7, %v8925_v15  ;;  %v11809_v15 = vld [vmem:[#allocation155_spill] sm:$0xff] }
 0x540   :  { %v5001_v37 = vpop.f32.mrf.mxu1  ;;  %v2023_v16 = vadd.f32 %v5662_v63, %v5534_v48  ;;  %v3105_v6 = vadd.f32 %v5848_v27, %v2081_v26  ;;  %v6509_v27 = vld [vmem:[#allocation2 + $0x1e8] sm:$0xff]  ;;  %v5663_v48 = vsel %vm1640_vm8, 1.0, %v6607_v36  ;;  %v5978_v39 = vsel %vm3747_vm3, 1.0, %v6607_v36 }
 0x541   :  { %5426 = vst [vmem:[#allocation7 + $0x208] sm:$0xff] %v5173_v31  ;;  %v5002_v5 = vadd.f32 %v5001_v37, %v4600_v29  ;;  %v11798_v31 = vld [vmem:[#allocation172_spill] sm:$0xff]  ;;  %vm2725_vm3 = vcmp.eq.s32.totalorder %v8092_v7, %v7994_v46 }
 0x542   :  { %6045 = vmatmul.msk.f32.gmra.mxu0 %vm4174_vm4, %v4070_v33  ;;  %6103 = vmatmul.msk.f32.gmra.mxu2 %vm4174_vm4, %v4128_v11  ;;  %vm674_vm7 = vcmp.eq.s32.totalorder %v8092_v7, %v11798_v31  ;;  %v3047_v29 = vadd.f32 %v5790_v1, %v2023_v16  ;;  %v4129_v20 = vadd.f32 %v5976_v4, %v3105_v6  ;;  %v6510_v1 = vld [vmem:[#allocation2 + $0x3d0] sm:$0xff]  ;;  %v5849_v4 = vsel %vm2722_vm10, 1.0, %v6607_v36 }
 0x543   :  { %6173 = vmatmul.msk.f32.gmra.mxu1 %vm4174_vm4, %v4070_v33  ;;  %6231 = vmatmul.msk.f32.gmra.mxu3 %vm4174_vm4, %v4128_v11  ;;  %5369 = vst [vmem:[#allocation7 + $0x40] sm:$0xff] %v5002_v5  ;;  %v11797_v33 = vld [vmem:[#allocation35_spill] sm:$0xff]  ;;  %v3211_v5 = vadd.s32 48, %v6509_v27  ;;  %v3272_v16 = vadd.s32 48, %v6510_v1  ;;  %v5593_v41 = vsel %vm674_vm7, 1.0, %v6607_v36 }
 0x544   :  { %3639 = vperm.xlu1 %6316, %v3270_v62   ;;  %3651 = vperm.xlu0 %6315, %v3274_v13   ;;  %vm616_vm6 = vcmp.eq.s32.totalorder %v8092_v7, %v11797_v33  ;;  %v11800_v62 = vld [vmem:[#allocation283_spill] sm:$0xff]  ;;  %v4071_v63 = vadd.f32 %v5918_v55, %v3047_v29  ;;  %v5919_v29 = vsel %vm3688_vm12, 1.0, %v6607_v36  ;;  %vm3748_vm12 = vcmp.eq.s32.totalorder %v8092_v7, %v8936_v43 }
 0x545   :  { %3447 = vperm.xlu2 %6314, %v3206_v44   ;;  %v4774_v11 = vpop.f32.mrf.mxu2  ;;  %vm2664_vm9 = vcmp.eq.s32.totalorder %v8092_v7, %v11800_v62  ;;  %v6508_v44 = vld [vmem:[#allocation2 + $0x1c8] sm:$0xff]  ;;  %v5535_v55 = vsel %vm616_vm6, 1.0, %v6607_v36  ;;  %v11815_v43 = vld [vmem:[#allocation175_spill] sm:$0xff] }
 0x546   :  { %v5175_v13 = vpop.f32.mrf.mxu3  ;;  %v3207_v23 = vadd.s32 48, %v6508_v44  ;;  %v5791_v18 = vsel %vm2664_vm9, 1.0, %v6607_v36  ;;  %v2024_v31 = vadd.f32 %v5663_v48, %v5535_v55  ;;  %vm676_vm9 = vcmp.eq.s32.totalorder %v8092_v7, %v11809_v15  ;;  %v11812_v15 = vld [vmem:[#allocation38_spill] sm:$0xff] }
 0x547   :  { %v5176_v37 = vadd.f32 %v5175_v13, %v4774_v11  ;;  %v4603_v51 = vpop.f32.mrf.mxu0  ;;  %v2082_v11 = vadd.f32 %v5721_v10, %v5593_v41  ;;  %v9175_v10 = vpop.permute.xlu0 %3552  ;;  %v11801_v13 = vld [vmem:[#allocation61_spill] sm:$0xff] }
 0x548   :  { %v5004_v26 = vpop.f32.mrf.mxu1  ;;  %vm617_vm13 = vcmp.eq.s32.totalorder %v8092_v7, %v11801_v13  ;;  %v3361_v44 = vpop.permute.xlu1 %3360 }
 0x549   :  { %5427 = vst [vmem:[#allocation7 + $0x210] sm:$0xff] %v5176_v37  ;;  %v5005_v6 = vadd.f32 %v5004_v26, %v4603_v51  ;;  %v3106_v33 = vadd.f32 %v5849_v4, %v2082_v11  ;;  %v11804_v37 = vld [vmem:[#allocation171_spill] sm:$0xff]  ;;  %v11805_v51 = vld [vmem:[#allocation288_spill] sm:$0xff]  ;;  %v6511_v26 = vld [vmem:[#allocation2 + $0x3d8] sm:$0xff]  ;;  %vm3689_vm5 = vcmp.eq.s32.totalorder %v8092_v7, %v3361_v44 }
 0x54a   :  { %6046 = vmatmul.msk.f32.gmra.mxu0 %vm4174_vm4, %v4071_v63  ;;  %6104 = vmatmul.msk.f32.gmra.mxu2 %vm4174_vm4, %v4129_v20  ;;  %vm675_vm0 = vcmp.eq.s32.totalorder %v8092_v7, %v11804_v37  ;;  %vm2665_vm1 = vcmp.eq.s32.totalorder %v8092_v7, %v11805_v51  ;;  %v3273_v1 = vadd.s32 48, %v6511_v26  ;;  %v6513_v11 = vld [vmem:[#allocation2 + $0x1d8] sm:$0xff]  ;;  %v5920_v3 = vsel %vm3689_vm5, 1.0, %v6607_v36  ;;  %v11806_v51 = vld [vmem:[#allocation57_spill] sm:$0xff] }
 0x54b   :  { %6174 = vmatmul.msk.f32.gmra.mxu1 %vm4174_vm4, %v4071_v63  ;;  %6232 = vmatmul.msk.f32.gmra.mxu3 %vm4174_vm4, %v4129_v20  ;;  %5370 = vst [vmem:[#allocation7 + $0x48] sm:$0xff] %v5005_v6  ;;  %v11802_v20 = vld [vmem:[#allocation58_spill] sm:$0xff]  ;;  %v3048_v63 = vadd.f32 %v5791_v18, %v2024_v31  ;;  %v4130_v21 = vadd.f32 %v5977_v52, %v3106_v33  ;;  %v5722_v6 = vsel %vm1699_vm15, 1.0, %v6607_v36  ;;  %v3209_v18 = vadd.s32 48, %v6513_v11  ;;  %v11811_v44 = vld [vmem:[#allocation353_spill] sm:$0xff] }
 0x54c   :  { %3450 = vperm.xlu1 %6316, %v3207_v23   ;;  %3462 = vperm.xlu0 %6315, %v3211_v5   ;;  %vm1641_vm14 = vcmp.eq.s32.totalorder %v8092_v7, %v11802_v20  ;;  %v5536_v52 = vsel %vm617_vm13, 1.0, %v6607_v36  ;;  %v5594_v33 = vsel %vm675_vm0, 1.0, %v6607_v36  ;;  %vm1642_vm6 = vcmp.eq.s32.totalorder %v8092_v7, %v11806_v51 }
 0x54d   :  { %3645 = vperm.xlu2 %6314, %v3272_v16   ;;  %v4777_v62 = vpop.f32.mrf.mxu2  ;;  %v4072_v27 = vadd.f32 %v5919_v29, %v3048_v63  ;;  %v6512_v16 = vld [vmem:[#allocation2 + $0x3f8] sm:$0xff]  ;;  %v5664_v4 = vsel %vm1641_vm14, 1.0, %v6607_v36  ;;  %v5792_v29 = vsel %vm2665_vm1, 1.0, %v6607_v36  ;;  %v2083_v20 = vadd.f32 %v5722_v6, %v5594_v33  ;;  %v9224_v63 = vpop.permute.xlu2 %3555  ;;  %v6515_v33 = vld [vmem:[#allocation2 + $0x3e8] sm:$0xff] }
 0x54e   :  { %v5178_v23 = vpop.f32.mrf.mxu3  ;;  %v3277_v41 = vadd.s32 48, %v6512_v16  ;;  %v2025_v13 = vadd.f32 %v5664_v4, %v5536_v52  ;;  %vm2724_vm11 = vcmp.eq.s32.totalorder %v8092_v7, %v11811_v44  ;;  %vm1643_vm14 = vcmp.eq.s32.totalorder %v8092_v7, %v11812_v15 }
 0x54f   :  { %v5179_v5 = vadd.f32 %v5178_v23, %v4777_v62  ;;  %v4606_v48 = vpop.f32.mrf.mxu0  ;;  %v5850_v62 = vsel %vm2723_vm2, 1.0, %v6607_v36  ;;  %v3364_v26 = vpop.permute.xlu0 %3363  ;;  %vm677_vm1 = vcmp.eq.s32.totalorder %v8092_v7, %v11815_v43  ;;  %vm3749_vm5 = vcmp.eq.s32.totalorder %v8092_v7, %v8988_v30  ;;  %v11820_v30 = vld [vmem:[#allocation174_spill] sm:$0xff] }
 0x550   :  { %v5007_v55 = vpop.f32.mrf.mxu1  ;;  %v3049_v23 = vadd.f32 %v5792_v29, %v2025_v13  ;;  %v3275_v29 = vadd.s32 48, %v6515_v33  ;;  %vm3690_vm13 = vcmp.eq.s32.totalorder %v8092_v7, %v3364_v26  ;;  %v11816_v26 = vld [vmem:[#allocation286_spill] sm:$0xff]  ;;  %v5666_v33 = vsel %vm1643_vm14, 1.0, %v6607_v36 }
 0x551   :  { %5428 = vst [vmem:[#allocation7 + $0x218] sm:$0xff] %v5179_v5  ;;  %v5008_v31 = vadd.f32 %v5007_v55, %v4606_v48  ;;  %v11808_v5 = vld [vmem:[#allocation60_spill] sm:$0xff]  ;;  %v11810_v48 = vld [vmem:[#allocation293_spill] sm:$0xff]  ;;  %v6514_v55 = vld [vmem:[#allocation2 + $0x1e0] sm:$0xff]  ;;  %vm2667_vm2 = vcmp.eq.s32.totalorder %v8092_v7, %v11816_v26  ;;  %v5980_v15 = vsel %vm3749_vm5, 1.0, %v6607_v36 }
 0x552   :  { %6047 = vmatmul.msk.f32.gmra.mxu0 %vm4174_vm4, %v4072_v27  ;;  %6105 = vmatmul.msk.f32.gmra.mxu2 %vm4174_vm4, %v4130_v21  ;;  %vm618_vm8 = vcmp.eq.s32.totalorder %v8092_v7, %v11808_v5  ;;  %vm2666_vm10 = vcmp.eq.s32.totalorder %v8092_v7, %v11810_v48  ;;  %v3210_v11 = vadd.s32 48, %v6514_v55  ;;  %v11813_v48 = vld [vmem:[#allocation225_spill] sm:$0xff] }
 0x553   :  { %6175 = vmatmul.msk.f32.gmra.mxu1 %vm4174_vm4, %v4072_v27  ;;  %6233 = vmatmul.msk.f32.gmra.mxu3 %vm4174_vm4, %v4130_v21  ;;  %5371 = vst [vmem:[#allocation7 + $0x50] sm:$0xff] %v5008_v31  ;;  %v11807_v21 = vld [vmem:[#allocation152_spill] sm:$0xff]  ;;  %v3107_v27 = vadd.f32 %v5850_v62, %v2083_v20  ;;  %v5537_v13 = vsel %vm618_vm8, 1.0, %v6607_v36  ;;  %v5595_v20 = vsel %vm676_vm9, 1.0, %v6607_v36  ;;  %vm1701_vm15 = vcmp.eq.s32.totalorder %v8092_v7, %v11813_v48 }
 0x554   :  { %3648 = vperm.xlu1 %6316, %v3273_v1   ;;  %3660 = vperm.xlu0 %6315, %v3277_v41   ;;  %vm1700_vm7 = vcmp.eq.s32.totalorder %v8092_v7, %v11807_v21  ;;  %v4073_v41 = vadd.f32 %v5920_v3, %v3049_v23  ;;  %v5851_v3 = vsel %vm2724_vm11, 1.0, %v6607_v36  ;;  %v5979_v21 = vsel %vm3748_vm12, 1.0, %v6607_v36 }
 0x555   :  { %3456 = vperm.xlu2 %6314, %v3209_v18   ;;  %v4780_v37 = vpop.f32.mrf.mxu2  ;;  %v4131_v16 = vadd.f32 %v5978_v39, %v3107_v27  ;;  %v5665_v18 = vsel %vm1642_vm6, 1.0, %v6607_v36  ;;  %v5723_v31 = vsel %vm1700_vm7, 1.0, %v6607_v36  ;;  %v5793_v39 = vsel %vm2666_vm10, 1.0, %v6607_v36  ;;  %v9279_v27 = vpop.permute.xlu1 %3558 }
 0x556   :  { %v5181_v1 = vpop.f32.mrf.mxu3  ;;  %v2084_v51 = vadd.f32 %v5723_v31, %v5595_v20  ;;  %v5921_v23 = vsel %vm3690_vm13, 1.0, %v6607_v36  ;;  %v6516_v31 = vld [vmem:[#allocation2 + $0x3f0] sm:$0xff]  ;;  %vm678_vm10 = vcmp.eq.s32.totalorder %v8092_v7, %v11820_v30  ;;  %vm2726_vm12 = vcmp.eq.s32.totalorder %v8092_v7, %v8009_v50  ;;  %v11826_v30 = vld [vmem:[#allocation296_spill] sm:$0xff] }
 0x557   :  { %v5182_v4 = vadd.f32 %v5181_v1, %v4780_v37  ;;  %v4609_v6 = vpop.f32.mrf.mxu0  ;;  %v2026_v37 = vadd.f32 %v5665_v18, %v5537_v13  ;;  %v6517_v13 = vld [vmem:[#allocation2 + $0x1f0] sm:$0xff]  ;;  %vm3750_vm13 = vcmp.eq.s32.totalorder %v8092_v7, %v9042_v25 }
 0x558   :  { %v5010_v52 = vpop.f32.mrf.mxu1  ;;  %v3108_v1 = vadd.f32 %v5851_v3, %v2084_v51  ;;  %v3212_v20 = vadd.s32 48, %v6517_v13  ;;  %v5794_v51 = vsel %vm2667_vm2, 1.0, %v6607_v36  ;;  %v11825_v25 = vld [vmem:[#allocation161_spill] sm:$0xff] }
 0x559   :  { %5429 = vst [vmem:[#allocation7 + $0x220] sm:$0xff] %v5182_v4  ;;  %v5011_v62 = vadd.f32 %v5010_v52, %v4609_v6  ;;  %v3050_v44 = vadd.f32 %v5793_v39, %v2026_v37  ;;  %v3276_v52 = vadd.s32 48, %v6516_v31  ;;  %v5596_v37 = vsel %vm677_vm1, 1.0, %v6607_v36 }
 0x55a   :  { %6048 = vmatmul.msk.f32.gmra.mxu0 %vm4174_vm4, %v4073_v41  ;;  %6106 = vmatmul.msk.f32.gmra.mxu2 %vm4174_vm4, %v4131_v16  ;;  %v4132_v6 = vadd.f32 %v5979_v21, %v3108_v1  ;;  %v5852_v21 = vsel %vm2725_vm3, 1.0, %v6607_v36  ;;  %v11817_v1 = vld [vmem:[#allocation64_spill] sm:$0xff]  ;;  %vm679_vm2 = vcmp.eq.s32.totalorder %v8092_v7, %v11825_v25  ;;  %vm2669_vm3 = vcmp.eq.s32.totalorder %v8092_v7, %v11826_v30 }
 0x55b   :  { %6176 = vmatmul.msk.f32.gmra.mxu1 %vm4174_vm4, %v4073_v41  ;;  %6234 = vmatmul.msk.f32.gmra.mxu3 %vm4174_vm4, %v4131_v16  ;;  %5372 = vst [vmem:[#allocation7 + $0x58] sm:$0xff] %v5011_v62  ;;  %v11814_v16 = vld [vmem:[#allocation41_spill] sm:$0xff]  ;;  %v3367_v41 = vpop.permute.xlu2 %3366  ;;  %v4074_v55 = vadd.f32 %v5921_v23, %v3050_v44  ;;  %v9331_v44 = vpop.permute.xlu0 %3561  ;;  %vm1644_vm7 = vcmp.eq.s32.totalorder %v8092_v7, %v11817_v1  ;;  %v11822_v1 = vld [vmem:[#allocation63_spill] sm:$0xff] }
 0x55c   :  { %3459 = vperm.xlu1 %6316, %v3210_v11   ;;  %vm619_vm0 = vcmp.eq.s32.totalorder %v8092_v7, %v11814_v16  ;;  %vm3691_vm6 = vcmp.eq.s32.totalorder %v8092_v7, %v3367_v41  ;;  %v11818_v16 = vld [vmem:[#allocation227_spill] sm:$0xff] }
 0x55d   :  { %3654 = vperm.xlu2 %6314, %v3275_v29   ;;  %v4783_v5 = vpop.f32.mrf.mxu2  ;;  %v5724_v29 = vsel %vm1701_vm15, 1.0, %v6607_v36  ;;  %v5538_v3 = vsel %vm619_vm0, 1.0, %v6607_v36  ;;  %v5922_v48 = vsel %vm3691_vm6, 1.0, %v6607_v36  ;;  %vm1702_vm8 = vcmp.eq.s32.totalorder %v8092_v7, %v11818_v16  ;;  %v11821_v41 = vld [vmem:[#allocation291_spill] sm:$0xff] }
 0x55e   :  { %v5184_v4 = vpop.f32.mrf.mxu3  ;;  %v2027_v23 = vadd.f32 %v5666_v33, %v5538_v3  ;;  %vm2668_vm11 = vcmp.eq.s32.totalorder %v8092_v7, %v11821_v41  ;;  %v6518_v33 = vld [vmem:[#allocation2 + $0x1f8] sm:$0xff]  ;;  %v5725_v13 = vsel %vm1702_vm8, 1.0, %v6607_v36  ;;  %vm1645_vm15 = vcmp.eq.s32.totalorder %v8092_v7, %v11822_v1  ;;  %v11823_v16 = vld [vmem:[#allocation223_spill] sm:$0xff] }
 0x55f   :  { %v5185_v11 = vadd.f32 %v5184_v4, %v4783_v5  ;;  %v4612_v18 = vpop.f32.mrf.mxu0  ;;  %v2085_v5 = vadd.f32 %v5724_v29, %v5596_v37  ;;  %v11819_v4 = vld [vmem:[#allocation67_spill] sm:$0xff]  ;;  %v3213_v29 = vadd.s32 48, %v6518_v33  ;;  %v5597_v37 = vsel %vm678_vm10, 1.0, %v6607_v36 }
 0x560   :  { %v5013_v62 = vpop.f32.mrf.mxu1  ;;  %v3051_v43 = vadd.f32 %v5794_v51, %v2027_v23  ;;  %vm620_vm9 = vcmp.eq.s32.totalorder %v8092_v7, %v11819_v4  ;;  %v5795_v51 = vsel %vm2668_vm11, 1.0, %v6607_v36  ;;  %vm1703_vm0 = vcmp.eq.s32.totalorder %v8092_v7, %v11823_v16  ;;  %v11824_v4 = vld [vmem:[#allocation66_spill] sm:$0xff] }
 0x561   :  { %5430 = vst [vmem:[#allocation7 + $0x228] sm:$0xff] %v5185_v11  ;;  %v5014_v39 = vadd.f32 %v5013_v62, %v4612_v18  ;;  %v3109_v26 = vadd.f32 %v5852_v21, %v2085_v5  ;;  %v5667_v62 = vsel %vm1644_vm7, 1.0, %v6607_v36  ;;  %v5539_v3 = vsel %vm620_vm9, 1.0, %v6607_v36 }
 0x562   :  { %6049 = vmatmul.msk.f32.gmra.mxu0 %vm4174_vm4, %v4074_v55  ;;  %6107 = vmatmul.msk.f32.gmra.mxu2 %vm4174_vm4, %v4132_v6  ;;  %v4075_v18 = vadd.f32 %v5922_v48, %v3051_v43  ;;  %v5853_v21 = vsel %vm2726_vm12, 1.0, %v6607_v36  ;;  %v2028_v23 = vadd.f32 %v5667_v62, %v5539_v3  ;;  %v2086_v5 = vadd.f32 %v5725_v13, %v5597_v37 }
 0x563   :  { %6177 = vmatmul.msk.f32.gmra.mxu1 %vm4174_vm4, %v4074_v55  ;;  %6235 = vmatmul.msk.f32.gmra.mxu3 %vm4174_vm4, %v4132_v6  ;;  %5373 = vst [vmem:[#allocation7 + $0x60] sm:$0xff] %v5014_v39  ;;  %v3370_v6 = vpop.permute.xlu1 %3369  ;;  %v4133_v11 = vadd.f32 %v5980_v15, %v3109_v26  ;;  %v5981_v15 = vsel %vm3750_vm13, 1.0, %v6607_v36  ;;  %v9380_v48 = vpop.permute.xlu2 %3564  ;;  %vm621_vm1 = vcmp.eq.s32.totalorder %v8092_v7, %v11824_v4  ;;  %v5668_v33 = vsel %vm1645_vm15, 1.0, %v6607_v36  ;;  %v11832_v4 = vld [vmem:[#allocation289_spill] sm:$0xff] }
 0x564   :  { %3657 = vperm.xlu1 %6316, %v3276_v52   ;;  %vm3692_vm14 = vcmp.eq.s32.totalorder %v8092_v7, %v3370_v6  ;;  %v3052_v43 = vadd.f32 %v5795_v51, %v2028_v23  ;;  %v3110_v26 = vadd.f32 %v5853_v21, %v2086_v5  ;;  %v3373_v41 = vpop.permute.xlu0 %3372  ;;  %vm3751_vm6 = vcmp.eq.s32.totalorder %v8092_v7, %v9082_v19 }
 0x565   :  { %3465 = vperm.xlu2 %6314, %v3212_v20   ;;  %v4786_v46 = vpop.f32.mrf.mxu2  ;;  %v5923_v50 = vsel %vm3692_vm14, 1.0, %v6607_v36  ;;  %vm3693_vm7 = vcmp.eq.s32.totalorder %v8092_v7, %v3373_v41  ;;  %v5796_v19 = vsel %vm2669_vm3, 1.0, %v6607_v36  ;;  %v5982_v21 = vsel %vm3751_vm6, 1.0, %v6607_v36 }
 0x566   :  { %v5187_v55 = vpop.f32.mrf.mxu3  ;;  %v5924_v23 = vsel %vm3693_vm7, 1.0, %v6607_v36  ;;  %vm2670_vm12 = vcmp.eq.s32.totalorder %v8092_v7, %v11832_v4  ;;  %vm2728_vm13 = vcmp.eq.s32.totalorder %v8092_v7, %v8002_v17  ;;  %vm3752_vm14 = vcmp.eq.s32.totalorder %v8092_v7, %v9131_v58 }
 0x567   :  { %v5188_v31 = vadd.f32 %v5187_v55, %v4786_v46  ;;  %v4615_v52 = vpop.f32.mrf.mxu0  ;;  %v11827_v55 = vld [vmem:[#allocation354_spill] sm:$0xff]  ;;  %v5797_v58 = vsel %vm2670_vm12, 1.0, %v6607_v36  ;;  %vm2729_vm6 = vcmp.eq.s32.totalorder %v8092_v7, %v8018_v14  ;;  %vm3753_vm7 = vcmp.eq.s32.totalorder %v8092_v7, %v9175_v10  ;;  %v11839_v14 = vld [vmem:[#allocation224_spill] sm:$0xff] }
 0x568   :  { %v5016_v20 = vpop.f32.mrf.mxu1  ;;  %vm2727_vm5 = vcmp.eq.s32.totalorder %v8092_v7, %v11827_v55 }
 0x569   :  { %5431 = vst [vmem:[#allocation7 + $0x230] sm:$0xff] %v5188_v31  ;;  %v5017_v39 = vadd.f32 %v5016_v20, %v4615_v52  ;;  %v5540_v20 = vsel %vm621_vm1, 1.0, %v6607_v36  ;;  %v5854_v3 = vsel %vm2727_vm5, 1.0, %v6607_v36 }
 0x56a   :  { %6050 = vmatmul.msk.f32.gmra.mxu0 %vm4174_vm4, %v4075_v18  ;;  %6108 = vmatmul.msk.f32.gmra.mxu2 %vm4174_vm4, %v4133_v11  ;;  %v2029_v37 = vadd.f32 %v5668_v33, %v5540_v20 }
 0x56b   :  { %6178 = vmatmul.msk.f32.gmra.mxu1 %vm4174_vm4, %v4075_v18  ;;  %6236 = vmatmul.msk.f32.gmra.mxu3 %vm4174_vm4, %v4133_v11  ;;  %5374 = vst [vmem:[#allocation7 + $0x68] sm:$0xff] %v5017_v39  ;;  %v4134_v11 = vadd.f32 %v5981_v15, %v3110_v26  ;;  %v4076_v18 = vadd.f32 %v5923_v50, %v3052_v43  ;;  %v5598_v39 = vsel %vm679_vm2, 1.0, %v6607_v36  ;;  %v9424_v5 = vpop.permute.xlu1 %3567  ;;  %v11828_v50 = vld [vmem:[#allocation44_spill] sm:$0xff]  ;;  %v11830_v43 = vld [vmem:[#allocation47_spill] sm:$0xff]  ;;  %v11831_v26 = vld [vmem:[#allocation178_spill] sm:$0xff]  ;;  %v3376_v25 = vpop.permute.xlu2 %3375 }
 0x56c   :  { %3468 = vperm.xlu1 %6316, %v3213_v29   ;;  %v5726_v29 = vsel %vm1703_vm0, 1.0, %v6607_v36  ;;  %vm1646_vm8 = vcmp.eq.s32.totalorder %v8092_v7, %v11828_v50  ;;  %v3053_v1 = vadd.f32 %v5796_v19, %v2029_v37  ;;  %vm622_vm10 = vcmp.eq.s32.totalorder %v8092_v7, %v11830_v43  ;;  %v9465_v37 = vpop.permute.xlu0 %3570  ;;  %v11835_v50 = vld [vmem:[#allocation73_spill] sm:$0xff] }
 0x56d   :  { %v4789_v46 = vpop.f32.mrf.mxu2  ;;  %v2087_v51 = vadd.f32 %v5726_v29, %v5598_v39  ;;  %vm680_vm11 = vcmp.eq.s32.totalorder %v8092_v7, %v11831_v26  ;;  %vm3694_vm15 = vcmp.eq.s32.totalorder %v8092_v7, %v3376_v25  ;;  %v5541_v29 = vsel %vm622_vm10, 1.0, %v6607_v36 }
 0x56e   :  { %v5190_v6 = vpop.f32.mrf.mxu3  ;;  %v5983_v19 = vsel %vm3752_vm14, 1.0, %v6607_v36  ;;  %vm623_vm2 = vcmp.eq.s32.totalorder %v8092_v7, %v11835_v50  ;;  %vm1706_vm10 = vcmp.eq.s32.totalorder %v8092_v7, %v11839_v14  ;;  %vm2730_vm14 = vcmp.eq.s32.totalorder %v8092_v7, %v7996_v40 }
 0x56f   :  { %v5191_v31 = vadd.f32 %v5190_v6, %v4789_v46  ;;  %v4618_v52 = vpop.f32.mrf.mxu0  ;;  %v11829_v46 = vld [vmem:[#allocation228_spill] sm:$0xff]  ;;  %v3111_v16 = vadd.f32 %v5854_v3, %v2087_v51  ;;  %v4077_v6 = vadd.f32 %v5924_v23, %v3053_v1  ;;  %v5925_v3 = vsel %vm3694_vm15, 1.0, %v6607_v36  ;;  %v11834_v23 = vld [vmem:[#allocation230_spill] sm:$0xff] }
 0x570   :  { %v5019_v62 = vpop.f32.mrf.mxu1  ;;  %vm1704_vm9 = vcmp.eq.s32.totalorder %v8092_v7, %v11829_v46  ;;  %vm1705_vm1 = vcmp.eq.s32.totalorder %v8092_v7, %v11834_v23  ;;  %v11836_v46 = vld [vmem:[#allocation177_spill] sm:$0xff]  ;;  %v11837_v1 = vld [vmem:[#allocation294_spill] sm:$0xff]  ;;  %v11842_v23 = vld [vmem:[#allocation299_spill] sm:$0xff]  ;;  %vm3754_vm15 = vcmp.eq.s32.totalorder %v8092_v7, %v9224_v63 }
 0x571   :  { %5432 = vst [vmem:[#allocation7 + $0x238] sm:$0xff] %v5191_v31  ;;  %v5020_v13 = vadd.f32 %v5019_v62, %v4618_v52  ;;  %v4135_v41 = vadd.f32 %v5982_v21, %v3111_v16  ;;  %v5727_v31 = vsel %vm1704_vm9, 1.0, %v6607_v36  ;;  %v5599_v62 = vsel %vm680_vm11, 1.0, %v6607_v36  ;;  %v11833_v21 = vld [vmem:[#allocation70_spill] sm:$0xff] }
 0x572   :  { %6051 = vmatmul.msk.f32.gmra.mxu0 %vm4174_vm4, %v4076_v18  ;;  %6109 = vmatmul.msk.f32.gmra.mxu2 %vm4174_vm4, %v4134_v11  ;;  %v2088_v39 = vadd.f32 %v5727_v31, %v5599_v62  ;;  %vm1647_vm0 = vcmp.eq.s32.totalorder %v8092_v7, %v11833_v21  ;;  %vm681_vm3 = vcmp.eq.s32.totalorder %v8092_v7, %v11836_v46  ;;  %v5984_v62 = vsel %vm3753_vm7, 1.0, %v6607_v36  ;;  %v11841_v21 = vld [vmem:[#allocation166_spill] sm:$0xff] }
 0x573   :  { %6179 = vmatmul.msk.f32.gmra.mxu1 %vm4174_vm4, %v4076_v18  ;;  %6237 = vmatmul.msk.f32.gmra.mxu3 %vm4174_vm4, %v4134_v11  ;;  %5375 = vst [vmem:[#allocation7 + $0x70] sm:$0xff] %v5020_v13  ;;  %v5669_v18 = vsel %vm1646_vm8, 1.0, %v6607_v36  ;;  %v5855_v13 = vsel %vm2728_vm13, 1.0, %v6607_v36  ;;  %vm2671_vm5 = vcmp.eq.s32.totalorder %v8092_v7, %v11837_v1  ;;  %v3379_v16 = vpop.permute.xlu1 %3378  ;;  %v5600_v31 = vsel %vm681_vm3, 1.0, %v6607_v36 }
 0x574   :  { %v2030_v20 = vadd.f32 %v5669_v18, %v5541_v29  ;;  %vm3695_vm8 = vcmp.eq.s32.totalorder %v8092_v7, %v3379_v16  ;;  %v5542_v18 = vsel %vm623_vm2, 1.0, %v6607_v36  ;;  %v5798_v10 = vsel %vm2671_vm5, 1.0, %v6607_v36 }
 0x575   :  { %v4792_v15 = vpop.f32.mrf.mxu2  ;;  %vm682_vm12 = vcmp.eq.s32.totalorder %v8092_v7, %v11841_v21  ;;  %vm2672_vm13 = vcmp.eq.s32.totalorder %v8092_v7, %v11842_v23  ;;  %vm2731_vm7 = vcmp.eq.s32.totalorder %v8092_v7, %v8011_v45 }
 0x576   :  { %v5193_v30 = vpop.f32.mrf.mxu3  ;;  %v3054_v17 = vadd.f32 %v5797_v58, %v2030_v20  ;;  %v9505_v58 = vpop.permute.xlu2 %3573  ;;  %v5799_v63 = vsel %vm2672_vm13, 1.0, %v6607_v36 }
 0x577   :  { %v5194_v55 = vadd.f32 %v5193_v30, %v4792_v15  ;;  %v4621_v11 = vpop.f32.mrf.mxu0  ;;  %v3112_v15 = vadd.f32 %v5855_v13, %v2088_v39  ;;  %v5926_v13 = vsel %vm3695_vm8, 1.0, %v6607_v36  ;;  %v11838_v39 = vld [vmem:[#allocation69_spill] sm:$0xff]  ;;  %vm3755_vm8 = vcmp.eq.s32.totalorder %v8092_v7, %v9279_v27 }
 0x578   :  { %v5022_v52 = vpop.f32.mrf.mxu1  ;;  %v4078_v4 = vadd.f32 %v5925_v3, %v3054_v17  ;;  %vm1648_vm9 = vcmp.eq.s32.totalorder %v8092_v7, %v11838_v39  ;;  %v3382_v17 = vpop.permute.xlu0 %3381  ;;  %v11847_v39 = vld [vmem:[#allocation292_spill] sm:$0xff] }
 0x579   :  { %5433 = vst [vmem:[#allocation7 + $0x240] sm:$0xff] %v5194_v55  ;;  %v5023_v33 = vadd.f32 %v5022_v52, %v4621_v11  ;;  %v4136_v26 = vadd.f32 %v5983_v19, %v3112_v15  ;;  %v5856_v52 = vsel %vm2729_vm6, 1.0, %v6607_v36  ;;  %vm2673_vm6 = vcmp.eq.s32.totalorder %v8092_v7, %v11847_v39 }
 0x57a   :  { %6052 = vmatmul.msk.f32.gmra.mxu0 %vm4174_vm4, %v4077_v6  ;;  %6110 = vmatmul.msk.f32.gmra.mxu2 %vm4174_vm4, %v4135_v41  ;;  %v5800_v27 = vsel %vm2673_vm6, 1.0, %v6607_v36 }
 0x57b   :  { %6180 = vmatmul.msk.f32.gmra.mxu1 %vm4174_vm4, %v4077_v6  ;;  %6238 = vmatmul.msk.f32.gmra.mxu3 %vm4174_vm4, %v4135_v41  ;;  %5376 = vst [vmem:[#allocation7 + $0x78] sm:$0xff] %v5023_v33  ;;  %v5670_v41 = vsel %vm1647_vm0, 1.0, %v6607_v36  ;;  %v5728_v6 = vsel %vm1705_vm1, 1.0, %v6607_v36  ;;  %vm3696_vm0 = vcmp.eq.s32.totalorder %v8092_v7, %v3382_v17 }
 0x57c   :  { %v2031_v33 = vadd.f32 %v5670_v41, %v5542_v18  ;;  %v2089_v29 = vadd.f32 %v5728_v6, %v5600_v31  ;;  %v5601_v41 = vsel %vm682_vm12, 1.0, %v6607_v36  ;;  %v5857_v6 = vsel %vm2730_vm14, 1.0, %v6607_v36 }
 0x57d   :  { %v4795_v51 = vpop.f32.mrf.mxu2  ;;  %v5985_v18 = vsel %vm3754_vm15, 1.0, %v6607_v36  ;;  %v5927_v31 = vsel %vm3696_vm0, 1.0, %v6607_v36  ;;  %vm2732_vm15 = vcmp.eq.s32.totalorder %v8092_v7, %v8027_v61  ;;  %vm3756_vm0 = vcmp.eq.s32.totalorder %v8092_v7, %v9331_v44  ;;  %v11854_v61 = vld [vmem:[#allocation226_spill] sm:$0xff] }
 0x57e   :  { %v5196_v43 = vpop.f32.mrf.mxu3  ;;  %v3055_v19 = vadd.f32 %v5798_v10, %v2031_v33  ;;  %v3113_v3 = vadd.f32 %v5856_v52, %v2089_v29  ;;  %v9549_v10 = vpop.permute.xlu1 %3576  ;;  %v11843_v33 = vld [vmem:[#allocation50_spill] sm:$0xff]  ;;  %v11844_v29 = vld [vmem:[#allocation231_spill] sm:$0xff] }
 0x57f   :  { %v5197_v25 = vadd.f32 %v5196_v43, %v4795_v51  ;;  %v4624_v30 = vpop.f32.mrf.mxu0  ;;  %v11840_v51 = vld [vmem:[#allocation72_spill] sm:$0xff]  ;;  %v5671_v43 = vsel %vm1648_vm9, 1.0, %v6607_v36  ;;  %vm1649_vm1 = vcmp.eq.s32.totalorder %v8092_v7, %v11843_v33  ;;  %vm1707_vm2 = vcmp.eq.s32.totalorder %v8092_v7, %v11844_v29  ;;  %v3385_v14 = vpop.permute.xlu2 %3384 }
 0x580   :  { %v5025_v55 = vpop.f32.mrf.mxu1  ;;  %vm624_vm11 = vcmp.eq.s32.totalorder %v8092_v7, %v11840_v51  ;;  %v4137_v50 = vadd.f32 %v5984_v62, %v3113_v3  ;;  %v4079_v46 = vadd.f32 %v5926_v13, %v3055_v19  ;;  %v11845_v13 = vld [vmem:[#allocation53_spill] sm:$0xff]  ;;  %v5672_v17 = vsel %vm1649_vm1, 1.0, %v6607_v36 }
 0x581   :  { %5434 = vst [vmem:[#allocation7 + $0x248] sm:$0xff] %v5197_v25  ;;  %v5026_v11 = vadd.f32 %v5025_v55, %v4624_v30  ;;  %v5543_v30 = vsel %vm624_vm11, 1.0, %v6607_v36  ;;  %vm625_vm3 = vcmp.eq.s32.totalorder %v8092_v7, %v11845_v13  ;;  %vm3697_vm9 = vcmp.eq.s32.totalorder %v8092_v7, %v3385_v14 }
 0x582   :  { %6053 = vmatmul.msk.f32.gmra.mxu0 %vm4174_vm4, %v4078_v4  ;;  %6111 = vmatmul.msk.f32.gmra.mxu2 %vm4174_vm4, %v4136_v26  ;;  %v2032_v55 = vadd.f32 %v5671_v43, %v5543_v30  ;;  %v5858_v43 = vsel %vm2731_vm7, 1.0, %v6607_v36  ;;  %v5928_v30 = vsel %vm3697_vm9, 1.0, %v6607_v36  ;;  %vm3757_vm9 = vcmp.eq.s32.totalorder %v8092_v7, %v9380_v48 }
 0x583   :  { %6181 = vmatmul.msk.f32.gmra.mxu1 %vm4174_vm4, %v4078_v4  ;;  %6239 = vmatmul.msk.f32.gmra.mxu3 %vm4174_vm4, %v4136_v26  ;;  %5377 = vst [vmem:[#allocation7 + $0x80] sm:$0xff] %v5026_v11  ;;  %v5729_v26 = vsel %vm1706_vm10, 1.0, %v6607_v36 }
 0x584   :  { %v2090_v11 = vadd.f32 %v5729_v26, %v5601_v41  ;;  %v3056_v40 = vadd.f32 %v5799_v63, %v2032_v55  ;;  %v9590_v41 = vpop.permute.xlu0 %3579  ;;  %v11849_v55 = vld [vmem:[#allocation233_spill] sm:$0xff] }
 0x585   :  { %v4798_v20 = vpop.f32.mrf.mxu2  ;;  %vm1708_vm11 = vcmp.eq.s32.totalorder %v8092_v7, %v11849_v55 }
 0x586   :  { %v5199_v15 = vpop.f32.mrf.mxu3  ;;  %v3114_v62 = vadd.f32 %v5857_v6, %v2090_v11  ;;  %v4080_v51 = vadd.f32 %v5927_v31, %v3056_v40  ;;  %v11848_v6 = vld [vmem:[#allocation76_spill] sm:$0xff]  ;;  %v3388_v33 = vpop.permute.xlu1 %3387  ;;  %v5731_v14 = vsel %vm1708_vm11, 1.0, %v6607_v36 }
 0x587   :  { %v5200_v1 = vadd.f32 %v5199_v15, %v4798_v20  ;;  %v4627_v16 = vpop.f32.mrf.mxu0  ;;  %v11846_v20 = vld [vmem:[#allocation181_spill] sm:$0xff]  ;;  %v5730_v15 = vsel %vm1707_vm2, 1.0, %v6607_v36  ;;  %vm1650_vm10 = vcmp.eq.s32.totalorder %v8092_v7, %v11848_v6  ;;  %v11851_v31 = vld [vmem:[#allocation180_spill] sm:$0xff]  ;;  %vm3698_vm1 = vcmp.eq.s32.totalorder %v8092_v7, %v3388_v33 }
 0x588   :  { %v5028_v4 = vpop.f32.mrf.mxu1  ;;  %vm683_vm5 = vcmp.eq.s32.totalorder %v8092_v7, %v11846_v20  ;;  %v4138_v3 = vadd.f32 %v5985_v18, %v3114_v62  ;;  %v11850_v18 = vld [vmem:[#allocation79_spill] sm:$0xff]  ;;  %vm684_vm13 = vcmp.eq.s32.totalorder %v8092_v7, %v11851_v31  ;;  %v5673_v39 = vsel %vm1650_vm10, 1.0, %v6607_v36 }
 0x589   :  { %5435 = vst [vmem:[#allocation7 + $0x250] sm:$0xff] %v5200_v1  ;;  %v5029_v25 = vadd.f32 %v5028_v4, %v4627_v16  ;;  %v5544_v1 = vsel %vm625_vm3, 1.0, %v6607_v36  ;;  %v5602_v16 = vsel %vm683_vm5, 1.0, %v6607_v36  ;;  %vm626_vm12 = vcmp.eq.s32.totalorder %v8092_v7, %v11850_v18 }
 0x58a   :  { %6054 = vmatmul.msk.f32.gmra.mxu0 %vm4174_vm4, %v4079_v46  ;;  %6112 = vmatmul.msk.f32.gmra.mxu2 %vm4174_vm4, %v4137_v50  ;;  %v2033_v26 = vadd.f32 %v5672_v17, %v5544_v1  ;;  %v2091_v4 = vadd.f32 %v5730_v15, %v5602_v16  ;;  %v5929_v1 = vsel %vm3698_vm1, 1.0, %v6607_v36  ;;  %vm1709_vm3 = vcmp.eq.s32.totalorder %v8092_v7, %v11854_v61 }
 0x58b   :  { %6182 = vmatmul.msk.f32.gmra.mxu1 %vm4174_vm4, %v4079_v46  ;;  %6240 = vmatmul.msk.f32.gmra.mxu3 %vm4174_vm4, %v4137_v50  ;;  %5378 = vst [vmem:[#allocation7 + $0x88] sm:$0xff] %v5029_v25  ;;  %v5986_v25 = vsel %vm3755_vm8, 1.0, %v6607_v36  ;;  %vm2733_vm8 = vcmp.eq.s32.totalorder %v8092_v7, %v8004_v59  ;;  %vm3758_vm1 = vcmp.eq.s32.totalorder %v8092_v7, %v9424_v5 }
 0x58c   :  { %v3057_v45 = vadd.f32 %v5800_v27, %v2033_v26  ;;  %v3115_v11 = vadd.f32 %v5858_v43, %v2091_v4  ;;  %v11853_v27 = vld [vmem:[#allocation75_spill] sm:$0xff]  ;;  %v11855_v4 = vld [vmem:[#allocation78_spill] sm:$0xff] }
 0x58d   :  { %v4801_v52 = vpop.f32.mrf.mxu2  ;;  %vm1651_vm2 = vcmp.eq.s32.totalorder %v8092_v7, %v11853_v27  ;;  %vm627_vm5 = vcmp.eq.s32.totalorder %v8092_v7, %v11855_v4 }
 0x58e   :  { %v5202_v19 = vpop.f32.mrf.mxu3  ;;  %v4139_v40 = vadd.f32 %v5986_v25, %v3115_v11  ;;  %v4081_v62 = vadd.f32 %v5928_v30, %v3057_v45  ;;  %v11856_v25 = vld [vmem:[#allocation170_spill] sm:$0xff]  ;;  %v5674_v31 = vsel %vm1651_vm2, 1.0, %v6607_v36 }
 0x58f   :  { %v5203_v21 = vadd.f32 %v5202_v19, %v4801_v52  ;;  %v4630_v23 = vpop.f32.mrf.mxu0  ;;  %v11852_v52 = vld [vmem:[#allocation297_spill] sm:$0xff]  ;;  %vm685_vm6 = vcmp.eq.s32.totalorder %v8092_v7, %v11856_v25  ;;  %v11857_v30 = vld [vmem:[#allocation302_spill] sm:$0xff] }
 0x590   :  { %v5031_v50 = vpop.f32.mrf.mxu1  ;;  %vm2674_vm14 = vcmp.eq.s32.totalorder %v8092_v7, %v11852_v52  ;;  %vm2675_vm7 = vcmp.eq.s32.totalorder %v8092_v7, %v11857_v30  ;;  %v5732_v52 = vsel %vm1709_vm3, 1.0, %v6607_v36 }
 0x591   :  { %5436 = vst [vmem:[#allocation7 + $0x258] sm:$0xff] %v5203_v21  ;;  %v5032_v46 = vadd.f32 %v5031_v50, %v4630_v23  ;;  %v5603_v21 = vsel %vm684_vm13, 1.0, %v6607_v36  ;;  %v5801_v44 = vsel %vm2674_vm14, 1.0, %v6607_v36  ;;  %v5859_v23 = vsel %vm2732_vm15, 1.0, %v6607_v36 }
 0x592   :  { %6055 = vmatmul.msk.f32.gmra.mxu0 %vm4174_vm4, %v4080_v51  ;;  %6113 = vmatmul.msk.f32.gmra.mxu2 %vm4174_vm4, %v4138_v3  ;;  %v2092_v15 = vadd.f32 %v5731_v14, %v5603_v21  ;;  %v5987_v50 = vsel %vm3756_vm0, 1.0, %v6607_v36  ;;  %v5802_v48 = vsel %vm2675_vm7, 1.0, %v6607_v36  ;;  %v5988_v14 = vsel %vm3757_vm9, 1.0, %v6607_v36  ;;  %v11858_v21 = vld [vmem:[#allocation56_spill] sm:$0xff] }
 0x593   :  { %6183 = vmatmul.msk.f32.gmra.mxu1 %vm4174_vm4, %v4080_v51  ;;  %6241 = vmatmul.msk.f32.gmra.mxu3 %vm4174_vm4, %v4138_v3  ;;  %5379 = vst [vmem:[#allocation7 + $0x90] sm:$0xff] %v5032_v46  ;;  %v5545_v51 = vsel %vm626_vm12, 1.0, %v6607_v36  ;;  %v9630_v46 = vpop.permute.xlu2 %3582  ;;  %vm1652_vm11 = vcmp.eq.s32.totalorder %v8092_v7, %v11858_v21  ;;  %vm2734_vm0 = vcmp.eq.s32.totalorder %v8092_v7, %v8020_v0 }
 0x594   :  { %v2034_v17 = vadd.f32 %v5673_v39, %v5545_v51  ;;  %v3116_v26 = vadd.f32 %v5859_v23, %v2092_v15  ;;  %v11861_v15 = vld [vmem:[#allocation184_spill] sm:$0xff]  ;;  %v5675_v4 = vsel %vm1652_vm11, 1.0, %v6607_v36  ;;  %vm2735_vm9 = vcmp.eq.s32.totalorder %v8092_v7, %v8036_v2  ;;  %v11869_v2 = vld [vmem:[#allocation229_spill] sm:$0xff] }
 0x595   :  { %v4804_v63 = vpop.f32.mrf.mxu2  ;;  %vm686_vm14 = vcmp.eq.s32.totalorder %v8092_v7, %v11861_v15 }
 0x596   :  { %v5205_v29 = vpop.f32.mrf.mxu3  ;;  %v3058_v43 = vadd.f32 %v5801_v44, %v2034_v17  ;;  %v4140_v55 = vadd.f32 %v5987_v50, %v3116_v26  ;;  %v11859_v44 = vld [vmem:[#allocation234_spill] sm:$0xff]  ;;  %v11860_v17 = vld [vmem:[#allocation59_spill] sm:$0xff] }
 0x597   :  { %v5206_v13 = vadd.f32 %v5205_v29, %v4804_v63  ;;  %v4633_v20 = vpop.f32.mrf.mxu0  ;;  %v3391_v63 = vpop.permute.xlu0 %3390  ;;  %vm1710_vm12 = vcmp.eq.s32.totalorder %v8092_v7, %v11859_v44  ;;  %vm628_vm13 = vcmp.eq.s32.totalorder %v8092_v7, %v11860_v17  ;;  %v11862_v50 = vld [vmem:[#allocation295_spill] sm:$0xff] }
 0x598   :  { %v5034_v19 = vpop.f32.mrf.mxu1  ;;  %v4082_v45 = vadd.f32 %v5929_v1, %v3058_v43  ;;  %vm3699_vm10 = vcmp.eq.s32.totalorder %v8092_v7, %v3391_v63  ;;  %vm2676_vm15 = vcmp.eq.s32.totalorder %v8092_v7, %v11862_v50  ;;  %v5733_v25 = vsel %vm1710_vm12, 1.0, %v6607_v36 }
 0x599   :  { %5437 = vst [vmem:[#allocation7 + $0x260] sm:$0xff] %v5206_v13  ;;  %v5035_v3 = vadd.f32 %v5034_v19, %v4633_v20  ;;  %v5860_v13 = vsel %vm2733_vm8, 1.0, %v6607_v36  ;;  %v5930_v19 = vsel %vm3699_vm10, 1.0, %v6607_v36  ;;  %v5803_v5 = vsel %vm2676_vm15, 1.0, %v6607_v36 }
 0x59a   :  { %6056 = vmatmul.msk.f32.gmra.mxu0 %vm4174_vm4, %v4081_v62  ;;  %6114 = vmatmul.msk.f32.gmra.mxu2 %vm4174_vm4, %v4139_v40  ;;  %vm3759_vm10 = vcmp.eq.s32.totalorder %v8092_v7, %v9465_v37 }
 0x59b   :  { %6184 = vmatmul.msk.f32.gmra.mxu1 %vm4174_vm4, %v4081_v62  ;;  %6242 = vmatmul.msk.f32.gmra.mxu3 %vm4174_vm4, %v4139_v40  ;;  %5380 = vst [vmem:[#allocation7 + $0x98] sm:$0xff] %v5035_v3  ;;  %v5546_v40 = vsel %vm627_vm5, 1.0, %v6607_v36  ;;  %v5604_v62 = vsel %vm685_vm6, 1.0, %v6607_v36  ;;  %v9674_v3 = vpop.permute.xlu1 %3585  ;;  %v3394_v1 = vpop.permute.xlu2 %3393 }
 0x59c   :  { %v2035_v20 = vadd.f32 %v5674_v31, %v5546_v40  ;;  %v2093_v39 = vadd.f32 %v5732_v52, %v5604_v62  ;;  %vm3700_vm2 = vcmp.eq.s32.totalorder %v8092_v7, %v3394_v1  ;;  %v5989_v31 = vsel %vm3758_vm1, 1.0, %v6607_v36  ;;  %v11863_v40 = vld [vmem:[#allocation82_spill] sm:$0xff]  ;;  %v11864_v62 = vld [vmem:[#allocation236_spill] sm:$0xff] }
 0x59d   :  { %v4807_v16 = vpop.f32.mrf.mxu2  ;;  %v5931_v52 = vsel %vm3700_vm2, 1.0, %v6607_v36  ;;  %vm1653_vm3 = vcmp.eq.s32.totalorder %v8092_v7, %v11863_v40  ;;  %vm1711_vm5 = vcmp.eq.s32.totalorder %v8092_v7, %v11864_v62  ;;  %vm2736_vm1 = vcmp.eq.s32.totalorder %v8092_v7, %v8013_v49 }
 0x59e   :  { %v5208_v6 = vpop.f32.mrf.mxu3  ;;  %v3059_v59 = vadd.f32 %v5802_v48, %v2035_v20  ;;  %v3117_v23 = vadd.f32 %v5860_v13, %v2093_v39  ;;  %v11865_v13 = vld [vmem:[#allocation85_spill] sm:$0xff]  ;;  %v11866_v20 = vld [vmem:[#allocation183_spill] sm:$0xff]  ;;  %v11867_v39 = vld [vmem:[#allocation300_spill] sm:$0xff]  ;;  %v5734_v17 = vsel %vm1711_vm5, 1.0, %v6607_v36  ;;  %vm3760_vm2 = vcmp.eq.s32.totalorder %v8092_v7, %v9505_v58 }
 0x59f   :  { %v5209_v11 = vadd.f32 %v5208_v6, %v4807_v16  ;;  %v4636_v18 = vpop.f32.mrf.mxu0  ;;  %v5547_v6 = vsel %vm628_vm13, 1.0, %v6607_v36  ;;  %vm629_vm6 = vcmp.eq.s32.totalorder %v8092_v7, %v11865_v13  ;;  %vm687_vm7 = vcmp.eq.s32.totalorder %v8092_v7, %v11866_v20 }
 0x5a0   :  { %v5037_v33 = vpop.f32.mrf.mxu1  ;;  %v4141_v27 = vadd.f32 %v5988_v14, %v3117_v23  ;;  %v4083_v61 = vadd.f32 %v5930_v19, %v3059_v59  ;;  %vm2677_vm8 = vcmp.eq.s32.totalorder %v8092_v7, %v11867_v39  ;;  %v5676_v23 = vsel %vm1653_vm3, 1.0, %v6607_v36 }
 0x5a1   :  { %5438 = vst [vmem:[#allocation7 + $0x268] sm:$0xff] %v5209_v11  ;;  %v5038_v29 = vadd.f32 %v5037_v33, %v4636_v18  ;;  %v2036_v11 = vadd.f32 %v5675_v4, %v5547_v6  ;;  %v9715_v33 = vpop.permute.xlu0 %3588  ;;  %v5548_v1 = vsel %vm629_vm6, 1.0, %v6607_v36  ;;  %v5804_v37 = vsel %vm2677_vm8, 1.0, %v6607_v36 }
 0x5a2   :  { %6057 = vmatmul.msk.f32.gmra.mxu0 %vm4174_vm4, %v4082_v45  ;;  %6115 = vmatmul.msk.f32.gmra.mxu2 %vm4174_vm4, %v4140_v55  ;;  %vm1712_vm13 = vcmp.eq.s32.totalorder %v8092_v7, %v11869_v2 }
 0x5a3   :  { %6185 = vmatmul.msk.f32.gmra.mxu1 %vm4174_vm4, %v4082_v45  ;;  %6243 = vmatmul.msk.f32.gmra.mxu3 %vm4174_vm4, %v4140_v55  ;;  %5381 = vst [vmem:[#allocation7 + $0xa0] sm:$0xff] %v5038_v29  ;;  %v5605_v55 = vsel %vm686_vm14, 1.0, %v6607_v36  ;;  %v5861_v45 = vsel %vm2734_vm0, 1.0, %v6607_v36  ;;  %v3060_v0 = vadd.f32 %v5803_v5, %v2036_v11  ;;  %v3397_v14 = vpop.permute.xlu1 %3396  ;;  %v9755_v4 = vpop.permute.xlu2 %3591  ;;  %v11870_v5 = vld [vmem:[#allocation84_spill] sm:$0xff]  ;;  %v11872_v11 = vld [vmem:[#allocation306_spill] sm:$0xff] }
 0x5a4   :  { %v2094_v18 = vadd.f32 %v5733_v25, %v5605_v55  ;;  %vm3701_vm11 = vcmp.eq.s32.totalorder %v8092_v7, %v3397_v14  ;;  %vm630_vm14 = vcmp.eq.s32.totalorder %v8092_v7, %v11870_v5  ;;  %vm2678_vm0 = vcmp.eq.s32.totalorder %v8092_v7, %v11872_v11 }
 0x5a5   :  { %v4810_v51 = vpop.f32.mrf.mxu2  ;;  %v4084_v21 = vadd.f32 %v5931_v52, %v3060_v0  ;;  %v5932_v25 = vsel %vm3701_vm11, 1.0, %v6607_v36  ;;  %v5549_v39 = vsel %vm630_vm14, 1.0, %v6607_v36  ;;  %v5805_v58 = vsel %vm2678_vm0, 1.0, %v6607_v36 }
 0x5a6   :  { %v5211_v16 = vpop.f32.mrf.mxu3  ;;  %v3118_v48 = vadd.f32 %v5861_v45, %v2094_v18  ;;  %v11871_v45 = vld [vmem:[#allocation173_spill] sm:$0xff]  ;;  %vm3761_vm11 = vcmp.eq.s32.totalorder %v8092_v7, %v9549_v10 }
 0x5a7   :  { %v5212_v43 = vadd.f32 %v5211_v16, %v4810_v51  ;;  %v4639_v26 = vpop.f32.mrf.mxu0  ;;  %v5606_v16 = vsel %vm687_vm7, 1.0, %v6607_v36  ;;  %vm688_vm15 = vcmp.eq.s32.totalorder %v8092_v7, %v11871_v45 }
 0x5a8   :  { %v5040_v30 = vpop.f32.mrf.mxu1  ;;  %v4142_v51 = vadd.f32 %v5989_v31, %v3118_v48  ;;  %v5735_v48 = vsel %vm1712_vm13, 1.0, %v6607_v36  ;;  %v5607_v14 = vsel %vm688_vm15, 1.0, %v6607_v36 }
 0x5a9   :  { %5439 = vst [vmem:[#allocation7 + $0x270] sm:$0xff] %v5212_v43  ;;  %v5041_v63 = vadd.f32 %v5040_v30, %v4639_v26  ;;  %v2095_v43 = vadd.f32 %v5734_v17, %v5606_v16  ;;  %v5990_v26 = vsel %vm3759_vm10, 1.0, %v6607_v36  ;;  %v3400_v18 = vpop.permute.xlu0 %3399  ;;  %v11875_v16 = vld [vmem:[#allocation65_spill] sm:$0xff]  ;;  %vm2737_vm10 = vcmp.eq.s32.totalorder %v8092_v7, %v8029_v35 }
 0x5aa   :  { %6058 = vmatmul.msk.f32.gmra.mxu0 %vm4174_vm4, %v4083_v61  ;;  %6116 = vmatmul.msk.f32.gmra.mxu2 %vm4174_vm4, %v4141_v27  ;;  %vm3702_vm3 = vcmp.eq.s32.totalorder %v8092_v7, %v3400_v18  ;;  %vm631_vm7 = vcmp.eq.s32.totalorder %v8092_v7, %v11875_v16  ;;  %v5864_v18 = vsel %vm2737_vm10, 1.0, %v6607_v36 }
 0x5ab   :  { %6186 = vmatmul.msk.f32.gmra.mxu1 %vm4174_vm4, %v4083_v61  ;;  %6244 = vmatmul.msk.f32.gmra.mxu3 %vm4174_vm4, %v4141_v27  ;;  %5382 = vst [vmem:[#allocation7 + $0xa8] sm:$0xff] %v5041_v63  ;;  %v5862_v27 = vsel %vm2735_vm9, 1.0, %v6607_v36  ;;  %v2037_v61 = vadd.f32 %v5676_v23, %v5548_v1  ;;  %v11868_v63 = vld [vmem:[#allocation81_spill] sm:$0xff]  ;;  %v9799_v23 = vpop.permute.xlu1 %3594  ;;  %v5550_v45 = vsel %vm631_vm7, 1.0, %v6607_v36 }
 0x5ac   :  { %vm1654_vm12 = vcmp.eq.s32.totalorder %v8092_v7, %v11868_v63  ;;  %v3119_v55 = vadd.f32 %v5862_v27, %v2095_v43  ;;  %v11877_v27 = vld [vmem:[#allocation298_spill] sm:$0xff] }
 0x5ad   :  { %v4813_v29 = vpop.f32.mrf.mxu2  ;;  %v3061_v6 = vadd.f32 %v5804_v37, %v2037_v61  ;;  %v5677_v0 = vsel %vm1654_vm12, 1.0, %v6607_v36  ;;  %v11876_v37 = vld [vmem:[#allocation187_spill] sm:$0xff]  ;;  %vm2679_vm9 = vcmp.eq.s32.totalorder %v8092_v7, %v11877_v27  ;;  %v3403_v61 = vpop.permute.xlu2 %3402 }
 0x5ae   :  { %v5214_v19 = vpop.f32.mrf.mxu3  ;;  %v4143_v52 = vadd.f32 %v5990_v26, %v3119_v55  ;;  %vm689_vm8 = vcmp.eq.s32.totalorder %v8092_v7, %v11876_v37  ;;  %vm3703_vm12 = vcmp.eq.s32.totalorder %v8092_v7, %v3403_v61  ;;  %v5806_v10 = vsel %vm2679_vm9, 1.0, %v6607_v36 }
 0x5af   :  { %v5215_v44 = vadd.f32 %v5214_v19, %v4813_v29  ;;  %v4642_v59 = vpop.f32.mrf.mxu0  ;;  %v4085_v29 = vadd.f32 %v5932_v25, %v3061_v6  ;;  %v5863_v19 = vsel %vm2736_vm1, 1.0, %v6607_v36  ;;  %v5608_v11 = vsel %vm689_vm8, 1.0, %v6607_v36 }
 0x5b0   :  { %v5043_v15 = vpop.f32.mrf.mxu1 }
 0x5b1   :  { %5440 = vst [vmem:[#allocation7 + $0x278] sm:$0xff] %v5215_v44  ;;  %v5044_v50 = vadd.f32 %v5043_v15, %v4642_v59  ;;  %v5991_v44 = vsel %vm3760_vm2, 1.0, %v6607_v36  ;;  %v5933_v59 = vsel %vm3702_vm3, 1.0, %v6607_v36  ;;  %v11873_v15 = vld [vmem:[#allocation62_spill] sm:$0xff]  ;;  %vm3762_vm3 = vcmp.eq.s32.totalorder %v8092_v7, %v9590_v41 }
 0x5b2   :  { %6059 = vmatmul.msk.f32.gmra.mxu0 %vm4174_vm4, %v4084_v21  ;;  %6117 = vmatmul.msk.f32.gmra.mxu2 %vm4174_vm4, %v4142_v51  ;;  %vm1655_vm5 = vcmp.eq.s32.totalorder %v8092_v7, %v11873_v15 }
 0x5b3   :  { %6187 = vmatmul.msk.f32.gmra.mxu1 %vm4174_vm4, %v4084_v21  ;;  %6245 = vmatmul.msk.f32.gmra.mxu3 %vm4174_vm4, %v4142_v51  ;;  %5383 = vst [vmem:[#allocation7 + $0xb0] sm:$0xff] %v5044_v50  ;;  %v2038_v51 = vadd.f32 %v5677_v0, %v5549_v39  ;;  %v2096_v21 = vadd.f32 %v5735_v48, %v5607_v14  ;;  %v11874_v50 = vld [vmem:[#allocation237_spill] sm:$0xff]  ;;  %v5678_v2 = vsel %vm1655_vm5, 1.0, %v6607_v36  ;;  %v11878_v48 = vld [vmem:[#allocation88_spill] sm:$0xff]  ;;  %v11880_v39 = vld [vmem:[#allocation91_spill] sm:$0xff] }
 0x5b4   :  { %vm1713_vm6 = vcmp.eq.s32.totalorder %v8092_v7, %v11874_v50  ;;  %vm1656_vm13 = vcmp.eq.s32.totalorder %v8092_v7, %v11878_v48  ;;  %vm632_vm15 = vcmp.eq.s32.totalorder %v8092_v7, %v11880_v39  ;;  %v11881_v14 = vld [vmem:[#allocation186_spill] sm:$0xff] }
 0x5b5   :  { %v4816_v30 = vpop.f32.mrf.mxu2  ;;  %v3062_v49 = vadd.f32 %v5805_v58, %v2038_v51  ;;  %v3120_v1 = vadd.f32 %v5863_v19, %v2096_v21  ;;  %v5736_v6 = vsel %vm1713_vm6, 1.0, %v6607_v36  ;;  %vm690_vm0 = vcmp.eq.s32.totalorder %v8092_v7, %v11881_v14  ;;  %v11882_v58 = vld [vmem:[#allocation303_spill] sm:$0xff]  ;;  %v3406_v19 = vpop.permute.xlu1 %3405 }
 0x5b6   :  { %v5217_v31 = vpop.f32.mrf.mxu3  ;;  %vm2680_vm1 = vcmp.eq.s32.totalorder %v8092_v7, %v11882_v58  ;;  %v11883_v21 = vld [vmem:[#allocation359_spill] sm:$0xff]  ;;  %v5679_v50 = vsel %vm1656_vm13, 1.0, %v6607_v36  ;;  %vm3704_vm5 = vcmp.eq.s32.totalorder %v8092_v7, %v3406_v19  ;;  %v5551_v37 = vsel %vm632_vm15, 1.0, %v6607_v36 }
 0x5b7   :  { %v5218_v40 = vadd.f32 %v5217_v31, %v4816_v30  ;;  %v4645_v62 = vpop.f32.mrf.mxu0  ;;  %v4144_v26 = vadd.f32 %v5991_v44, %v3120_v1  ;;  %v4086_v25 = vadd.f32 %v5933_v59, %v3062_v49  ;;  %v2039_v31 = vadd.f32 %v5678_v2, %v5550_v45 }
 0x5b8   :  { %v5046_v13 = vpop.f32.mrf.mxu1  ;;  %vm2738_vm2 = vcmp.eq.s32.totalorder %v8092_v7, %v11883_v21  ;;  %v5609_v27 = vsel %vm690_vm0, 1.0, %v6607_v36  ;;  %v5807_v41 = vsel %vm2680_vm1, 1.0, %v6607_v36 }
 0x5b9   :  { %5441 = vst [vmem:[#allocation7 + $0x280] sm:$0xff] %v5218_v40  ;;  %v5047_v20 = vadd.f32 %v5046_v13, %v4645_v62  ;;  %v5934_v40 = vsel %vm3703_vm12, 1.0, %v6607_v36  ;;  %v9840_v62 = vpop.permute.xlu0 %3597  ;;  %v11879_v13 = vld [vmem:[#allocation239_spill] sm:$0xff]  ;;  %v3063_v35 = vadd.f32 %v5806_v10, %v2039_v31  ;;  %v5865_v61 = vsel %vm2738_vm2, 1.0, %v6607_v36  ;;  %v11887_v10 = vld [vmem:[#allocation176_spill] sm:$0xff] }
 0x5ba   :  { %6060 = vmatmul.msk.f32.gmra.mxu0 %vm4174_vm4, %v4085_v29  ;;  %6118 = vmatmul.msk.f32.gmra.mxu2 %vm4174_vm4, %v4143_v52  ;;  %vm1714_vm14 = vcmp.eq.s32.totalorder %v8092_v7, %v11879_v13  ;;  %vm691_vm9 = vcmp.eq.s32.totalorder %v8092_v7, %v11887_v10  ;;  %vm3763_vm12 = vcmp.eq.s32.totalorder %v8092_v7, %v9630_v46 }
 0x5bb   :  { %6188 = vmatmul.msk.f32.gmra.mxu1 %vm4174_vm4, %v4085_v29  ;;  %6246 = vmatmul.msk.f32.gmra.mxu3 %vm4174_vm4, %v4143_v52  ;;  %5384 = vst [vmem:[#allocation7 + $0xb8] sm:$0xff] %v5047_v20  ;;  %v2097_v52 = vadd.f32 %v5736_v6, %v5608_v11  ;;  %v5992_v29 = vsel %vm3761_vm11, 1.0, %v6607_v36  ;;  %v4087_v59 = vadd.f32 %v5934_v40, %v3063_v35  ;;  %v5737_v49 = vsel %vm1714_vm14, 1.0, %v6607_v36  ;;  %v11884_v6 = vld [vmem:[#allocation87_spill] sm:$0xff]  ;;  %v11886_v11 = vld [vmem:[#allocation90_spill] sm:$0xff] }
 0x5bc   :  { %vm1657_vm6 = vcmp.eq.s32.totalorder %v8092_v7, %v11884_v6  ;;  %vm633_vm8 = vcmp.eq.s32.totalorder %v8092_v7, %v11886_v11  ;;  %v5610_v19 = vsel %vm691_vm9, 1.0, %v6607_v36 }
 0x5bd   :  { %v4819_v17 = vpop.f32.mrf.mxu2  ;;  %v3121_v20 = vadd.f32 %v5864_v18, %v2097_v52  ;;  %v11888_v18 = vld [vmem:[#allocation311_spill] sm:$0xff]  ;;  %v5680_v35 = vsel %vm1657_vm6, 1.0, %v6607_v36  ;;  %v5552_v58 = vsel %vm633_vm8, 1.0, %v6607_v36 }
 0x5be   :  { %v5220_v43 = vpop.f32.mrf.mxu3  ;;  %vm2681_vm10 = vcmp.eq.s32.totalorder %v8092_v7, %v11888_v18  ;;  %v2041_v21 = vadd.f32 %v5680_v35, %v5552_v58 }
 0x5bf   :  { %v5221_v30 = vadd.f32 %v5220_v43, %v4819_v17  ;;  %v4648_v63 = vpop.f32.mrf.mxu0  ;;  %v4145_v44 = vadd.f32 %v5992_v29, %v3121_v20  ;;  %v2040_v43 = vadd.f32 %v5679_v50, %v5551_v37  ;;  %v11889_v29 = vld [vmem:[#allocation355_spill] sm:$0xff]  ;;  %v5808_v46 = vsel %vm2681_vm10, 1.0, %v6607_v36 }
 0x5c0   :  { %v5049_v55 = vpop.f32.mrf.mxu1  ;;  %vm2739_vm11 = vcmp.eq.s32.totalorder %v8092_v7, %v11889_v29 }
 0x5c1   :  { %5442 = vst [vmem:[#allocation7 + $0x288] sm:$0xff] %v5221_v30  ;;  %v5050_v5 = vadd.f32 %v5049_v55, %v4648_v63  ;;  %v9880_v30 = vpop.permute.xlu2 %3600  ;;  %v5935_v63 = vsel %vm3704_vm5, 1.0, %v6607_v36  ;;  %v11885_v55 = vld [vmem:[#allocation232_spill] sm:$0xff]  ;;  %v3409_v31 = vpop.permute.xlu0 %3408  ;;  %vm3764_vm5 = vcmp.eq.s32.totalorder %v8092_v7, %v9674_v3 }
 0x5c2   :  { %6061 = vmatmul.msk.f32.gmra.mxu0 %vm4174_vm4, %v4086_v25  ;;  %6119 = vmatmul.msk.f32.gmra.mxu2 %vm4174_vm4, %v4144_v26  ;;  %vm1715_vm7 = vcmp.eq.s32.totalorder %v8092_v7, %v11885_v55  ;;  %vm3705_vm13 = vcmp.eq.s32.totalorder %v8092_v7, %v3409_v31 }
 0x5c3   :  { %6189 = vmatmul.msk.f32.gmra.mxu1 %vm4174_vm4, %v4086_v25  ;;  %6247 = vmatmul.msk.f32.gmra.mxu3 %vm4174_vm4, %v4144_v26  ;;  %5385 = vst [vmem:[#allocation7 + $0xc0] sm:$0xff] %v5050_v5  ;;  %v2098_v26 = vadd.f32 %v5737_v49, %v5609_v27  ;;  %v5993_v25 = vsel %vm3762_vm3, 1.0, %v6607_v36  ;;  %v3064_v5 = vadd.f32 %v5807_v41, %v2040_v43  ;;  %v5738_v20 = vsel %vm1715_vm7, 1.0, %v6607_v36  ;;  %v11890_v49 = vld [vmem:[#allocation68_spill] sm:$0xff]  ;;  %v11892_v27 = vld [vmem:[#allocation71_spill] sm:$0xff]  ;;  %v11893_v41 = vld [vmem:[#allocation190_spill] sm:$0xff] }
 0x5c4   :  { %vm1658_vm14 = vcmp.eq.s32.totalorder %v8092_v7, %v11890_v49  ;;  %vm634_vm0 = vcmp.eq.s32.totalorder %v8092_v7, %v11892_v27  ;;  %vm692_vm1 = vcmp.eq.s32.totalorder %v8092_v7, %v11893_v41 }
 0x5c5   :  { %v4822_v0 = vpop.f32.mrf.mxu2  ;;  %v3122_v45 = vadd.f32 %v5865_v61, %v2098_v26  ;;  %v11894_v61 = vld [vmem:[#allocation301_spill] sm:$0xff]  ;;  %v5553_v18 = vsel %vm634_vm0, 1.0, %v6607_v36  ;;  %v5611_v31 = vsel %vm692_vm1, 1.0, %v6607_v36 }
 0x5c6   :  { %v5223_v51 = vpop.f32.mrf.mxu3  ;;  %vm2682_vm2 = vcmp.eq.s32.totalorder %v8092_v7, %v11894_v61 }
 0x5c7   :  { %v5224_v17 = vadd.f32 %v5223_v51, %v4822_v0  ;;  %v4651_v15 = vpop.f32.mrf.mxu0  ;;  %v4146_v40 = vadd.f32 %v5993_v25, %v3122_v45  ;;  %v4088_v0 = vadd.f32 %v5935_v63, %v3064_v5  ;;  %v5866_v51 = vsel %vm2739_vm11, 1.0, %v6607_v36  ;;  %v11895_v25 = vld [vmem:[#allocation357_spill] sm:$0xff] }
 0x5c8   :  { %v5052_v1 = vpop.f32.mrf.mxu1  ;;  %vm2740_vm3 = vcmp.eq.s32.totalorder %v8092_v7, %v11895_v25  ;;  %v5681_v5 = vsel %vm1658_vm14, 1.0, %v6607_v36  ;;  %v5809_v3 = vsel %vm2682_vm2, 1.0, %v6607_v36 }
 0x5c9   :  { %5443 = vst [vmem:[#allocation7 + $0x290] sm:$0xff] %v5224_v17  ;;  %v5053_v16 = vadd.f32 %v5052_v1, %v4651_v15  ;;  %v5936_v17 = vsel %vm3705_vm13, 1.0, %v6607_v36  ;;  %v9924_v15 = vpop.permute.xlu1 %3603  ;;  %v11891_v1 = vld [vmem:[#allocation240_spill] sm:$0xff]  ;;  %v3412_v43 = vpop.permute.xlu2 %3411  ;;  %v2042_v29 = vadd.f32 %v5681_v5, %v5553_v18  ;;  %vm3765_vm13 = vcmp.eq.s32.totalorder %v8092_v7, %v9715_v33  ;;  %v11901_v5 = vld [vmem:[#allocation93_spill] sm:$0xff]  ;;  %v11904_v18 = vld [vmem:[#allocation179_spill] sm:$0xff] }
 0x5ca   :  { %6062 = vmatmul.msk.f32.gmra.mxu0 %vm4174_vm4, %v4087_v59  ;;  %6120 = vmatmul.msk.f32.gmra.mxu2 %vm4174_vm4, %v4145_v44  ;;  %vm1716_vm15 = vcmp.eq.s32.totalorder %v8092_v7, %v11891_v1  ;;  %vm3706_vm6 = vcmp.eq.s32.totalorder %v8092_v7, %v3412_v43  ;;  %vm694_vm2 = vcmp.eq.s32.totalorder %v8092_v7, %v11904_v18 }
 0x5cb   :  { %6190 = vmatmul.msk.f32.gmra.mxu1 %vm4174_vm4, %v4087_v59  ;;  %6248 = vmatmul.msk.f32.gmra.mxu3 %vm4174_vm4, %v4145_v44  ;;  %5386 = vst [vmem:[#allocation7 + $0xc8] sm:$0xff] %v5053_v16  ;;  %v2099_v44 = vadd.f32 %v5738_v20, %v5610_v19  ;;  %v5994_v59 = vsel %vm3763_vm12, 1.0, %v6607_v36  ;;  %v3065_v16 = vadd.f32 %v5808_v46, %v2041_v21  ;;  %v5739_v45 = vsel %vm1716_vm15, 1.0, %v6607_v36  ;;  %v11896_v20 = vld [vmem:[#allocation94_spill] sm:$0xff]  ;;  %v11898_v19 = vld [vmem:[#allocation97_spill] sm:$0xff] }
 0x5cc   :  { %vm1659_vm7 = vcmp.eq.s32.totalorder %v8092_v7, %v11896_v20  ;;  %vm635_vm9 = vcmp.eq.s32.totalorder %v8092_v7, %v11898_v19  ;;  %v11899_v46 = vld [vmem:[#allocation189_spill] sm:$0xff]  ;;  %vm2741_vm12 = vcmp.eq.s32.totalorder %v8092_v7, %v8054_v38  ;;  %vm1660_vm15 = vcmp.eq.s32.totalorder %v8092_v7, %v11901_v5  ;;  %v11902_v38 = vld [vmem:[#allocation235_spill] sm:$0xff] }
 0x5cd   :  { %v4825_v2 = vpop.f32.mrf.mxu2  ;;  %v3123_v37 = vadd.f32 %v5866_v51, %v2099_v44  ;;  %vm693_vm10 = vcmp.eq.s32.totalorder %v8092_v7, %v11899_v46  ;;  %v11900_v51 = vld [vmem:[#allocation307_spill] sm:$0xff]  ;;  %v5682_v1 = vsel %vm1659_vm7, 1.0, %v6607_v36  ;;  %v5554_v41 = vsel %vm635_vm9, 1.0, %v6607_v36 }
 0x5ce   :  { %v5226_v52 = vpop.f32.mrf.mxu3  ;;  %vm2683_vm11 = vcmp.eq.s32.totalorder %v8092_v7, %v11900_v51  ;;  %v5612_v61 = vsel %vm693_vm10, 1.0, %v6607_v36  ;;  %v5868_v43 = vsel %vm2741_vm12, 1.0, %v6607_v36  ;;  %vm1718_vm0 = vcmp.eq.s32.totalorder %v8092_v7, %v11902_v38 }
 0x5cf   :  { %v5227_v48 = vadd.f32 %v5226_v52, %v4825_v2  ;;  %v4654_v13 = vpop.f32.mrf.mxu0  ;;  %v4147_v63 = vadd.f32 %v5994_v59, %v3123_v37  ;;  %v4089_v2 = vadd.f32 %v5936_v17, %v3065_v16  ;;  %v5867_v52 = vsel %vm2740_vm3, 1.0, %v6607_v36 }
 0x5d0   :  { %v5055_v39 = vpop.f32.mrf.mxu1  ;;  %v5810_v33 = vsel %vm2683_vm11, 1.0, %v6607_v36  ;;  %v5683_v20 = vsel %vm1660_vm15, 1.0, %v6607_v36  ;;  %v5613_v46 = vsel %vm694_vm2, 1.0, %v6607_v36 }
 0x5d1   :  { %5444 = vst [vmem:[#allocation7 + $0x298] sm:$0xff] %v5227_v48  ;;  %v5056_v14 = vadd.f32 %v5055_v39, %v4654_v13  ;;  %v5937_v48 = vsel %vm3706_vm6, 1.0, %v6607_v36  ;;  %v9965_v13 = vpop.permute.xlu0 %3606  ;;  %v11897_v39 = vld [vmem:[#allocation242_spill] sm:$0xff]  ;;  %v3415_v21 = vpop.permute.xlu1 %3414  ;;  %vm3766_vm6 = vcmp.eq.s32.totalorder %v8092_v7, %v9755_v4 }
 0x5d2   :  { %6063 = vmatmul.msk.f32.gmra.mxu0 %vm4174_vm4, %v4088_v0  ;;  %6121 = vmatmul.msk.f32.gmra.mxu2 %vm4174_vm4, %v4146_v40  ;;  %vm1717_vm8 = vcmp.eq.s32.totalorder %v8092_v7, %v11897_v39  ;;  %vm3707_vm14 = vcmp.eq.s32.totalorder %v8092_v7, %v3415_v21  ;;  %v5741_v39 = vsel %vm1718_vm0, 1.0, %v6607_v36 }
 0x5d3   :  { %6191 = vmatmul.msk.f32.gmra.mxu1 %vm4174_vm4, %v4088_v0  ;;  %6249 = vmatmul.msk.f32.gmra.mxu3 %vm4174_vm4, %v4146_v40  ;;  %5387 = vst [vmem:[#allocation7 + $0xd0] sm:$0xff] %v5056_v14  ;;  %v2100_v40 = vadd.f32 %v5739_v45, %v5611_v31  ;;  %v5995_v0 = vsel %vm3764_vm5, 1.0, %v6607_v36  ;;  %v3066_v14 = vadd.f32 %v5809_v3, %v2042_v29  ;;  %v5740_v16 = vsel %vm1717_vm8, 1.0, %v6607_v36  ;;  %v11905_v31 = vld [vmem:[#allocation316_spill] sm:$0xff] }
 0x5d4   :  { %v2101_v25 = vadd.f32 %v5740_v16, %v5612_v61  ;;  %vm2684_vm3 = vcmp.eq.s32.totalorder %v8092_v7, %v11905_v31  ;;  %v11906_v29 = vld [vmem:[#allocation356_spill] sm:$0xff]  ;;  %v11908_v16 = vld [vmem:[#allocation243_spill] sm:$0xff]  ;;  %v11910_v61 = vld [vmem:[#allocation193_spill] sm:$0xff] }
 0x5d5   :  { %v4828_v50 = vpop.f32.mrf.mxu2  ;;  %v3124_v58 = vadd.f32 %v5867_v52, %v2100_v40  ;;  %v4090_v17 = vadd.f32 %v5937_v48, %v3066_v14  ;;  %vm2742_vm5 = vcmp.eq.s32.totalorder %v8092_v7, %v11906_v29  ;;  %v5811_v4 = vsel %vm2684_vm3, 1.0, %v6607_v36 }
 0x5d6   :  { %v5229_v26 = vpop.f32.mrf.mxu3  ;;  %v5869_v51 = vsel %vm2742_vm5, 1.0, %v6607_v36  ;;  %vm1719_vm9 = vcmp.eq.s32.totalorder %v8092_v7, %v11908_v16  ;;  %vm695_vm11 = vcmp.eq.s32.totalorder %v8092_v7, %v11910_v61 }
 0x5d7   :  { %v5230_v6 = vadd.f32 %v5229_v26, %v4828_v50  ;;  %v4657_v55 = vpop.f32.mrf.mxu0  ;;  %v4148_v59 = vadd.f32 %v5995_v0, %v3124_v58  ;;  %v2043_v26 = vadd.f32 %v5682_v1, %v5554_v41  ;;  %v11907_v1 = vld [vmem:[#allocation74_spill] sm:$0xff]  ;;  %v11909_v41 = vld [vmem:[#allocation77_spill] sm:$0xff]  ;;  %v5614_v31 = vsel %vm695_vm11, 1.0, %v6607_v36 }
 0x5d8   :  { %v5058_v11 = vpop.f32.mrf.mxu1  ;;  %vm1661_vm8 = vcmp.eq.s32.totalorder %v8092_v7, %v11907_v1  ;;  %vm637_vm10 = vcmp.eq.s32.totalorder %v8092_v7, %v11909_v41 }
 0x5d9   :  { %5445 = vst [vmem:[#allocation7 + $0x2a0] sm:$0xff] %v5230_v6  ;;  %v5059_v10 = vadd.f32 %v5058_v11, %v4657_v55  ;;  %v5938_v6 = vsel %vm3707_vm14, 1.0, %v6607_v36  ;;  %v3067_v45 = vadd.f32 %v5810_v33, %v2043_v26  ;;  %v3125_v11 = vadd.f32 %v5868_v43, %v2101_v25  ;;  %v3418_v3 = vpop.permute.xlu0 %3417  ;;  %v11911_v33 = vld [vmem:[#allocation304_spill] sm:$0xff] }
 0x5da   :  { %6064 = vmatmul.msk.f32.gmra.mxu0 %vm4174_vm4, %v4089_v2  ;;  %6122 = vmatmul.msk.f32.gmra.mxu2 %vm4174_vm4, %v4147_v63  ;;  %vm3708_vm7 = vcmp.eq.s32.totalorder %v8092_v7, %v3418_v3  ;;  %vm2685_vm12 = vcmp.eq.s32.totalorder %v8092_v7, %v11911_v33  ;;  %v11912_v25 = vld [vmem:[#allocation360_spill] sm:$0xff]  ;;  %v5684_v38 = vsel %vm1661_vm8, 1.0, %v6607_v36  ;;  %vm3767_vm14 = vcmp.eq.s32.totalorder %v8092_v7, %v9799_v23 }
 0x5db   :  { %6192 = vmatmul.msk.f32.gmra.mxu1 %vm4174_vm4, %v4089_v2  ;;  %6250 = vmatmul.msk.f32.gmra.mxu3 %vm4174_vm4, %v4147_v63  ;;  %5388 = vst [vmem:[#allocation7 + $0xd8] sm:$0xff] %v5059_v10  ;;  %v5996_v63 = vsel %vm3765_vm13, 1.0, %v6607_v36  ;;  %v10005_v2 = vpop.permute.xlu2 %3609  ;;  %v11903_v10 = vld [vmem:[#allocation96_spill] sm:$0xff]  ;;  %v4091_v0 = vadd.f32 %v5938_v6, %v3067_v45  ;;  %vm2743_vm13 = vcmp.eq.s32.totalorder %v8092_v7, %v11912_v25  ;;  %v5742_v45 = vsel %vm1719_vm9, 1.0, %v6607_v36 }
 0x5dc   :  { %vm636_vm1 = vcmp.eq.s32.totalorder %v8092_v7, %v11903_v10  ;;  %v4149_v40 = vadd.f32 %v5996_v63, %v3125_v11  ;;  %v5556_v18 = vsel %vm637_vm10, 1.0, %v6607_v36  ;;  %v5812_v23 = vsel %vm2685_vm12, 1.0, %v6607_v36 }
 0x5dd   :  { %v4831_v35 = vpop.f32.mrf.mxu2  ;;  %v5555_v19 = vsel %vm636_vm1, 1.0, %v6607_v36  ;;  %v5870_v3 = vsel %vm2743_vm13, 1.0, %v6607_v36  ;;  %v2103_v29 = vadd.f32 %v5742_v45, %v5614_v31 }
 0x5de   :  { %v5232_v44 = vpop.f32.mrf.mxu3  ;;  %v2044_v21 = vadd.f32 %v5683_v20, %v5555_v19  ;;  %v11913_v20 = vld [vmem:[#allocation100_spill] sm:$0xff]  ;;  %v11915_v19 = vld [vmem:[#allocation103_spill] sm:$0xff] }
 0x5df   :  { %v5233_v50 = vadd.f32 %v5232_v44, %v4831_v35  ;;  %v4660_v49 = vpop.f32.mrf.mxu0  ;;  %v2102_v44 = vadd.f32 %v5741_v39, %v5613_v46  ;;  %vm1662_vm0 = vcmp.eq.s32.totalorder %v8092_v7, %v11913_v20  ;;  %v11914_v39 = vld [vmem:[#allocation245_spill] sm:$0xff]  ;;  %vm638_vm2 = vcmp.eq.s32.totalorder %v8092_v7, %v11915_v19  ;;  %v11916_v46 = vld [vmem:[#allocation192_spill] sm:$0xff] }
 0x5e0   :  { %v5061_v37 = vpop.f32.mrf.mxu1  ;;  %vm1720_vm1 = vcmp.eq.s32.totalorder %v8092_v7, %v11914_v39  ;;  %vm696_vm3 = vcmp.eq.s32.totalorder %v8092_v7, %v11916_v46  ;;  %v5685_v1 = vsel %vm1662_vm0, 1.0, %v6607_v36  ;;  %v5557_v41 = vsel %vm638_vm2, 1.0, %v6607_v36 }
 0x5e1   :  { %5446 = vst [vmem:[#allocation7 + $0x2a8] sm:$0xff] %v5233_v50  ;;  %v5062_v27 = vadd.f32 %v5061_v37, %v4660_v49  ;;  %v10049_v50 = vpop.permute.xlu1 %3612  ;;  %v3068_v37 = vadd.f32 %v5811_v4, %v2044_v21  ;;  %v11917_v4 = vld [vmem:[#allocation312_spill] sm:$0xff]  ;;  %v5743_v16 = vsel %vm1720_vm1, 1.0, %v6607_v36  ;;  %v5615_v61 = vsel %vm696_vm3, 1.0, %v6607_v36 }
 0x5e2   :  { %6065 = vmatmul.msk.f32.gmra.mxu0 %vm4174_vm4, %v4090_v17  ;;  %6123 = vmatmul.msk.f32.gmra.mxu2 %vm4174_vm4, %v4148_v59  ;;  %vm2686_vm5 = vcmp.eq.s32.totalorder %v8092_v7, %v11917_v4 }
 0x5e3   :  { %6193 = vmatmul.msk.f32.gmra.mxu1 %vm4174_vm4, %v4090_v17  ;;  %6251 = vmatmul.msk.f32.gmra.mxu3 %vm4174_vm4, %v4148_v59  ;;  %5389 = vst [vmem:[#allocation7 + $0xe0] sm:$0xff] %v5062_v27  ;;  %v5997_v59 = vsel %vm3766_vm6, 1.0, %v6607_v36  ;;  %v5939_v17 = vsel %vm3708_vm7, 1.0, %v6607_v36  ;;  %v3126_v27 = vadd.f32 %v5869_v51, %v2102_v44  ;;  %v3421_v43 = vpop.permute.xlu2 %3420  ;;  %vm2744_vm6 = vcmp.eq.s32.totalorder %v8092_v7, %v8063_v12  ;;  %v11919_v12 = vld [vmem:[#allocation238_spill] sm:$0xff] }
 0x5e4   :  { %v4092_v6 = vadd.f32 %v5939_v17, %v3068_v37  ;;  %vm3709_vm15 = vcmp.eq.s32.totalorder %v8092_v7, %v3421_v43  ;;  %vm3768_vm7 = vcmp.eq.s32.totalorder %v8092_v7, %v9840_v62  ;;  %v5813_v62 = vsel %vm2686_vm5, 1.0, %v6607_v36 }
 0x5e5   :  { %v4834_v55 = vpop.f32.mrf.mxu2  ;;  %v4150_v63 = vadd.f32 %v5997_v59, %v3126_v27  ;;  %v5871_v33 = vsel %vm2744_vm6, 1.0, %v6607_v36  ;;  %v2046_v43 = vadd.f32 %v5685_v1, %v5557_v41  ;;  %v5999_v25 = vsel %vm3768_vm7, 1.0, %v6607_v36  ;;  %v11925_v1 = vld [vmem:[#allocation246_spill] sm:$0xff]  ;;  %v11927_v41 = vld [vmem:[#allocation196_spill] sm:$0xff] }
 0x5e6   :  { %v5235_v52 = vpop.f32.mrf.mxu3  ;;  %vm1721_vm10 = vcmp.eq.s32.totalorder %v8092_v7, %v11919_v12  ;;  %vm1722_vm2 = vcmp.eq.s32.totalorder %v8092_v7, %v11925_v1  ;;  %vm698_vm5 = vcmp.eq.s32.totalorder %v8092_v7, %v11927_v41 }
 0x5e7   :  { %v5236_v48 = vadd.f32 %v5235_v52, %v4834_v55  ;;  %v4663_v35 = vpop.f32.mrf.mxu0  ;;  %v2045_v52 = vadd.f32 %v5684_v38, %v5556_v18  ;;  %v3070_v38 = vadd.f32 %v5813_v62, %v2046_v43  ;;  %v11922_v18 = vld [vmem:[#allocation321_spill] sm:$0xff]  ;;  %v5744_v20 = vsel %vm1721_vm10, 1.0, %v6607_v36  ;;  %v11929_v43 = vld [vmem:[#allocation362_spill] sm:$0xff] }
 0x5e8   :  { %v5064_v14 = vpop.f32.mrf.mxu1  ;;  %vm2687_vm13 = vcmp.eq.s32.totalorder %v8092_v7, %v11922_v18  ;;  %vm2746_vm7 = vcmp.eq.s32.totalorder %v8092_v7, %v11929_v43  ;;  %v5745_v12 = vsel %vm1722_vm2, 1.0, %v6607_v36 }
 0x5e9   :  { %5447 = vst [vmem:[#allocation7 + $0x2b0] sm:$0xff] %v5236_v48  ;;  %v5065_v58 = vadd.f32 %v5064_v14, %v4663_v35  ;;  %v10090_v48 = vpop.permute.xlu0 %3615  ;;  %v3069_v14 = vadd.f32 %v5812_v23, %v2045_v52  ;;  %v3424_v51 = vpop.permute.xlu1 %3423  ;;  %v5873_v18 = vsel %vm2746_vm7, 1.0, %v6607_v36 }
 0x5ea   :  { %6066 = vmatmul.msk.f32.gmra.mxu0 %vm4174_vm4, %v4091_v0  ;;  %6124 = vmatmul.msk.f32.gmra.mxu2 %vm4174_vm4, %v4149_v40  ;;  %vm3710_vm8 = vcmp.eq.s32.totalorder %v8092_v7, %v3424_v51 }
 0x5eb   :  { %6194 = vmatmul.msk.f32.gmra.mxu1 %vm4174_vm4, %v4091_v0  ;;  %6252 = vmatmul.msk.f32.gmra.mxu3 %vm4174_vm4, %v4149_v40  ;;  %5390 = vst [vmem:[#allocation7 + $0xe8] sm:$0xff] %v5065_v58  ;;  %v5998_v40 = vsel %vm3767_vm14, 1.0, %v6607_v36  ;;  %v5940_v0 = vsel %vm3709_vm15, 1.0, %v6607_v36  ;;  %v3127_v58 = vadd.f32 %v5870_v3, %v2103_v29  ;;  %v11923_v3 = vld [vmem:[#allocation358_spill] sm:$0xff]  ;;  %vm3769_vm15 = vcmp.eq.s32.totalorder %v8092_v7, %v9880_v30 }
 0x5ec   :  { %v4093_v59 = vadd.f32 %v5940_v0, %v3069_v14  ;;  %vm2745_vm14 = vcmp.eq.s32.totalorder %v8092_v7, %v11923_v3  ;;  %v5814_v30 = vsel %vm2687_vm13, 1.0, %v6607_v36 }
 0x5ed   :  { %v4837_v49 = vpop.f32.mrf.mxu2  ;;  %v4151_v44 = vadd.f32 %v5998_v40, %v3127_v58  ;;  %v5872_v46 = vsel %vm2745_vm14, 1.0, %v6607_v36 }
 0x5ee   :  { %v5238_v26 = vpop.f32.mrf.mxu3 }
 0x5ef   :  { %v5239_v55 = vadd.f32 %v5238_v26, %v4837_v49  ;;  %v4666_v5 = vpop.f32.mrf.mxu0  ;;  %v2104_v26 = vadd.f32 %v5743_v16, %v5615_v61  ;;  %v11928_v61 = vld [vmem:[#allocation308_spill] sm:$0xff] }
 0x5f0   :  { %v5067_v11 = vpop.f32.mrf.mxu1  ;;  %vm2688_vm6 = vcmp.eq.s32.totalorder %v8092_v7, %v11928_v61 }
 0x5f1   :  { %5448 = vst [vmem:[#allocation7 + $0x2b8] sm:$0xff] %v5239_v55  ;;  %v5068_v10 = vadd.f32 %v5067_v11, %v4666_v5  ;;  %v11918_v5 = vld [vmem:[#allocation99_spill] sm:$0xff]  ;;  %v3128_v45 = vadd.f32 %v5871_v33, %v2104_v26  ;;  %v11920_v11 = vld [vmem:[#allocation102_spill] sm:$0xff]  ;;  %v3427_v31 = vpop.permute.xlu0 %3426 }
 0x5f2   :  { %6067 = vmatmul.msk.f32.gmra.mxu0 %vm4174_vm4, %v4092_v6  ;;  %6125 = vmatmul.msk.f32.gmra.mxu2 %vm4174_vm4, %v4150_v63  ;;  %vm1663_vm9 = vcmp.eq.s32.totalorder %v8092_v7, %v11918_v5  ;;  %vm639_vm11 = vcmp.eq.s32.totalorder %v8092_v7, %v11920_v11  ;;  %vm3711_vm0 = vcmp.eq.s32.totalorder %v8092_v7, %v3427_v31 }
 0x5f3   :  { %6195 = vmatmul.msk.f32.gmra.mxu1 %vm4174_vm4, %v4092_v6  ;;  %6253 = vmatmul.msk.f32.gmra.mxu3 %vm4174_vm4, %v4150_v63  ;;  %5391 = vst [vmem:[#allocation7 + $0xf0] sm:$0xff] %v5068_v10  ;;  %v10130_v63 = vpop.permute.xlu2 %3618  ;;  %v5941_v6 = vsel %vm3710_vm8, 1.0, %v6607_v36  ;;  %v11921_v10 = vld [vmem:[#allocation182_spill] sm:$0xff]  ;;  %v4152_v52 = vadd.f32 %v5999_v25, %v3128_v45  ;;  %v5558_v58 = vsel %vm639_vm11, 1.0, %v6607_v36  ;;  %vm3770_vm8 = vcmp.eq.s32.totalorder %v8092_v7, %v9924_v15 }
 0x5f4   :  { %vm697_vm12 = vcmp.eq.s32.totalorder %v8092_v7, %v11921_v10  ;;  %v4094_v29 = vadd.f32 %v5941_v6, %v3070_v38  ;;  %v5617_v10 = vsel %vm698_vm5, 1.0, %v6607_v36  ;;  %v5815_v15 = vsel %vm2688_vm6, 1.0, %v6607_v36 }
 0x5f5   :  { %v4840_v35 = vpop.f32.mrf.mxu2  ;;  %v5616_v19 = vsel %vm697_vm12, 1.0, %v6607_v36  ;;  %v6001_v3 = vsel %vm3770_vm8, 1.0, %v6607_v36 }
 0x5f6   :  { %v5241_v21 = vpop.f32.mrf.mxu3  ;;  %v2105_v51 = vadd.f32 %v5744_v20, %v5616_v19  ;;  %v11934_v19 = vld [vmem:[#allocation317_spill] sm:$0xff] }
 0x5f7   :  { %v5242_v17 = vadd.f32 %v5241_v21, %v4840_v35  ;;  %v4669_v49 = vpop.f32.mrf.mxu0  ;;  %v5686_v35 = vsel %vm1663_vm9, 1.0, %v6607_v36  ;;  %v6000_v21 = vsel %vm3769_vm15, 1.0, %v6607_v36  ;;  %vm2689_vm14 = vcmp.eq.s32.totalorder %v8092_v7, %v11934_v19 }
 0x5f8   :  { %v5070_v37 = vpop.f32.mrf.mxu1  ;;  %v2047_v4 = vadd.f32 %v5686_v35, %v5558_v58  ;;  %v11931_v35 = vld [vmem:[#allocation248_spill] sm:$0xff]  ;;  %v11933_v58 = vld [vmem:[#allocation195_spill] sm:$0xff]  ;;  %vm2747_vm15 = vcmp.eq.s32.totalorder %v8092_v7, %v8072_v28  ;;  %v11936_v28 = vld [vmem:[#allocation241_spill] sm:$0xff] }
 0x5f9   :  { %5449 = vst [vmem:[#allocation7 + $0x2c0] sm:$0xff] %v5242_v17  ;;  %v5071_v27 = vadd.f32 %v5070_v37, %v4669_v49  ;;  %v11924_v49 = vld [vmem:[#allocation80_spill] sm:$0xff]  ;;  %v3129_v37 = vadd.f32 %v5872_v46, %v2105_v51  ;;  %vm1723_vm11 = vcmp.eq.s32.totalorder %v8092_v7, %v11931_v35  ;;  %vm699_vm13 = vcmp.eq.s32.totalorder %v8092_v7, %v11933_v58 }
 0x5fa   :  { %6068 = vmatmul.msk.f32.gmra.mxu0 %vm4174_vm4, %v4093_v59  ;;  %6126 = vmatmul.msk.f32.gmra.mxu2 %vm4174_vm4, %v4151_v44  ;;  %vm1664_vm1 = vcmp.eq.s32.totalorder %v8092_v7, %v11924_v49  ;;  %v3071_v16 = vadd.f32 %v5814_v30, %v2047_v4  ;;  %v5746_v49 = vsel %vm1723_vm11, 1.0, %v6607_v36  ;;  %v5874_v41 = vsel %vm2747_vm15, 1.0, %v6607_v36 }
 0x5fb   :  { %6196 = vmatmul.msk.f32.gmra.mxu1 %vm4174_vm4, %v4093_v59  ;;  %6254 = vmatmul.msk.f32.gmra.mxu3 %vm4174_vm4, %v4151_v44  ;;  %5392 = vst [vmem:[#allocation7 + $0xf8] sm:$0xff] %v5071_v27  ;;  %v5942_v44 = vsel %vm3711_vm0, 1.0, %v6607_v36  ;;  %v10174_v59 = vpop.permute.xlu1 %3621  ;;  %v11926_v27 = vld [vmem:[#allocation83_spill] sm:$0xff]  ;;  %v3430_v62 = vpop.permute.xlu2 %3429  ;;  %v4153_v26 = vadd.f32 %v6000_v21, %v3129_v37  ;;  %v5687_v5 = vsel %vm1664_vm1, 1.0, %v6607_v36  ;;  %vm3771_vm0 = vcmp.eq.s32.totalorder %v8092_v7, %v9965_v13 }
 0x5fc   :  { %vm640_vm3 = vcmp.eq.s32.totalorder %v8092_v7, %v11926_v27  ;;  %v4095_v25 = vadd.f32 %v5942_v44, %v3071_v16  ;;  %vm3712_vm9 = vcmp.eq.s32.totalorder %v8092_v7, %v3430_v62  ;;  %v5618_v27 = vsel %vm699_vm13, 1.0, %v6607_v36 }
 0x5fd   :  { %v4843_v55 = vpop.f32.mrf.mxu2  ;;  %v5559_v11 = vsel %vm640_vm3, 1.0, %v6607_v36  ;;  %v5816_v13 = vsel %vm2689_vm14, 1.0, %v6607_v36  ;;  %v2107_v62 = vadd.f32 %v5746_v49, %v5618_v27  ;;  %vm1724_vm3 = vcmp.eq.s32.totalorder %v8092_v7, %v11936_v28 }
 0x5fe   :  { %v5244_v23 = vpop.f32.mrf.mxu3  ;;  %v2048_v31 = vadd.f32 %v5687_v5, %v5559_v11 }
 0x5ff   :  { %v5245_v40 = vadd.f32 %v5244_v23, %v4843_v55  ;;  %v4672_v0 = vpop.f32.mrf.mxu0  ;;  %v2106_v23 = vadd.f32 %v5745_v12, %v5617_v10  ;;  %v3131_v5 = vadd.f32 %v5874_v41, %v2107_v62  ;;  %v11937_v12 = vld [vmem:[#allocation108_spill] sm:$0xff] }
 0x600   :  { %v5073_v39 = vpop.f32.mrf.mxu1  ;;  %v3072_v20 = vadd.f32 %v5815_v15, %v2048_v31  ;;  %vm642_vm5 = vcmp.eq.s32.totalorder %v8092_v7, %v11937_v12  ;;  %v11940_v15 = vld [vmem:[#allocation361_spill] sm:$0xff] }
 0x601   :  { %5450 = vst [vmem:[#allocation7 + $0x2c8] sm:$0xff] %v5245_v40  ;;  %v5074_v14 = vadd.f32 %v5073_v39, %v4672_v0  ;;  %v11930_v0 = vld [vmem:[#allocation106_spill] sm:$0xff]  ;;  %v3130_v39 = vadd.f32 %v5873_v18, %v2106_v23  ;;  %vm2748_vm8 = vcmp.eq.s32.totalorder %v8092_v7, %v11940_v15 }
 0x602   :  { %6069 = vmatmul.msk.f32.gmra.mxu0 %vm4174_vm4, %v4094_v29  ;;  %6127 = vmatmul.msk.f32.gmra.mxu2 %vm4174_vm4, %v4152_v52  ;;  %vm1665_vm10 = vcmp.eq.s32.totalorder %v8092_v7, %v11930_v0 }
 0x603   :  { %6197 = vmatmul.msk.f32.gmra.mxu1 %vm4174_vm4, %v4094_v29  ;;  %6255 = vmatmul.msk.f32.gmra.mxu3 %vm4174_vm4, %v4152_v52  ;;  %5393 = vst [vmem:[#allocation7 + $0x100] sm:$0xff] %v5074_v14  ;;  %v5943_v52 = vsel %vm3712_vm9, 1.0, %v6607_v36  ;;  %v10215_v29 = vpop.permute.xlu0 %3624  ;;  %v11932_v14 = vld [vmem:[#allocation109_spill] sm:$0xff]  ;;  %v3433_v30 = vpop.permute.xlu1 %3432  ;;  %v4154_v4 = vadd.f32 %v6001_v3, %v3130_v39  ;;  %vm3772_vm9 = vcmp.eq.s32.totalorder %v8092_v7, %v10005_v2 }
 0x604   :  { %vm641_vm12 = vcmp.eq.s32.totalorder %v8092_v7, %v11932_v14  ;;  %v4096_v51 = vadd.f32 %v5943_v52, %v3072_v20  ;;  %vm3713_vm1 = vcmp.eq.s32.totalorder %v8092_v7, %v3433_v30  ;;  %v10255_v43 = vpop.permute.xlu2 %3627  ;;  %v5561_v20 = vsel %vm642_vm5, 1.0, %v6607_v36 }
 0x605   :  { %v4846_v17 = vpop.f32.mrf.mxu2  ;;  %v5560_v37 = vsel %vm641_vm12, 1.0, %v6607_v36  ;;  %v5875_v14 = vsel %vm2748_vm8, 1.0, %v6607_v36  ;;  %v6003_v30 = vsel %vm3772_vm9, 1.0, %v6607_v36  ;;  %vm2750_vm9 = vcmp.eq.s32.totalorder %v8092_v7, %v8081_v47  ;;  %v11952_v47 = vld [vmem:[#allocation244_spill] sm:$0xff] }
 0x606   :  { %v5247_v33 = vpop.f32.mrf.mxu3 }
 0x607   :  { %v5248_v6 = vadd.f32 %v5247_v33, %v4846_v17  ;;  %v4675_v55 = vpop.f32.mrf.mxu0  ;;  %v5688_v17 = vsel %vm1665_vm10, 1.0, %v6607_v36  ;;  %v6002_v33 = vsel %vm3771_vm0, 1.0, %v6607_v36  ;;  %vm2749_vm0 = vcmp.eq.s32.totalorder %v8092_v7, %v8065_v9 }
 0x608   :  { %v5076_v38 = vpop.f32.mrf.mxu1  ;;  %v2049_v61 = vadd.f32 %v5688_v17, %v5560_v37  ;;  %v4155_v18 = vadd.f32 %v6002_v33, %v3131_v5  ;;  %v11945_v37 = vld [vmem:[#allocation313_spill] sm:$0xff]  ;;  %v5876_v12 = vsel %vm2749_vm0, 1.0, %v6607_v36 }
 0x609   :  { %5451 = vst [vmem:[#allocation7 + $0x2d0] sm:$0xff] %v5248_v6  ;;  %v5077_v45 = vadd.f32 %v5076_v38, %v4675_v55  ;;  %v11935_v6 = vld [vmem:[#allocation105_spill] sm:$0xff]  ;;  %vm2691_vm15 = vcmp.eq.s32.totalorder %v8092_v7, %v11945_v37 }
 0x60a   :  { %6070 = vmatmul.msk.f32.gmra.mxu0 %vm4174_vm4, %v4095_v25  ;;  %6128 = vmatmul.msk.f32.gmra.mxu2 %vm4174_vm4, %v4153_v26  ;;  %vm1666_vm2 = vcmp.eq.s32.totalorder %v8092_v7, %v11935_v6  ;;  %v3073_v55 = vadd.f32 %v5816_v13, %v2049_v61  ;;  %v11938_v38 = vld [vmem:[#allocation185_spill] sm:$0xff] }
 0x60b   :  { %6198 = vmatmul.msk.f32.gmra.mxu1 %vm4174_vm4, %v4095_v25  ;;  %6256 = vmatmul.msk.f32.gmra.mxu3 %vm4174_vm4, %v4153_v26  ;;  %5394 = vst [vmem:[#allocation7 + $0x108] sm:$0xff] %v5077_v45  ;;  %v5944_v26 = vsel %vm3713_vm1, 1.0, %v6607_v36  ;;  %vm700_vm6 = vcmp.eq.s32.totalorder %v8092_v7, %v11938_v38  ;;  %v11939_v45 = vld [vmem:[#allocation326_spill] sm:$0xff]  ;;  %v3436_v11 = vpop.permute.xlu0 %3435  ;;  %v5689_v52 = vsel %vm1666_vm2, 1.0, %v6607_v36  ;;  %vm3773_vm1 = vcmp.eq.s32.totalorder %v8092_v7, %v10049_v50 }
 0x60c   :  { %vm2690_vm7 = vcmp.eq.s32.totalorder %v8092_v7, %v11939_v45  ;;  %v4097_v31 = vadd.f32 %v5944_v26, %v3073_v55  ;;  %vm3714_vm10 = vcmp.eq.s32.totalorder %v8092_v7, %v3436_v11  ;;  %v5619_v39 = vsel %vm700_vm6, 1.0, %v6607_v36  ;;  %v3439_v27 = vpop.permute.xlu2 %3438 }
 0x60d   :  { %v4849_v40 = vpop.f32.mrf.mxu2  ;;  %v5817_v2 = vsel %vm2690_vm7, 1.0, %v6607_v36  ;;  %v2050_v58 = vadd.f32 %v5689_v52, %v5561_v20  ;;  %vm3715_vm2 = vcmp.eq.s32.totalorder %v8092_v7, %v3439_v27  ;;  %v5818_v50 = vsel %vm2691_vm15, 1.0, %v6607_v36  ;;  %v11948_v52 = vld [vmem:[#allocation115_spill] sm:$0xff] }
 0x60e   :  { %v5250_v46 = vpop.f32.mrf.mxu3  ;;  %v6004_v11 = vsel %vm3773_vm1, 1.0, %v6607_v36  ;;  %vm644_vm6 = vcmp.eq.s32.totalorder %v8092_v7, %v11948_v52 }
 0x60f   :  { %v5251_v21 = vadd.f32 %v5250_v46, %v4849_v40  ;;  %v4678_v44 = vpop.f32.mrf.mxu0  ;;  %v5747_v40 = vsel %vm1724_vm3, 1.0, %v6607_v36  ;;  %v5945_v46 = vsel %vm3714_vm10, 1.0, %v6607_v36  ;;  %v3074_v17 = vadd.f32 %v5817_v2, %v2050_v58 }
 0x610   :  { %v5079_v1 = vpop.f32.mrf.mxu1  ;;  %v2108_v19 = vadd.f32 %v5747_v40, %v5619_v39  ;;  %v11949_v40 = vld [vmem:[#allocation198_spill] sm:$0xff]  ;;  %vm3774_vm10 = vcmp.eq.s32.totalorder %v8092_v7, %v10090_v48 }
 0x611   :  { %5452 = vst [vmem:[#allocation7 + $0x2d8] sm:$0xff] %v5251_v21  ;;  %v5080_v16 = vadd.f32 %v5079_v1, %v4678_v44  ;;  %v11941_v21 = vld [vmem:[#allocation86_spill] sm:$0xff]  ;;  %v11942_v44 = vld [vmem:[#allocation249_spill] sm:$0xff]  ;;  %v4098_v61 = vadd.f32 %v5945_v46, %v3074_v17  ;;  %vm702_vm7 = vcmp.eq.s32.totalorder %v8092_v7, %v11949_v40  ;;  %v5877_v17 = vsel %vm2750_vm9, 1.0, %v6607_v36 }
 0x612   :  { %6071 = vmatmul.msk.f32.gmra.mxu0 %vm4174_vm4, %v4096_v51  ;;  %6129 = vmatmul.msk.f32.gmra.mxu2 %vm4174_vm4, %v4154_v4  ;;  %vm1667_vm11 = vcmp.eq.s32.totalorder %v8092_v7, %v11941_v21  ;;  %vm1725_vm12 = vcmp.eq.s32.totalorder %v8092_v7, %v11942_v44  ;;  %v3132_v49 = vadd.f32 %v5875_v14, %v2108_v19  ;;  %v11943_v1 = vld [vmem:[#allocation89_spill] sm:$0xff]  ;;  %v5563_v21 = vsel %vm644_vm6, 1.0, %v6607_v36 }
 0x613   :  { %6199 = vmatmul.msk.f32.gmra.mxu1 %vm4174_vm4, %v4096_v51  ;;  %6257 = vmatmul.msk.f32.gmra.mxu3 %vm4174_vm4, %v4154_v4  ;;  %5395 = vst [vmem:[#allocation7 + $0x110] sm:$0xff] %v5080_v16  ;;  %v10299_v4 = vpop.permute.xlu1 %3630  ;;  %vm643_vm13 = vcmp.eq.s32.totalorder %v8092_v7, %v11943_v1  ;;  %v11944_v16 = vld [vmem:[#allocation199_spill] sm:$0xff]  ;;  %v5690_v26 = vsel %vm1667_vm11, 1.0, %v6607_v36  ;;  %v10340_v15 = vpop.permute.xlu0 %3633  ;;  %v5621_v44 = vsel %vm702_vm7, 1.0, %v6607_v36 }
 0x614   :  { %vm701_vm14 = vcmp.eq.s32.totalorder %v8092_v7, %v11944_v16  ;;  %v4156_v41 = vadd.f32 %v6003_v30, %v3132_v49  ;;  %v5562_v55 = vsel %vm643_vm13, 1.0, %v6607_v36  ;;  %v6005_v16 = vsel %vm3774_vm10, 1.0, %v6607_v36  ;;  %v10380_v37 = vpop.permute.xlu2 %3636 }
 0x615   :  { %v4852_v25 = vpop.f32.mrf.mxu2  ;;  %v5620_v5 = vsel %vm701_vm14, 1.0, %v6607_v36  ;;  %v2051_v38 = vadd.f32 %v5690_v26, %v5562_v55  ;;  %vm1727_vm13 = vcmp.eq.s32.totalorder %v8092_v7, %v11952_v47  ;;  %v11954_v26 = vld [vmem:[#allocation188_spill] sm:$0xff]  ;;  %v11956_v55 = vld [vmem:[#allocation363_spill] sm:$0xff]  ;;  %vm2752_vm10 = vcmp.eq.s32.totalorder %v8092_v7, %v8074_v24 }
 0x616   :  { %v5253_v10 = vpop.f32.mrf.mxu3  ;;  %vm703_vm15 = vcmp.eq.s32.totalorder %v8092_v7, %v11954_v26  ;;  %vm2751_vm1 = vcmp.eq.s32.totalorder %v8092_v7, %v11956_v55  ;;  %v11962_v55 = vld [vmem:[#allocation118_spill] sm:$0xff] }
 0x617   :  { %v5254_v23 = vadd.f32 %v5253_v10, %v4852_v25  ;;  %v4681_v3 = vpop.f32.mrf.mxu0  ;;  %v5748_v25 = vsel %vm1725_vm12, 1.0, %v6607_v36  ;;  %v5946_v10 = vsel %vm3715_vm2, 1.0, %v6607_v36  ;;  %v3075_v9 = vadd.f32 %v5818_v50, %v2051_v38 }
 0x618   :  { %v5082_v0 = vpop.f32.mrf.mxu1  ;;  %v2109_v45 = vadd.f32 %v5748_v25, %v5620_v5  ;;  %v11955_v25 = vld [vmem:[#allocation330_spill] sm:$0xff]  ;;  %vm3775_vm2 = vcmp.eq.s32.totalorder %v8092_v7, %v10130_v63 }
 0x619   :  { %5453 = vst [vmem:[#allocation7 + $0x2e0] sm:$0xff] %v5254_v23  ;;  %v5083_v35 = vadd.f32 %v5082_v0, %v4681_v3  ;;  %v11947_v23 = vld [vmem:[#allocation251_spill] sm:$0xff]  ;;  %v11950_v0 = vld [vmem:[#allocation322_spill] sm:$0xff]  ;;  %v4099_v2 = vadd.f32 %v5946_v10, %v3075_v9  ;;  %vm2693_vm0 = vcmp.eq.s32.totalorder %v8092_v7, %v11955_v25  ;;  %v5878_v9 = vsel %vm2751_vm1, 1.0, %v6607_v36 }
 0x61a   :  { %6072 = vmatmul.msk.f32.gmra.mxu0 %vm4174_vm4, %v4097_v31  ;;  %6130 = vmatmul.msk.f32.gmra.mxu2 %vm4174_vm4, %v4155_v18  ;;  %vm1726_vm5 = vcmp.eq.s32.totalorder %v8092_v7, %v11947_v23  ;;  %v3133_v3 = vadd.f32 %v5876_v12, %v2109_v45  ;;  %vm2692_vm8 = vcmp.eq.s32.totalorder %v8092_v7, %v11950_v0  ;;  %v5622_v23 = vsel %vm703_vm15, 1.0, %v6607_v36 }
 0x61b   :  { %6200 = vmatmul.msk.f32.gmra.mxu1 %vm4174_vm4, %v4097_v31  ;;  %6258 = vmatmul.msk.f32.gmra.mxu3 %vm4174_vm4, %v4155_v18  ;;  %5396 = vst [vmem:[#allocation7 + $0x118] sm:$0xff] %v5083_v35  ;;  %v11946_v31 = vld [vmem:[#allocation112_spill] sm:$0xff]  ;;  %v3442_v35 = vpop.permute.xlu1 %3441  ;;  %v5749_v30 = vsel %vm1726_vm5, 1.0, %v6607_v36  ;;  %v5819_v48 = vsel %vm2692_vm8, 1.0, %v6607_v36  ;;  %v5820_v63 = vsel %vm2693_vm0, 1.0, %v6607_v36  ;;  %v6006_v40 = vsel %vm3775_vm2, 1.0, %v6607_v36 }
 0x61c   :  { %vm1668_vm3 = vcmp.eq.s32.totalorder %v8092_v7, %v11946_v31  ;;  %v4157_v39 = vadd.f32 %v6004_v11, %v3133_v3  ;;  %vm3716_vm11 = vcmp.eq.s32.totalorder %v8092_v7, %v3442_v35  ;;  %v2110_v1 = vadd.f32 %v5749_v30, %v5621_v44  ;;  %v11960_v30 = vld [vmem:[#allocation202_spill] sm:$0xff] }
 0x61d   :  { %v4855_v51 = vpop.f32.mrf.mxu2  ;;  %v5691_v19 = vsel %vm1668_vm3, 1.0, %v6607_v36  ;;  %v5947_v27 = vsel %vm3716_vm11, 1.0, %v6607_v36  ;;  %v5750_v11 = vsel %vm1727_vm13, 1.0, %v6607_v36  ;;  %vm704_vm8 = vcmp.eq.s32.totalorder %v8092_v7, %v11960_v30 }
 0x61e   :  { %v5256_v13 = vpop.f32.mrf.mxu3  ;;  %v2052_v49 = vadd.f32 %v5691_v19, %v5563_v21  ;;  %v2111_v52 = vadd.f32 %v5750_v11, %v5622_v23  ;;  %v11959_v19 = vld [vmem:[#allocation95_spill] sm:$0xff]  ;;  %vm3776_vm11 = vcmp.eq.s32.totalorder %v8092_v7, %v10174_v59  ;;  %v5623_v47 = vsel %vm704_vm8, 1.0, %v6607_v36 }
 0x61f   :  { %v5257_v62 = vadd.f32 %v5256_v13, %v4855_v51  ;;  %v4684_v33 = vpop.f32.mrf.mxu0  ;;  %vm646_vm7 = vcmp.eq.s32.totalorder %v8092_v7, %v11959_v19  ;;  %v6007_v26 = vsel %vm3776_vm11, 1.0, %v6607_v36  ;;  %vm1671_vm13 = vcmp.eq.s32.totalorder %v8092_v7, %v11962_v55 }
 0x620   :  { %v5085_v6 = vpop.f32.mrf.mxu1  ;;  %vm2753_vm2 = vcmp.eq.s32.totalorder %v8092_v7, %v8090_v56  ;;  %v11968_v56 = vld [vmem:[#allocation247_spill] sm:$0xff]  ;;  %vm2754_vm11 = vcmp.eq.s32.totalorder %v8092_v7, %v8067_v34 }
 0x621   :  { %5454 = vst [vmem:[#allocation7 + $0x2e8] sm:$0xff] %v5257_v62  ;;  %v5086_v28 = vadd.f32 %v5085_v6, %v4684_v33  ;;  %v3134_v62 = vadd.f32 %v5877_v17, %v2110_v1  ;;  %v11953_v33 = vld [vmem:[#allocation114_spill] sm:$0xff]  ;;  %v3445_v6 = vpop.permute.xlu0 %3444 }
 0x622   :  { %6073 = vmatmul.msk.f32.gmra.mxu0 %vm4174_vm4, %v4098_v61  ;;  %6131 = vmatmul.msk.f32.gmra.mxu2 %vm4174_vm4, %v4156_v41  ;;  %vm645_vm14 = vcmp.eq.s32.totalorder %v8092_v7, %v11953_v33  ;;  %vm3717_vm3 = vcmp.eq.s32.totalorder %v8092_v7, %v3445_v6 }
 0x623   :  { %6201 = vmatmul.msk.f32.gmra.mxu1 %vm4174_vm4, %v4098_v61  ;;  %6259 = vmatmul.msk.f32.gmra.mxu3 %vm4174_vm4, %v4156_v41  ;;  %5397 = vst [vmem:[#allocation7 + $0x120] sm:$0xff] %v5086_v28  ;;  %v11951_v41 = vld [vmem:[#allocation111_spill] sm:$0xff]  ;;  %v3076_v61 = vadd.f32 %v5819_v48, %v2052_v49  ;;  %v4158_v5 = vadd.f32 %v6005_v16, %v3134_v62  ;;  %v5564_v31 = vsel %vm645_vm14, 1.0, %v6607_v36  ;;  %v5948_v0 = vsel %vm3717_vm3, 1.0, %v6607_v36  ;;  %v10424_v35 = vpop.permute.xlu1 %3639 }
 0x624   :  { %vm1669_vm12 = vcmp.eq.s32.totalorder %v8092_v7, %v11951_v41  ;;  %v5565_v41 = vsel %vm646_vm7, 1.0, %v6607_v36  ;;  %vm3777_vm3 = vcmp.eq.s32.totalorder %v8092_v7, %v10215_v29  ;;  %vm1730_vm7 = vcmp.eq.s32.totalorder %v8092_v7, %v11968_v56 }
 0x625   :  { %v4858_v18 = vpop.f32.mrf.mxu2  ;;  %v4100_v50 = vadd.f32 %v5947_v27, %v3076_v61  ;;  %v5692_v45 = vsel %vm1669_vm12, 1.0, %v6607_v36  ;;  %v5879_v61 = vsel %vm2752_vm10, 1.0, %v6607_v36 }
 0x626   :  { %v5259_v20 = vpop.f32.mrf.mxu3  ;;  %v2053_v3 = vadd.f32 %v5692_v45, %v5564_v31  ;;  %v11966_v45 = vld [vmem:[#allocation327_spill] sm:$0xff] }
 0x627   :  { %v5260_v14 = vadd.f32 %v5259_v20, %v4858_v18  ;;  %v4687_v58 = vpop.f32.mrf.mxu0  ;;  %vm2695_vm1 = vcmp.eq.s32.totalorder %v8092_v7, %v11966_v45  ;;  %v11972_v45 = vld [vmem:[#allocation98_spill] sm:$0xff] }
 0x628   :  { %v5088_v46 = vpop.f32.mrf.mxu1  ;;  %v5822_v29 = vsel %vm2695_vm1, 1.0, %v6607_v36 }
 0x629   :  { %5455 = vst [vmem:[#allocation7 + $0x2f0] sm:$0xff] %v5260_v14  ;;  %v5089_v51 = vadd.f32 %v5088_v46, %v4687_v58  ;;  %v3077_v14 = vadd.f32 %v5820_v63, %v2053_v3  ;;  %v3135_v58 = vadd.f32 %v5878_v9, %v2111_v52  ;;  %v11961_v46 = vld [vmem:[#allocation318_spill] sm:$0xff]  ;;  %v10465_v6 = vpop.permute.xlu0 %3642  ;;  %v5694_v9 = vsel %vm1671_vm13, 1.0, %v6607_v36 }
 0x62a   :  { %6074 = vmatmul.msk.f32.gmra.mxu0 %vm4174_vm4, %v4099_v2  ;;  %6132 = vmatmul.msk.f32.gmra.mxu2 %vm4174_vm4, %v4157_v39  ;;  %vm2694_vm9 = vcmp.eq.s32.totalorder %v8092_v7, %v11961_v46 }
 0x62b   :  { %6202 = vmatmul.msk.f32.gmra.mxu1 %vm4174_vm4, %v4099_v2  ;;  %6260 = vmatmul.msk.f32.gmra.mxu3 %vm4174_vm4, %v4157_v39  ;;  %5398 = vst [vmem:[#allocation7 + $0x128] sm:$0xff] %v5089_v51  ;;  %v11957_v39 = vld [vmem:[#allocation92_spill] sm:$0xff]  ;;  %v3448_v51 = vpop.permute.xlu2 %3447  ;;  %v4159_v44 = vadd.f32 %v6006_v40, %v3135_v58  ;;  %v4101_v48 = vadd.f32 %v5948_v0, %v3077_v14  ;;  %v5821_v59 = vsel %vm2694_vm9, 1.0, %v6607_v36  ;;  %v3451_v11 = vpop.permute.xlu1 %3450  ;;  %v6008_v58 = vsel %vm3777_vm3, 1.0, %v6607_v36 }
 0x62c   :  { %vm1670_vm5 = vcmp.eq.s32.totalorder %v8092_v7, %v11957_v39  ;;  %v11958_v2 = vld [vmem:[#allocation252_spill] sm:$0xff]  ;;  %vm3718_vm12 = vcmp.eq.s32.totalorder %v8092_v7, %v3448_v51  ;;  %v5880_v39 = vsel %vm2753_vm2, 1.0, %v6607_v36  ;;  %v11967_v51 = vld [vmem:[#allocation117_spill] sm:$0xff]  ;;  %vm2755_vm3 = vcmp.eq.s32.totalorder %v8092_v7, %v8083_v53 }
 0x62d   :  { %v4861_v13 = vpop.f32.mrf.mxu2  ;;  %vm1728_vm6 = vcmp.eq.s32.totalorder %v8092_v7, %v11958_v2  ;;  %v5693_v1 = vsel %vm1670_vm5, 1.0, %v6607_v36  ;;  %v5949_v25 = vsel %vm3718_vm12, 1.0, %v6607_v36  ;;  %vm3719_vm5 = vcmp.eq.s32.totalorder %v8092_v7, %v3451_v11  ;;  %v11973_v11 = vld [vmem:[#allocation255_spill] sm:$0xff] }
 0x62e   :  { %v5262_v28 = vpop.f32.mrf.mxu3  ;;  %v5751_v16 = vsel %vm1728_vm6, 1.0, %v6607_v36  ;;  %v2054_v62 = vadd.f32 %v5693_v1, %v5565_v41  ;;  %v5950_v30 = vsel %vm3719_vm5, 1.0, %v6607_v36  ;;  %vm1672_vm6 = vcmp.eq.s32.totalorder %v8092_v7, %v11967_v51 }
 0x62f   :  { %v5263_v12 = vadd.f32 %v5262_v28, %v4861_v13  ;;  %v4690_v38 = vpop.f32.mrf.mxu0  ;;  %v2112_v33 = vadd.f32 %v5751_v16, %v5623_v47  ;;  %vm3778_vm12 = vcmp.eq.s32.totalorder %v8092_v7, %v10255_v43  ;;  %vm3779_vm5 = vcmp.eq.s32.totalorder %v8092_v7, %v10299_v4 }
 0x630   :  { %v5091_v10 = vpop.f32.mrf.mxu1  ;;  %v3078_v24 = vadd.f32 %v5821_v59, %v2054_v62  ;;  %v5695_v59 = vsel %vm1672_vm6, 1.0, %v6607_v36  ;;  %v6010_v56 = vsel %vm3779_vm5, 1.0, %v6607_v36  ;;  %vm2757_vm5 = vcmp.eq.s32.totalorder %v8092_v7, %v8076_v22 }
 0x631   :  { %5456 = vst [vmem:[#allocation7 + $0x2f8] sm:$0xff] %v5263_v12  ;;  %v5092_v18 = vadd.f32 %v5091_v10, %v4690_v38  ;;  %v11964_v12 = vld [vmem:[#allocation121_spill] sm:$0xff]  ;;  %v3454_v1 = vpop.permute.xlu0 %3453 }
 0x632   :  { %6075 = vmatmul.msk.f32.gmra.mxu0 %vm4174_vm4, %v4100_v50  ;;  %6133 = vmatmul.msk.f32.gmra.mxu2 %vm4174_vm4, %v4158_v5  ;;  %vm647_vm15 = vcmp.eq.s32.totalorder %v8092_v7, %v11964_v12  ;;  %v11965_v38 = vld [vmem:[#allocation201_spill] sm:$0xff]  ;;  %v4102_v31 = vadd.f32 %v5949_v25, %v3078_v24  ;;  %vm3720_vm13 = vcmp.eq.s32.totalorder %v8092_v7, %v3454_v1  ;;  %v6009_v24 = vsel %vm3778_vm12, 1.0, %v6607_v36 }
 0x633   :  { %6203 = vmatmul.msk.f32.gmra.mxu1 %vm4174_vm4, %v4100_v50  ;;  %6261 = vmatmul.msk.f32.gmra.mxu3 %vm4174_vm4, %v4158_v5  ;;  %5399 = vst [vmem:[#allocation7 + $0x130] sm:$0xff] %v5092_v18  ;;  %v11963_v5 = vld [vmem:[#allocation254_spill] sm:$0xff]  ;;  %v3136_v50 = vadd.f32 %v5879_v61, %v2112_v33  ;;  %vm705_vm0 = vcmp.eq.s32.totalorder %v8092_v7, %v11965_v38  ;;  %v5566_v0 = vsel %vm647_vm15, 1.0, %v6607_v36  ;;  %v10505_v19 = vpop.permute.xlu2 %3645  ;;  %v5753_v61 = vsel %vm1730_vm7, 1.0, %v6607_v36  ;;  %v10549_v12 = vpop.permute.xlu1 %3648 }
 0x634   :  { %vm1729_vm14 = vcmp.eq.s32.totalorder %v8092_v7, %v11963_v5  ;;  %v2055_v2 = vadd.f32 %v5694_v9, %v5566_v0  ;;  %vm1731_vm15 = vcmp.eq.s32.totalorder %v8092_v7, %v11973_v11  ;;  %vm2756_vm12 = vcmp.eq.s32.totalorder %v8092_v7, %v8110_v32  ;;  %v11983_v32 = vld [vmem:[#allocation250_spill] sm:$0xff] }
 0x635   :  { %v4864_v20 = vpop.f32.mrf.mxu2  ;;  %v4160_v18 = vadd.f32 %v6007_v26, %v3136_v50  ;;  %v5752_v3 = vsel %vm1729_vm14, 1.0, %v6607_v36  ;;  %v5951_v50 = vsel %vm3720_vm13, 1.0, %v6607_v36  ;;  %vm1673_vm14 = vcmp.eq.s32.totalorder %v8092_v7, %v11972_v45 }
 0x636   :  { %v5265_v21 = vpop.f32.mrf.mxu3  ;;  %vm3780_vm13 = vcmp.eq.s32.totalorder %v8092_v7, %v10340_v15 }
 0x637   :  { %v5266_v17 = vadd.f32 %v5265_v21, %v4864_v20  ;;  %v4693_v49 = vpop.f32.mrf.mxu0  ;;  %v5624_v20 = vsel %vm705_vm0, 1.0, %v6607_v36  ;;  %v3079_v21 = vadd.f32 %v5822_v29, %v2055_v2  ;;  %v5754_v29 = vsel %vm1731_vm15, 1.0, %v6607_v36 }
 0x638   :  { %v5094_v27 = vpop.f32.mrf.mxu1  ;;  %v2113_v14 = vadd.f32 %v5752_v3, %v5624_v20  ;;  %v5696_v20 = vsel %vm1673_vm14, 1.0, %v6607_v36  ;;  %v6011_v45 = vsel %vm3780_vm13, 1.0, %v6607_v36  ;;  %vm2758_vm13 = vcmp.eq.s32.totalorder %v8092_v7, %v8094_v8 }
 0x639   :  { %5457 = vst [vmem:[#allocation7 + $0x300] sm:$0xff] %v5266_v17  ;;  %v5095_v13 = vadd.f32 %v5094_v27, %v4693_v49  ;;  %v11970_v17 = vld [vmem:[#allocation191_spill] sm:$0xff]  ;;  %v11971_v49 = vld [vmem:[#allocation334_spill] sm:$0xff] }
 0x63a   :  { %6076 = vmatmul.msk.f32.gmra.mxu0 %vm4174_vm4, %v4101_v48  ;;  %6134 = vmatmul.msk.f32.gmra.mxu2 %vm4174_vm4, %v4159_v44  ;;  %vm706_vm9 = vcmp.eq.s32.totalorder %v8092_v7, %v11970_v17  ;;  %vm2696_vm10 = vcmp.eq.s32.totalorder %v8092_v7, %v11971_v49  ;;  %v11977_v17 = vld [vmem:[#allocation124_spill] sm:$0xff]  ;;  %v11978_v49 = vld [vmem:[#allocation257_spill] sm:$0xff] }
 0x63b   :  { %6204 = vmatmul.msk.f32.gmra.mxu1 %vm4174_vm4, %v4101_v48  ;;  %6262 = vmatmul.msk.f32.gmra.mxu3 %vm4174_vm4, %v4159_v44  ;;  %5400 = vst [vmem:[#allocation7 + $0x138] sm:$0xff] %v5095_v13  ;;  %v3137_v44 = vadd.f32 %v5880_v39, %v2113_v14  ;;  %v11969_v48 = vld [vmem:[#allocation120_spill] sm:$0xff]  ;;  %v4103_v13 = vadd.f32 %v5950_v30, %v3079_v21  ;;  %v5625_v25 = vsel %vm706_vm9, 1.0, %v6607_v36  ;;  %v5823_v43 = vsel %vm2696_vm10, 1.0, %v6607_v36 }
 0x63c   :  { %vm648_vm8 = vcmp.eq.s32.totalorder %v8092_v7, %v11969_v48  ;;  %v2114_v5 = vadd.f32 %v5753_v61, %v5625_v25  ;;  %v5882_v30 = vsel %vm2755_vm3, 1.0, %v6607_v36  ;;  %vm1674_vm7 = vcmp.eq.s32.totalorder %v8092_v7, %v11977_v17 }
 0x63d   :  { %v4867_v28 = vpop.f32.mrf.mxu2  ;;  %v4161_v27 = vadd.f32 %v6008_v58, %v3137_v44  ;;  %v5567_v26 = vsel %vm648_vm8, 1.0, %v6607_v36  ;;  %v10590_v44 = vpop.permute.xlu0 %3651  ;;  %vm1732_vm8 = vcmp.eq.s32.totalorder %v8092_v7, %v11978_v49 }
 0x63e   :  { %v5268_v10 = vpop.f32.mrf.mxu3  ;;  %v2056_v55 = vadd.f32 %v5695_v59, %v5567_v26  ;;  %v5697_v26 = vsel %vm1674_vm7, 1.0, %v6607_v36  ;;  %v5755_v25 = vsel %vm1732_vm8, 1.0, %v6607_v36 }
 0x63f   :  { %v5269_v23 = vadd.f32 %v5268_v10, %v4867_v28  ;;  %v4696_v63 = vpop.f32.mrf.mxu0  ;;  %v5881_v28 = vsel %vm2754_vm11, 1.0, %v6607_v36 }
 0x640   :  { %v5097_v52 = vpop.f32.mrf.mxu1  ;;  %v3080_v34 = vadd.f32 %v5823_v43, %v2056_v55  ;;  %v3138_v10 = vadd.f32 %v5881_v28, %v2114_v5 }
 0x641   :  { %5458 = vst [vmem:[#allocation7 + $0x308] sm:$0xff] %v5269_v23  ;;  %v5098_v40 = vadd.f32 %v5097_v52, %v4696_v63  ;;  %v11976_v23 = vld [vmem:[#allocation323_spill] sm:$0xff]  ;;  %v3457_v63 = vpop.permute.xlu2 %3456 }
 0x642   :  { %6077 = vmatmul.msk.f32.gmra.mxu0 %vm4174_vm4, %v4102_v31  ;;  %6135 = vmatmul.msk.f32.gmra.mxu2 %vm4174_vm4, %v4160_v18  ;;  %vm2697_vm2 = vcmp.eq.s32.totalorder %v8092_v7, %v11976_v23  ;;  %v4162_v3 = vadd.f32 %v6009_v24, %v3138_v10  ;;  %v4104_v52 = vadd.f32 %v5951_v50, %v3080_v34  ;;  %v5883_v24 = vsel %vm2756_vm12, 1.0, %v6607_v36 }
 0x643   :  { %6205 = vmatmul.msk.f32.gmra.mxu1 %vm4174_vm4, %v4102_v31  ;;  %6263 = vmatmul.msk.f32.gmra.mxu3 %vm4174_vm4, %v4160_v18  ;;  %5401 = vst [vmem:[#allocation7 + $0x140] sm:$0xff] %v5098_v40  ;;  %v11974_v18 = vld [vmem:[#allocation101_spill] sm:$0xff]  ;;  %v11975_v31 = vld [vmem:[#allocation204_spill] sm:$0xff]  ;;  %vm3721_vm6 = vcmp.eq.s32.totalorder %v8092_v7, %v3457_v63  ;;  %v5824_v4 = vsel %vm2697_vm2, 1.0, %v6607_v36  ;;  %v11984_v63 = vld [vmem:[#allocation126_spill] sm:$0xff] }
 0x644   :  { %vm649_vm0 = vcmp.eq.s32.totalorder %v8092_v7, %v11974_v18  ;;  %vm707_vm1 = vcmp.eq.s32.totalorder %v8092_v7, %v11975_v31  ;;  %v5952_v21 = vsel %vm3721_vm6, 1.0, %v6607_v36  ;;  %v11982_v18 = vld [vmem:[#allocation123_spill] sm:$0xff]  ;;  %vm3781_vm6 = vcmp.eq.s32.totalorder %v8092_v7, %v10380_v37 }
 0x645   :  { %v4870_v46 = vpop.f32.mrf.mxu2  ;;  %v5568_v14 = vsel %vm649_vm0, 1.0, %v6607_v36  ;;  %v5626_v58 = vsel %vm707_vm1, 1.0, %v6607_v36  ;;  %vm1675_vm15 = vcmp.eq.s32.totalorder %v8092_v7, %v11982_v18  ;;  %vm1733_vm0 = vcmp.eq.s32.totalorder %v8092_v7, %v11983_v32  ;;  %v11992_v32 = vld [vmem:[#allocation130_spill] sm:$0xff] }
 0x646   :  { %v5271_v16 = vpop.f32.mrf.mxu3  ;;  %v2115_v51 = vadd.f32 %v5754_v29, %v5626_v58  ;;  %vm651_vm1 = vcmp.eq.s32.totalorder %v8092_v7, %v11984_v63  ;;  %v11994_v63 = vld [vmem:[#allocation133_spill] sm:$0xff] }
 0x647   :  { %v5272_v41 = vadd.f32 %v5271_v16, %v4870_v46  ;;  %v4699_v47 = vpop.f32.mrf.mxu0  ;;  %v2057_v46 = vadd.f32 %v5696_v20, %v5568_v14  ;;  %v11979_v16 = vld [vmem:[#allocation127_spill] sm:$0xff]  ;;  %v5756_v14 = vsel %vm1733_vm0, 1.0, %v6607_v36  ;;  %vm1677_vm0 = vcmp.eq.s32.totalorder %v8092_v7, %v11992_v32 }
 0x648   :  { %v5100_v62 = vpop.f32.mrf.mxu1  ;;  %v3139_v1 = vadd.f32 %v5882_v30, %v2115_v51  ;;  %vm650_vm9 = vcmp.eq.s32.totalorder %v8092_v7, %v11979_v16  ;;  %v5570_v30 = vsel %vm651_vm1, 1.0, %v6607_v36  ;;  %v5884_v51 = vsel %vm2757_vm5, 1.0, %v6607_v36  ;;  %v11988_v16 = vld [vmem:[#allocation258_spill] sm:$0xff] }
 0x649   :  { %5459 = vst [vmem:[#allocation7 + $0x310] sm:$0xff] %v5272_v41  ;;  %v5101_v33 = vadd.f32 %v5100_v62, %v4699_v47  ;;  %v3081_v53 = vadd.f32 %v5824_v4, %v2057_v46  ;;  %v3460_v41 = vpop.permute.xlu1 %3459  ;;  %v5569_v55 = vsel %vm650_vm9, 1.0, %v6607_v36  ;;  %v10630_v11 = vpop.permute.xlu2 %3654  ;;  %vm1734_vm9 = vcmp.eq.s32.totalorder %v8092_v7, %v11988_v16 }
 0x64a   :  { %6078 = vmatmul.msk.f32.gmra.mxu0 %vm4174_vm4, %v4103_v13  ;;  %6136 = vmatmul.msk.f32.gmra.mxu2 %vm4174_vm4, %v4161_v27  ;;  %v4163_v59 = vadd.f32 %v6010_v56, %v3139_v1  ;;  %vm3722_vm14 = vcmp.eq.s32.totalorder %v8092_v7, %v3460_v41  ;;  %v2058_v50 = vadd.f32 %v5697_v26, %v5569_v55  ;;  %v11987_v1 = vld [vmem:[#allocation104_spill] sm:$0xff]  ;;  %v11990_v41 = vld [vmem:[#allocation206_spill] sm:$0xff] }
 0x64b   :  { %6206 = vmatmul.msk.f32.gmra.mxu1 %vm4174_vm4, %v4103_v13  ;;  %6264 = vmatmul.msk.f32.gmra.mxu3 %vm4174_vm4, %v4161_v27  ;;  %5402 = vst [vmem:[#allocation7 + $0x148] sm:$0xff] %v5101_v33  ;;  %v11980_v27 = vld [vmem:[#allocation203_spill] sm:$0xff]  ;;  %v4105_v61 = vadd.f32 %v5952_v21, %v3081_v53  ;;  %v5953_v34 = vsel %vm3722_vm14, 1.0, %v6607_v36  ;;  %vm1676_vm8 = vcmp.eq.s32.totalorder %v8092_v7, %v11987_v1 }
 0x64c   :  { %vm708_vm10 = vcmp.eq.s32.totalorder %v8092_v7, %v11980_v27  ;;  %v11981_v13 = vld [vmem:[#allocation331_spill] sm:$0xff]  ;;  %vm3782_vm14 = vcmp.eq.s32.totalorder %v8092_v7, %v10424_v35 }
 0x64d   :  { %v4873_v38 = vpop.f32.mrf.mxu2  ;;  %vm2698_vm11 = vcmp.eq.s32.totalorder %v8092_v7, %v11981_v13  ;;  %v5627_v5 = vsel %vm708_vm10, 1.0, %v6607_v36  ;;  %v11989_v13 = vld [vmem:[#allocation107_spill] sm:$0xff] }
 0x64e   :  { %v5274_v9 = vpop.f32.mrf.mxu3  ;;  %v5825_v15 = vsel %vm2698_vm11, 1.0, %v6607_v36  ;;  %vm652_vm10 = vcmp.eq.s32.totalorder %v8092_v7, %v11989_v13  ;;  %vm710_vm11 = vcmp.eq.s32.totalorder %v8092_v7, %v11990_v41 }
 0x64f   :  { %v5275_v40 = vadd.f32 %v5274_v9, %v4873_v38  ;;  %v4702_v0 = vpop.f32.mrf.mxu0  ;;  %v2116_v38 = vadd.f32 %v5755_v25, %v5627_v5  ;;  %v3082_v31 = vadd.f32 %v5825_v15, %v2058_v50  ;;  %v11985_v9 = vld [vmem:[#allocation194_spill] sm:$0xff]  ;;  %v5571_v15 = vsel %vm652_vm10, 1.0, %v6607_v36 }
 0x650   :  { %v5103_v39 = vpop.f32.mrf.mxu1  ;;  %vm709_vm2 = vcmp.eq.s32.totalorder %v8092_v7, %v11985_v9  ;;  %v5885_v50 = vsel %vm2758_vm13, 1.0, %v6607_v36  ;;  %v11995_v9 = vld [vmem:[#allocation205_spill] sm:$0xff] }
 0x651   :  { %5460 = vst [vmem:[#allocation7 + $0x318] sm:$0xff] %v5275_v40  ;;  %v5104_v2 = vadd.f32 %v5103_v39, %v4702_v0  ;;  %v3140_v23 = vadd.f32 %v5883_v24, %v2116_v38  ;;  %v4106_v20 = vadd.f32 %v5953_v34, %v3082_v31  ;;  %v5628_v46 = vsel %vm709_vm2, 1.0, %v6607_v36  ;;  %v10674_v49 = vpop.permute.xlu1 %3657  ;;  %v11993_v31 = vld [vmem:[#allocation259_spill] sm:$0xff] }
 0x652   :  { %6079 = vmatmul.msk.f32.gmra.mxu0 %vm4174_vm4, %v4104_v52  ;;  %6137 = vmatmul.msk.f32.gmra.mxu2 %vm4174_vm4, %v4162_v3  ;;  %v2117_v21 = vadd.f32 %v5756_v14, %v5628_v46  ;;  %v5629_v24 = vsel %vm710_vm11, 1.0, %v6607_v36  ;;  %v6013_v34 = vsel %vm3782_vm14, 1.0, %v6607_v36  ;;  %vm1735_vm1 = vcmp.eq.s32.totalorder %v8092_v7, %v11993_v31  ;;  %v12001_v31 = vld [vmem:[#allocation262_spill] sm:$0xff] }
 0x653   :  { %6207 = vmatmul.msk.f32.gmra.mxu1 %vm4174_vm4, %v4104_v52  ;;  %6265 = vmatmul.msk.f32.gmra.mxu3 %vm4174_vm4, %v4162_v3  ;;  %5403 = vst [vmem:[#allocation7 + $0x150] sm:$0xff] %v5104_v2  ;;  %v11986_v3 = vld [vmem:[#allocation337_spill] sm:$0xff]  ;;  %v3463_v52 = vpop.permute.xlu0 %3462  ;;  %v4164_v0 = vadd.f32 %v6011_v45, %v3140_v23  ;;  %v5698_v2 = vsel %vm1675_vm15, 1.0, %v6607_v36  ;;  %vm653_vm2 = vcmp.eq.s32.totalorder %v8092_v7, %v11994_v63  ;;  %v5758_v14 = vsel %vm1735_vm1, 1.0, %v6607_v36 }
 0x654   :  { %vm2699_vm3 = vcmp.eq.s32.totalorder %v8092_v7, %v11986_v3  ;;  %vm3723_vm7 = vcmp.eq.s32.totalorder %v8092_v7, %v3463_v52  ;;  %v2059_v56 = vadd.f32 %v5698_v2, %v5570_v30  ;;  %v3141_v27 = vadd.f32 %v5884_v51, %v2117_v21  ;;  %v11996_v3 = vld [vmem:[#allocation335_spill] sm:$0xff] }
 0x655   :  { %v4876_v48 = vpop.f32.mrf.mxu2  ;;  %v5826_v37 = vsel %vm2699_vm3, 1.0, %v6607_v36  ;;  %v5954_v17 = vsel %vm3723_vm7, 1.0, %v6607_v36  ;;  %vm711_vm3 = vcmp.eq.s32.totalorder %v8092_v7, %v11995_v9  ;;  %vm2701_vm5 = vcmp.eq.s32.totalorder %v8092_v7, %v11996_v3 }
 0x656   :  { %v5277_v47 = vpop.f32.mrf.mxu3  ;;  %v3083_v22 = vadd.f32 %v5826_v37, %v2059_v56  ;;  %v5700_v2 = vsel %vm1677_vm0, 1.0, %v6607_v36  ;;  %vm3783_vm7 = vcmp.eq.s32.totalorder %v8092_v7, %v10465_v6  ;;  %v5572_v30 = vsel %vm653_vm2, 1.0, %v6607_v36 }
 0x657   :  { %v5278_v62 = vadd.f32 %v5277_v47, %v4876_v48  ;;  %v4705_v33 = vpop.f32.mrf.mxu0  ;;  %v6012_v48 = vsel %vm3781_vm6, 1.0, %v6607_v36  ;;  %v11991_v47 = vld [vmem:[#allocation328_spill] sm:$0xff]  ;;  %vm2759_vm6 = vcmp.eq.s32.totalorder %v8092_v7, %v8121_v54  ;;  %v5630_v46 = vsel %vm711_vm3, 1.0, %v6607_v36 }
 0x658   :  { %v5106_v43 = vpop.f32.mrf.mxu1  ;;  %vm2700_vm12 = vcmp.eq.s32.totalorder %v8092_v7, %v11991_v47  ;;  %v5828_v6 = vsel %vm2701_vm5, 1.0, %v6607_v36  ;;  %v5886_v37 = vsel %vm2759_vm6, 1.0, %v6607_v36  ;;  %v2061_v51 = vadd.f32 %v5700_v2, %v5572_v30  ;;  %v12005_v30 = vld [vmem:[#allocation364_spill] sm:$0xff] }
 0x659   :  { %5461 = vst [vmem:[#allocation7 + $0x320] sm:$0xff] %v5278_v62  ;;  %v5107_v28 = vadd.f32 %v5106_v43, %v4705_v33  ;;  %v4165_v62 = vadd.f32 %v6012_v48, %v3141_v27  ;;  %v4107_v33 = vadd.f32 %v5954_v17, %v3083_v22  ;;  %v5699_v43 = vsel %vm1676_vm8, 1.0, %v6607_v36  ;;  %v3469_v52 = vpop.permute.xlu1 %3468  ;;  %v11998_v22 = vld [vmem:[#allocation197_spill] sm:$0xff] }
 0x65a   :  { %6080 = vmatmul.msk.f32.gmra.mxu0 %vm4174_vm4, %v4105_v61  ;;  %6138 = vmatmul.msk.f32.gmra.mxu2 %vm4174_vm4, %v4163_v59  ;;  %v5827_v35 = vsel %vm2700_vm12, 1.0, %v6607_v36  ;;  %v2060_v38 = vadd.f32 %v5699_v43, %v5571_v15  ;;  %vm3725_vm8 = vcmp.eq.s32.totalorder %v8092_v7, %v3469_v52  ;;  %v2119_v56 = vadd.f32 %v5758_v14, %v5630_v46  ;;  %v12003_v14 = vld [vmem:[#allocation256_spill] sm:$0xff] }
 0x65b   :  { %6208 = vmatmul.msk.f32.gmra.mxu1 %vm4174_vm4, %v4105_v61  ;;  %6266 = vmatmul.msk.f32.gmra.mxu3 %vm4174_vm4, %v4163_v59  ;;  %5404 = vst [vmem:[#allocation7 + $0x158] sm:$0xff] %v5107_v28  ;;  %v3466_v59 = vpop.permute.xlu2 %3465  ;;  %v5757_v28 = vsel %vm1734_vm9, 1.0, %v6607_v36  ;;  %v6014_v21 = vsel %vm3783_vm7, 1.0, %v6607_v36  ;;  %v5956_v48 = vsel %vm3725_vm8, 1.0, %v6607_v36  ;;  %v3085_v1 = vadd.f32 %v5828_v6, %v2061_v51 }
 0x65c   :  { %vm3724_vm15 = vcmp.eq.s32.totalorder %v8092_v7, %v3466_v59  ;;  %v2118_v45 = vadd.f32 %v5757_v28, %v5629_v24  ;;  %v3084_v8 = vadd.f32 %v5827_v35, %v2060_v38  ;;  %v3143_v16 = vadd.f32 %v5886_v37, %v2119_v56 }
 0x65d   :  { %v4879_v10 = vpop.f32.mrf.mxu2  ;;  %vm712_vm10 = vcmp.eq.s32.totalorder %v8092_v7, %v11998_v22  ;;  %vm2760_vm11 = vcmp.eq.s32.totalorder %v8092_v7, %v8085_v57  ;;  %v4109_v13 = vadd.f32 %v5956_v48, %v3085_v1  ;;  %vm3784_vm12 = vcmp.eq.s32.totalorder %v8092_v7, %v10505_v19  ;;  %v11999_v19 = vld [vmem:[#allocation260_spill] sm:$0xff]  ;;  %v12006_v22 = vld [vmem:[#allocation263_spill] sm:$0xff] }
 0x65e   :  { %v5280_v40 = vpop.f32.mrf.mxu3  ;;  %v3142_v23 = vadd.f32 %v5885_v50, %v2118_v45  ;;  %v4167_v27 = vadd.f32 %v6014_v21, %v3143_v16  ;;  %v5887_v57 = vsel %vm2760_vm11, 1.0, %v6607_v36  ;;  %vm1737_vm13 = vcmp.eq.s32.totalorder %v8092_v7, %v11999_v19 }
 0x65f   :  { %v5281_v29 = vadd.f32 %v5280_v40, %v4879_v10  ;;  %v4708_v39 = vpop.f32.mrf.mxu0  ;;  %v5955_v10 = vsel %vm3724_vm15, 1.0, %v6607_v36  ;;  %vm2761_vm15 = vcmp.eq.s32.totalorder %v8092_v7, %v8112_v60  ;;  %v5760_v50 = vsel %vm1737_vm13, 1.0, %v6607_v36 }
 0x660   :  { %v5109_v58 = vpop.f32.mrf.mxu1  ;;  %vm3785_vm0 = vcmp.eq.s32.totalorder %v8092_v7, %v10549_v12  ;;  %vm1738_vm1 = vcmp.eq.s32.totalorder %v8092_v7, %v12001_v31  ;;  %vm2762_vm3 = vcmp.eq.s32.totalorder %v8092_v7, %v8135_v42  ;;  %vm3786_vm5 = vcmp.eq.s32.totalorder %v8092_v7, %v10590_v44 }
 0x661   :  { %5462 = vst [vmem:[#allocation7 + $0x328] sm:$0xff] %v5281_v29  ;;  %v5110_v4 = vadd.f32 %v5109_v58, %v4708_v39  ;;  %v5761_v52 = vsel %vm1738_vm1, 1.0, %v6607_v36  ;;  %vm1739_vm6 = vcmp.eq.s32.totalorder %v8092_v7, %v12003_v14  ;;  %vm2763_vm8 = vcmp.eq.s32.totalorder %v8092_v7, %v12005_v30 }
 0x662   :  { %6081 = vmatmul.msk.f32.gmra.mxu0 %vm4174_vm4, %v4106_v20  ;;  %6139 = vmatmul.msk.f32.gmra.mxu2 %vm4174_vm4, %v4164_v0  ;;  %v5762_v51 = vsel %vm1739_vm6, 1.0, %v6607_v36  ;;  %vm3788_vm13 = vcmp.eq.s32.totalorder %v8092_v7, %v10674_v49  ;;  %v3661_v49 = vpop.permute.xlu0 %3660 }
 0x663   :  { %6209 = vmatmul.msk.f32.gmra.mxu1 %vm4174_vm4, %v4106_v20  ;;  %6267 = vmatmul.msk.f32.gmra.mxu3 %vm4174_vm4, %v4164_v0  ;;  %5405 = vst [vmem:[#allocation7 + $0x160] sm:$0xff] %v5110_v4  ;;  %v4166_v0 = vadd.f32 %v6013_v34, %v3142_v23  ;;  %v4108_v20 = vadd.f32 %v5955_v10, %v3084_v8  ;;  %v5888_v10 = vsel %vm2761_vm15, 1.0, %v6607_v36  ;;  %v12002_v23 = vld [vmem:[#allocation208_spill] sm:$0xff] }
 0x664   :  { %vm714_vm2 = vcmp.eq.s32.totalorder %v8092_v7, %v12002_v23  ;;  %vm3789_vm1 = vcmp.eq.s32.totalorder %v8092_v7, %v3661_v49 }
 0x665   :  { %v4882_v53 = vpop.f32.mrf.mxu2  ;;  %v6020_v31 = vsel %vm3789_vm1, 1.0, %v6607_v36 }
 0x666   :  { %v5283_v61 = vpop.f32.mrf.mxu3 }
 0x667   :  { %v5284_v26 = vadd.f32 %v5283_v61, %v4882_v53  ;;  %v4711_v25 = vpop.f32.mrf.mxu0  ;;  %v11997_v53 = vld [vmem:[#allocation253_spill] sm:$0xff] }
 0x668   :  { %v5112_v55 = vpop.f32.mrf.mxu1  ;;  %vm1736_vm9 = vcmp.eq.s32.totalorder %v8092_v7, %v11997_v53 }
 0x669   :  { %5463 = vst [vmem:[#allocation7 + $0x330] sm:$0xff] %v5284_v26  ;;  %v5113_v5 = vadd.f32 %v5112_v55, %v4711_v25  ;;  %v5759_v59 = vsel %vm1736_vm9, 1.0, %v6607_v36  ;;  %v6015_v25 = vsel %vm3784_vm12, 1.0, %v6607_v36  ;;  %vm3787_vm9 = vcmp.eq.s32.totalorder %v8092_v7, %v10630_v11 }
 0x66a   :  { %6082 = vmatmul.msk.f32.gmra.mxu0 %vm4174_vm4, %v4107_v33  ;;  %6140 = vmatmul.msk.f32.gmra.mxu2 %vm4174_vm4, %v4165_v62  ;;  %v6018_v1 = vsel %vm3787_vm9, 1.0, %v6607_v36 }
 0x66b   :  { %6210 = vmatmul.msk.f32.gmra.mxu1 %vm4174_vm4, %v4107_v33  ;;  %6268 = vmatmul.msk.f32.gmra.mxu3 %vm4174_vm4, %v4165_v62  ;;  %5406 = vst [vmem:[#allocation7 + $0x168] sm:$0xff] %v5113_v5  ;;  %v5631_v33 = vsel %vm712_vm10, 1.0, %v6607_v36  ;;  %v12000_v5 = vld [vmem:[#allocation209_spill] sm:$0xff]  ;;  %vm1740_vm10 = vcmp.eq.s32.totalorder %v8092_v7, %v12006_v22 }
 0x66c   :  { %v2120_v26 = vadd.f32 %v5759_v59, %v5631_v33  ;;  %vm713_vm14 = vcmp.eq.s32.totalorder %v8092_v7, %v12000_v5 }
 0x66d   :  { %v4885_v18 = vpop.f32.mrf.mxu2  ;;  %v5632_v34 = vsel %vm713_vm14, 1.0, %v6607_v36 }
 0x66e   :  { %v5286_v40 = vpop.f32.mrf.mxu3  ;;  %v3144_v28 = vadd.f32 %v5887_v57, %v2120_v26  ;;  %v2121_v60 = vadd.f32 %v5760_v50, %v5632_v34 }
 0x66f   :  { %v5287_v29 = vadd.f32 %v5286_v40, %v4885_v18  ;;  %v4714_v39 = vpop.f32.mrf.mxu0  ;;  %v6016_v18 = vsel %vm3785_vm0, 1.0, %v6607_v36 }
 0x670   :  { %v5115_v58 = vpop.f32.mrf.mxu1  ;;  %v4168_v15 = vadd.f32 %v6015_v25, %v3144_v28  ;;  %v3145_v8 = vadd.f32 %v5888_v10, %v2121_v60  ;;  %v12009_v28 = vld [vmem:[#allocation265_spill] sm:$0xff] }
 0x671   :  { %5464 = vst [vmem:[#allocation7 + $0x338] sm:$0xff] %v5287_v29  ;;  %v5116_v4 = vadd.f32 %v5115_v58, %v4714_v39  ;;  %v5889_v29 = vsel %vm2762_vm3, 1.0, %v6607_v36  ;;  %v6017_v39 = vsel %vm3786_vm5, 1.0, %v6607_v36  ;;  %vm1741_vm14 = vcmp.eq.s32.totalorder %v8092_v7, %v12009_v28 }
 0x672   :  { %6083 = vmatmul.msk.f32.gmra.mxu0 %vm4174_vm4, %v4108_v20  ;;  %6141 = vmatmul.msk.f32.gmra.mxu2 %vm4174_vm4, %v4166_v0  ;;  %v4169_v63 = vadd.f32 %v6016_v18, %v3145_v8 }
 0x673   :  { %6211 = vmatmul.msk.f32.gmra.mxu1 %vm4174_vm4, %v4108_v20  ;;  %6269 = vmatmul.msk.f32.gmra.mxu3 %vm4174_vm4, %v4166_v0  ;;  %5407 = vst [vmem:[#allocation7 + $0x170] sm:$0xff] %v5116_v4  ;;  %v5633_v20 = vsel %vm714_vm2, 1.0, %v6607_v36  ;;  %v12004_v4 = vld [vmem:[#allocation200_spill] sm:$0xff] }
 0x674   :  { %v2122_v42 = vadd.f32 %v5761_v52, %v5633_v20  ;;  %vm715_vm7 = vcmp.eq.s32.totalorder %v8092_v7, %v12004_v4 }
 0x675   :  { %v4888_v17 = vpop.f32.mrf.mxu2  ;;  %v5634_v48 = vsel %vm715_vm7, 1.0, %v6607_v36 }
 0x676   :  { %v5289_v54 = vpop.f32.mrf.mxu3  ;;  %v3146_v58 = vadd.f32 %v5889_v29, %v2122_v42  ;;  %v2123_v53 = vadd.f32 %v5762_v51, %v5634_v48 }
 0x677   :  { %v5290_v41 = vadd.f32 %v5289_v54, %v4888_v17  ;;  %v4717_v47 = vpop.f32.mrf.mxu0  ;;  %v5890_v17 = vsel %vm2763_vm8, 1.0, %v6607_v36 }
 0x678   :  { %v5118_v61 = vpop.f32.mrf.mxu1  ;;  %v4170_v46 = vadd.f32 %v6017_v39, %v3146_v58  ;;  %v3147_v54 = vadd.f32 %v5890_v17, %v2123_v53 }
 0x679   :  { %5465 = vst [vmem:[#allocation7 + $0x340] sm:$0xff] %v5290_v41  ;;  %v5119_v62 = vadd.f32 %v5118_v61, %v4717_v47  ;;  %v5763_v61 = vsel %vm1740_vm10, 1.0, %v6607_v36 }
 0x67a   :  { %6084 = vmatmul.msk.f32.gmra.mxu0 %vm4174_vm4, %v4109_v13  ;;  %6142 = vmatmul.msk.f32.gmra.mxu2 %vm4174_vm4, %v4167_v27  ;;  %v4171_v41 = vadd.f32 %v6018_v1, %v3147_v54 }
 0x67b   :  { %6212 = vmatmul.msk.f32.gmra.mxu1 %vm4174_vm4, %v4109_v13  ;;  %6270 = vmatmul.msk.f32.gmra.mxu3 %vm4174_vm4, %v4167_v27  ;;  %5408 = vst [vmem:[#allocation7 + $0x178] sm:$0xff] %v5119_v62  ;;  %v12007_v27 = vld [vmem:[#allocation212_spill] sm:$0xff] }
 0x67c   :  { %vm716_vm11 = vcmp.eq.s32.totalorder %v8092_v7, %v12007_v27  ;;  %v12008_v13 = vld [vmem:[#allocation16_spill] sm:$0xff] }
 0x67d   :  { %v4891_v43 = vpop.f32.mrf.mxu2  ;;  %vm2764_vm12 = vcmp.eq.s32.totalorder %v8092_v7, %v12008_v13  ;;  %v5635_v57 = vsel %vm716_vm11, 1.0, %v6607_v36 }
 0x67e   :  { %v5292_v55 = vpop.f32.mrf.mxu3  ;;  %v5891_v26 = vsel %vm2764_vm12, 1.0, %v6607_v36  ;;  %v2124_v25 = vadd.f32 %v5763_v61, %v5635_v57 }
 0x67f   :  { %v5293_v24 = vadd.f32 %v5292_v55, %v4891_v43  ;;  %v4720_v35 = vpop.f32.mrf.mxu0  ;;  %v6019_v43 = vsel %vm3788_vm13, 1.0, %v6607_v36 }
 0x680   :  { %v5121_v38 = vpop.f32.mrf.mxu1  ;;  %v3148_v55 = vadd.f32 %v5891_v26, %v2124_v25 }
 0x681   :  { %5466 = vst [vmem:[#allocation7 + $0x348] sm:$0xff] %v5293_v24  ;;  %v5122_v45 = vadd.f32 %v5121_v38, %v4720_v35  ;;  %v12011_v24 = vld [vmem:[#allocation19_spill] sm:$0xff] }
 0x682   :  { %6143 = vmatmul.msk.f32.gmra.mxu2 %vm4174_vm4, %v4168_v15  ;;  %vm2765_vm0 = vcmp.eq.s32.totalorder %v8092_v7, %v12011_v24  ;;  %v4172_v35 = vadd.f32 %v6019_v43, %v3148_v55 }
 0x683   :  { %6271 = vmatmul.msk.f32.gmra.mxu3 %vm4174_vm4, %v4168_v15  ;;  %5409 = vst [vmem:[#allocation7 + $0x180] sm:$0xff] %v5122_v45  ;;  %v12010_v15 = vld [vmem:[#allocation211_spill] sm:$0xff]  ;;  %v5764_v45 = vsel %vm1741_vm14, 1.0, %v6607_v36  ;;  %v5892_v18 = vsel %vm2765_vm0, 1.0, %v6607_v36 }
 0x684   :  { %vm717_vm15 = vcmp.eq.s32.totalorder %v8092_v7, %v12010_v15 }
 0x685   :  { %v4894_v32 = vpop.f32.mrf.mxu2  ;;  %v5636_v60 = vsel %vm717_vm15, 1.0, %v6607_v36 }
 0x686   :  { %v5295_v12 = vpop.f32.mrf.mxu3 }
 0x687   :  { %v5296_v9 = vadd.f32 %v5295_v12, %v4894_v32  ;;  %v4723_v3 = vpop.f32.mrf.mxu0  ;;  %v2125_v32 = vadd.f32 %v5764_v45, %v5636_v60 }
 0x688   :  { %v5124_v40 = vpop.f32.mrf.mxu1 }
 0x689   :  { %5467 = vst [vmem:[#allocation7 + $0x350] sm:$0xff] %v5296_v9  ;;  %v5125_v0 = vadd.f32 %v5124_v40, %v4723_v3  ;;  %v3149_v12 = vadd.f32 %v5892_v18, %v2125_v32 }
 0x68a   :  { %6144 = vmatmul.msk.f32.gmra.mxu2 %vm4174_vm4, %v4169_v63 }
 0x68b   :  { %6272 = vmatmul.msk.f32.gmra.mxu3 %vm4174_vm4, %v4169_v63  ;;  %5410 = vst [vmem:[#allocation7 + $0x188] sm:$0xff] %v5125_v0  ;;  %v4173_v63 = vadd.f32 %v6020_v31, %v3149_v12 }
 0x68d   :  { %v4897_v2 = vpop.f32.mrf.mxu2 }
 0x68e   :  { %v5298_v44 = vpop.f32.mrf.mxu3 }
 0x68f   :  { %v5299_v6 = vadd.f32 %v5298_v44, %v4897_v2  ;;  %v4726_v37 = vpop.f32.mrf.mxu0 }
 0x690   :  { %v5127_v56 = vpop.f32.mrf.mxu1 }
 0x691   :  { %5468 = vst [vmem:[#allocation7 + $0x358] sm:$0xff] %v5299_v6  ;;  %v5128_v21 = vadd.f32 %v5127_v56, %v4726_v37 }
 0x692   :  { %6145 = vmatmul.msk.f32.gmra.mxu2 %vm4174_vm4, %v4170_v46 }
 0x693   :  { %6273 = vmatmul.msk.f32.gmra.mxu3 %vm4174_vm4, %v4170_v46  ;;  %5411 = vst [vmem:[#allocation7 + $0x190] sm:$0xff] %v5128_v21 }
 0x695   :  { %v4900_v16 = vpop.f32.mrf.mxu2 }
 0x696   :  { %v5301_v11 = vpop.f32.mrf.mxu3 }
 0x697   :  { %v5302_v47 = vadd.f32 %v5301_v11, %v4900_v16  ;;  %v4729_v59 = vpop.f32.mrf.mxu0 }
 0x698   :  { %v5130_v62 = vpop.f32.mrf.mxu1 }
 0x699   :  { %5469 = vst [vmem:[#allocation7 + $0x360] sm:$0xff] %v5302_v47  ;;  %v5131_v33 = vadd.f32 %v5130_v62, %v4729_v59 }
 0x69a   :  { %6146 = vmatmul.msk.f32.gmra.mxu2 %vm4174_vm4, %v4171_v41 }
 0x69b   :  { %6274 = vmatmul.msk.f32.gmra.mxu3 %vm4174_vm4, %v4171_v41  ;;  %5412 = vst [vmem:[#allocation7 + $0x198] sm:$0xff] %v5131_v33 }
 0x69d   :  { %v4903_v19 = vpop.f32.mrf.mxu2 }
 0x69e   :  { %v5304_v5 = vpop.f32.mrf.mxu3 }
 0x69f   :  { %v5305_v50 = vadd.f32 %v5304_v5, %v4903_v19  ;;  %v4732_v38 = vpop.f32.mrf.mxu0 }
 0x6a0   :  { %v5133_v34 = vpop.f32.mrf.mxu1 }
 0x6a1   :  { %5470 = vst [vmem:[#allocation7 + $0x368] sm:$0xff] %v5305_v50  ;;  %v5134_v10 = vadd.f32 %v5133_v34, %v4732_v38 }
 0x6a2   :  { %6147 = vmatmul.msk.f32.gmra.mxu2 %vm4174_vm4, %v4172_v35 }
 0x6a3   :  { %6275 = vmatmul.msk.f32.gmra.mxu3 %vm4174_vm4, %v4172_v35  ;;  %5413 = vst [vmem:[#allocation7 + $0x1a0] sm:$0xff] %v5134_v10 }
 0x6a5   :  { %v4906_v8 = vpop.f32.mrf.mxu2 }
 0x6a6   :  { %v5307_v23 = vpop.f32.mrf.mxu3 }
 0x6a7   :  { %v5308_v9 = vadd.f32 %v5307_v23, %v4906_v8  ;;  %v4735_v7 = vpop.f32.mrf.mxu0 }
 0x6a8   :  { %v5136_v3 = vpop.f32.mrf.mxu1 }
 0x6a9   :  { %5471 = vst [vmem:[#allocation7 + $0x370] sm:$0xff] %v5308_v9  ;;  %v5137_v52 = vadd.f32 %v5136_v3, %v4735_v7 }
 0x6aa   :  { %6148 = vmatmul.msk.f32.gmra.mxu2 %vm4174_vm4, %v4173_v63 }
 0x6ab   :  { %6276 = vmatmul.msk.f32.gmra.mxu3 %vm4174_vm4, %v4173_v63  ;;  %5414 = vst [vmem:[#allocation7 + $0x1a8] sm:$0xff] %v5137_v52 }
 0x6ad   :  { %v4909_v40 = vpop.f32.mrf.mxu2 }
 0x6ae   :  { %v5310_v0 = vpop.f32.mrf.mxu3 }
 0x6af   :  { %v5311_v20 = vadd.f32 %v5310_v0, %v4909_v40  ;;  %v4738_v29 = vpop.f32.mrf.mxu0 }
 0x6b0   :  { %v5139_v42 = vpop.f32.mrf.mxu1 }
 0x6b1   :  { %5472 = vst [vmem:[#allocation7 + $0x378] sm:$0xff] %v5311_v20  ;;  %v5140_v36 = vadd.f32 %v5139_v42, %v4738_v29 }
 0x6b3   :  { %5415 = vst [vmem:[#allocation7 + $0x1b0] sm:$0xff] %v5140_v36 }
 0x6b5   :  { %v4912_v39 = vpop.f32.mrf.mxu2 }
 0x6b6   :  { %v5313_v2 = vpop.f32.mrf.mxu3 }
 0x6b7   :  { %v5314_v14 = vadd.f32 %v5313_v2, %v4912_v39  ;;  %v4741_v58 = vpop.f32.mrf.mxu0 }
 0x6b8   :  { %v5142_v44 = vpop.f32.mrf.mxu1 }
 0x6b9   :  { %5473 = vst [vmem:[#allocation7 + $0x380] sm:$0xff] %v5314_v14  ;;  %v5143_v4 = vadd.f32 %v5142_v44, %v4741_v58 }
 0x6bb   :  { %5416 = vst [vmem:[#allocation7 + $0x1b8] sm:$0xff] %v5143_v4 }
 0x6bd   :  { %v4915_v30 = vpop.f32.mrf.mxu2 }
 0x6be   :  { %v5316_v46 = vpop.f32.mrf.mxu3 }
 0x6bf   :  { %v5317_v6 = vadd.f32 %v5316_v46, %v4915_v30  ;;  %v4744_v37 = vpop.f32.mrf.mxu0 }
 0x6c0   :  { %v5145_v51 = vpop.f32.mrf.mxu1 }
 0x6c1   :  { %5474 = vst [vmem:[#allocation7 + $0x388] sm:$0xff] %v5317_v6  ;;  %v5146_v56 = vadd.f32 %v5145_v51, %v4744_v37 }
 0x6c3   :  { %5417 = vst [vmem:[#allocation7 + $0x1c0] sm:$0xff] %v5146_v56 }
 0x6c5   :  { %v4918_v21 = vpop.f32.mrf.mxu2 }
 0x6c6   :  { %v5319_v48 = vpop.f32.mrf.mxu3 }
 0x6c7   :  { %v5320_v17 = vadd.f32 %v5319_v48, %v4918_v21  ;;  %v4747_v53 = vpop.f32.mrf.mxu0 }
 0x6c8   :  { %v5148_v1 = vpop.f32.mrf.mxu1 }
 0x6c9   :  { %5475 = vst [vmem:[#allocation7 + $0x390] sm:$0xff] %v5320_v17  ;;  %v5149_v16 = vadd.f32 %v5148_v1, %v4747_v53 }
 0x6cb   :  { %5418 = vst [vmem:[#allocation7 + $0x1c8] sm:$0xff] %v5149_v16 }
 0x6cd   :  { %v4921_v22 = vpop.f32.mrf.mxu2 }
 0x6ce   :  { %v5322_v54 = vpop.f32.mrf.mxu3 }
 0x6cf   :  { %v5323_v11 = vadd.f32 %v5322_v54, %v4921_v22  ;;  %v4750_v27 = vpop.f32.mrf.mxu0 }
 0x6d0   :  { %v5151_v13 = vpop.f32.mrf.mxu1 }
 0x6d1   :  { %5476 = vst [vmem:[#allocation7 + $0x398] sm:$0xff] %v5323_v11  ;;  %v5152_v41 = vadd.f32 %v5151_v13, %v4750_v27 }
 0x6d3   :  { %5419 = vst [vmem:[#allocation7 + $0x1d0] sm:$0xff] %v5152_v41 }
 0x6d5   :  { %v4924_v47 = vpop.f32.mrf.mxu2 }
 0x6d6   :  { %v5325_v59 = vpop.f32.mrf.mxu3 }
 0x6d7   :  { %v5326_v61 = vadd.f32 %v5325_v59, %v4924_v47  ;;  %v4753_v62 = vpop.f32.mrf.mxu0 }
 0x6d8   :  { %v5154_v33 = vpop.f32.mrf.mxu1 }
 0x6d9   :  { %5477 = vst [vmem:[#allocation7 + $0x3a0] sm:$0xff] %v5326_v61  ;;  %v5155_v57 = vadd.f32 %v5154_v33, %v4753_v62 }
 0x6db   :  { %5420 = vst [vmem:[#allocation7 + $0x1d8] sm:$0xff] %v5155_v57 }
 0x6dd   :  { %v4927_v26 = vpop.f32.mrf.mxu2 }
 0x6de   :  { %v5328_v25 = vpop.f32.mrf.mxu3 }
 0x6df   :  { %v5329_v43 = vadd.f32 %v5328_v25, %v4927_v26  ;;  %v4756_v19 = vpop.f32.mrf.mxu0 }
 0x6e0   :  { %v5157_v28 = vpop.f32.mrf.mxu1 }
 0x6e1   :  { %5478 = vst [vmem:[#allocation7 + $0x3a8] sm:$0xff] %v5329_v43  ;;  %v5158_v55 = vadd.f32 %v5157_v28, %v4756_v19 }
 0x6e3   :  { %5421 = vst [vmem:[#allocation7 + $0x1e0] sm:$0xff] %v5158_v55 }
 0x6e5   :  { %v4930_v49 = vpop.f32.mrf.mxu2 }
 0x6e6   :  { %v5331_v5 = vpop.f32.mrf.mxu3 }
 0x6e7   :  { %v5332_v15 = vadd.f32 %v5331_v5, %v4930_v49  ;;  %v4759_v24 = vpop.f32.mrf.mxu0 }
 0x6e8   :  { %v5160_v35 = vpop.f32.mrf.mxu1 }
 0x6e9   :  { %5479 = vst [vmem:[#allocation7 + $0x3b0] sm:$0xff] %v5332_v15  ;;  %v5161_v50 = vadd.f32 %v5160_v35, %v4759_v24 }
 0x6eb   :  { %5422 = vst [vmem:[#allocation7 + $0x1e8] sm:$0xff] %v5161_v50 }
 0x6ed   :  { %v4933_v38 = vpop.f32.mrf.mxu2 }
 0x6ee   :  { %v5334_v45 = vpop.f32.mrf.mxu3 }
 0x6ef   :  { %v5335_v34 = vadd.f32 %v5334_v45, %v4933_v38  ;;  %v4762_v10 = vpop.f32.mrf.mxu0 }
 0x6f0   :  { %v5163_v60 = vpop.f32.mrf.mxu1 }
 0x6f1   :  { %5480 = vst [vmem:[#allocation7 + $0x3b8] sm:$0xff] %v5335_v34  ;;  %v5164_v18 = vadd.f32 %v5163_v60, %v4762_v10 }
 0x6f3   :  { %5423 = vst [vmem:[#allocation7 + $0x1f0] sm:$0xff] %v5164_v18 }
 0x6f5   :  { %v4936_v32 = vpop.f32.mrf.mxu2 }
 0x6f6   :  { %v5337_v31 = vpop.f32.mrf.mxu3 }
 0x6f7   :  { %v5338_v8 = vadd.f32 %v5337_v31, %v4936_v32  ;;  %v4765_v12 = vpop.f32.mrf.mxu0 }
 0x6f8   :  { %v5166_v23 = vpop.f32.mrf.mxu1 }
 0x6f9   :  { %5481 = vst [vmem:[#allocation7 + $0x3c0] sm:$0xff] %v5338_v8  ;;  %v5167_v63 = vadd.f32 %v5166_v23, %v4765_v12 }
 0x6fb   :  { %5424 = vst [vmem:[#allocation7 + $0x1f8] sm:$0xff] %v5167_v63 }
 0x6fd   :  { %v4939_v9 = vpop.f32.mrf.mxu2 }
 0x6fe   :  { %v5340_v7 = vpop.f32.mrf.mxu3 }
 0x6ff   :  { %v5341_v3 = vadd.f32 %v5340_v7, %v4939_v9 }
 0x701   :  { %5482 = vst [vmem:[#allocation7 + $0x3c8] sm:$0xff] %v5341_v3 }
 0x705   :  { %v4942_v52 = vpop.f32.mrf.mxu2 }
 0x706   :  { %v5343_v40 = vpop.f32.mrf.mxu3 }
 0x707   :  { %v5344_v0 = vadd.f32 %v5343_v40, %v4942_v52 }
 0x709   :  { %5483 = vst [vmem:[#allocation7 + $0x3d0] sm:$0xff] %v5344_v0 }
 0x70d   :  { %v4945_v20 = vpop.f32.mrf.mxu2 }
 0x70e   :  { %v5346_v29 = vpop.f32.mrf.mxu3 }
 0x70f   :  { %v5347_v42 = vadd.f32 %v5346_v29, %v4945_v20 }
 0x711   :  { %5484 = vst [vmem:[#allocation7 + $0x3d8] sm:$0xff] %v5347_v42 }
 0x715   :  { %v4948_v36 = vpop.f32.mrf.mxu2 }
 0x716   :  { %v5349_v39 = vpop.f32.mrf.mxu3 }
 0x717   :  { %v5350_v2 = vadd.f32 %v5349_v39, %v4948_v36 }
 0x719   :  { %5485 = vst [vmem:[#allocation7 + $0x3e0] sm:$0xff] %v5350_v2 }
 0x71d   :  { %v4951_v14 = vpop.f32.mrf.mxu2 }
 0x71e   :  { %v5352_v58 = vpop.f32.mrf.mxu3 }
 0x71f   :  { %v5353_v44 = vadd.f32 %v5352_v58, %v4951_v14 }
 0x721   :  { %5486 = vst [vmem:[#allocation7 + $0x3e8] sm:$0xff] %v5353_v44 }
 0x725   :  { %v4954_v4 = vpop.f32.mrf.mxu2 }
 0x726   :  { %v5355_v30 = vpop.f32.mrf.mxu3 }
 0x727   :  { %v5356_v46 = vadd.f32 %v5355_v30, %v4954_v4 }
 0x729   :  { %5487 = vst [vmem:[#allocation7 + $0x3f0] sm:$0xff] %v5356_v46 }
 0x72d   :  { %v4957_v6 = vpop.f32.mrf.mxu2 }
 0x72e   :  { %v5358_v37 = vpop.f32.mrf.mxu3 }
 0x72f   :  { %v5359_v51 = vadd.f32 %v5358_v37, %v4957_v6 }
 0x731   :  { %5488 = vst [vmem:[#allocation7 + $0x3f8] sm:$0xff] %v5359_v51 }
 0x732   :  { %5492 = vsyncadd [#allocation4], 16320  ;;  %s5495_s23 = sshll.u32 %s10849_s2, 4  ;;  %s6608_s24 = smov [#allocation7]   ;;  %s5496_s23 = int_to_ptr.hbm [resolvable:$true] %s5495_s23 }
 0x733   :  { %s5493_s25 = sshll.u32 %s6608_s24, 4  ;;  %s5494_s25 = int_to_ptr.vmem [resolvable:$true] %s5493_s25 }
 0x734   :  { %5501 = dma.vmem_to_hbm [thread:$0]  %s5494_s25, 64, %s5496_s23, [#allocation4], %s6598_s17, %s6598_s17, %s6599_s18  }
 0x735   :  { %6595 = dma.done.wait [#allocation4], 16384  }
 0x736   :  { %6596 = vsyncadd [#allocation4], 4294950912 }
 0x737   :  { %5506 = vsyncpa [#allocation3], 1 }
 0x738   :  { %5507 = vsyncpa [#allocation6], 1 }
 0x739   :  { %5508 = vsyncpa [#allocation4], 1 }

</bundles_post_ra>
